<compile_context>
chip_gen: v7x
topology: tpu7x:2x2x1
jax: 0.10.0
libtpu: 0.0.40
codegen_flags: <defaults>
</compile_context>

<pallas_src>
import functools

import numpy as np
import jax
import jax.numpy as jnp
from jax.experimental import pallas as pl
from jax.experimental.pallas import tpu as pltpu

F32 = jnp.float32
BF16 = jnp.bfloat16
_EPS = 1e-5
_VMEM = pl.BlockSpec(memory_space=pltpu.MemorySpace.VMEM)

_PARAM_ORDER = (
    "w1", "b1", "g1", "be1",
    "w2", "b2", "g2", "be2", "g2T",
    "w_fc1", "b_fc1", "selT",
    "w_fc2", "b_fc2", "place",
    "wd1", "bd1", "g3", "be3", "gd1T",
    "wd2", "bd2", "g4", "be4", "gd2T",
    "wd3", "bd3",
)


# ----------------------- constant gather-matrix builders --------------------
def _deconv_src(stride, pad):
    # ConvTranspose2d: output (oy) receives input (iy) at tap ti iff
    # oy == iy*stride - pad + ti.
    def src(oy, ox, ti, tj):
        y, x = oy + pad - ti, ox + pad - tj
        if y % stride or x % stride or y < 0 or x < 0:
            return None
        return y // stride, x // stride
    return src


def _conv_gather_T(n, hin, win, hout, wout, k, src_fn):
    # g[t, m_in, m_out] = 1 iff input pixel m_in feeds output pixel m_out at tap t.
    g = np.zeros((k * k, n * hin * win, n * hout * wout), np.float32)
    for ti in range(k):
        for tj in range(k):
            t = ti * k + tj
            for b in range(n):
                for oy in range(hout):
                    for ox in range(wout):
                        s = src_fn(oy, ox, ti, tj)
                        if s is None:
                            continue
                        iy, ix = s
                        if 0 <= iy < hin and 0 <= ix < win:
                            g[t, (b * hin + iy) * win + ix,
                              (b * hout + oy) * wout + ox] = 1.0
    return g


def _conv2_gather_T(n):
    # Conv2d(16,8,3,s2,p1) on 5x5 -> 3x3, fused with MaxPool2d(2, stride=1):
    # one gather set per pool-window offset q=(qi,qj); outputs indexed by the
    # 2x2 pool-output coords.
    g = np.zeros((4, 9, n * 25, n * 4), np.float32)
    for qi in range(2):
        for qj in range(2):
            for ti in range(3):
                for tj in range(3):
                    for b in range(n):
                        for i in range(2):
                            for j in range(2):
                                iy = (i + qi) * 2 - 1 + ti
                                ix = (j + qj) * 2 - 1 + tj
                                if 0 <= iy < 5 and 0 <= ix < 5:
                                    g[qi * 2 + qj, ti * 3 + tj,
                                      (b * 5 + iy) * 5 + ix,
                                      (b * 2 + i) * 2 + j] = 1.0
    return g.reshape(36, n * 25, n * 4)


def _fc_select_T(n):
    # selT[s, m, b] = 1 iff lane m == b*4 + s   (pick spatial position s)
    s = np.zeros((4, n * 4, n), np.float32)
    for k in range(4):
        for b in range(n):
            s[k, b * 4 + k, b] = 1.0
    return s


def _fc_place(n):
    # place[s, b, m] = 1 iff lane m == b*4 + s  (scatter block s to its lanes)
    p = np.zeros((4, n, n * 4), np.float32)
    for k in range(4):
        for b in range(n):
            p[k, b, b * 4 + k] = 1.0
    return p


# ------------------------------ parameter init ------------------------------
def init_params(key, n):
    ks = jax.random.split(key, 14)

    def unif(k, shape, fan_in):
        b = 1.0 / np.sqrt(float(fan_in))
        return jax.random.uniform(k, shape, F32, -b, b)

    # raw PyTorch-layout weights (default nn init: U(-1/sqrt(fan_in), +..))
    c1_w = unif(ks[0], (16, 1, 3, 3), 9);      c1_b = unif(ks[1], (16,), 9)
    c2_w = unif(ks[2], (8, 16, 3, 3), 144);    c2_b = unif(ks[3], (8,), 144)
    fc1_w = unif(ks[4], (2, 32), 32);          fc1_b = unif(ks[5], (2,), 32)
    fc2_w = unif(ks[6], (32, 2), 2);           fc2_b = unif(ks[7], (32,), 2)
    d1_w = unif(ks[8], (8, 16, 3, 3), 144);    d1_b = unif(ks[9], (16,), 144)
    d2_w = unif(ks[10], (16, 8, 5, 5), 200);   d2_b = unif(ks[11], (8,), 200)
    d3_w = unif(ks[12], (8, 1, 2, 2), 4);      d3_b = unif(ks[13], (1,), 4)

    p = {}
    # conv1: taps on K axis, padded 9->16 for sublane alignment
    w1 = c1_w[:, 0].reshape(16, 9)
    p["w1"] = jnp.pad(w1, ((0, 0), (0, 7))).astype(BF16)           # (16,16)
    p["b1"] = c1_b.reshape(16, 1)
    p["g1"], p["be1"] = jnp.ones((16, 1), F32), jnp.zeros((16, 1), F32)
    # conv2 (+ fused MaxPool2d(2,1))
    p["w2"] = jnp.transpose(c2_w, (2, 3, 0, 1)).reshape(9, 8, 16).astype(BF16)
    p["b2"] = c2_b.reshape(8, 1)
    p["g2"], p["be2"] = jnp.ones((8, 1), F32), jnp.zeros((8, 1), F32)
    p["g2T"] = jnp.asarray(_conv2_gather_T(n), BF16)               # (36, 25n, 4n)
    # Flatten + Linear(32, 2)
    p["w_fc1"] = jnp.transpose(fc1_w.reshape(2, 8, 4), (2, 0, 1)).astype(BF16)  # (4,2,8)
    p["b_fc1"] = fc1_b.reshape(2, 1)
    p["selT"] = jnp.asarray(_fc_select_T(n), BF16)                 # (4, 4n, n)
    # Linear(2, 32) + Unflatten
    p["w_fc2"] = jnp.transpose(fc2_w.reshape(8, 4, 2), (1, 0, 2)).astype(BF16)  # (4,8,2)
    p["b_fc2"] = jnp.transpose(fc2_b.reshape(8, 4), (1, 0))[:, :, None]         # (4,8,1)
    p["place"] = jnp.asarray(_fc_place(n), BF16)                   # (4, n, 4n)
    # ConvTranspose2d(8,16,3,s2)
    p["wd1"] = jnp.transpose(d1_w, (2, 3, 1, 0)).reshape(9, 16, 8).astype(BF16)
    p["bd1"] = d1_b.reshape(16, 1)
    p["g3"], p["be3"] = jnp.ones((16, 1), F32), jnp.zeros((16, 1), F32)
    p["gd1T"] = jnp.asarray(
        _conv_gather_T(n, 2, 2, 5, 5, 3, _deconv_src(2, 0)), BF16)  # (9, 4n, 25n)
    # ConvTranspose2d(16,8,5,s3,p1)
    p["wd2"] = jnp.transpose(d2_w, (2, 3, 1, 0)).reshape(25, 8, 16).astype(BF16)
    p["bd2"] = d2_b.reshape(8, 1)
    p["g4"], p["be4"] = jnp.ones((8, 1), F32), jnp.zeros((8, 1), F32)
    p["gd2T"] = jnp.asarray(
        _conv_gather_T(n, 5, 5, 15, 15, 5, _deconv_src(3, 1)), BF16)  # (25, 25n, 225n)
    # ConvTranspose2d(8,1,2,s2,p1): stride==kernel -> each output pixel has
    # exactly one (parity) tap, so it is a single (4,8) matmul per pixel plane.
    p["wd3"] = jnp.transpose(d3_w, (2, 3, 1, 0)).reshape(4, 8).astype(BF16)
    p["bd3"] = d3_b.reshape(1, 1)
    return p


# ------------------------------ the fused kernel -----------------------------
def _fused_autoencoder_kernel(patches_ref, *rest, n):
    (w1_r, b1_r, g1_r, be1_r,
     w2_r, b2_r, g2_r, be2_r, g2t_r,
     wf1_r, bf1_r, sel_r,
     wf2_r, bf2_r, plc_r,
     wd1_r, bd1_r, g3_r, be3_r, gd1t_r,
     wd2_r, bd2_r, g4_r, be4_r, gd2t_r,
     wd3_r, bd3_r, o_ref) = rest

    def mm(a, b):
        return jnp.dot(a.astype(BF16), b.astype(BF16),
                       preferred_element_type=F32)

    def bn(x, g, b):
        m = jnp.mean(x, axis=1, keepdims=True)
        v = jnp.mean((x - m) * (x - m), axis=1, keepdims=True)
        return (x - m) * jax.lax.rsqrt(v + _EPS) * g + b

    def relu(x):
        return jnp.maximum(x, 0.0)

    # ---------------- encoder ----------------
    # Conv2d(1,16,3,s3,p1) + ReLU + MaxPool2d(2,2): patches are pre-grouped by
    # pool-window offset q -> the pool is an elementwise max of 4 conv outputs.
    w1 = w1_r[...]
    b1 = b1_r[...]
    ys = [relu(mm(w1, patches_ref[q]) + b1) for q in range(4)]
    p1 = jnp.maximum(jnp.maximum(ys[0], ys[1]), jnp.maximum(ys[2], ys[3]))
    z1 = bn(p1, g1_r[...], be1_r[...])                       # (16, 25n)

    # Conv2d(16,8,3,s2,p1) + ReLU + MaxPool2d(2,1) + BN(8)
    a_t = [mm(w2_r[t], z1) for t in range(9)]                # 9 x (8, 25n)
    m2 = None
    for q in range(4):
        acc = jnp.zeros((8, 4 * n), F32)
        for t in range(9):
            acc = acc + mm(a_t[t], g2t_r[q * 9 + t])
        m2 = acc if m2 is None else jnp.maximum(m2, acc)
    z2 = bn(relu(m2 + b2_r[...]), g2_r[...], be2_r[...])     # (8, 4n)

    # Flatten (C,H,W order) + Linear(32, 2)
    code = jnp.zeros((2, n), F32)
    for s in range(4):
        code = code + mm(mm(wf1_r[s], z2), sel_r[s])
    code = code + bf1_r[...]                                 # (2, n)

    # ---------------- decoder ----------------
    # Linear(2, 32) + ReLU + Unflatten(1, (8,2,2)) -> (8 ch, 4n pixels)
    d1in = jnp.zeros((8, 4 * n), F32)
    for s in range(4):
        blk = mm(wf2_r[s], code) + bf2_r[s]                  # (8, n)
        d1in = d1in + mm(blk, plc_r[s])                      # placed into its lanes
    d1in = relu(d1in)

    # ConvTranspose2d(8,16,3,s2) + ReLU + BN(16)
    acc = jnp.zeros((16, 25 * n), F32)
    for t in range(9):
        acc = acc + mm(mm(wd1_r[t], d1in), gd1t_r[t])
    z3 = bn(relu(acc + bd1_r[...]), g3_r[...], be3_r[...])   # (16, 25n)

    # ConvTranspose2d(16,8,5,s3,p1) + ReLU + BN(8)
    acc = jnp.zeros((8, 225 * n), F32)
    for t in range(25):
        acc = acc + mm(mm(wd2_r[t], z3), gd2t_r[t])
    z4 = bn(relu(acc + bd2_r[...]), g4_r[...], be4_r[...])   # (8, 225n)

    # ConvTranspose2d(8,1,2,s2,p1) + Sigmoid: one matmul, 4 parity planes
    logits = mm(wd3_r[...], z4) + bd3_r[...]                 # (4, 225n)
    sig = pl.reciprocal(1.0 + jnp.exp(-logits), approx=True)
    o_ref[...] = jnp.clip(sig, 0.0, 1.0)


# ------------------------------- public forward ------------------------------
def conv_autoencoder_forward(x_nchw, params):
    n = x_nchw.shape[0]

    # Input-boundary glue: im2col for the first conv, grouped by pool-window
    # offset q so the kernel-side MaxPool is a plain elementwise max.
    xp = jnp.pad(x_nchw[:, 0], ((0, 0), (1, 1), (1, 1)))              # (n,30,30)
    xp = xp.reshape(n, 5, 2, 3, 5, 2, 3)                              # n,i,qi,ti,j,qj,tj
    patches = jnp.transpose(xp, (2, 5, 3, 6, 0, 1, 4)).reshape(4, 9, n * 25)
    patches = jnp.pad(patches, ((0, 0), (0, 7), (0, 0))).astype(BF16)  # (4,16,25n)

    args = [patches] + [params[k] for k in _PARAM_ORDER]
    out = pl.pallas_call(
        functools.partial(_fused_autoencoder_kernel, n=n),
        out_shape=jax.ShapeDtypeStruct((4, n * 225), F32),
        in_specs=[_VMEM] * len(args),
        out_specs=_VMEM,
    )(*args)

    # Output-boundary glue: interleave the 4 parity planes of the final
    # ConvTranspose2d (stride==kernel==2, pad=1) back into NCHW.
    y = out.reshape(2, 2, n, 15, 15)                                  # (ti,tj,n,iy,ix)
    full = jnp.zeros((n, 30, 30), F32)
    for ti in range(2):
        for tj in range(2):
            full = full.at[:, ti::2, tj::2].set(y[ti, tj])
    return full[:, 1:29, 1:29][:, None, :, :]                         # (n,1,28,28)


if __name__ == "__main__":
    key = jax.random.PRNGKey(0)
    pkey, xkey = jax.random.split(key)
    x = jax.random.normal(xkey, (2, 1, 28, 28), F32)    # NCHW, MNIST-sized
    params = init_params(pkey, n=x.shape[0])

    fwd = jax.jit(conv_autoencoder_forward)
    y = jax.block_until_ready(fwd(x, params))

    assert y.shape == (2, 1, 28, 28), y.shape
    assert bool(jnp.all(jnp.isfinite(y)))
    assert bool(jnp.all((y >= 0.0) & (y <= 1.0)))       # sigmoid output range
    print("KERNEL_OK")
</pallas_src>

<mosaic_0001>
module attributes {stable_mosaic.version = 11 : i64} {
  func.func @_fused_autoencoder_kernel(%arg0: memref<4x16x50xbf16, #tpu.memory_space<vmem>>, %arg1: memref<16x16xbf16, #tpu.memory_space<vmem>>, %arg2: memref<16x1xf32, #tpu.memory_space<vmem>>, %arg3: memref<16x1xf32, #tpu.memory_space<vmem>>, %arg4: memref<16x1xf32, #tpu.memory_space<vmem>>, %arg5: memref<9x8x16xbf16, #tpu.memory_space<vmem>>, %arg6: memref<8x1xf32, #tpu.memory_space<vmem>>, %arg7: memref<8x1xf32, #tpu.memory_space<vmem>>, %arg8: memref<8x1xf32, #tpu.memory_space<vmem>>, %arg9: memref<36x50x8xbf16, #tpu.memory_space<vmem>>, %arg10: memref<4x2x8xbf16, #tpu.memory_space<vmem>>, %arg11: memref<2x1xf32, #tpu.memory_space<vmem>>, %arg12: memref<4x8x2xbf16, #tpu.memory_space<vmem>>, %arg13: memref<4x8x2xbf16, #tpu.memory_space<vmem>>, %arg14: memref<4x8x1xf32, #tpu.memory_space<vmem>>, %arg15: memref<4x2x8xbf16, #tpu.memory_space<vmem>>, %arg16: memref<9x16x8xbf16, #tpu.memory_space<vmem>>, %arg17: memref<16x1xf32, #tpu.memory_space<vmem>>, %arg18: memref<16x1xf32, #tpu.memory_space<vmem>>, %arg19: memref<16x1xf32, #tpu.memory_space<vmem>>, %arg20: memref<9x8x50xbf16, #tpu.memory_space<vmem>>, %arg21: memref<25x8x16xbf16, #tpu.memory_space<vmem>>, %arg22: memref<8x1xf32, #tpu.memory_space<vmem>>, %arg23: memref<8x1xf32, #tpu.memory_space<vmem>>, %arg24: memref<8x1xf32, #tpu.memory_space<vmem>>, %arg25: memref<25x50x450xbf16, #tpu.memory_space<vmem>>, %arg26: memref<4x8xbf16, #tpu.memory_space<vmem>>, %arg27: memref<1x1xf32, #tpu.memory_space<vmem>>, %arg28: memref<4x450xf32, #tpu.memory_space<vmem>>) attributes {dimension_semantics = [], scalar_prefetch = 0 : i64, scratch_operands = 0 : i64, tpu.core_type = #tpu.core_type<tc>} {
    %c0 = arith.constant 0 : index
    %c0_0 = arith.constant 0 : index
    %0 = vector.load %arg1[%c0, %c0_0] : memref<16x16xbf16, #tpu.memory_space<vmem>>, vector<16x16xbf16>
    %c0_1 = arith.constant 0 : index
    %c0_2 = arith.constant 0 : index
    %1 = vector.load %arg2[%c0_1, %c0_2] : memref<16x1xf32, #tpu.memory_space<vmem>>, vector<16x1xf32>
    %c0_3 = arith.constant 0 : index
    %c0_4 = arith.constant 0 : index
    %c0_5 = arith.constant 0 : index
    %2 = vector.load %arg0[%c0_3, %c0_4, %c0_5] : memref<4x16x50xbf16, #tpu.memory_space<vmem>>, vector<1x16x50xbf16>
    %3 = vector.shape_cast %2 : vector<1x16x50xbf16> to vector<16x50xbf16>
    %cst = arith.constant dense<0.000000e+00> : vector<16x50xf32>
    %4 = tpu.matmul %0, %3, %cst {dimension_numbers = #tpu.dot_dimension_numbers<[1], [0], [0], [1], [0, 0, 1, 1], [], []>} : vector<16x16xbf16>, vector<16x50xbf16>, vector<16x50xf32> -> vector<16x50xf32>
    %5 = vector.broadcast %1 : vector<16x1xf32> to vector<16x50xf32>
    %6 = arith.addf %4, %5 : vector<16x50xf32>
    %cst_6 = arith.constant 0.000000e+00 : f32
    %7 = vector.broadcast %cst_6 : f32 to vector<16x50xf32>
    %8 = arith.maximumf %6, %7 : vector<16x50xf32>
    %c1 = arith.constant 1 : index
    %c0_7 = arith.constant 0 : index
    %c0_8 = arith.constant 0 : index
    %9 = vector.load %arg0[%c1, %c0_7, %c0_8] : memref<4x16x50xbf16, #tpu.memory_space<vmem>>, vector<1x16x50xbf16>
    %10 = vector.shape_cast %9 : vector<1x16x50xbf16> to vector<16x50xbf16>
    %cst_9 = arith.constant dense<0.000000e+00> : vector<16x50xf32>
    %11 = tpu.matmul %0, %10, %cst_9 {dimension_numbers = #tpu.dot_dimension_numbers<[1], [0], [0], [1], [0, 0, 1, 1], [], []>} : vector<16x16xbf16>, vector<16x50xbf16>, vector<16x50xf32> -> vector<16x50xf32>
    %12 = vector.broadcast %1 : vector<16x1xf32> to vector<16x50xf32>
    %13 = arith.addf %11, %12 : vector<16x50xf32>
    %cst_10 = arith.constant 0.000000e+00 : f32
    %14 = vector.broadcast %cst_10 : f32 to vector<16x50xf32>
    %15 = arith.maximumf %13, %14 : vector<16x50xf32>
    %c2 = arith.constant 2 : index
    %c0_11 = arith.constant 0 : index
    %c0_12 = arith.constant 0 : index
    %16 = vector.load %arg0[%c2, %c0_11, %c0_12] : memref<4x16x50xbf16, #tpu.memory_space<vmem>>, vector<1x16x50xbf16>
    %17 = vector.shape_cast %16 : vector<1x16x50xbf16> to vector<16x50xbf16>
    %cst_13 = arith.constant dense<0.000000e+00> : vector<16x50xf32>
    %18 = tpu.matmul %0, %17, %cst_13 {dimension_numbers = #tpu.dot_dimension_numbers<[1], [0], [0], [1], [0, 0, 1, 1], [], []>} : vector<16x16xbf16>, vector<16x50xbf16>, vector<16x50xf32> -> vector<16x50xf32>
    %19 = vector.broadcast %1 : vector<16x1xf32> to vector<16x50xf32>
    %20 = arith.addf %18, %19 : vector<16x50xf32>
    %cst_14 = arith.constant 0.000000e+00 : f32
    %21 = vector.broadcast %cst_14 : f32 to vector<16x50xf32>
    %22 = arith.maximumf %20, %21 : vector<16x50xf32>
    %c3 = arith.constant 3 : index
    %c0_15 = arith.constant 0 : index
    %c0_16 = arith.constant 0 : index
    %23 = vector.load %arg0[%c3, %c0_15, %c0_16] : memref<4x16x50xbf16, #tpu.memory_space<vmem>>, vector<1x16x50xbf16>
    %24 = vector.shape_cast %23 : vector<1x16x50xbf16> to vector<16x50xbf16>
    %cst_17 = arith.constant dense<0.000000e+00> : vector<16x50xf32>
    %25 = tpu.matmul %0, %24, %cst_17 {dimension_numbers = #tpu.dot_dimension_numbers<[1], [0], [0], [1], [0, 0, 1, 1], [], []>} : vector<16x16xbf16>, vector<16x50xbf16>, vector<16x50xf32> -> vector<16x50xf32>
    %26 = vector.broadcast %1 : vector<16x1xf32> to vector<16x50xf32>
    %27 = arith.addf %25, %26 : vector<16x50xf32>
    %cst_18 = arith.constant 0.000000e+00 : f32
    %28 = vector.broadcast %cst_18 : f32 to vector<16x50xf32>
    %29 = arith.maximumf %27, %28 : vector<16x50xf32>
    %30 = arith.maximumf %8, %15 : vector<16x50xf32>
    %31 = arith.maximumf %22, %29 : vector<16x50xf32>
    %32 = arith.maximumf %30, %31 : vector<16x50xf32>
    %c0_19 = arith.constant 0 : index
    %c0_20 = arith.constant 0 : index
    %33 = vector.load %arg3[%c0_19, %c0_20] : memref<16x1xf32, #tpu.memory_space<vmem>>, vector<16x1xf32>
    %c0_21 = arith.constant 0 : index
    %c0_22 = arith.constant 0 : index
    %34 = vector.load %arg4[%c0_21, %c0_22] : memref<16x1xf32, #tpu.memory_space<vmem>>, vector<16x1xf32>
    %cst_23 = arith.constant dense<0.000000e+00> : vector<16xf32>
    %35 = vector.multi_reduction <add>, %32, %cst_23 [1] : vector<16x50xf32> to vector<16xf32>
    %36 = vector.shape_cast %35 : vector<16xf32> to vector<16x1xf32>
    %cst_24 = arith.constant 5.000000e+01 : f32
    %37 = vector.broadcast %cst_24 : f32 to vector<16x1xf32>
    %38 = arith.divf %36, %37 : vector<16x1xf32>
    %39 = vector.broadcast %38 : vector<16x1xf32> to vector<16x50xf32>
    %40 = arith.subf %32, %39 : vector<16x50xf32>
    %41 = vector.broadcast %38 : vector<16x1xf32> to vector<16x50xf32>
    %42 = arith.subf %32, %41 : vector<16x50xf32>
    %43 = arith.mulf %40, %42 : vector<16x50xf32>
    %cst_25 = arith.constant dense<0.000000e+00> : vector<16xf32>
    %44 = vector.multi_reduction <add>, %43, %cst_25 [1] : vector<16x50xf32> to vector<16xf32>
    %45 = vector.shape_cast %44 : vector<16xf32> to vector<16x1xf32>
    %cst_26 = arith.constant 5.000000e+01 : f32
    %46 = vector.broadcast %cst_26 : f32 to vector<16x1xf32>
    %47 = arith.divf %45, %46 : vector<16x1xf32>
    %48 = vector.broadcast %38 : vector<16x1xf32> to vector<16x50xf32>
    %49 = arith.subf %32, %48 : vector<16x50xf32>
    %cst_27 = arith.constant 9.99999974E-6 : f32
    %50 = vector.broadcast %cst_27 : f32 to vector<16x1xf32>
    %51 = arith.addf %47, %50 : vector<16x1xf32>
    %52 = math.rsqrt %51 : vector<16x1xf32>
    %53 = vector.broadcast %52 : vector<16x1xf32> to vector<16x50xf32>
    %54 = arith.mulf %49, %53 : vector<16x50xf32>
    %55 = vector.broadcast %33 : vector<16x1xf32> to vector<16x50xf32>
    %56 = arith.mulf %54, %55 : vector<16x50xf32>
    %57 = vector.broadcast %34 : vector<16x1xf32> to vector<16x50xf32>
    %58 = arith.addf %56, %57 : vector<16x50xf32>
    %c0_28 = arith.constant 0 : index
    %c0_29 = arith.constant 0 : index
    %c0_30 = arith.constant 0 : index
    %59 = vector.load %arg5[%c0_28, %c0_29, %c0_30] : memref<9x8x16xbf16, #tpu.memory_space<vmem>>, vector<1x8x16xbf16>
    %60 = vector.shape_cast %59 : vector<1x8x16xbf16> to vector<8x16xbf16>
    %61 = arith.truncf %58 : vector<16x50xf32> to vector<16x50xbf16>
    %cst_31 = arith.constant dense<0.000000e+00> : vector<8x50xf32>
    %62 = tpu.matmul %60, %61, %cst_31 {dimension_numbers = #tpu.dot_dimension_numbers<[1], [0], [0], [1], [0, 0, 1, 1], [], []>} : vector<8x16xbf16>, vector<16x50xbf16>, vector<8x50xf32> -> vector<8x50xf32>
    %c1_32 = arith.constant 1 : index
    %c0_33 = arith.constant 0 : index
    %c0_34 = arith.constant 0 : index
    %63 = vector.load %arg5[%c1_32, %c0_33, %c0_34] : memref<9x8x16xbf16, #tpu.memory_space<vmem>>, vector<1x8x16xbf16>
    %64 = vector.shape_cast %63 : vector<1x8x16xbf16> to vector<8x16xbf16>
    %65 = arith.truncf %58 : vector<16x50xf32> to vector<16x50xbf16>
    %cst_35 = arith.constant dense<0.000000e+00> : vector<8x50xf32>
    %66 = tpu.matmul %64, %65, %cst_35 {dimension_numbers = #tpu.dot_dimension_numbers<[1], [0], [0], [1], [0, 0, 1, 1], [], []>} : vector<8x16xbf16>, vector<16x50xbf16>, vector<8x50xf32> -> vector<8x50xf32>
    %c2_36 = arith.constant 2 : index
    %c0_37 = arith.constant 0 : index
    %c0_38 = arith.constant 0 : index
    %67 = vector.load %arg5[%c2_36, %c0_37, %c0_38] : memref<9x8x16xbf16, #tpu.memory_space<vmem>>, vector<1x8x16xbf16>
    %68 = vector.shape_cast %67 : vector<1x8x16xbf16> to vector<8x16xbf16>
    %69 = arith.truncf %58 : vector<16x50xf32> to vector<16x50xbf16>
    %cst_39 = arith.constant dense<0.000000e+00> : vector<8x50xf32>
    %70 = tpu.matmul %68, %69, %cst_39 {dimension_numbers = #tpu.dot_dimension_numbers<[1], [0], [0], [1], [0, 0, 1, 1], [], []>} : vector<8x16xbf16>, vector<16x50xbf16>, vector<8x50xf32> -> vector<8x50xf32>
    %c3_40 = arith.constant 3 : index
    %c0_41 = arith.constant 0 : index
    %c0_42 = arith.constant 0 : index
    %71 = vector.load %arg5[%c3_40, %c0_41, %c0_42] : memref<9x8x16xbf16, #tpu.memory_space<vmem>>, vector<1x8x16xbf16>
    %72 = vector.shape_cast %71 : vector<1x8x16xbf16> to vector<8x16xbf16>
    %73 = arith.truncf %58 : vector<16x50xf32> to vector<16x50xbf16>
    %cst_43 = arith.constant dense<0.000000e+00> : vector<8x50xf32>
    %74 = tpu.matmul %72, %73, %cst_43 {dimension_numbers = #tpu.dot_dimension_numbers<[1], [0], [0], [1], [0, 0, 1, 1], [], []>} : vector<8x16xbf16>, vector<16x50xbf16>, vector<8x50xf32> -> vector<8x50xf32>
    %c4 = arith.constant 4 : index
    %c0_44 = arith.constant 0 : index
    %c0_45 = arith.constant 0 : index
    %75 = vector.load %arg5[%c4, %c0_44, %c0_45] : memref<9x8x16xbf16, #tpu.memory_space<vmem>>, vector<1x8x16xbf16>
    %76 = vector.shape_cast %75 : vector<1x8x16xbf16> to vector<8x16xbf16>
    %77 = arith.truncf %58 : vector<16x50xf32> to vector<16x50xbf16>
    %cst_46 = arith.constant dense<0.000000e+00> : vector<8x50xf32>
    %78 = tpu.matmul %76, %77, %cst_46 {dimension_numbers = #tpu.dot_dimension_numbers<[1], [0], [0], [1], [0, 0, 1, 1], [], []>} : vector<8x16xbf16>, vector<16x50xbf16>, vector<8x50xf32> -> vector<8x50xf32>
    %c5 = arith.constant 5 : index
    %c0_47 = arith.constant 0 : index
    %c0_48 = arith.constant 0 : index
    %79 = vector.load %arg5[%c5, %c0_47, %c0_48] : memref<9x8x16xbf16, #tpu.memory_space<vmem>>, vector<1x8x16xbf16>
    %80 = vector.shape_cast %79 : vector<1x8x16xbf16> to vector<8x16xbf16>
    %81 = arith.truncf %58 : vector<16x50xf32> to vector<16x50xbf16>
    %cst_49 = arith.constant dense<0.000000e+00> : vector<8x50xf32>
    %82 = tpu.matmul %80, %81, %cst_49 {dimension_numbers = #tpu.dot_dimension_numbers<[1], [0], [0], [1], [0, 0, 1, 1], [], []>} : vector<8x16xbf16>, vector<16x50xbf16>, vector<8x50xf32> -> vector<8x50xf32>
    %c6 = arith.constant 6 : index
    %c0_50 = arith.constant 0 : index
    %c0_51 = arith.constant 0 : index
    %83 = vector.load %arg5[%c6, %c0_50, %c0_51] : memref<9x8x16xbf16, #tpu.memory_space<vmem>>, vector<1x8x16xbf16>
    %84 = vector.shape_cast %83 : vector<1x8x16xbf16> to vector<8x16xbf16>
    %85 = arith.truncf %58 : vector<16x50xf32> to vector<16x50xbf16>
    %cst_52 = arith.constant dense<0.000000e+00> : vector<8x50xf32>
    %86 = tpu.matmul %84, %85, %cst_52 {dimension_numbers = #tpu.dot_dimension_numbers<[1], [0], [0], [1], [0, 0, 1, 1], [], []>} : vector<8x16xbf16>, vector<16x50xbf16>, vector<8x50xf32> -> vector<8x50xf32>
    %c7 = arith.constant 7 : index
    %c0_53 = arith.constant 0 : index
    %c0_54 = arith.constant 0 : index
    %87 = vector.load %arg5[%c7, %c0_53, %c0_54] : memref<9x8x16xbf16, #tpu.memory_space<vmem>>, vector<1x8x16xbf16>
    %88 = vector.shape_cast %87 : vector<1x8x16xbf16> to vector<8x16xbf16>
    %89 = arith.truncf %58 : vector<16x50xf32> to vector<16x50xbf16>
    %cst_55 = arith.constant dense<0.000000e+00> : vector<8x50xf32>
    %90 = tpu.matmul %88, %89, %cst_55 {dimension_numbers = #tpu.dot_dimension_numbers<[1], [0], [0], [1], [0, 0, 1, 1], [], []>} : vector<8x16xbf16>, vector<16x50xbf16>, vector<8x50xf32> -> vector<8x50xf32>
    %c8 = arith.constant 8 : index
    %c0_56 = arith.constant 0 : index
    %c0_57 = arith.constant 0 : index
    %91 = vector.load %arg5[%c8, %c0_56, %c0_57] : memref<9x8x16xbf16, #tpu.memory_space<vmem>>, vector<1x8x16xbf16>
    %92 = vector.shape_cast %91 : vector<1x8x16xbf16> to vector<8x16xbf16>
    %93 = arith.truncf %58 : vector<16x50xf32> to vector<16x50xbf16>
    %cst_58 = arith.constant dense<0.000000e+00> : vector<8x50xf32>
    %94 = tpu.matmul %92, %93, %cst_58 {dimension_numbers = #tpu.dot_dimension_numbers<[1], [0], [0], [1], [0, 0, 1, 1], [], []>} : vector<8x16xbf16>, vector<16x50xbf16>, vector<8x50xf32> -> vector<8x50xf32>
    %cst_59 = arith.constant 0.000000e+00 : f32
    %95 = vector.broadcast %cst_59 : f32 to vector<8x8xf32>
    %c0_60 = arith.constant 0 : index
    %c0_61 = arith.constant 0 : index
    %c0_62 = arith.constant 0 : index
    %96 = vector.load %arg9[%c0_60, %c0_61, %c0_62] : memref<36x50x8xbf16, #tpu.memory_space<vmem>>, vector<1x50x8xbf16>
    %97 = vector.shape_cast %96 : vector<1x50x8xbf16> to vector<50x8xbf16>
    %98 = arith.truncf %62 : vector<8x50xf32> to vector<8x50xbf16>
    %cst_63 = arith.constant dense<0.000000e+00> : vector<8x8xf32>
    %99 = tpu.matmul %98, %97, %cst_63 {dimension_numbers = #tpu.dot_dimension_numbers<[1], [0], [0], [1], [0, 0, 1, 1], [], []>} : vector<8x50xbf16>, vector<50x8xbf16>, vector<8x8xf32> -> vector<8x8xf32>
    %100 = arith.addf %95, %99 : vector<8x8xf32>
    %c1_64 = arith.constant 1 : index
    %c0_65 = arith.constant 0 : index
    %c0_66 = arith.constant 0 : index
    %101 = vector.load %arg9[%c1_64, %c0_65, %c0_66] : memref<36x50x8xbf16, #tpu.memory_space<vmem>>, vector<1x50x8xbf16>
    %102 = vector.shape_cast %101 : vector<1x50x8xbf16> to vector<50x8xbf16>
    %103 = arith.truncf %66 : vector<8x50xf32> to vector<8x50xbf16>
    %cst_67 = arith.constant dense<0.000000e+00> : vector<8x8xf32>
    %104 = tpu.matmul %103, %102, %cst_67 {dimension_numbers = #tpu.dot_dimension_numbers<[1], [0], [0], [1], [0, 0, 1, 1], [], []>} : vector<8x50xbf16>, vector<50x8xbf16>, vector<8x8xf32> -> vector<8x8xf32>
    %105 = arith.addf %100, %104 : vector<8x8xf32>
    %c2_68 = arith.constant 2 : index
    %c0_69 = arith.constant 0 : index
    %c0_70 = arith.constant 0 : index
    %106 = vector.load %arg9[%c2_68, %c0_69, %c0_70] : memref<36x50x8xbf16, #tpu.memory_space<vmem>>, vector<1x50x8xbf16>
    %107 = vector.shape_cast %106 : vector<1x50x8xbf16> to vector<50x8xbf16>
    %108 = arith.truncf %70 : vector<8x50xf32> to vector<8x50xbf16>
    %cst_71 = arith.constant dense<0.000000e+00> : vector<8x8xf32>
    %109 = tpu.matmul %108, %107, %cst_71 {dimension_numbers = #tpu.dot_dimension_numbers<[1], [0], [0], [1], [0, 0, 1, 1], [], []>} : vector<8x50xbf16>, vector<50x8xbf16>, vector<8x8xf32> -> vector<8x8xf32>
    %110 = arith.addf %105, %109 : vector<8x8xf32>
    %c3_72 = arith.constant 3 : index
    %c0_73 = arith.constant 0 : index
    %c0_74 = arith.constant 0 : index
    %111 = vector.load %arg9[%c3_72, %c0_73, %c0_74] : memref<36x50x8xbf16, #tpu.memory_space<vmem>>, vector<1x50x8xbf16>
    %112 = vector.shape_cast %111 : vector<1x50x8xbf16> to vector<50x8xbf16>
    %113 = arith.truncf %74 : vector<8x50xf32> to vector<8x50xbf16>
    %cst_75 = arith.constant dense<0.000000e+00> : vector<8x8xf32>
    %114 = tpu.matmul %113, %112, %cst_75 {dimension_numbers = #tpu.dot_dimension_numbers<[1], [0], [0], [1], [0, 0, 1, 1], [], []>} : vector<8x50xbf16>, vector<50x8xbf16>, vector<8x8xf32> -> vector<8x8xf32>
    %115 = arith.addf %110, %114 : vector<8x8xf32>
    %c4_76 = arith.constant 4 : index
    %c0_77 = arith.constant 0 : index
    %c0_78 = arith.constant 0 : index
    %116 = vector.load %arg9[%c4_76, %c0_77, %c0_78] : memref<36x50x8xbf16, #tpu.memory_space<vmem>>, vector<1x50x8xbf16>
    %117 = vector.shape_cast %116 : vector<1x50x8xbf16> to vector<50x8xbf16>
    %118 = arith.truncf %78 : vector<8x50xf32> to vector<8x50xbf16>
    %cst_79 = arith.constant dense<0.000000e+00> : vector<8x8xf32>
    %119 = tpu.matmul %118, %117, %cst_79 {dimension_numbers = #tpu.dot_dimension_numbers<[1], [0], [0], [1], [0, 0, 1, 1], [], []>} : vector<8x50xbf16>, vector<50x8xbf16>, vector<8x8xf32> -> vector<8x8xf32>
    %120 = arith.addf %115, %119 : vector<8x8xf32>
    %c5_80 = arith.constant 5 : index
    %c0_81 = arith.constant 0 : index
    %c0_82 = arith.constant 0 : index
    %121 = vector.load %arg9[%c5_80, %c0_81, %c0_82] : memref<36x50x8xbf16, #tpu.memory_space<vmem>>, vector<1x50x8xbf16>
    %122 = vector.shape_cast %121 : vector<1x50x8xbf16> to vector<50x8xbf16>
    %123 = arith.truncf %82 : vector<8x50xf32> to vector<8x50xbf16>
    %cst_83 = arith.constant dense<0.000000e+00> : vector<8x8xf32>
    %124 = tpu.matmul %123, %122, %cst_83 {dimension_numbers = #tpu.dot_dimension_numbers<[1], [0], [0], [1], [0, 0, 1, 1], [], []>} : vector<8x50xbf16>, vector<50x8xbf16>, vector<8x8xf32> -> vector<8x8xf32>
    %125 = arith.addf %120, %124 : vector<8x8xf32>
    %c6_84 = arith.constant 6 : index
    %c0_85 = arith.constant 0 : index
    %c0_86 = arith.constant 0 : index
    %126 = vector.load %arg9[%c6_84, %c0_85, %c0_86] : memref<36x50x8xbf16, #tpu.memory_space<vmem>>, vector<1x50x8xbf16>
    %127 = vector.shape_cast %126 : vector<1x50x8xbf16> to vector<50x8xbf16>
    %128 = arith.truncf %86 : vector<8x50xf32> to vector<8x50xbf16>
    %cst_87 = arith.constant dense<0.000000e+00> : vector<8x8xf32>
    %129 = tpu.matmul %128, %127, %cst_87 {dimension_numbers = #tpu.dot_dimension_numbers<[1], [0], [0], [1], [0, 0, 1, 1], [], []>} : vector<8x50xbf16>, vector<50x8xbf16>, vector<8x8xf32> -> vector<8x8xf32>
    %130 = arith.addf %125, %129 : vector<8x8xf32>
    %c7_88 = arith.constant 7 : index
    %c0_89 = arith.constant 0 : index
    %c0_90 = arith.constant 0 : index
    %131 = vector.load %arg9[%c7_88, %c0_89, %c0_90] : memref<36x50x8xbf16, #tpu.memory_space<vmem>>, vector<1x50x8xbf16>
    %132 = vector.shape_cast %131 : vector<1x50x8xbf16> to vector<50x8xbf16>
    %133 = arith.truncf %90 : vector<8x50xf32> to vector<8x50xbf16>
    %cst_91 = arith.constant dense<0.000000e+00> : vector<8x8xf32>
    %134 = tpu.matmul %133, %132, %cst_91 {dimension_numbers = #tpu.dot_dimension_numbers<[1], [0], [0], [1], [0, 0, 1, 1], [], []>} : vector<8x50xbf16>, vector<50x8xbf16>, vector<8x8xf32> -> vector<8x8xf32>
    %135 = arith.addf %130, %134 : vector<8x8xf32>
    %c8_92 = arith.constant 8 : index
    %c0_93 = arith.constant 0 : index
    %c0_94 = arith.constant 0 : index
    %136 = vector.load %arg9[%c8_92, %c0_93, %c0_94] : memref<36x50x8xbf16, #tpu.memory_space<vmem>>, vector<1x50x8xbf16>
    %137 = vector.shape_cast %136 : vector<1x50x8xbf16> to vector<50x8xbf16>
    %138 = arith.truncf %94 : vector<8x50xf32> to vector<8x50xbf16>
    %cst_95 = arith.constant dense<0.000000e+00> : vector<8x8xf32>
    %139 = tpu.matmul %138, %137, %cst_95 {dimension_numbers = #tpu.dot_dimension_numbers<[1], [0], [0], [1], [0, 0, 1, 1], [], []>} : vector<8x50xbf16>, vector<50x8xbf16>, vector<8x8xf32> -> vector<8x8xf32>
    %140 = arith.addf %135, %139 : vector<8x8xf32>
    %cst_96 = arith.constant 0.000000e+00 : f32
    %141 = vector.broadcast %cst_96 : f32 to vector<8x8xf32>
    %c9 = arith.constant 9 : index
    %c0_97 = arith.constant 0 : index
    %c0_98 = arith.constant 0 : index
    %142 = vector.load %arg9[%c9, %c0_97, %c0_98] : memref<36x50x8xbf16, #tpu.memory_space<vmem>>, vector<1x50x8xbf16>
    %143 = vector.shape_cast %142 : vector<1x50x8xbf16> to vector<50x8xbf16>
    %144 = arith.truncf %62 : vector<8x50xf32> to vector<8x50xbf16>
    %cst_99 = arith.constant dense<0.000000e+00> : vector<8x8xf32>
    %145 = tpu.matmul %144, %143, %cst_99 {dimension_numbers = #tpu.dot_dimension_numbers<[1], [0], [0], [1], [0, 0, 1, 1], [], []>} : vector<8x50xbf16>, vector<50x8xbf16>, vector<8x8xf32> -> vector<8x8xf32>
    %146 = arith.addf %141, %145 : vector<8x8xf32>
    %c10 = arith.constant 10 : index
    %c0_100 = arith.constant 0 : index
    %c0_101 = arith.constant 0 : index
    %147 = vector.load %arg9[%c10, %c0_100, %c0_101] : memref<36x50x8xbf16, #tpu.memory_space<vmem>>, vector<1x50x8xbf16>
    %148 = vector.shape_cast %147 : vector<1x50x8xbf16> to vector<50x8xbf16>
    %149 = arith.truncf %66 : vector<8x50xf32> to vector<8x50xbf16>
    %cst_102 = arith.constant dense<0.000000e+00> : vector<8x8xf32>
    %150 = tpu.matmul %149, %148, %cst_102 {dimension_numbers = #tpu.dot_dimension_numbers<[1], [0], [0], [1], [0, 0, 1, 1], [], []>} : vector<8x50xbf16>, vector<50x8xbf16>, vector<8x8xf32> -> vector<8x8xf32>
    %151 = arith.addf %146, %150 : vector<8x8xf32>
    %c11 = arith.constant 11 : index
    %c0_103 = arith.constant 0 : index
    %c0_104 = arith.constant 0 : index
    %152 = vector.load %arg9[%c11, %c0_103, %c0_104] : memref<36x50x8xbf16, #tpu.memory_space<vmem>>, vector<1x50x8xbf16>
    %153 = vector.shape_cast %152 : vector<1x50x8xbf16> to vector<50x8xbf16>
    %154 = arith.truncf %70 : vector<8x50xf32> to vector<8x50xbf16>
    %cst_105 = arith.constant dense<0.000000e+00> : vector<8x8xf32>
    %155 = tpu.matmul %154, %153, %cst_105 {dimension_numbers = #tpu.dot_dimension_numbers<[1], [0], [0], [1], [0, 0, 1, 1], [], []>} : vector<8x50xbf16>, vector<50x8xbf16>, vector<8x8xf32> -> vector<8x8xf32>
    %156 = arith.addf %151, %155 : vector<8x8xf32>
    %c12 = arith.constant 12 : index
    %c0_106 = arith.constant 0 : index
    %c0_107 = arith.constant 0 : index
    %157 = vector.load %arg9[%c12, %c0_106, %c0_107] : memref<36x50x8xbf16, #tpu.memory_space<vmem>>, vector<1x50x8xbf16>
    %158 = vector.shape_cast %157 : vector<1x50x8xbf16> to vector<50x8xbf16>
    %159 = arith.truncf %74 : vector<8x50xf32> to vector<8x50xbf16>
    %cst_108 = arith.constant dense<0.000000e+00> : vector<8x8xf32>
    %160 = tpu.matmul %159, %158, %cst_108 {dimension_numbers = #tpu.dot_dimension_numbers<[1], [0], [0], [1], [0, 0, 1, 1], [], []>} : vector<8x50xbf16>, vector<50x8xbf16>, vector<8x8xf32> -> vector<8x8xf32>
    %161 = arith.addf %156, %160 : vector<8x8xf32>
    %c13 = arith.constant 13 : index
    %c0_109 = arith.constant 0 : index
    %c0_110 = arith.constant 0 : index
    %162 = vector.load %arg9[%c13, %c0_109, %c0_110] : memref<36x50x8xbf16, #tpu.memory_space<vmem>>, vector<1x50x8xbf16>
    %163 = vector.shape_cast %162 : vector<1x50x8xbf16> to vector<50x8xbf16>
    %164 = arith.truncf %78 : vector<8x50xf32> to vector<8x50xbf16>
    %cst_111 = arith.constant dense<0.000000e+00> : vector<8x8xf32>
    %165 = tpu.matmul %164, %163, %cst_111 {dimension_numbers = #tpu.dot_dimension_numbers<[1], [0], [0], [1], [0, 0, 1, 1], [], []>} : vector<8x50xbf16>, vector<50x8xbf16>, vector<8x8xf32> -> vector<8x8xf32>
    %166 = arith.addf %161, %165 : vector<8x8xf32>
    %c14 = arith.constant 14 : index
    %c0_112 = arith.constant 0 : index
    %c0_113 = arith.constant 0 : index
    %167 = vector.load %arg9[%c14, %c0_112, %c0_113] : memref<36x50x8xbf16, #tpu.memory_space<vmem>>, vector<1x50x8xbf16>
    %168 = vector.shape_cast %167 : vector<1x50x8xbf16> to vector<50x8xbf16>
    %169 = arith.truncf %82 : vector<8x50xf32> to vector<8x50xbf16>
    %cst_114 = arith.constant dense<0.000000e+00> : vector<8x8xf32>
    %170 = tpu.matmul %169, %168, %cst_114 {dimension_numbers = #tpu.dot_dimension_numbers<[1], [0], [0], [1], [0, 0, 1, 1], [], []>} : vector<8x50xbf16>, vector<50x8xbf16>, vector<8x8xf32> -> vector<8x8xf32>
    %171 = arith.addf %166, %170 : vector<8x8xf32>
    %c15 = arith.constant 15 : index
    %c0_115 = arith.constant 0 : index
    %c0_116 = arith.constant 0 : index
    %172 = vector.load %arg9[%c15, %c0_115, %c0_116] : memref<36x50x8xbf16, #tpu.memory_space<vmem>>, vector<1x50x8xbf16>
    %173 = vector.shape_cast %172 : vector<1x50x8xbf16> to vector<50x8xbf16>
    %174 = arith.truncf %86 : vector<8x50xf32> to vector<8x50xbf16>
    %cst_117 = arith.constant dense<0.000000e+00> : vector<8x8xf32>
    %175 = tpu.matmul %174, %173, %cst_117 {dimension_numbers = #tpu.dot_dimension_numbers<[1], [0], [0], [1], [0, 0, 1, 1], [], []>} : vector<8x50xbf16>, vector<50x8xbf16>, vector<8x8xf32> -> vector<8x8xf32>
    %176 = arith.addf %171, %175 : vector<8x8xf32>
    %c16 = arith.constant 16 : index
    %c0_118 = arith.constant 0 : index
    %c0_119 = arith.constant 0 : index
    %177 = vector.load %arg9[%c16, %c0_118, %c0_119] : memref<36x50x8xbf16, #tpu.memory_space<vmem>>, vector<1x50x8xbf16>
    %178 = vector.shape_cast %177 : vector<1x50x8xbf16> to vector<50x8xbf16>
    %179 = arith.truncf %90 : vector<8x50xf32> to vector<8x50xbf16>
    %cst_120 = arith.constant dense<0.000000e+00> : vector<8x8xf32>
    %180 = tpu.matmul %179, %178, %cst_120 {dimension_numbers = #tpu.dot_dimension_numbers<[1], [0], [0], [1], [0, 0, 1, 1], [], []>} : vector<8x50xbf16>, vector<50x8xbf16>, vector<8x8xf32> -> vector<8x8xf32>
    %181 = arith.addf %176, %180 : vector<8x8xf32>
    %c17 = arith.constant 17 : index
    %c0_121 = arith.constant 0 : index
    %c0_122 = arith.constant 0 : index
    %182 = vector.load %arg9[%c17, %c0_121, %c0_122] : memref<36x50x8xbf16, #tpu.memory_space<vmem>>, vector<1x50x8xbf16>
    %183 = vector.shape_cast %182 : vector<1x50x8xbf16> to vector<50x8xbf16>
    %184 = arith.truncf %94 : vector<8x50xf32> to vector<8x50xbf16>
    %cst_123 = arith.constant dense<0.000000e+00> : vector<8x8xf32>
    %185 = tpu.matmul %184, %183, %cst_123 {dimension_numbers = #tpu.dot_dimension_numbers<[1], [0], [0], [1], [0, 0, 1, 1], [], []>} : vector<8x50xbf16>, vector<50x8xbf16>, vector<8x8xf32> -> vector<8x8xf32>
    %186 = arith.addf %181, %185 : vector<8x8xf32>
    %187 = arith.maximumf %140, %186 : vector<8x8xf32>
    %cst_124 = arith.constant 0.000000e+00 : f32
    %188 = vector.broadcast %cst_124 : f32 to vector<8x8xf32>
    %c18 = arith.constant 18 : index
    %c0_125 = arith.constant 0 : index
    %c0_126 = arith.constant 0 : index
    %189 = vector.load %arg9[%c18, %c0_125, %c0_126] : memref<36x50x8xbf16, #tpu.memory_space<vmem>>, vector<1x50x8xbf16>
    %190 = vector.shape_cast %189 : vector<1x50x8xbf16> to vector<50x8xbf16>
    %191 = arith.truncf %62 : vector<8x50xf32> to vector<8x50xbf16>
    %cst_127 = arith.constant dense<0.000000e+00> : vector<8x8xf32>
    %192 = tpu.matmul %191, %190, %cst_127 {dimension_numbers = #tpu.dot_dimension_numbers<[1], [0], [0], [1], [0, 0, 1, 1], [], []>} : vector<8x50xbf16>, vector<50x8xbf16>, vector<8x8xf32> -> vector<8x8xf32>
    %193 = arith.addf %188, %192 : vector<8x8xf32>
    %c19 = arith.constant 19 : index
    %c0_128 = arith.constant 0 : index
    %c0_129 = arith.constant 0 : index
    %194 = vector.load %arg9[%c19, %c0_128, %c0_129] : memref<36x50x8xbf16, #tpu.memory_space<vmem>>, vector<1x50x8xbf16>
    %195 = vector.shape_cast %194 : vector<1x50x8xbf16> to vector<50x8xbf16>
    %196 = arith.truncf %66 : vector<8x50xf32> to vector<8x50xbf16>
    %cst_130 = arith.constant dense<0.000000e+00> : vector<8x8xf32>
    %197 = tpu.matmul %196, %195, %cst_130 {dimension_numbers = #tpu.dot_dimension_numbers<[1], [0], [0], [1], [0, 0, 1, 1], [], []>} : vector<8x50xbf16>, vector<50x8xbf16>, vector<8x8xf32> -> vector<8x8xf32>
    %198 = arith.addf %193, %197 : vector<8x8xf32>
    %c20 = arith.constant 20 : index
    %c0_131 = arith.constant 0 : index
    %c0_132 = arith.constant 0 : index
    %199 = vector.load %arg9[%c20, %c0_131, %c0_132] : memref<36x50x8xbf16, #tpu.memory_space<vmem>>, vector<1x50x8xbf16>
    %200 = vector.shape_cast %199 : vector<1x50x8xbf16> to vector<50x8xbf16>
    %201 = arith.truncf %70 : vector<8x50xf32> to vector<8x50xbf16>
    %cst_133 = arith.constant dense<0.000000e+00> : vector<8x8xf32>
    %202 = tpu.matmul %201, %200, %cst_133 {dimension_numbers = #tpu.dot_dimension_numbers<[1], [0], [0], [1], [0, 0, 1, 1], [], []>} : vector<8x50xbf16>, vector<50x8xbf16>, vector<8x8xf32> -> vector<8x8xf32>
    %203 = arith.addf %198, %202 : vector<8x8xf32>
    %c21 = arith.constant 21 : index
    %c0_134 = arith.constant 0 : index
    %c0_135 = arith.constant 0 : index
    %204 = vector.load %arg9[%c21, %c0_134, %c0_135] : memref<36x50x8xbf16, #tpu.memory_space<vmem>>, vector<1x50x8xbf16>
    %205 = vector.shape_cast %204 : vector<1x50x8xbf16> to vector<50x8xbf16>
    %206 = arith.truncf %74 : vector<8x50xf32> to vector<8x50xbf16>
    %cst_136 = arith.constant dense<0.000000e+00> : vector<8x8xf32>
    %207 = tpu.matmul %206, %205, %cst_136 {dimension_numbers = #tpu.dot_dimension_numbers<[1], [0], [0], [1], [0, 0, 1, 1], [], []>} : vector<8x50xbf16>, vector<50x8xbf16>, vector<8x8xf32> -> vector<8x8xf32>
    %208 = arith.addf %203, %207 : vector<8x8xf32>
    %c22 = arith.constant 22 : index
    %c0_137 = arith.constant 0 : index
    %c0_138 = arith.constant 0 : index
    %209 = vector.load %arg9[%c22, %c0_137, %c0_138] : memref<36x50x8xbf16, #tpu.memory_space<vmem>>, vector<1x50x8xbf16>
    %210 = vector.shape_cast %209 : vector<1x50x8xbf16> to vector<50x8xbf16>
    %211 = arith.truncf %78 : vector<8x50xf32> to vector<8x50xbf16>
    %cst_139 = arith.constant dense<0.000000e+00> : vector<8x8xf32>
    %212 = tpu.matmul %211, %210, %cst_139 {dimension_numbers = #tpu.dot_dimension_numbers<[1], [0], [0], [1], [0, 0, 1, 1], [], []>} : vector<8x50xbf16>, vector<50x8xbf16>, vector<8x8xf32> -> vector<8x8xf32>
    %213 = arith.addf %208, %212 : vector<8x8xf32>
    %c23 = arith.constant 23 : index
    %c0_140 = arith.constant 0 : index
    %c0_141 = arith.constant 0 : index
    %214 = vector.load %arg9[%c23, %c0_140, %c0_141] : memref<36x50x8xbf16, #tpu.memory_space<vmem>>, vector<1x50x8xbf16>
    %215 = vector.shape_cast %214 : vector<1x50x8xbf16> to vector<50x8xbf16>
    %216 = arith.truncf %82 : vector<8x50xf32> to vector<8x50xbf16>
    %cst_142 = arith.constant dense<0.000000e+00> : vector<8x8xf32>
    %217 = tpu.matmul %216, %215, %cst_142 {dimension_numbers = #tpu.dot_dimension_numbers<[1], [0], [0], [1], [0, 0, 1, 1], [], []>} : vector<8x50xbf16>, vector<50x8xbf16>, vector<8x8xf32> -> vector<8x8xf32>
    %218 = arith.addf %213, %217 : vector<8x8xf32>
    %c24 = arith.constant 24 : index
    %c0_143 = arith.constant 0 : index
    %c0_144 = arith.constant 0 : index
    %219 = vector.load %arg9[%c24, %c0_143, %c0_144] : memref<36x50x8xbf16, #tpu.memory_space<vmem>>, vector<1x50x8xbf16>
    %220 = vector.shape_cast %219 : vector<1x50x8xbf16> to vector<50x8xbf16>
    %221 = arith.truncf %86 : vector<8x50xf32> to vector<8x50xbf16>
    %cst_145 = arith.constant dense<0.000000e+00> : vector<8x8xf32>
    %222 = tpu.matmul %221, %220, %cst_145 {dimension_numbers = #tpu.dot_dimension_numbers<[1], [0], [0], [1], [0, 0, 1, 1], [], []>} : vector<8x50xbf16>, vector<50x8xbf16>, vector<8x8xf32> -> vector<8x8xf32>
    %223 = arith.addf %218, %222 : vector<8x8xf32>
    %c25 = arith.constant 25 : index
    %c0_146 = arith.constant 0 : index
    %c0_147 = arith.constant 0 : index
    %224 = vector.load %arg9[%c25, %c0_146, %c0_147] : memref<36x50x8xbf16, #tpu.memory_space<vmem>>, vector<1x50x8xbf16>
    %225 = vector.shape_cast %224 : vector<1x50x8xbf16> to vector<50x8xbf16>
    %226 = arith.truncf %90 : vector<8x50xf32> to vector<8x50xbf16>
    %cst_148 = arith.constant dense<0.000000e+00> : vector<8x8xf32>
    %227 = tpu.matmul %226, %225, %cst_148 {dimension_numbers = #tpu.dot_dimension_numbers<[1], [0], [0], [1], [0, 0, 1, 1], [], []>} : vector<8x50xbf16>, vector<50x8xbf16>, vector<8x8xf32> -> vector<8x8xf32>
    %228 = arith.addf %223, %227 : vector<8x8xf32>
    %c26 = arith.constant 26 : index
    %c0_149 = arith.constant 0 : index
    %c0_150 = arith.constant 0 : index
    %229 = vector.load %arg9[%c26, %c0_149, %c0_150] : memref<36x50x8xbf16, #tpu.memory_space<vmem>>, vector<1x50x8xbf16>
    %230 = vector.shape_cast %229 : vector<1x50x8xbf16> to vector<50x8xbf16>
    %231 = arith.truncf %94 : vector<8x50xf32> to vector<8x50xbf16>
    %cst_151 = arith.constant dense<0.000000e+00> : vector<8x8xf32>
    %232 = tpu.matmul %231, %230, %cst_151 {dimension_numbers = #tpu.dot_dimension_numbers<[1], [0], [0], [1], [0, 0, 1, 1], [], []>} : vector<8x50xbf16>, vector<50x8xbf16>, vector<8x8xf32> -> vector<8x8xf32>
    %233 = arith.addf %228, %232 : vector<8x8xf32>
    %234 = arith.maximumf %187, %233 : vector<8x8xf32>
    %cst_152 = arith.constant 0.000000e+00 : f32
    %235 = vector.broadcast %cst_152 : f32 to vector<8x8xf32>
    %c27 = arith.constant 27 : index
    %c0_153 = arith.constant 0 : index
    %c0_154 = arith.constant 0 : index
    %236 = vector.load %arg9[%c27, %c0_153, %c0_154] : memref<36x50x8xbf16, #tpu.memory_space<vmem>>, vector<1x50x8xbf16>
    %237 = vector.shape_cast %236 : vector<1x50x8xbf16> to vector<50x8xbf16>
    %238 = arith.truncf %62 : vector<8x50xf32> to vector<8x50xbf16>
    %cst_155 = arith.constant dense<0.000000e+00> : vector<8x8xf32>
    %239 = tpu.matmul %238, %237, %cst_155 {dimension_numbers = #tpu.dot_dimension_numbers<[1], [0], [0], [1], [0, 0, 1, 1], [], []>} : vector<8x50xbf16>, vector<50x8xbf16>, vector<8x8xf32> -> vector<8x8xf32>
    %240 = arith.addf %235, %239 : vector<8x8xf32>
    %c28 = arith.constant 28 : index
    %c0_156 = arith.constant 0 : index
    %c0_157 = arith.constant 0 : index
    %241 = vector.load %arg9[%c28, %c0_156, %c0_157] : memref<36x50x8xbf16, #tpu.memory_space<vmem>>, vector<1x50x8xbf16>
    %242 = vector.shape_cast %241 : vector<1x50x8xbf16> to vector<50x8xbf16>
    %243 = arith.truncf %66 : vector<8x50xf32> to vector<8x50xbf16>
    %cst_158 = arith.constant dense<0.000000e+00> : vector<8x8xf32>
    %244 = tpu.matmul %243, %242, %cst_158 {dimension_numbers = #tpu.dot_dimension_numbers<[1], [0], [0], [1], [0, 0, 1, 1], [], []>} : vector<8x50xbf16>, vector<50x8xbf16>, vector<8x8xf32> -> vector<8x8xf32>
    %245 = arith.addf %240, %244 : vector<8x8xf32>
    %c29 = arith.constant 29 : index
    %c0_159 = arith.constant 0 : index
    %c0_160 = arith.constant 0 : index
    %246 = vector.load %arg9[%c29, %c0_159, %c0_160] : memref<36x50x8xbf16, #tpu.memory_space<vmem>>, vector<1x50x8xbf16>
    %247 = vector.shape_cast %246 : vector<1x50x8xbf16> to vector<50x8xbf16>
    %248 = arith.truncf %70 : vector<8x50xf32> to vector<8x50xbf16>
    %cst_161 = arith.constant dense<0.000000e+00> : vector<8x8xf32>
    %249 = tpu.matmul %248, %247, %cst_161 {dimension_numbers = #tpu.dot_dimension_numbers<[1], [0], [0], [1], [0, 0, 1, 1], [], []>} : vector<8x50xbf16>, vector<50x8xbf16>, vector<8x8xf32> -> vector<8x8xf32>
    %250 = arith.addf %245, %249 : vector<8x8xf32>
    %c30 = arith.constant 30 : index
    %c0_162 = arith.constant 0 : index
    %c0_163 = arith.constant 0 : index
    %251 = vector.load %arg9[%c30, %c0_162, %c0_163] : memref<36x50x8xbf16, #tpu.memory_space<vmem>>, vector<1x50x8xbf16>
    %252 = vector.shape_cast %251 : vector<1x50x8xbf16> to vector<50x8xbf16>
    %253 = arith.truncf %74 : vector<8x50xf32> to vector<8x50xbf16>
    %cst_164 = arith.constant dense<0.000000e+00> : vector<8x8xf32>
    %254 = tpu.matmul %253, %252, %cst_164 {dimension_numbers = #tpu.dot_dimension_numbers<[1], [0], [0], [1], [0, 0, 1, 1], [], []>} : vector<8x50xbf16>, vector<50x8xbf16>, vector<8x8xf32> -> vector<8x8xf32>
    %255 = arith.addf %250, %254 : vector<8x8xf32>
    %c31 = arith.constant 31 : index
    %c0_165 = arith.constant 0 : index
    %c0_166 = arith.constant 0 : index
    %256 = vector.load %arg9[%c31, %c0_165, %c0_166] : memref<36x50x8xbf16, #tpu.memory_space<vmem>>, vector<1x50x8xbf16>
    %257 = vector.shape_cast %256 : vector<1x50x8xbf16> to vector<50x8xbf16>
    %258 = arith.truncf %78 : vector<8x50xf32> to vector<8x50xbf16>
    %cst_167 = arith.constant dense<0.000000e+00> : vector<8x8xf32>
    %259 = tpu.matmul %258, %257, %cst_167 {dimension_numbers = #tpu.dot_dimension_numbers<[1], [0], [0], [1], [0, 0, 1, 1], [], []>} : vector<8x50xbf16>, vector<50x8xbf16>, vector<8x8xf32> -> vector<8x8xf32>
    %260 = arith.addf %255, %259 : vector<8x8xf32>
    %c32 = arith.constant 32 : index
    %c0_168 = arith.constant 0 : index
    %c0_169 = arith.constant 0 : index
    %261 = vector.load %arg9[%c32, %c0_168, %c0_169] : memref<36x50x8xbf16, #tpu.memory_space<vmem>>, vector<1x50x8xbf16>
    %262 = vector.shape_cast %261 : vector<1x50x8xbf16> to vector<50x8xbf16>
    %263 = arith.truncf %82 : vector<8x50xf32> to vector<8x50xbf16>
    %cst_170 = arith.constant dense<0.000000e+00> : vector<8x8xf32>
    %264 = tpu.matmul %263, %262, %cst_170 {dimension_numbers = #tpu.dot_dimension_numbers<[1], [0], [0], [1], [0, 0, 1, 1], [], []>} : vector<8x50xbf16>, vector<50x8xbf16>, vector<8x8xf32> -> vector<8x8xf32>
    %265 = arith.addf %260, %264 : vector<8x8xf32>
    %c33 = arith.constant 33 : index
    %c0_171 = arith.constant 0 : index
    %c0_172 = arith.constant 0 : index
    %266 = vector.load %arg9[%c33, %c0_171, %c0_172] : memref<36x50x8xbf16, #tpu.memory_space<vmem>>, vector<1x50x8xbf16>
    %267 = vector.shape_cast %266 : vector<1x50x8xbf16> to vector<50x8xbf16>
    %268 = arith.truncf %86 : vector<8x50xf32> to vector<8x50xbf16>
    %cst_173 = arith.constant dense<0.000000e+00> : vector<8x8xf32>
    %269 = tpu.matmul %268, %267, %cst_173 {dimension_numbers = #tpu.dot_dimension_numbers<[1], [0], [0], [1], [0, 0, 1, 1], [], []>} : vector<8x50xbf16>, vector<50x8xbf16>, vector<8x8xf32> -> vector<8x8xf32>
    %270 = arith.addf %265, %269 : vector<8x8xf32>
    %c34 = arith.constant 34 : index
    %c0_174 = arith.constant 0 : index
    %c0_175 = arith.constant 0 : index
    %271 = vector.load %arg9[%c34, %c0_174, %c0_175] : memref<36x50x8xbf16, #tpu.memory_space<vmem>>, vector<1x50x8xbf16>
    %272 = vector.shape_cast %271 : vector<1x50x8xbf16> to vector<50x8xbf16>
    %273 = arith.truncf %90 : vector<8x50xf32> to vector<8x50xbf16>
    %cst_176 = arith.constant dense<0.000000e+00> : vector<8x8xf32>
    %274 = tpu.matmul %273, %272, %cst_176 {dimension_numbers = #tpu.dot_dimension_numbers<[1], [0], [0], [1], [0, 0, 1, 1], [], []>} : vector<8x50xbf16>, vector<50x8xbf16>, vector<8x8xf32> -> vector<8x8xf32>
    %275 = arith.addf %270, %274 : vector<8x8xf32>
    %c35 = arith.constant 35 : index
    %c0_177 = arith.constant 0 : index
    %c0_178 = arith.constant 0 : index
    %276 = vector.load %arg9[%c35, %c0_177, %c0_178] : memref<36x50x8xbf16, #tpu.memory_space<vmem>>, vector<1x50x8xbf16>
    %277 = vector.shape_cast %276 : vector<1x50x8xbf16> to vector<50x8xbf16>
    %278 = arith.truncf %94 : vector<8x50xf32> to vector<8x50xbf16>
    %cst_179 = arith.constant dense<0.000000e+00> : vector<8x8xf32>
    %279 = tpu.matmul %278, %277, %cst_179 {dimension_numbers = #tpu.dot_dimension_numbers<[1], [0], [0], [1], [0, 0, 1, 1], [], []>} : vector<8x50xbf16>, vector<50x8xbf16>, vector<8x8xf32> -> vector<8x8xf32>
    %280 = arith.addf %275, %279 : vector<8x8xf32>
    %281 = arith.maximumf %234, %280 : vector<8x8xf32>
    %c0_180 = arith.constant 0 : index
    %c0_181 = arith.constant 0 : index
    %282 = vector.load %arg6[%c0_180, %c0_181] : memref<8x1xf32, #tpu.memory_space<vmem>>, vector<8x1xf32>
    %283 = vector.broadcast %282 : vector<8x1xf32> to vector<8x8xf32>
    %284 = arith.addf %281, %283 : vector<8x8xf32>
    %cst_182 = arith.constant 0.000000e+00 : f32
    %285 = vector.broadcast %cst_182 : f32 to vector<8x8xf32>
    %286 = arith.maximumf %284, %285 : vector<8x8xf32>
    %c0_183 = arith.constant 0 : index
    %c0_184 = arith.constant 0 : index
    %287 = vector.load %arg7[%c0_183, %c0_184] : memref<8x1xf32, #tpu.memory_space<vmem>>, vector<8x1xf32>
    %c0_185 = arith.constant 0 : index
    %c0_186 = arith.constant 0 : index
    %288 = vector.load %arg8[%c0_185, %c0_186] : memref<8x1xf32, #tpu.memory_space<vmem>>, vector<8x1xf32>
    %cst_187 = arith.constant dense<0.000000e+00> : vector<8xf32>
    %289 = vector.multi_reduction <add>, %286, %cst_187 [1] : vector<8x8xf32> to vector<8xf32>
    %290 = vector.shape_cast %289 : vector<8xf32> to vector<8x1xf32>
    %cst_188 = arith.constant 8.000000e+00 : f32
    %291 = vector.broadcast %cst_188 : f32 to vector<8x1xf32>
    %292 = arith.divf %290, %291 : vector<8x1xf32>
    %293 = vector.broadcast %292 : vector<8x1xf32> to vector<8x8xf32>
    %294 = arith.subf %286, %293 : vector<8x8xf32>
    %295 = vector.broadcast %292 : vector<8x1xf32> to vector<8x8xf32>
    %296 = arith.subf %286, %295 : vector<8x8xf32>
    %297 = arith.mulf %294, %296 : vector<8x8xf32>
    %cst_189 = arith.constant dense<0.000000e+00> : vector<8xf32>
    %298 = vector.multi_reduction <add>, %297, %cst_189 [1] : vector<8x8xf32> to vector<8xf32>
    %299 = vector.shape_cast %298 : vector<8xf32> to vector<8x1xf32>
    %cst_190 = arith.constant 8.000000e+00 : f32
    %300 = vector.broadcast %cst_190 : f32 to vector<8x1xf32>
    %301 = arith.divf %299, %300 : vector<8x1xf32>
    %302 = vector.broadcast %292 : vector<8x1xf32> to vector<8x8xf32>
    %303 = arith.subf %286, %302 : vector<8x8xf32>
    %cst_191 = arith.constant 9.99999974E-6 : f32
    %304 = vector.broadcast %cst_191 : f32 to vector<8x1xf32>
    %305 = arith.addf %301, %304 : vector<8x1xf32>
    %306 = math.rsqrt %305 : vector<8x1xf32>
    %307 = vector.broadcast %306 : vector<8x1xf32> to vector<8x8xf32>
    %308 = arith.mulf %303, %307 : vector<8x8xf32>
    %309 = vector.broadcast %287 : vector<8x1xf32> to vector<8x8xf32>
    %310 = arith.mulf %308, %309 : vector<8x8xf32>
    %311 = vector.broadcast %288 : vector<8x1xf32> to vector<8x8xf32>
    %312 = arith.addf %310, %311 : vector<8x8xf32>
    %cst_192 = arith.constant 0.000000e+00 : f32
    %313 = vector.broadcast %cst_192 : f32 to vector<2x2xf32>
    %c0_193 = arith.constant 0 : index
    %c0_194 = arith.constant 0 : index
    %c0_195 = arith.constant 0 : index
    %314 = vector.load %arg10[%c0_193, %c0_194, %c0_195] : memref<4x2x8xbf16, #tpu.memory_space<vmem>>, vector<1x2x8xbf16>
    %315 = vector.shape_cast %314 : vector<1x2x8xbf16> to vector<2x8xbf16>
    %316 = arith.truncf %312 : vector<8x8xf32> to vector<8x8xbf16>
    %cst_196 = arith.constant dense<0.000000e+00> : vector<2x8xf32>
    %317 = tpu.matmul %315, %316, %cst_196 {dimension_numbers = #tpu.dot_dimension_numbers<[1], [0], [0], [1], [0, 0, 1, 1], [], []>} : vector<2x8xbf16>, vector<8x8xbf16>, vector<2x8xf32> -> vector<2x8xf32>
    %c0_197 = arith.constant 0 : index
    %c0_198 = arith.constant 0 : index
    %c0_199 = arith.constant 0 : index
    %318 = vector.load %arg12[%c0_197, %c0_198, %c0_199] : memref<4x8x2xbf16, #tpu.memory_space<vmem>>, vector<1x8x2xbf16>
    %319 = vector.shape_cast %318 : vector<1x8x2xbf16> to vector<8x2xbf16>
    %320 = arith.truncf %317 : vector<2x8xf32> to vector<2x8xbf16>
    %cst_200 = arith.constant dense<0.000000e+00> : vector<2x2xf32>
    %321 = tpu.matmul %320, %319, %cst_200 {dimension_numbers = #tpu.dot_dimension_numbers<[1], [0], [0], [1], [0, 0, 1, 1], [], []>} : vector<2x8xbf16>, vector<8x2xbf16>, vector<2x2xf32> -> vector<2x2xf32>
    %322 = arith.addf %313, %321 : vector<2x2xf32>
    %c1_201 = arith.constant 1 : index
    %c0_202 = arith.constant 0 : index
    %c0_203 = arith.constant 0 : index
    %323 = vector.load %arg10[%c1_201, %c0_202, %c0_203] : memref<4x2x8xbf16, #tpu.memory_space<vmem>>, vector<1x2x8xbf16>
    %324 = vector.shape_cast %323 : vector<1x2x8xbf16> to vector<2x8xbf16>
    %325 = arith.truncf %312 : vector<8x8xf32> to vector<8x8xbf16>
    %cst_204 = arith.constant dense<0.000000e+00> : vector<2x8xf32>
    %326 = tpu.matmul %324, %325, %cst_204 {dimension_numbers = #tpu.dot_dimension_numbers<[1], [0], [0], [1], [0, 0, 1, 1], [], []>} : vector<2x8xbf16>, vector<8x8xbf16>, vector<2x8xf32> -> vector<2x8xf32>
    %c1_205 = arith.constant 1 : index
    %c0_206 = arith.constant 0 : index
    %c0_207 = arith.constant 0 : index
    %327 = vector.load %arg12[%c1_205, %c0_206, %c0_207] : memref<4x8x2xbf16, #tpu.memory_space<vmem>>, vector<1x8x2xbf16>
    %328 = vector.shape_cast %327 : vector<1x8x2xbf16> to vector<8x2xbf16>
    %329 = arith.truncf %326 : vector<2x8xf32> to vector<2x8xbf16>
    %cst_208 = arith.constant dense<0.000000e+00> : vector<2x2xf32>
    %330 = tpu.matmul %329, %328, %cst_208 {dimension_numbers = #tpu.dot_dimension_numbers<[1], [0], [0], [1], [0, 0, 1, 1], [], []>} : vector<2x8xbf16>, vector<8x2xbf16>, vector<2x2xf32> -> vector<2x2xf32>
    %331 = arith.addf %322, %330 : vector<2x2xf32>
    %c2_209 = arith.constant 2 : index
    %c0_210 = arith.constant 0 : index
    %c0_211 = arith.constant 0 : index
    %332 = vector.load %arg10[%c2_209, %c0_210, %c0_211] : memref<4x2x8xbf16, #tpu.memory_space<vmem>>, vector<1x2x8xbf16>
    %333 = vector.shape_cast %332 : vector<1x2x8xbf16> to vector<2x8xbf16>
    %334 = arith.truncf %312 : vector<8x8xf32> to vector<8x8xbf16>
    %cst_212 = arith.constant dense<0.000000e+00> : vector<2x8xf32>
    %335 = tpu.matmul %333, %334, %cst_212 {dimension_numbers = #tpu.dot_dimension_numbers<[1], [0], [0], [1], [0, 0, 1, 1], [], []>} : vector<2x8xbf16>, vector<8x8xbf16>, vector<2x8xf32> -> vector<2x8xf32>
    %c2_213 = arith.constant 2 : index
    %c0_214 = arith.constant 0 : index
    %c0_215 = arith.constant 0 : index
    %336 = vector.load %arg12[%c2_213, %c0_214, %c0_215] : memref<4x8x2xbf16, #tpu.memory_space<vmem>>, vector<1x8x2xbf16>
    %337 = vector.shape_cast %336 : vector<1x8x2xbf16> to vector<8x2xbf16>
    %338 = arith.truncf %335 : vector<2x8xf32> to vector<2x8xbf16>
    %cst_216 = arith.constant dense<0.000000e+00> : vector<2x2xf32>
    %339 = tpu.matmul %338, %337, %cst_216 {dimension_numbers = #tpu.dot_dimension_numbers<[1], [0], [0], [1], [0, 0, 1, 1], [], []>} : vector<2x8xbf16>, vector<8x2xbf16>, vector<2x2xf32> -> vector<2x2xf32>
    %340 = arith.addf %331, %339 : vector<2x2xf32>
    %c3_217 = arith.constant 3 : index
    %c0_218 = arith.constant 0 : index
    %c0_219 = arith.constant 0 : index
    %341 = vector.load %arg10[%c3_217, %c0_218, %c0_219] : memref<4x2x8xbf16, #tpu.memory_space<vmem>>, vector<1x2x8xbf16>
    %342 = vector.shape_cast %341 : vector<1x2x8xbf16> to vector<2x8xbf16>
    %343 = arith.truncf %312 : vector<8x8xf32> to vector<8x8xbf16>
    %cst_220 = arith.constant dense<0.000000e+00> : vector<2x8xf32>
    %344 = tpu.matmul %342, %343, %cst_220 {dimension_numbers = #tpu.dot_dimension_numbers<[1], [0], [0], [1], [0, 0, 1, 1], [], []>} : vector<2x8xbf16>, vector<8x8xbf16>, vector<2x8xf32> -> vector<2x8xf32>
    %c3_221 = arith.constant 3 : index
    %c0_222 = arith.constant 0 : index
    %c0_223 = arith.constant 0 : index
    %345 = vector.load %arg12[%c3_221, %c0_222, %c0_223] : memref<4x8x2xbf16, #tpu.memory_space<vmem>>, vector<1x8x2xbf16>
    %346 = vector.shape_cast %345 : vector<1x8x2xbf16> to vector<8x2xbf16>
    %347 = arith.truncf %344 : vector<2x8xf32> to vector<2x8xbf16>
    %cst_224 = arith.constant dense<0.000000e+00> : vector<2x2xf32>
    %348 = tpu.matmul %347, %346, %cst_224 {dimension_numbers = #tpu.dot_dimension_numbers<[1], [0], [0], [1], [0, 0, 1, 1], [], []>} : vector<2x8xbf16>, vector<8x2xbf16>, vector<2x2xf32> -> vector<2x2xf32>
    %349 = arith.addf %340, %348 : vector<2x2xf32>
    %c0_225 = arith.constant 0 : index
    %c0_226 = arith.constant 0 : index
    %350 = vector.load %arg11[%c0_225, %c0_226] : memref<2x1xf32, #tpu.memory_space<vmem>>, vector<2x1xf32>
    %351 = vector.broadcast %350 : vector<2x1xf32> to vector<2x2xf32>
    %352 = arith.addf %349, %351 : vector<2x2xf32>
    %cst_227 = arith.constant 0.000000e+00 : f32
    %353 = vector.broadcast %cst_227 : f32 to vector<8x8xf32>
    %c0_228 = arith.constant 0 : index
    %c0_229 = arith.constant 0 : index
    %c0_230 = arith.constant 0 : index
    %354 = vector.load %arg13[%c0_228, %c0_229, %c0_230] : memref<4x8x2xbf16, #tpu.memory_space<vmem>>, vector<1x8x2xbf16>
    %355 = vector.shape_cast %354 : vector<1x8x2xbf16> to vector<8x2xbf16>
    %356 = arith.truncf %352 : vector<2x2xf32> to vector<2x2xbf16>
    %cst_231 = arith.constant dense<0.000000e+00> : vector<8x2xf32>
    %357 = tpu.matmul %355, %356, %cst_231 {dimension_numbers = #tpu.dot_dimension_numbers<[1], [0], [0], [1], [0, 0, 1, 1], [], []>} : vector<8x2xbf16>, vector<2x2xbf16>, vector<8x2xf32> -> vector<8x2xf32>
    %c0_232 = arith.constant 0 : index
    %c0_233 = arith.constant 0 : index
    %c0_234 = arith.constant 0 : index
    %358 = vector.load %arg14[%c0_232, %c0_233, %c0_234] : memref<4x8x1xf32, #tpu.memory_space<vmem>>, vector<1x8x1xf32>
    %359 = vector.shape_cast %358 : vector<1x8x1xf32> to vector<8x1xf32>
    %360 = vector.broadcast %359 : vector<8x1xf32> to vector<8x2xf32>
    %361 = arith.addf %357, %360 : vector<8x2xf32>
    %c0_235 = arith.constant 0 : index
    %c0_236 = arith.constant 0 : index
    %c0_237 = arith.constant 0 : index
    %362 = vector.load %arg15[%c0_235, %c0_236, %c0_237] : memref<4x2x8xbf16, #tpu.memory_space<vmem>>, vector<1x2x8xbf16>
    %363 = vector.shape_cast %362 : vector<1x2x8xbf16> to vector<2x8xbf16>
    %364 = arith.truncf %361 : vector<8x2xf32> to vector<8x2xbf16>
    %cst_238 = arith.constant dense<0.000000e+00> : vector<8x8xf32>
    %365 = tpu.matmul %364, %363, %cst_238 {dimension_numbers = #tpu.dot_dimension_numbers<[1], [0], [0], [1], [0, 0, 1, 1], [], []>} : vector<8x2xbf16>, vector<2x8xbf16>, vector<8x8xf32> -> vector<8x8xf32>
    %366 = arith.addf %353, %365 : vector<8x8xf32>
    %c1_239 = arith.constant 1 : index
    %c0_240 = arith.constant 0 : index
    %c0_241 = arith.constant 0 : index
    %367 = vector.load %arg13[%c1_239, %c0_240, %c0_241] : memref<4x8x2xbf16, #tpu.memory_space<vmem>>, vector<1x8x2xbf16>
    %368 = vector.shape_cast %367 : vector<1x8x2xbf16> to vector<8x2xbf16>
    %369 = arith.truncf %352 : vector<2x2xf32> to vector<2x2xbf16>
    %cst_242 = arith.constant dense<0.000000e+00> : vector<8x2xf32>
    %370 = tpu.matmul %368, %369, %cst_242 {dimension_numbers = #tpu.dot_dimension_numbers<[1], [0], [0], [1], [0, 0, 1, 1], [], []>} : vector<8x2xbf16>, vector<2x2xbf16>, vector<8x2xf32> -> vector<8x2xf32>
    %c1_243 = arith.constant 1 : index
    %c0_244 = arith.constant 0 : index
    %c0_245 = arith.constant 0 : index
    %371 = vector.load %arg14[%c1_243, %c0_244, %c0_245] : memref<4x8x1xf32, #tpu.memory_space<vmem>>, vector<1x8x1xf32>
    %372 = vector.shape_cast %371 : vector<1x8x1xf32> to vector<8x1xf32>
    %373 = vector.broadcast %372 : vector<8x1xf32> to vector<8x2xf32>
    %374 = arith.addf %370, %373 : vector<8x2xf32>
    %c1_246 = arith.constant 1 : index
    %c0_247 = arith.constant 0 : index
    %c0_248 = arith.constant 0 : index
    %375 = vector.load %arg15[%c1_246, %c0_247, %c0_248] : memref<4x2x8xbf16, #tpu.memory_space<vmem>>, vector<1x2x8xbf16>
    %376 = vector.shape_cast %375 : vector<1x2x8xbf16> to vector<2x8xbf16>
    %377 = arith.truncf %374 : vector<8x2xf32> to vector<8x2xbf16>
    %cst_249 = arith.constant dense<0.000000e+00> : vector<8x8xf32>
    %378 = tpu.matmul %377, %376, %cst_249 {dimension_numbers = #tpu.dot_dimension_numbers<[1], [0], [0], [1], [0, 0, 1, 1], [], []>} : vector<8x2xbf16>, vector<2x8xbf16>, vector<8x8xf32> -> vector<8x8xf32>
    %379 = arith.addf %366, %378 : vector<8x8xf32>
    %c2_250 = arith.constant 2 : index
    %c0_251 = arith.constant 0 : index
    %c0_252 = arith.constant 0 : index
    %380 = vector.load %arg13[%c2_250, %c0_251, %c0_252] : memref<4x8x2xbf16, #tpu.memory_space<vmem>>, vector<1x8x2xbf16>
    %381 = vector.shape_cast %380 : vector<1x8x2xbf16> to vector<8x2xbf16>
    %382 = arith.truncf %352 : vector<2x2xf32> to vector<2x2xbf16>
    %cst_253 = arith.constant dense<0.000000e+00> : vector<8x2xf32>
    %383 = tpu.matmul %381, %382, %cst_253 {dimension_numbers = #tpu.dot_dimension_numbers<[1], [0], [0], [1], [0, 0, 1, 1], [], []>} : vector<8x2xbf16>, vector<2x2xbf16>, vector<8x2xf32> -> vector<8x2xf32>
    %c2_254 = arith.constant 2 : index
    %c0_255 = arith.constant 0 : index
    %c0_256 = arith.constant 0 : index
    %384 = vector.load %arg14[%c2_254, %c0_255, %c0_256] : memref<4x8x1xf32, #tpu.memory_space<vmem>>, vector<1x8x1xf32>
    %385 = vector.shape_cast %384 : vector<1x8x1xf32> to vector<8x1xf32>
    %386 = vector.broadcast %385 : vector<8x1xf32> to vector<8x2xf32>
    %387 = arith.addf %383, %386 : vector<8x2xf32>
    %c2_257 = arith.constant 2 : index
    %c0_258 = arith.constant 0 : index
    %c0_259 = arith.constant 0 : index
    %388 = vector.load %arg15[%c2_257, %c0_258, %c0_259] : memref<4x2x8xbf16, #tpu.memory_space<vmem>>, vector<1x2x8xbf16>
    %389 = vector.shape_cast %388 : vector<1x2x8xbf16> to vector<2x8xbf16>
    %390 = arith.truncf %387 : vector<8x2xf32> to vector<8x2xbf16>
    %cst_260 = arith.constant dense<0.000000e+00> : vector<8x8xf32>
    %391 = tpu.matmul %390, %389, %cst_260 {dimension_numbers = #tpu.dot_dimension_numbers<[1], [0], [0], [1], [0, 0, 1, 1], [], []>} : vector<8x2xbf16>, vector<2x8xbf16>, vector<8x8xf32> -> vector<8x8xf32>
    %392 = arith.addf %379, %391 : vector<8x8xf32>
    %c3_261 = arith.constant 3 : index
    %c0_262 = arith.constant 0 : index
    %c0_263 = arith.constant 0 : index
    %393 = vector.load %arg13[%c3_261, %c0_262, %c0_263] : memref<4x8x2xbf16, #tpu.memory_space<vmem>>, vector<1x8x2xbf16>
    %394 = vector.shape_cast %393 : vector<1x8x2xbf16> to vector<8x2xbf16>
    %395 = arith.truncf %352 : vector<2x2xf32> to vector<2x2xbf16>
    %cst_264 = arith.constant dense<0.000000e+00> : vector<8x2xf32>
    %396 = tpu.matmul %394, %395, %cst_264 {dimension_numbers = #tpu.dot_dimension_numbers<[1], [0], [0], [1], [0, 0, 1, 1], [], []>} : vector<8x2xbf16>, vector<2x2xbf16>, vector<8x2xf32> -> vector<8x2xf32>
    %c3_265 = arith.constant 3 : index
    %c0_266 = arith.constant 0 : index
    %c0_267 = arith.constant 0 : index
    %397 = vector.load %arg14[%c3_265, %c0_266, %c0_267] : memref<4x8x1xf32, #tpu.memory_space<vmem>>, vector<1x8x1xf32>
    %398 = vector.shape_cast %397 : vector<1x8x1xf32> to vector<8x1xf32>
    %399 = vector.broadcast %398 : vector<8x1xf32> to vector<8x2xf32>
    %400 = arith.addf %396, %399 : vector<8x2xf32>
    %c3_268 = arith.constant 3 : index
    %c0_269 = arith.constant 0 : index
    %c0_270 = arith.constant 0 : index
    %401 = vector.load %arg15[%c3_268, %c0_269, %c0_270] : memref<4x2x8xbf16, #tpu.memory_space<vmem>>, vector<1x2x8xbf16>
    %402 = vector.shape_cast %401 : vector<1x2x8xbf16> to vector<2x8xbf16>
    %403 = arith.truncf %400 : vector<8x2xf32> to vector<8x2xbf16>
    %cst_271 = arith.constant dense<0.000000e+00> : vector<8x8xf32>
    %404 = tpu.matmul %403, %402, %cst_271 {dimension_numbers = #tpu.dot_dimension_numbers<[1], [0], [0], [1], [0, 0, 1, 1], [], []>} : vector<8x2xbf16>, vector<2x8xbf16>, vector<8x8xf32> -> vector<8x8xf32>
    %405 = arith.addf %392, %404 : vector<8x8xf32>
    %cst_272 = arith.constant 0.000000e+00 : f32
    %406 = vector.broadcast %cst_272 : f32 to vector<8x8xf32>
    %407 = arith.maximumf %405, %406 : vector<8x8xf32>
    %cst_273 = arith.constant 0.000000e+00 : f32
    %408 = vector.broadcast %cst_273 : f32 to vector<16x50xf32>
    %c0_274 = arith.constant 0 : index
    %c0_275 = arith.constant 0 : index
    %c0_276 = arith.constant 0 : index
    %409 = vector.load %arg16[%c0_274, %c0_275, %c0_276] : memref<9x16x8xbf16, #tpu.memory_space<vmem>>, vector<1x16x8xbf16>
    %410 = vector.shape_cast %409 : vector<1x16x8xbf16> to vector<16x8xbf16>
    %411 = arith.truncf %407 : vector<8x8xf32> to vector<8x8xbf16>
    %cst_277 = arith.constant dense<0.000000e+00> : vector<16x8xf32>
    %412 = tpu.matmul %410, %411, %cst_277 {dimension_numbers = #tpu.dot_dimension_numbers<[1], [0], [0], [1], [0, 0, 1, 1], [], []>} : vector<16x8xbf16>, vector<8x8xbf16>, vector<16x8xf32> -> vector<16x8xf32>
    %c0_278 = arith.constant 0 : index
    %c0_279 = arith.constant 0 : index
    %c0_280 = arith.constant 0 : index
    %413 = vector.load %arg20[%c0_278, %c0_279, %c0_280] : memref<9x8x50xbf16, #tpu.memory_space<vmem>>, vector<1x8x50xbf16>
    %414 = vector.shape_cast %413 : vector<1x8x50xbf16> to vector<8x50xbf16>
    %415 = arith.truncf %412 : vector<16x8xf32> to vector<16x8xbf16>
    %cst_281 = arith.constant dense<0.000000e+00> : vector<16x50xf32>
    %416 = tpu.matmul %415, %414, %cst_281 {dimension_numbers = #tpu.dot_dimension_numbers<[1], [0], [0], [1], [0, 0, 1, 1], [], []>} : vector<16x8xbf16>, vector<8x50xbf16>, vector<16x50xf32> -> vector<16x50xf32>
    %417 = arith.addf %408, %416 : vector<16x50xf32>
    %c1_282 = arith.constant 1 : index
    %c0_283 = arith.constant 0 : index
    %c0_284 = arith.constant 0 : index
    %418 = vector.load %arg16[%c1_282, %c0_283, %c0_284] : memref<9x16x8xbf16, #tpu.memory_space<vmem>>, vector<1x16x8xbf16>
    %419 = vector.shape_cast %418 : vector<1x16x8xbf16> to vector<16x8xbf16>
    %420 = arith.truncf %407 : vector<8x8xf32> to vector<8x8xbf16>
    %cst_285 = arith.constant dense<0.000000e+00> : vector<16x8xf32>
    %421 = tpu.matmul %419, %420, %cst_285 {dimension_numbers = #tpu.dot_dimension_numbers<[1], [0], [0], [1], [0, 0, 1, 1], [], []>} : vector<16x8xbf16>, vector<8x8xbf16>, vector<16x8xf32> -> vector<16x8xf32>
    %c1_286 = arith.constant 1 : index
    %c0_287 = arith.constant 0 : index
    %c0_288 = arith.constant 0 : index
    %422 = vector.load %arg20[%c1_286, %c0_287, %c0_288] : memref<9x8x50xbf16, #tpu.memory_space<vmem>>, vector<1x8x50xbf16>
    %423 = vector.shape_cast %422 : vector<1x8x50xbf16> to vector<8x50xbf16>
    %424 = arith.truncf %421 : vector<16x8xf32> to vector<16x8xbf16>
    %cst_289 = arith.constant dense<0.000000e+00> : vector<16x50xf32>
    %425 = tpu.matmul %424, %423, %cst_289 {dimension_numbers = #tpu.dot_dimension_numbers<[1], [0], [0], [1], [0, 0, 1, 1], [], []>} : vector<16x8xbf16>, vector<8x50xbf16>, vector<16x50xf32> -> vector<16x50xf32>
    %426 = arith.addf %417, %425 : vector<16x50xf32>
    %c2_290 = arith.constant 2 : index
    %c0_291 = arith.constant 0 : index
    %c0_292 = arith.constant 0 : index
    %427 = vector.load %arg16[%c2_290, %c0_291, %c0_292] : memref<9x16x8xbf16, #tpu.memory_space<vmem>>, vector<1x16x8xbf16>
    %428 = vector.shape_cast %427 : vector<1x16x8xbf16> to vector<16x8xbf16>
    %429 = arith.truncf %407 : vector<8x8xf32> to vector<8x8xbf16>
    %cst_293 = arith.constant dense<0.000000e+00> : vector<16x8xf32>
    %430 = tpu.matmul %428, %429, %cst_293 {dimension_numbers = #tpu.dot_dimension_numbers<[1], [0], [0], [1], [0, 0, 1, 1], [], []>} : vector<16x8xbf16>, vector<8x8xbf16>, vector<16x8xf32> -> vector<16x8xf32>
    %c2_294 = arith.constant 2 : index
    %c0_295 = arith.constant 0 : index
    %c0_296 = arith.constant 0 : index
    %431 = vector.load %arg20[%c2_294, %c0_295, %c0_296] : memref<9x8x50xbf16, #tpu.memory_space<vmem>>, vector<1x8x50xbf16>
    %432 = vector.shape_cast %431 : vector<1x8x50xbf16> to vector<8x50xbf16>
    %433 = arith.truncf %430 : vector<16x8xf32> to vector<16x8xbf16>
    %cst_297 = arith.constant dense<0.000000e+00> : vector<16x50xf32>
    %434 = tpu.matmul %433, %432, %cst_297 {dimension_numbers = #tpu.dot_dimension_numbers<[1], [0], [0], [1], [0, 0, 1, 1], [], []>} : vector<16x8xbf16>, vector<8x50xbf16>, vector<16x50xf32> -> vector<16x50xf32>
    %435 = arith.addf %426, %434 : vector<16x50xf32>
    %c3_298 = arith.constant 3 : index
    %c0_299 = arith.constant 0 : index
    %c0_300 = arith.constant 0 : index
    %436 = vector.load %arg16[%c3_298, %c0_299, %c0_300] : memref<9x16x8xbf16, #tpu.memory_space<vmem>>, vector<1x16x8xbf16>
    %437 = vector.shape_cast %436 : vector<1x16x8xbf16> to vector<16x8xbf16>
    %438 = arith.truncf %407 : vector<8x8xf32> to vector<8x8xbf16>
    %cst_301 = arith.constant dense<0.000000e+00> : vector<16x8xf32>
    %439 = tpu.matmul %437, %438, %cst_301 {dimension_numbers = #tpu.dot_dimension_numbers<[1], [0], [0], [1], [0, 0, 1, 1], [], []>} : vector<16x8xbf16>, vector<8x8xbf16>, vector<16x8xf32> -> vector<16x8xf32>
    %c3_302 = arith.constant 3 : index
    %c0_303 = arith.constant 0 : index
    %c0_304 = arith.constant 0 : index
    %440 = vector.load %arg20[%c3_302, %c0_303, %c0_304] : memref<9x8x50xbf16, #tpu.memory_space<vmem>>, vector<1x8x50xbf16>
    %441 = vector.shape_cast %440 : vector<1x8x50xbf16> to vector<8x50xbf16>
    %442 = arith.truncf %439 : vector<16x8xf32> to vector<16x8xbf16>
    %cst_305 = arith.constant dense<0.000000e+00> : vector<16x50xf32>
    %443 = tpu.matmul %442, %441, %cst_305 {dimension_numbers = #tpu.dot_dimension_numbers<[1], [0], [0], [1], [0, 0, 1, 1], [], []>} : vector<16x8xbf16>, vector<8x50xbf16>, vector<16x50xf32> -> vector<16x50xf32>
    %444 = arith.addf %435, %443 : vector<16x50xf32>
    %c4_306 = arith.constant 4 : index
    %c0_307 = arith.constant 0 : index
    %c0_308 = arith.constant 0 : index
    %445 = vector.load %arg16[%c4_306, %c0_307, %c0_308] : memref<9x16x8xbf16, #tpu.memory_space<vmem>>, vector<1x16x8xbf16>
    %446 = vector.shape_cast %445 : vector<1x16x8xbf16> to vector<16x8xbf16>
    %447 = arith.truncf %407 : vector<8x8xf32> to vector<8x8xbf16>
    %cst_309 = arith.constant dense<0.000000e+00> : vector<16x8xf32>
    %448 = tpu.matmul %446, %447, %cst_309 {dimension_numbers = #tpu.dot_dimension_numbers<[1], [0], [0], [1], [0, 0, 1, 1], [], []>} : vector<16x8xbf16>, vector<8x8xbf16>, vector<16x8xf32> -> vector<16x8xf32>
    %c4_310 = arith.constant 4 : index
    %c0_311 = arith.constant 0 : index
    %c0_312 = arith.constant 0 : index
    %449 = vector.load %arg20[%c4_310, %c0_311, %c0_312] : memref<9x8x50xbf16, #tpu.memory_space<vmem>>, vector<1x8x50xbf16>
    %450 = vector.shape_cast %449 : vector<1x8x50xbf16> to vector<8x50xbf16>
    %451 = arith.truncf %448 : vector<16x8xf32> to vector<16x8xbf16>
    %cst_313 = arith.constant dense<0.000000e+00> : vector<16x50xf32>
    %452 = tpu.matmul %451, %450, %cst_313 {dimension_numbers = #tpu.dot_dimension_numbers<[1], [0], [0], [1], [0, 0, 1, 1], [], []>} : vector<16x8xbf16>, vector<8x50xbf16>, vector<16x50xf32> -> vector<16x50xf32>
    %453 = arith.addf %444, %452 : vector<16x50xf32>
    %c5_314 = arith.constant 5 : index
    %c0_315 = arith.constant 0 : index
    %c0_316 = arith.constant 0 : index
    %454 = vector.load %arg16[%c5_314, %c0_315, %c0_316] : memref<9x16x8xbf16, #tpu.memory_space<vmem>>, vector<1x16x8xbf16>
    %455 = vector.shape_cast %454 : vector<1x16x8xbf16> to vector<16x8xbf16>
    %456 = arith.truncf %407 : vector<8x8xf32> to vector<8x8xbf16>
    %cst_317 = arith.constant dense<0.000000e+00> : vector<16x8xf32>
    %457 = tpu.matmul %455, %456, %cst_317 {dimension_numbers = #tpu.dot_dimension_numbers<[1], [0], [0], [1], [0, 0, 1, 1], [], []>} : vector<16x8xbf16>, vector<8x8xbf16>, vector<16x8xf32> -> vector<16x8xf32>
    %c5_318 = arith.constant 5 : index
    %c0_319 = arith.constant 0 : index
    %c0_320 = arith.constant 0 : index
    %458 = vector.load %arg20[%c5_318, %c0_319, %c0_320] : memref<9x8x50xbf16, #tpu.memory_space<vmem>>, vector<1x8x50xbf16>
    %459 = vector.shape_cast %458 : vector<1x8x50xbf16> to vector<8x50xbf16>
    %460 = arith.truncf %457 : vector<16x8xf32> to vector<16x8xbf16>
    %cst_321 = arith.constant dense<0.000000e+00> : vector<16x50xf32>
    %461 = tpu.matmul %460, %459, %cst_321 {dimension_numbers = #tpu.dot_dimension_numbers<[1], [0], [0], [1], [0, 0, 1, 1], [], []>} : vector<16x8xbf16>, vector<8x50xbf16>, vector<16x50xf32> -> vector<16x50xf32>
    %462 = arith.addf %453, %461 : vector<16x50xf32>
    %c6_322 = arith.constant 6 : index
    %c0_323 = arith.constant 0 : index
    %c0_324 = arith.constant 0 : index
    %463 = vector.load %arg16[%c6_322, %c0_323, %c0_324] : memref<9x16x8xbf16, #tpu.memory_space<vmem>>, vector<1x16x8xbf16>
    %464 = vector.shape_cast %463 : vector<1x16x8xbf16> to vector<16x8xbf16>
    %465 = arith.truncf %407 : vector<8x8xf32> to vector<8x8xbf16>
    %cst_325 = arith.constant dense<0.000000e+00> : vector<16x8xf32>
    %466 = tpu.matmul %464, %465, %cst_325 {dimension_numbers = #tpu.dot_dimension_numbers<[1], [0], [0], [1], [0, 0, 1, 1], [], []>} : vector<16x8xbf16>, vector<8x8xbf16>, vector<16x8xf32> -> vector<16x8xf32>
    %c6_326 = arith.constant 6 : index
    %c0_327 = arith.constant 0 : index
    %c0_328 = arith.constant 0 : index
    %467 = vector.load %arg20[%c6_326, %c0_327, %c0_328] : memref<9x8x50xbf16, #tpu.memory_space<vmem>>, vector<1x8x50xbf16>
    %468 = vector.shape_cast %467 : vector<1x8x50xbf16> to vector<8x50xbf16>
    %469 = arith.truncf %466 : vector<16x8xf32> to vector<16x8xbf16>
    %cst_329 = arith.constant dense<0.000000e+00> : vector<16x50xf32>
    %470 = tpu.matmul %469, %468, %cst_329 {dimension_numbers = #tpu.dot_dimension_numbers<[1], [0], [0], [1], [0, 0, 1, 1], [], []>} : vector<16x8xbf16>, vector<8x50xbf16>, vector<16x50xf32> -> vector<16x50xf32>
    %471 = arith.addf %462, %470 : vector<16x50xf32>
    %c7_330 = arith.constant 7 : index
    %c0_331 = arith.constant 0 : index
    %c0_332 = arith.constant 0 : index
    %472 = vector.load %arg16[%c7_330, %c0_331, %c0_332] : memref<9x16x8xbf16, #tpu.memory_space<vmem>>, vector<1x16x8xbf16>
    %473 = vector.shape_cast %472 : vector<1x16x8xbf16> to vector<16x8xbf16>
    %474 = arith.truncf %407 : vector<8x8xf32> to vector<8x8xbf16>
    %cst_333 = arith.constant dense<0.000000e+00> : vector<16x8xf32>
    %475 = tpu.matmul %473, %474, %cst_333 {dimension_numbers = #tpu.dot_dimension_numbers<[1], [0], [0], [1], [0, 0, 1, 1], [], []>} : vector<16x8xbf16>, vector<8x8xbf16>, vector<16x8xf32> -> vector<16x8xf32>
    %c7_334 = arith.constant 7 : index
    %c0_335 = arith.constant 0 : index
    %c0_336 = arith.constant 0 : index
    %476 = vector.load %arg20[%c7_334, %c0_335, %c0_336] : memref<9x8x50xbf16, #tpu.memory_space<vmem>>, vector<1x8x50xbf16>
    %477 = vector.shape_cast %476 : vector<1x8x50xbf16> to vector<8x50xbf16>
    %478 = arith.truncf %475 : vector<16x8xf32> to vector<16x8xbf16>
    %cst_337 = arith.constant dense<0.000000e+00> : vector<16x50xf32>
    %479 = tpu.matmul %478, %477, %cst_337 {dimension_numbers = #tpu.dot_dimension_numbers<[1], [0], [0], [1], [0, 0, 1, 1], [], []>} : vector<16x8xbf16>, vector<8x50xbf16>, vector<16x50xf32> -> vector<16x50xf32>
    %480 = arith.addf %471, %479 : vector<16x50xf32>
    %c8_338 = arith.constant 8 : index
    %c0_339 = arith.constant 0 : index
    %c0_340 = arith.constant 0 : index
    %481 = vector.load %arg16[%c8_338, %c0_339, %c0_340] : memref<9x16x8xbf16, #tpu.memory_space<vmem>>, vector<1x16x8xbf16>
    %482 = vector.shape_cast %481 : vector<1x16x8xbf16> to vector<16x8xbf16>
    %483 = arith.truncf %407 : vector<8x8xf32> to vector<8x8xbf16>
    %cst_341 = arith.constant dense<0.000000e+00> : vector<16x8xf32>
    %484 = tpu.matmul %482, %483, %cst_341 {dimension_numbers = #tpu.dot_dimension_numbers<[1], [0], [0], [1], [0, 0, 1, 1], [], []>} : vector<16x8xbf16>, vector<8x8xbf16>, vector<16x8xf32> -> vector<16x8xf32>
    %c8_342 = arith.constant 8 : index
    %c0_343 = arith.constant 0 : index
    %c0_344 = arith.constant 0 : index
    %485 = vector.load %arg20[%c8_342, %c0_343, %c0_344] : memref<9x8x50xbf16, #tpu.memory_space<vmem>>, vector<1x8x50xbf16>
    %486 = vector.shape_cast %485 : vector<1x8x50xbf16> to vector<8x50xbf16>
    %487 = arith.truncf %484 : vector<16x8xf32> to vector<16x8xbf16>
    %cst_345 = arith.constant dense<0.000000e+00> : vector<16x50xf32>
    %488 = tpu.matmul %487, %486, %cst_345 {dimension_numbers = #tpu.dot_dimension_numbers<[1], [0], [0], [1], [0, 0, 1, 1], [], []>} : vector<16x8xbf16>, vector<8x50xbf16>, vector<16x50xf32> -> vector<16x50xf32>
    %489 = arith.addf %480, %488 : vector<16x50xf32>
    %c0_346 = arith.constant 0 : index
    %c0_347 = arith.constant 0 : index
    %490 = vector.load %arg17[%c0_346, %c0_347] : memref<16x1xf32, #tpu.memory_space<vmem>>, vector<16x1xf32>
    %491 = vector.broadcast %490 : vector<16x1xf32> to vector<16x50xf32>
    %492 = arith.addf %489, %491 : vector<16x50xf32>
    %cst_348 = arith.constant 0.000000e+00 : f32
    %493 = vector.broadcast %cst_348 : f32 to vector<16x50xf32>
    %494 = arith.maximumf %492, %493 : vector<16x50xf32>
    %c0_349 = arith.constant 0 : index
    %c0_350 = arith.constant 0 : index
    %495 = vector.load %arg18[%c0_349, %c0_350] : memref<16x1xf32, #tpu.memory_space<vmem>>, vector<16x1xf32>
    %c0_351 = arith.constant 0 : index
    %c0_352 = arith.constant 0 : index
    %496 = vector.load %arg19[%c0_351, %c0_352] : memref<16x1xf32, #tpu.memory_space<vmem>>, vector<16x1xf32>
    %cst_353 = arith.constant dense<0.000000e+00> : vector<16xf32>
    %497 = vector.multi_reduction <add>, %494, %cst_353 [1] : vector<16x50xf32> to vector<16xf32>
    %498 = vector.shape_cast %497 : vector<16xf32> to vector<16x1xf32>
    %cst_354 = arith.constant 5.000000e+01 : f32
    %499 = vector.broadcast %cst_354 : f32 to vector<16x1xf32>
    %500 = arith.divf %498, %499 : vector<16x1xf32>
    %501 = vector.broadcast %500 : vector<16x1xf32> to vector<16x50xf32>
    %502 = arith.subf %494, %501 : vector<16x50xf32>
    %503 = vector.broadcast %500 : vector<16x1xf32> to vector<16x50xf32>
    %504 = arith.subf %494, %503 : vector<16x50xf32>
    %505 = arith.mulf %502, %504 : vector<16x50xf32>
    %cst_355 = arith.constant dense<0.000000e+00> : vector<16xf32>
    %506 = vector.multi_reduction <add>, %505, %cst_355 [1] : vector<16x50xf32> to vector<16xf32>
    %507 = vector.shape_cast %506 : vector<16xf32> to vector<16x1xf32>
    %cst_356 = arith.constant 5.000000e+01 : f32
    %508 = vector.broadcast %cst_356 : f32 to vector<16x1xf32>
    %509 = arith.divf %507, %508 : vector<16x1xf32>
    %510 = vector.broadcast %500 : vector<16x1xf32> to vector<16x50xf32>
    %511 = arith.subf %494, %510 : vector<16x50xf32>
    %cst_357 = arith.constant 9.99999974E-6 : f32
    %512 = vector.broadcast %cst_357 : f32 to vector<16x1xf32>
    %513 = arith.addf %509, %512 : vector<16x1xf32>
    %514 = math.rsqrt %513 : vector<16x1xf32>
    %515 = vector.broadcast %514 : vector<16x1xf32> to vector<16x50xf32>
    %516 = arith.mulf %511, %515 : vector<16x50xf32>
    %517 = vector.broadcast %495 : vector<16x1xf32> to vector<16x50xf32>
    %518 = arith.mulf %516, %517 : vector<16x50xf32>
    %519 = vector.broadcast %496 : vector<16x1xf32> to vector<16x50xf32>
    %520 = arith.addf %518, %519 : vector<16x50xf32>
    %cst_358 = arith.constant 0.000000e+00 : f32
    %521 = vector.broadcast %cst_358 : f32 to vector<8x450xf32>
    %c0_359 = arith.constant 0 : index
    %c0_360 = arith.constant 0 : index
    %c0_361 = arith.constant 0 : index
    %522 = vector.load %arg21[%c0_359, %c0_360, %c0_361] : memref<25x8x16xbf16, #tpu.memory_space<vmem>>, vector<1x8x16xbf16>
    %523 = vector.shape_cast %522 : vector<1x8x16xbf16> to vector<8x16xbf16>
    %524 = arith.truncf %520 : vector<16x50xf32> to vector<16x50xbf16>
    %cst_362 = arith.constant dense<0.000000e+00> : vector<8x50xf32>
    %525 = tpu.matmul %523, %524, %cst_362 {dimension_numbers = #tpu.dot_dimension_numbers<[1], [0], [0], [1], [0, 0, 1, 1], [], []>} : vector<8x16xbf16>, vector<16x50xbf16>, vector<8x50xf32> -> vector<8x50xf32>
    %c0_363 = arith.constant 0 : index
    %c0_364 = arith.constant 0 : index
    %c0_365 = arith.constant 0 : index
    %526 = vector.load %arg25[%c0_363, %c0_364, %c0_365] : memref<25x50x450xbf16, #tpu.memory_space<vmem>>, vector<1x50x450xbf16>
    %527 = vector.shape_cast %526 : vector<1x50x450xbf16> to vector<50x450xbf16>
    %528 = arith.truncf %525 : vector<8x50xf32> to vector<8x50xbf16>
    %cst_366 = arith.constant dense<0.000000e+00> : vector<8x450xf32>
    %529 = tpu.matmul %528, %527, %cst_366 {dimension_numbers = #tpu.dot_dimension_numbers<[1], [0], [0], [1], [0, 0, 1, 1], [], []>} : vector<8x50xbf16>, vector<50x450xbf16>, vector<8x450xf32> -> vector<8x450xf32>
    %530 = arith.addf %521, %529 : vector<8x450xf32>
    %c1_367 = arith.constant 1 : index
    %c0_368 = arith.constant 0 : index
    %c0_369 = arith.constant 0 : index
    %531 = vector.load %arg21[%c1_367, %c0_368, %c0_369] : memref<25x8x16xbf16, #tpu.memory_space<vmem>>, vector<1x8x16xbf16>
    %532 = vector.shape_cast %531 : vector<1x8x16xbf16> to vector<8x16xbf16>
    %533 = arith.truncf %520 : vector<16x50xf32> to vector<16x50xbf16>
    %cst_370 = arith.constant dense<0.000000e+00> : vector<8x50xf32>
    %534 = tpu.matmul %532, %533, %cst_370 {dimension_numbers = #tpu.dot_dimension_numbers<[1], [0], [0], [1], [0, 0, 1, 1], [], []>} : vector<8x16xbf16>, vector<16x50xbf16>, vector<8x50xf32> -> vector<8x50xf32>
    %c1_371 = arith.constant 1 : index
    %c0_372 = arith.constant 0 : index
    %c0_373 = arith.constant 0 : index
    %535 = vector.load %arg25[%c1_371, %c0_372, %c0_373] : memref<25x50x450xbf16, #tpu.memory_space<vmem>>, vector<1x50x450xbf16>
    %536 = vector.shape_cast %535 : vector<1x50x450xbf16> to vector<50x450xbf16>
    %537 = arith.truncf %534 : vector<8x50xf32> to vector<8x50xbf16>
    %cst_374 = arith.constant dense<0.000000e+00> : vector<8x450xf32>
    %538 = tpu.matmul %537, %536, %cst_374 {dimension_numbers = #tpu.dot_dimension_numbers<[1], [0], [0], [1], [0, 0, 1, 1], [], []>} : vector<8x50xbf16>, vector<50x450xbf16>, vector<8x450xf32> -> vector<8x450xf32>
    %539 = arith.addf %530, %538 : vector<8x450xf32>
    %c2_375 = arith.constant 2 : index
    %c0_376 = arith.constant 0 : index
    %c0_377 = arith.constant 0 : index
    %540 = vector.load %arg21[%c2_375, %c0_376, %c0_377] : memref<25x8x16xbf16, #tpu.memory_space<vmem>>, vector<1x8x16xbf16>
    %541 = vector.shape_cast %540 : vector<1x8x16xbf16> to vector<8x16xbf16>
    %542 = arith.truncf %520 : vector<16x50xf32> to vector<16x50xbf16>
    %cst_378 = arith.constant dense<0.000000e+00> : vector<8x50xf32>
    %543 = tpu.matmul %541, %542, %cst_378 {dimension_numbers = #tpu.dot_dimension_numbers<[1], [0], [0], [1], [0, 0, 1, 1], [], []>} : vector<8x16xbf16>, vector<16x50xbf16>, vector<8x50xf32> -> vector<8x50xf32>
    %c2_379 = arith.constant 2 : index
    %c0_380 = arith.constant 0 : index
    %c0_381 = arith.constant 0 : index
    %544 = vector.load %arg25[%c2_379, %c0_380, %c0_381] : memref<25x50x450xbf16, #tpu.memory_space<vmem>>, vector<1x50x450xbf16>
    %545 = vector.shape_cast %544 : vector<1x50x450xbf16> to vector<50x450xbf16>
    %546 = arith.truncf %543 : vector<8x50xf32> to vector<8x50xbf16>
    %cst_382 = arith.constant dense<0.000000e+00> : vector<8x450xf32>
    %547 = tpu.matmul %546, %545, %cst_382 {dimension_numbers = #tpu.dot_dimension_numbers<[1], [0], [0], [1], [0, 0, 1, 1], [], []>} : vector<8x50xbf16>, vector<50x450xbf16>, vector<8x450xf32> -> vector<8x450xf32>
    %548 = arith.addf %539, %547 : vector<8x450xf32>
    %c3_383 = arith.constant 3 : index
    %c0_384 = arith.constant 0 : index
    %c0_385 = arith.constant 0 : index
    %549 = vector.load %arg21[%c3_383, %c0_384, %c0_385] : memref<25x8x16xbf16, #tpu.memory_space<vmem>>, vector<1x8x16xbf16>
    %550 = vector.shape_cast %549 : vector<1x8x16xbf16> to vector<8x16xbf16>
    %551 = arith.truncf %520 : vector<16x50xf32> to vector<16x50xbf16>
    %cst_386 = arith.constant dense<0.000000e+00> : vector<8x50xf32>
    %552 = tpu.matmul %550, %551, %cst_386 {dimension_numbers = #tpu.dot_dimension_numbers<[1], [0], [0], [1], [0, 0, 1, 1], [], []>} : vector<8x16xbf16>, vector<16x50xbf16>, vector<8x50xf32> -> vector<8x50xf32>
    %c3_387 = arith.constant 3 : index
    %c0_388 = arith.constant 0 : index
    %c0_389 = arith.constant 0 : index
    %553 = vector.load %arg25[%c3_387, %c0_388, %c0_389] : memref<25x50x450xbf16, #tpu.memory_space<vmem>>, vector<1x50x450xbf16>
    %554 = vector.shape_cast %553 : vector<1x50x450xbf16> to vector<50x450xbf16>
    %555 = arith.truncf %552 : vector<8x50xf32> to vector<8x50xbf16>
    %cst_390 = arith.constant dense<0.000000e+00> : vector<8x450xf32>
    %556 = tpu.matmul %555, %554, %cst_390 {dimension_numbers = #tpu.dot_dimension_numbers<[1], [0], [0], [1], [0, 0, 1, 1], [], []>} : vector<8x50xbf16>, vector<50x450xbf16>, vector<8x450xf32> -> vector<8x450xf32>
    %557 = arith.addf %548, %556 : vector<8x450xf32>
    %c4_391 = arith.constant 4 : index
    %c0_392 = arith.constant 0 : index
    %c0_393 = arith.constant 0 : index
    %558 = vector.load %arg21[%c4_391, %c0_392, %c0_393] : memref<25x8x16xbf16, #tpu.memory_space<vmem>>, vector<1x8x16xbf16>
    %559 = vector.shape_cast %558 : vector<1x8x16xbf16> to vector<8x16xbf16>
    %560 = arith.truncf %520 : vector<16x50xf32> to vector<16x50xbf16>
    %cst_394 = arith.constant dense<0.000000e+00> : vector<8x50xf32>
    %561 = tpu.matmul %559, %560, %cst_394 {dimension_numbers = #tpu.dot_dimension_numbers<[1], [0], [0], [1], [0, 0, 1, 1], [], []>} : vector<8x16xbf16>, vector<16x50xbf16>, vector<8x50xf32> -> vector<8x50xf32>
    %c4_395 = arith.constant 4 : index
    %c0_396 = arith.constant 0 : index
    %c0_397 = arith.constant 0 : index
    %562 = vector.load %arg25[%c4_395, %c0_396, %c0_397] : memref<25x50x450xbf16, #tpu.memory_space<vmem>>, vector<1x50x450xbf16>
    %563 = vector.shape_cast %562 : vector<1x50x450xbf16> to vector<50x450xbf16>
    %564 = arith.truncf %561 : vector<8x50xf32> to vector<8x50xbf16>
    %cst_398 = arith.constant dense<0.000000e+00> : vector<8x450xf32>
    %565 = tpu.matmul %564, %563, %cst_398 {dimension_numbers = #tpu.dot_dimension_numbers<[1], [0], [0], [1], [0, 0, 1, 1], [], []>} : vector<8x50xbf16>, vector<50x450xbf16>, vector<8x450xf32> -> vector<8x450xf32>
    %566 = arith.addf %557, %565 : vector<8x450xf32>
    %c5_399 = arith.constant 5 : index
    %c0_400 = arith.constant 0 : index
    %c0_401 = arith.constant 0 : index
    %567 = vector.load %arg21[%c5_399, %c0_400, %c0_401] : memref<25x8x16xbf16, #tpu.memory_space<vmem>>, vector<1x8x16xbf16>
    %568 = vector.shape_cast %567 : vector<1x8x16xbf16> to vector<8x16xbf16>
    %569 = arith.truncf %520 : vector<16x50xf32> to vector<16x50xbf16>
    %cst_402 = arith.constant dense<0.000000e+00> : vector<8x50xf32>
    %570 = tpu.matmul %568, %569, %cst_402 {dimension_numbers = #tpu.dot_dimension_numbers<[1], [0], [0], [1], [0, 0, 1, 1], [], []>} : vector<8x16xbf16>, vector<16x50xbf16>, vector<8x50xf32> -> vector<8x50xf32>
    %c5_403 = arith.constant 5 : index
    %c0_404 = arith.constant 0 : index
    %c0_405 = arith.constant 0 : index
    %571 = vector.load %arg25[%c5_403, %c0_404, %c0_405] : memref<25x50x450xbf16, #tpu.memory_space<vmem>>, vector<1x50x450xbf16>
    %572 = vector.shape_cast %571 : vector<1x50x450xbf16> to vector<50x450xbf16>
    %573 = arith.truncf %570 : vector<8x50xf32> to vector<8x50xbf16>
    %cst_406 = arith.constant dense<0.000000e+00> : vector<8x450xf32>
    %574 = tpu.matmul %573, %572, %cst_406 {dimension_numbers = #tpu.dot_dimension_numbers<[1], [0], [0], [1], [0, 0, 1, 1], [], []>} : vector<8x50xbf16>, vector<50x450xbf16>, vector<8x450xf32> -> vector<8x450xf32>
    %575 = arith.addf %566, %574 : vector<8x450xf32>
    %c6_407 = arith.constant 6 : index
    %c0_408 = arith.constant 0 : index
    %c0_409 = arith.constant 0 : index
    %576 = vector.load %arg21[%c6_407, %c0_408, %c0_409] : memref<25x8x16xbf16, #tpu.memory_space<vmem>>, vector<1x8x16xbf16>
    %577 = vector.shape_cast %576 : vector<1x8x16xbf16> to vector<8x16xbf16>
    %578 = arith.truncf %520 : vector<16x50xf32> to vector<16x50xbf16>
    %cst_410 = arith.constant dense<0.000000e+00> : vector<8x50xf32>
    %579 = tpu.matmul %577, %578, %cst_410 {dimension_numbers = #tpu.dot_dimension_numbers<[1], [0], [0], [1], [0, 0, 1, 1], [], []>} : vector<8x16xbf16>, vector<16x50xbf16>, vector<8x50xf32> -> vector<8x50xf32>
    %c6_411 = arith.constant 6 : index
    %c0_412 = arith.constant 0 : index
    %c0_413 = arith.constant 0 : index
    %580 = vector.load %arg25[%c6_411, %c0_412, %c0_413] : memref<25x50x450xbf16, #tpu.memory_space<vmem>>, vector<1x50x450xbf16>
    %581 = vector.shape_cast %580 : vector<1x50x450xbf16> to vector<50x450xbf16>
    %582 = arith.truncf %579 : vector<8x50xf32> to vector<8x50xbf16>
    %cst_414 = arith.constant dense<0.000000e+00> : vector<8x450xf32>
    %583 = tpu.matmul %582, %581, %cst_414 {dimension_numbers = #tpu.dot_dimension_numbers<[1], [0], [0], [1], [0, 0, 1, 1], [], []>} : vector<8x50xbf16>, vector<50x450xbf16>, vector<8x450xf32> -> vector<8x450xf32>
    %584 = arith.addf %575, %583 : vector<8x450xf32>
    %c7_415 = arith.constant 7 : index
    %c0_416 = arith.constant 0 : index
    %c0_417 = arith.constant 0 : index
    %585 = vector.load %arg21[%c7_415, %c0_416, %c0_417] : memref<25x8x16xbf16, #tpu.memory_space<vmem>>, vector<1x8x16xbf16>
    %586 = vector.shape_cast %585 : vector<1x8x16xbf16> to vector<8x16xbf16>
    %587 = arith.truncf %520 : vector<16x50xf32> to vector<16x50xbf16>
    %cst_418 = arith.constant dense<0.000000e+00> : vector<8x50xf32>
    %588 = tpu.matmul %586, %587, %cst_418 {dimension_numbers = #tpu.dot_dimension_numbers<[1], [0], [0], [1], [0, 0, 1, 1], [], []>} : vector<8x16xbf16>, vector<16x50xbf16>, vector<8x50xf32> -> vector<8x50xf32>
    %c7_419 = arith.constant 7 : index
    %c0_420 = arith.constant 0 : index
    %c0_421 = arith.constant 0 : index
    %589 = vector.load %arg25[%c7_419, %c0_420, %c0_421] : memref<25x50x450xbf16, #tpu.memory_space<vmem>>, vector<1x50x450xbf16>
    %590 = vector.shape_cast %589 : vector<1x50x450xbf16> to vector<50x450xbf16>
    %591 = arith.truncf %588 : vector<8x50xf32> to vector<8x50xbf16>
    %cst_422 = arith.constant dense<0.000000e+00> : vector<8x450xf32>
    %592 = tpu.matmul %591, %590, %cst_422 {dimension_numbers = #tpu.dot_dimension_numbers<[1], [0], [0], [1], [0, 0, 1, 1], [], []>} : vector<8x50xbf16>, vector<50x450xbf16>, vector<8x450xf32> -> vector<8x450xf32>
    %593 = arith.addf %584, %592 : vector<8x450xf32>
    %c8_423 = arith.constant 8 : index
    %c0_424 = arith.constant 0 : index
    %c0_425 = arith.constant 0 : index
    %594 = vector.load %arg21[%c8_423, %c0_424, %c0_425] : memref<25x8x16xbf16, #tpu.memory_space<vmem>>, vector<1x8x16xbf16>
    %595 = vector.shape_cast %594 : vector<1x8x16xbf16> to vector<8x16xbf16>
    %596 = arith.truncf %520 : vector<16x50xf32> to vector<16x50xbf16>
    %cst_426 = arith.constant dense<0.000000e+00> : vector<8x50xf32>
    %597 = tpu.matmul %595, %596, %cst_426 {dimension_numbers = #tpu.dot_dimension_numbers<[1], [0], [0], [1], [0, 0, 1, 1], [], []>} : vector<8x16xbf16>, vector<16x50xbf16>, vector<8x50xf32> -> vector<8x50xf32>
    %c8_427 = arith.constant 8 : index
    %c0_428 = arith.constant 0 : index
    %c0_429 = arith.constant 0 : index
    %598 = vector.load %arg25[%c8_427, %c0_428, %c0_429] : memref<25x50x450xbf16, #tpu.memory_space<vmem>>, vector<1x50x450xbf16>
    %599 = vector.shape_cast %598 : vector<1x50x450xbf16> to vector<50x450xbf16>
    %600 = arith.truncf %597 : vector<8x50xf32> to vector<8x50xbf16>
    %cst_430 = arith.constant dense<0.000000e+00> : vector<8x450xf32>
    %601 = tpu.matmul %600, %599, %cst_430 {dimension_numbers = #tpu.dot_dimension_numbers<[1], [0], [0], [1], [0, 0, 1, 1], [], []>} : vector<8x50xbf16>, vector<50x450xbf16>, vector<8x450xf32> -> vector<8x450xf32>
    %602 = arith.addf %593, %601 : vector<8x450xf32>
    %c9_431 = arith.constant 9 : index
    %c0_432 = arith.constant 0 : index
    %c0_433 = arith.constant 0 : index
    %603 = vector.load %arg21[%c9_431, %c0_432, %c0_433] : memref<25x8x16xbf16, #tpu.memory_space<vmem>>, vector<1x8x16xbf16>
    %604 = vector.shape_cast %603 : vector<1x8x16xbf16> to vector<8x16xbf16>
    %605 = arith.truncf %520 : vector<16x50xf32> to vector<16x50xbf16>
    %cst_434 = arith.constant dense<0.000000e+00> : vector<8x50xf32>
    %606 = tpu.matmul %604, %605, %cst_434 {dimension_numbers = #tpu.dot_dimension_numbers<[1], [0], [0], [1], [0, 0, 1, 1], [], []>} : vector<8x16xbf16>, vector<16x50xbf16>, vector<8x50xf32> -> vector<8x50xf32>
    %c9_435 = arith.constant 9 : index
    %c0_436 = arith.constant 0 : index
    %c0_437 = arith.constant 0 : index
    %607 = vector.load %arg25[%c9_435, %c0_436, %c0_437] : memref<25x50x450xbf16, #tpu.memory_space<vmem>>, vector<1x50x450xbf16>
    %608 = vector.shape_cast %607 : vector<1x50x450xbf16> to vector<50x450xbf16>
    %609 = arith.truncf %606 : vector<8x50xf32> to vector<8x50xbf16>
    %cst_438 = arith.constant dense<0.000000e+00> : vector<8x450xf32>
    %610 = tpu.matmul %609, %608, %cst_438 {dimension_numbers = #tpu.dot_dimension_numbers<[1], [0], [0], [1], [0, 0, 1, 1], [], []>} : vector<8x50xbf16>, vector<50x450xbf16>, vector<8x450xf32> -> vector<8x450xf32>
    %611 = arith.addf %602, %610 : vector<8x450xf32>
    %c10_439 = arith.constant 10 : index
    %c0_440 = arith.constant 0 : index
    %c0_441 = arith.constant 0 : index
    %612 = vector.load %arg21[%c10_439, %c0_440, %c0_441] : memref<25x8x16xbf16, #tpu.memory_space<vmem>>, vector<1x8x16xbf16>
    %613 = vector.shape_cast %612 : vector<1x8x16xbf16> to vector<8x16xbf16>
    %614 = arith.truncf %520 : vector<16x50xf32> to vector<16x50xbf16>
    %cst_442 = arith.constant dense<0.000000e+00> : vector<8x50xf32>
    %615 = tpu.matmul %613, %614, %cst_442 {dimension_numbers = #tpu.dot_dimension_numbers<[1], [0], [0], [1], [0, 0, 1, 1], [], []>} : vector<8x16xbf16>, vector<16x50xbf16>, vector<8x50xf32> -> vector<8x50xf32>
    %c10_443 = arith.constant 10 : index
    %c0_444 = arith.constant 0 : index
    %c0_445 = arith.constant 0 : index
    %616 = vector.load %arg25[%c10_443, %c0_444, %c0_445] : memref<25x50x450xbf16, #tpu.memory_space<vmem>>, vector<1x50x450xbf16>
    %617 = vector.shape_cast %616 : vector<1x50x450xbf16> to vector<50x450xbf16>
    %618 = arith.truncf %615 : vector<8x50xf32> to vector<8x50xbf16>
    %cst_446 = arith.constant dense<0.000000e+00> : vector<8x450xf32>
    %619 = tpu.matmul %618, %617, %cst_446 {dimension_numbers = #tpu.dot_dimension_numbers<[1], [0], [0], [1], [0, 0, 1, 1], [], []>} : vector<8x50xbf16>, vector<50x450xbf16>, vector<8x450xf32> -> vector<8x450xf32>
    %620 = arith.addf %611, %619 : vector<8x450xf32>
    %c11_447 = arith.constant 11 : index
    %c0_448 = arith.constant 0 : index
    %c0_449 = arith.constant 0 : index
    %621 = vector.load %arg21[%c11_447, %c0_448, %c0_449] : memref<25x8x16xbf16, #tpu.memory_space<vmem>>, vector<1x8x16xbf16>
    %622 = vector.shape_cast %621 : vector<1x8x16xbf16> to vector<8x16xbf16>
    %623 = arith.truncf %520 : vector<16x50xf32> to vector<16x50xbf16>
    %cst_450 = arith.constant dense<0.000000e+00> : vector<8x50xf32>
    %624 = tpu.matmul %622, %623, %cst_450 {dimension_numbers = #tpu.dot_dimension_numbers<[1], [0], [0], [1], [0, 0, 1, 1], [], []>} : vector<8x16xbf16>, vector<16x50xbf16>, vector<8x50xf32> -> vector<8x50xf32>
    %c11_451 = arith.constant 11 : index
    %c0_452 = arith.constant 0 : index
    %c0_453 = arith.constant 0 : index
    %625 = vector.load %arg25[%c11_451, %c0_452, %c0_453] : memref<25x50x450xbf16, #tpu.memory_space<vmem>>, vector<1x50x450xbf16>
    %626 = vector.shape_cast %625 : vector<1x50x450xbf16> to vector<50x450xbf16>
    %627 = arith.truncf %624 : vector<8x50xf32> to vector<8x50xbf16>
    %cst_454 = arith.constant dense<0.000000e+00> : vector<8x450xf32>
    %628 = tpu.matmul %627, %626, %cst_454 {dimension_numbers = #tpu.dot_dimension_numbers<[1], [0], [0], [1], [0, 0, 1, 1], [], []>} : vector<8x50xbf16>, vector<50x450xbf16>, vector<8x450xf32> -> vector<8x450xf32>
    %629 = arith.addf %620, %628 : vector<8x450xf32>
    %c12_455 = arith.constant 12 : index
    %c0_456 = arith.constant 0 : index
    %c0_457 = arith.constant 0 : index
    %630 = vector.load %arg21[%c12_455, %c0_456, %c0_457] : memref<25x8x16xbf16, #tpu.memory_space<vmem>>, vector<1x8x16xbf16>
    %631 = vector.shape_cast %630 : vector<1x8x16xbf16> to vector<8x16xbf16>
    %632 = arith.truncf %520 : vector<16x50xf32> to vector<16x50xbf16>
    %cst_458 = arith.constant dense<0.000000e+00> : vector<8x50xf32>
    %633 = tpu.matmul %631, %632, %cst_458 {dimension_numbers = #tpu.dot_dimension_numbers<[1], [0], [0], [1], [0, 0, 1, 1], [], []>} : vector<8x16xbf16>, vector<16x50xbf16>, vector<8x50xf32> -> vector<8x50xf32>
    %c12_459 = arith.constant 12 : index
    %c0_460 = arith.constant 0 : index
    %c0_461 = arith.constant 0 : index
    %634 = vector.load %arg25[%c12_459, %c0_460, %c0_461] : memref<25x50x450xbf16, #tpu.memory_space<vmem>>, vector<1x50x450xbf16>
    %635 = vector.shape_cast %634 : vector<1x50x450xbf16> to vector<50x450xbf16>
    %636 = arith.truncf %633 : vector<8x50xf32> to vector<8x50xbf16>
    %cst_462 = arith.constant dense<0.000000e+00> : vector<8x450xf32>
    %637 = tpu.matmul %636, %635, %cst_462 {dimension_numbers = #tpu.dot_dimension_numbers<[1], [0], [0], [1], [0, 0, 1, 1], [], []>} : vector<8x50xbf16>, vector<50x450xbf16>, vector<8x450xf32> -> vector<8x450xf32>
    %638 = arith.addf %629, %637 : vector<8x450xf32>
    %c13_463 = arith.constant 13 : index
    %c0_464 = arith.constant 0 : index
    %c0_465 = arith.constant 0 : index
    %639 = vector.load %arg21[%c13_463, %c0_464, %c0_465] : memref<25x8x16xbf16, #tpu.memory_space<vmem>>, vector<1x8x16xbf16>
    %640 = vector.shape_cast %639 : vector<1x8x16xbf16> to vector<8x16xbf16>
    %641 = arith.truncf %520 : vector<16x50xf32> to vector<16x50xbf16>
    %cst_466 = arith.constant dense<0.000000e+00> : vector<8x50xf32>
    %642 = tpu.matmul %640, %641, %cst_466 {dimension_numbers = #tpu.dot_dimension_numbers<[1], [0], [0], [1], [0, 0, 1, 1], [], []>} : vector<8x16xbf16>, vector<16x50xbf16>, vector<8x50xf32> -> vector<8x50xf32>
    %c13_467 = arith.constant 13 : index
    %c0_468 = arith.constant 0 : index
    %c0_469 = arith.constant 0 : index
    %643 = vector.load %arg25[%c13_467, %c0_468, %c0_469] : memref<25x50x450xbf16, #tpu.memory_space<vmem>>, vector<1x50x450xbf16>
    %644 = vector.shape_cast %643 : vector<1x50x450xbf16> to vector<50x450xbf16>
    %645 = arith.truncf %642 : vector<8x50xf32> to vector<8x50xbf16>
    %cst_470 = arith.constant dense<0.000000e+00> : vector<8x450xf32>
    %646 = tpu.matmul %645, %644, %cst_470 {dimension_numbers = #tpu.dot_dimension_numbers<[1], [0], [0], [1], [0, 0, 1, 1], [], []>} : vector<8x50xbf16>, vector<50x450xbf16>, vector<8x450xf32> -> vector<8x450xf32>
    %647 = arith.addf %638, %646 : vector<8x450xf32>
    %c14_471 = arith.constant 14 : index
    %c0_472 = arith.constant 0 : index
    %c0_473 = arith.constant 0 : index
    %648 = vector.load %arg21[%c14_471, %c0_472, %c0_473] : memref<25x8x16xbf16, #tpu.memory_space<vmem>>, vector<1x8x16xbf16>
    %649 = vector.shape_cast %648 : vector<1x8x16xbf16> to vector<8x16xbf16>
    %650 = arith.truncf %520 : vector<16x50xf32> to vector<16x50xbf16>
    %cst_474 = arith.constant dense<0.000000e+00> : vector<8x50xf32>
    %651 = tpu.matmul %649, %650, %cst_474 {dimension_numbers = #tpu.dot_dimension_numbers<[1], [0], [0], [1], [0, 0, 1, 1], [], []>} : vector<8x16xbf16>, vector<16x50xbf16>, vector<8x50xf32> -> vector<8x50xf32>
    %c14_475 = arith.constant 14 : index
    %c0_476 = arith.constant 0 : index
    %c0_477 = arith.constant 0 : index
    %652 = vector.load %arg25[%c14_475, %c0_476, %c0_477] : memref<25x50x450xbf16, #tpu.memory_space<vmem>>, vector<1x50x450xbf16>
    %653 = vector.shape_cast %652 : vector<1x50x450xbf16> to vector<50x450xbf16>
    %654 = arith.truncf %651 : vector<8x50xf32> to vector<8x50xbf16>
    %cst_478 = arith.constant dense<0.000000e+00> : vector<8x450xf32>
    %655 = tpu.matmul %654, %653, %cst_478 {dimension_numbers = #tpu.dot_dimension_numbers<[1], [0], [0], [1], [0, 0, 1, 1], [], []>} : vector<8x50xbf16>, vector<50x450xbf16>, vector<8x450xf32> -> vector<8x450xf32>
    %656 = arith.addf %647, %655 : vector<8x450xf32>
    %c15_479 = arith.constant 15 : index
    %c0_480 = arith.constant 0 : index
    %c0_481 = arith.constant 0 : index
    %657 = vector.load %arg21[%c15_479, %c0_480, %c0_481] : memref<25x8x16xbf16, #tpu.memory_space<vmem>>, vector<1x8x16xbf16>
    %658 = vector.shape_cast %657 : vector<1x8x16xbf16> to vector<8x16xbf16>
    %659 = arith.truncf %520 : vector<16x50xf32> to vector<16x50xbf16>
    %cst_482 = arith.constant dense<0.000000e+00> : vector<8x50xf32>
    %660 = tpu.matmul %658, %659, %cst_482 {dimension_numbers = #tpu.dot_dimension_numbers<[1], [0], [0], [1], [0, 0, 1, 1], [], []>} : vector<8x16xbf16>, vector<16x50xbf16>, vector<8x50xf32> -> vector<8x50xf32>
    %c15_483 = arith.constant 15 : index
    %c0_484 = arith.constant 0 : index
    %c0_485 = arith.constant 0 : index
    %661 = vector.load %arg25[%c15_483, %c0_484, %c0_485] : memref<25x50x450xbf16, #tpu.memory_space<vmem>>, vector<1x50x450xbf16>
    %662 = vector.shape_cast %661 : vector<1x50x450xbf16> to vector<50x450xbf16>
    %663 = arith.truncf %660 : vector<8x50xf32> to vector<8x50xbf16>
    %cst_486 = arith.constant dense<0.000000e+00> : vector<8x450xf32>
    %664 = tpu.matmul %663, %662, %cst_486 {dimension_numbers = #tpu.dot_dimension_numbers<[1], [0], [0], [1], [0, 0, 1, 1], [], []>} : vector<8x50xbf16>, vector<50x450xbf16>, vector<8x450xf32> -> vector<8x450xf32>
    %665 = arith.addf %656, %664 : vector<8x450xf32>
    %c16_487 = arith.constant 16 : index
    %c0_488 = arith.constant 0 : index
    %c0_489 = arith.constant 0 : index
    %666 = vector.load %arg21[%c16_487, %c0_488, %c0_489] : memref<25x8x16xbf16, #tpu.memory_space<vmem>>, vector<1x8x16xbf16>
    %667 = vector.shape_cast %666 : vector<1x8x16xbf16> to vector<8x16xbf16>
    %668 = arith.truncf %520 : vector<16x50xf32> to vector<16x50xbf16>
    %cst_490 = arith.constant dense<0.000000e+00> : vector<8x50xf32>
    %669 = tpu.matmul %667, %668, %cst_490 {dimension_numbers = #tpu.dot_dimension_numbers<[1], [0], [0], [1], [0, 0, 1, 1], [], []>} : vector<8x16xbf16>, vector<16x50xbf16>, vector<8x50xf32> -> vector<8x50xf32>
    %c16_491 = arith.constant 16 : index
    %c0_492 = arith.constant 0 : index
    %c0_493 = arith.constant 0 : index
    %670 = vector.load %arg25[%c16_491, %c0_492, %c0_493] : memref<25x50x450xbf16, #tpu.memory_space<vmem>>, vector<1x50x450xbf16>
    %671 = vector.shape_cast %670 : vector<1x50x450xbf16> to vector<50x450xbf16>
    %672 = arith.truncf %669 : vector<8x50xf32> to vector<8x50xbf16>
    %cst_494 = arith.constant dense<0.000000e+00> : vector<8x450xf32>
    %673 = tpu.matmul %672, %671, %cst_494 {dimension_numbers = #tpu.dot_dimension_numbers<[1], [0], [0], [1], [0, 0, 1, 1], [], []>} : vector<8x50xbf16>, vector<50x450xbf16>, vector<8x450xf32> -> vector<8x450xf32>
    %674 = arith.addf %665, %673 : vector<8x450xf32>
    %c17_495 = arith.constant 17 : index
    %c0_496 = arith.constant 0 : index
    %c0_497 = arith.constant 0 : index
    %675 = vector.load %arg21[%c17_495, %c0_496, %c0_497] : memref<25x8x16xbf16, #tpu.memory_space<vmem>>, vector<1x8x16xbf16>
    %676 = vector.shape_cast %675 : vector<1x8x16xbf16> to vector<8x16xbf16>
    %677 = arith.truncf %520 : vector<16x50xf32> to vector<16x50xbf16>
    %cst_498 = arith.constant dense<0.000000e+00> : vector<8x50xf32>
    %678 = tpu.matmul %676, %677, %cst_498 {dimension_numbers = #tpu.dot_dimension_numbers<[1], [0], [0], [1], [0, 0, 1, 1], [], []>} : vector<8x16xbf16>, vector<16x50xbf16>, vector<8x50xf32> -> vector<8x50xf32>
    %c17_499 = arith.constant 17 : index
    %c0_500 = arith.constant 0 : index
    %c0_501 = arith.constant 0 : index
    %679 = vector.load %arg25[%c17_499, %c0_500, %c0_501] : memref<25x50x450xbf16, #tpu.memory_space<vmem>>, vector<1x50x450xbf16>
    %680 = vector.shape_cast %679 : vector<1x50x450xbf16> to vector<50x450xbf16>
    %681 = arith.truncf %678 : vector<8x50xf32> to vector<8x50xbf16>
    %cst_502 = arith.constant dense<0.000000e+00> : vector<8x450xf32>
    %682 = tpu.matmul %681, %680, %cst_502 {dimension_numbers = #tpu.dot_dimension_numbers<[1], [0], [0], [1], [0, 0, 1, 1], [], []>} : vector<8x50xbf16>, vector<50x450xbf16>, vector<8x450xf32> -> vector<8x450xf32>
    %683 = arith.addf %674, %682 : vector<8x450xf32>
    %c18_503 = arith.constant 18 : index
    %c0_504 = arith.constant 0 : index
    %c0_505 = arith.constant 0 : index
    %684 = vector.load %arg21[%c18_503, %c0_504, %c0_505] : memref<25x8x16xbf16, #tpu.memory_space<vmem>>, vector<1x8x16xbf16>
    %685 = vector.shape_cast %684 : vector<1x8x16xbf16> to vector<8x16xbf16>
    %686 = arith.truncf %520 : vector<16x50xf32> to vector<16x50xbf16>
    %cst_506 = arith.constant dense<0.000000e+00> : vector<8x50xf32>
    %687 = tpu.matmul %685, %686, %cst_506 {dimension_numbers = #tpu.dot_dimension_numbers<[1], [0], [0], [1], [0, 0, 1, 1], [], []>} : vector<8x16xbf16>, vector<16x50xbf16>, vector<8x50xf32> -> vector<8x50xf32>
    %c18_507 = arith.constant 18 : index
    %c0_508 = arith.constant 0 : index
    %c0_509 = arith.constant 0 : index
    %688 = vector.load %arg25[%c18_507, %c0_508, %c0_509] : memref<25x50x450xbf16, #tpu.memory_space<vmem>>, vector<1x50x450xbf16>
    %689 = vector.shape_cast %688 : vector<1x50x450xbf16> to vector<50x450xbf16>
    %690 = arith.truncf %687 : vector<8x50xf32> to vector<8x50xbf16>
    %cst_510 = arith.constant dense<0.000000e+00> : vector<8x450xf32>
    %691 = tpu.matmul %690, %689, %cst_510 {dimension_numbers = #tpu.dot_dimension_numbers<[1], [0], [0], [1], [0, 0, 1, 1], [], []>} : vector<8x50xbf16>, vector<50x450xbf16>, vector<8x450xf32> -> vector<8x450xf32>
    %692 = arith.addf %683, %691 : vector<8x450xf32>
    %c19_511 = arith.constant 19 : index
    %c0_512 = arith.constant 0 : index
    %c0_513 = arith.constant 0 : index
    %693 = vector.load %arg21[%c19_511, %c0_512, %c0_513] : memref<25x8x16xbf16, #tpu.memory_space<vmem>>, vector<1x8x16xbf16>
    %694 = vector.shape_cast %693 : vector<1x8x16xbf16> to vector<8x16xbf16>
    %695 = arith.truncf %520 : vector<16x50xf32> to vector<16x50xbf16>
    %cst_514 = arith.constant dense<0.000000e+00> : vector<8x50xf32>
    %696 = tpu.matmul %694, %695, %cst_514 {dimension_numbers = #tpu.dot_dimension_numbers<[1], [0], [0], [1], [0, 0, 1, 1], [], []>} : vector<8x16xbf16>, vector<16x50xbf16>, vector<8x50xf32> -> vector<8x50xf32>
    %c19_515 = arith.constant 19 : index
    %c0_516 = arith.constant 0 : index
    %c0_517 = arith.constant 0 : index
    %697 = vector.load %arg25[%c19_515, %c0_516, %c0_517] : memref<25x50x450xbf16, #tpu.memory_space<vmem>>, vector<1x50x450xbf16>
    %698 = vector.shape_cast %697 : vector<1x50x450xbf16> to vector<50x450xbf16>
    %699 = arith.truncf %696 : vector<8x50xf32> to vector<8x50xbf16>
    %cst_518 = arith.constant dense<0.000000e+00> : vector<8x450xf32>
    %700 = tpu.matmul %699, %698, %cst_518 {dimension_numbers = #tpu.dot_dimension_numbers<[1], [0], [0], [1], [0, 0, 1, 1], [], []>} : vector<8x50xbf16>, vector<50x450xbf16>, vector<8x450xf32> -> vector<8x450xf32>
    %701 = arith.addf %692, %700 : vector<8x450xf32>
    %c20_519 = arith.constant 20 : index
    %c0_520 = arith.constant 0 : index
    %c0_521 = arith.constant 0 : index
    %702 = vector.load %arg21[%c20_519, %c0_520, %c0_521] : memref<25x8x16xbf16, #tpu.memory_space<vmem>>, vector<1x8x16xbf16>
    %703 = vector.shape_cast %702 : vector<1x8x16xbf16> to vector<8x16xbf16>
    %704 = arith.truncf %520 : vector<16x50xf32> to vector<16x50xbf16>
    %cst_522 = arith.constant dense<0.000000e+00> : vector<8x50xf32>
    %705 = tpu.matmul %703, %704, %cst_522 {dimension_numbers = #tpu.dot_dimension_numbers<[1], [0], [0], [1], [0, 0, 1, 1], [], []>} : vector<8x16xbf16>, vector<16x50xbf16>, vector<8x50xf32> -> vector<8x50xf32>
    %c20_523 = arith.constant 20 : index
    %c0_524 = arith.constant 0 : index
    %c0_525 = arith.constant 0 : index
    %706 = vector.load %arg25[%c20_523, %c0_524, %c0_525] : memref<25x50x450xbf16, #tpu.memory_space<vmem>>, vector<1x50x450xbf16>
    %707 = vector.shape_cast %706 : vector<1x50x450xbf16> to vector<50x450xbf16>
    %708 = arith.truncf %705 : vector<8x50xf32> to vector<8x50xbf16>
    %cst_526 = arith.constant dense<0.000000e+00> : vector<8x450xf32>
    %709 = tpu.matmul %708, %707, %cst_526 {dimension_numbers = #tpu.dot_dimension_numbers<[1], [0], [0], [1], [0, 0, 1, 1], [], []>} : vector<8x50xbf16>, vector<50x450xbf16>, vector<8x450xf32> -> vector<8x450xf32>
    %710 = arith.addf %701, %709 : vector<8x450xf32>
    %c21_527 = arith.constant 21 : index
    %c0_528 = arith.constant 0 : index
    %c0_529 = arith.constant 0 : index
    %711 = vector.load %arg21[%c21_527, %c0_528, %c0_529] : memref<25x8x16xbf16, #tpu.memory_space<vmem>>, vector<1x8x16xbf16>
    %712 = vector.shape_cast %711 : vector<1x8x16xbf16> to vector<8x16xbf16>
    %713 = arith.truncf %520 : vector<16x50xf32> to vector<16x50xbf16>
    %cst_530 = arith.constant dense<0.000000e+00> : vector<8x50xf32>
    %714 = tpu.matmul %712, %713, %cst_530 {dimension_numbers = #tpu.dot_dimension_numbers<[1], [0], [0], [1], [0, 0, 1, 1], [], []>} : vector<8x16xbf16>, vector<16x50xbf16>, vector<8x50xf32> -> vector<8x50xf32>
    %c21_531 = arith.constant 21 : index
    %c0_532 = arith.constant 0 : index
    %c0_533 = arith.constant 0 : index
    %715 = vector.load %arg25[%c21_531, %c0_532, %c0_533] : memref<25x50x450xbf16, #tpu.memory_space<vmem>>, vector<1x50x450xbf16>
    %716 = vector.shape_cast %715 : vector<1x50x450xbf16> to vector<50x450xbf16>
    %717 = arith.truncf %714 : vector<8x50xf32> to vector<8x50xbf16>
    %cst_534 = arith.constant dense<0.000000e+00> : vector<8x450xf32>
    %718 = tpu.matmul %717, %716, %cst_534 {dimension_numbers = #tpu.dot_dimension_numbers<[1], [0], [0], [1], [0, 0, 1, 1], [], []>} : vector<8x50xbf16>, vector<50x450xbf16>, vector<8x450xf32> -> vector<8x450xf32>
    %719 = arith.addf %710, %718 : vector<8x450xf32>
    %c22_535 = arith.constant 22 : index
    %c0_536 = arith.constant 0 : index
    %c0_537 = arith.constant 0 : index
    %720 = vector.load %arg21[%c22_535, %c0_536, %c0_537] : memref<25x8x16xbf16, #tpu.memory_space<vmem>>, vector<1x8x16xbf16>
    %721 = vector.shape_cast %720 : vector<1x8x16xbf16> to vector<8x16xbf16>
    %722 = arith.truncf %520 : vector<16x50xf32> to vector<16x50xbf16>
    %cst_538 = arith.constant dense<0.000000e+00> : vector<8x50xf32>
    %723 = tpu.matmul %721, %722, %cst_538 {dimension_numbers = #tpu.dot_dimension_numbers<[1], [0], [0], [1], [0, 0, 1, 1], [], []>} : vector<8x16xbf16>, vector<16x50xbf16>, vector<8x50xf32> -> vector<8x50xf32>
    %c22_539 = arith.constant 22 : index
    %c0_540 = arith.constant 0 : index
    %c0_541 = arith.constant 0 : index
    %724 = vector.load %arg25[%c22_539, %c0_540, %c0_541] : memref<25x50x450xbf16, #tpu.memory_space<vmem>>, vector<1x50x450xbf16>
    %725 = vector.shape_cast %724 : vector<1x50x450xbf16> to vector<50x450xbf16>
    %726 = arith.truncf %723 : vector<8x50xf32> to vector<8x50xbf16>
    %cst_542 = arith.constant dense<0.000000e+00> : vector<8x450xf32>
    %727 = tpu.matmul %726, %725, %cst_542 {dimension_numbers = #tpu.dot_dimension_numbers<[1], [0], [0], [1], [0, 0, 1, 1], [], []>} : vector<8x50xbf16>, vector<50x450xbf16>, vector<8x450xf32> -> vector<8x450xf32>
    %728 = arith.addf %719, %727 : vector<8x450xf32>
    %c23_543 = arith.constant 23 : index
    %c0_544 = arith.constant 0 : index
    %c0_545 = arith.constant 0 : index
    %729 = vector.load %arg21[%c23_543, %c0_544, %c0_545] : memref<25x8x16xbf16, #tpu.memory_space<vmem>>, vector<1x8x16xbf16>
    %730 = vector.shape_cast %729 : vector<1x8x16xbf16> to vector<8x16xbf16>
    %731 = arith.truncf %520 : vector<16x50xf32> to vector<16x50xbf16>
    %cst_546 = arith.constant dense<0.000000e+00> : vector<8x50xf32>
    %732 = tpu.matmul %730, %731, %cst_546 {dimension_numbers = #tpu.dot_dimension_numbers<[1], [0], [0], [1], [0, 0, 1, 1], [], []>} : vector<8x16xbf16>, vector<16x50xbf16>, vector<8x50xf32> -> vector<8x50xf32>
    %c23_547 = arith.constant 23 : index
    %c0_548 = arith.constant 0 : index
    %c0_549 = arith.constant 0 : index
    %733 = vector.load %arg25[%c23_547, %c0_548, %c0_549] : memref<25x50x450xbf16, #tpu.memory_space<vmem>>, vector<1x50x450xbf16>
    %734 = vector.shape_cast %733 : vector<1x50x450xbf16> to vector<50x450xbf16>
    %735 = arith.truncf %732 : vector<8x50xf32> to vector<8x50xbf16>
    %cst_550 = arith.constant dense<0.000000e+00> : vector<8x450xf32>
    %736 = tpu.matmul %735, %734, %cst_550 {dimension_numbers = #tpu.dot_dimension_numbers<[1], [0], [0], [1], [0, 0, 1, 1], [], []>} : vector<8x50xbf16>, vector<50x450xbf16>, vector<8x450xf32> -> vector<8x450xf32>
    %737 = arith.addf %728, %736 : vector<8x450xf32>
    %c24_551 = arith.constant 24 : index
    %c0_552 = arith.constant 0 : index
    %c0_553 = arith.constant 0 : index
    %738 = vector.load %arg21[%c24_551, %c0_552, %c0_553] : memref<25x8x16xbf16, #tpu.memory_space<vmem>>, vector<1x8x16xbf16>
    %739 = vector.shape_cast %738 : vector<1x8x16xbf16> to vector<8x16xbf16>
    %740 = arith.truncf %520 : vector<16x50xf32> to vector<16x50xbf16>
    %cst_554 = arith.constant dense<0.000000e+00> : vector<8x50xf32>
    %741 = tpu.matmul %739, %740, %cst_554 {dimension_numbers = #tpu.dot_dimension_numbers<[1], [0], [0], [1], [0, 0, 1, 1], [], []>} : vector<8x16xbf16>, vector<16x50xbf16>, vector<8x50xf32> -> vector<8x50xf32>
    %c24_555 = arith.constant 24 : index
    %c0_556 = arith.constant 0 : index
    %c0_557 = arith.constant 0 : index
    %742 = vector.load %arg25[%c24_555, %c0_556, %c0_557] : memref<25x50x450xbf16, #tpu.memory_space<vmem>>, vector<1x50x450xbf16>
    %743 = vector.shape_cast %742 : vector<1x50x450xbf16> to vector<50x450xbf16>
    %744 = arith.truncf %741 : vector<8x50xf32> to vector<8x50xbf16>
    %cst_558 = arith.constant dense<0.000000e+00> : vector<8x450xf32>
    %745 = tpu.matmul %744, %743, %cst_558 {dimension_numbers = #tpu.dot_dimension_numbers<[1], [0], [0], [1], [0, 0, 1, 1], [], []>} : vector<8x50xbf16>, vector<50x450xbf16>, vector<8x450xf32> -> vector<8x450xf32>
    %746 = arith.addf %737, %745 : vector<8x450xf32>
    %c0_559 = arith.constant 0 : index
    %c0_560 = arith.constant 0 : index
    %747 = vector.load %arg22[%c0_559, %c0_560] : memref<8x1xf32, #tpu.memory_space<vmem>>, vector<8x1xf32>
    %748 = vector.broadcast %747 : vector<8x1xf32> to vector<8x450xf32>
    %749 = arith.addf %746, %748 : vector<8x450xf32>
    %cst_561 = arith.constant 0.000000e+00 : f32
    %750 = vector.broadcast %cst_561 : f32 to vector<8x450xf32>
    %751 = arith.maximumf %749, %750 : vector<8x450xf32>
    %c0_562 = arith.constant 0 : index
    %c0_563 = arith.constant 0 : index
    %752 = vector.load %arg23[%c0_562, %c0_563] : memref<8x1xf32, #tpu.memory_space<vmem>>, vector<8x1xf32>
    %c0_564 = arith.constant 0 : index
    %c0_565 = arith.constant 0 : index
    %753 = vector.load %arg24[%c0_564, %c0_565] : memref<8x1xf32, #tpu.memory_space<vmem>>, vector<8x1xf32>
    %cst_566 = arith.constant dense<0.000000e+00> : vector<8xf32>
    %754 = vector.multi_reduction <add>, %751, %cst_566 [1] : vector<8x450xf32> to vector<8xf32>
    %755 = vector.shape_cast %754 : vector<8xf32> to vector<8x1xf32>
    %cst_567 = arith.constant 4.500000e+02 : f32
    %756 = vector.broadcast %cst_567 : f32 to vector<8x1xf32>
    %757 = arith.divf %755, %756 : vector<8x1xf32>
    %758 = vector.broadcast %757 : vector<8x1xf32> to vector<8x450xf32>
    %759 = arith.subf %751, %758 : vector<8x450xf32>
    %760 = vector.broadcast %757 : vector<8x1xf32> to vector<8x450xf32>
    %761 = arith.subf %751, %760 : vector<8x450xf32>
    %762 = arith.mulf %759, %761 : vector<8x450xf32>
    %cst_568 = arith.constant dense<0.000000e+00> : vector<8xf32>
    %763 = vector.multi_reduction <add>, %762, %cst_568 [1] : vector<8x450xf32> to vector<8xf32>
    %764 = vector.shape_cast %763 : vector<8xf32> to vector<8x1xf32>
    %cst_569 = arith.constant 4.500000e+02 : f32
    %765 = vector.broadcast %cst_569 : f32 to vector<8x1xf32>
    %766 = arith.divf %764, %765 : vector<8x1xf32>
    %767 = vector.broadcast %757 : vector<8x1xf32> to vector<8x450xf32>
    %768 = arith.subf %751, %767 : vector<8x450xf32>
    %cst_570 = arith.constant 9.99999974E-6 : f32
    %769 = vector.broadcast %cst_570 : f32 to vector<8x1xf32>
    %770 = arith.addf %766, %769 : vector<8x1xf32>
    %771 = math.rsqrt %770 : vector<8x1xf32>
    %772 = vector.broadcast %771 : vector<8x1xf32> to vector<8x450xf32>
    %773 = arith.mulf %768, %772 : vector<8x450xf32>
    %774 = vector.broadcast %752 : vector<8x1xf32> to vector<8x450xf32>
    %775 = arith.mulf %773, %774 : vector<8x450xf32>
    %776 = vector.broadcast %753 : vector<8x1xf32> to vector<8x450xf32>
    %777 = arith.addf %775, %776 : vector<8x450xf32>
    %c0_571 = arith.constant 0 : index
    %c0_572 = arith.constant 0 : index
    %778 = vector.load %arg26[%c0_571, %c0_572] : memref<4x8xbf16, #tpu.memory_space<vmem>>, vector<4x8xbf16>
    %779 = arith.truncf %777 : vector<8x450xf32> to vector<8x450xbf16>
    %cst_573 = arith.constant dense<0.000000e+00> : vector<4x450xf32>
    %780 = tpu.matmul %778, %779, %cst_573 {dimension_numbers = #tpu.dot_dimension_numbers<[1], [0], [0], [1], [0, 0, 1, 1], [], []>} : vector<4x8xbf16>, vector<8x450xbf16>, vector<4x450xf32> -> vector<4x450xf32>
    %c0_574 = arith.constant 0 : index
    %c0_575 = arith.constant 0 : index
    %781 = vector.load %arg27[%c0_574, %c0_575] : memref<1x1xf32, #tpu.memory_space<vmem>>, vector<1x1xf32>
    %782 = vector.broadcast %781 : vector<1x1xf32> to vector<4x450xf32>
    %783 = arith.addf %780, %782 : vector<4x450xf32>
    %cst_576 = arith.constant 0.000000e+00 : f32
    %784 = vector.broadcast %cst_576 : f32 to vector<4x450xf32>
    %785 = arith.subf %784, %783 : vector<4x450xf32>
    %786 = math.exp %785 : vector<4x450xf32>
    %cst_577 = arith.constant 1.000000e+00 : f32
    %787 = vector.broadcast %cst_577 : f32 to vector<4x450xf32>
    %788 = arith.addf %787, %786 : vector<4x450xf32>
    %789 = tpu.reciprocal %788 {approx = true} : vector<4x450xf32> -> vector<4x450xf32>
    %cst_578 = arith.constant 0.000000e+00 : f32
    %cst_579 = arith.constant 1.000000e+00 : f32
    %790 = vector.broadcast %cst_578 : f32 to vector<4x450xf32>
    %791 = arith.maximumf %790, %789 : vector<4x450xf32>
    %792 = vector.broadcast %cst_579 : f32 to vector<4x450xf32>
    %793 = arith.minimumf %792, %791 : vector<4x450xf32>
    %c0_580 = arith.constant 0 : index
    %c0_581 = arith.constant 0 : index
    %794 = vector.load %arg28[%c0_580, %c0_581] : memref<4x450xf32, #tpu.memory_space<vmem>>, vector<4x450xf32>
    tpu.vector_store %arg28[%c0_580, %c0_581], %793 {strides = array<i32>} : memref<4x450xf32, #tpu.memory_space<vmem>>, vector<4x450xf32>,
    return
  }
}

</mosaic_0001>

<bundles_post_ra>
// kernel: conv_autoencoder_forward.1
= control target key start
LH: loop header
LB: loop body
LE: loop exit
PB: predicated region body
PF: predicated region fallthrough
CT: control target
= control target key end

     0   :  { %v14795_v0 = vmov 0.0   ;;  %vm14796_vm0 = vmmov 0   ;;  %vm119_vm1 = vcmask 130048   ;;  %v14797_v4 = vmov 0   ;;  %s17670_s0 = inlined_call_operand.vmem [shape: bf16[4,16,50], index: 0, kind: input, shape index: {}]   ;;  %s17671_s1 = inlined_call_operand.vmem [shape: bf16[16,16], index: 1, kind: input, shape index: {}]   ;;  %s17672_s2 = inlined_call_operand.vmem [shape: f32[16,1], index: 2, kind: input, shape index: {}]   ;;  %s17673_s3 = inlined_call_operand.vmem [shape: f32[16,1], index: 3, kind: input, shape index: {}]   ;;  %s17674_s4 = inlined_call_operand.vmem [shape: f32[16,1], index: 4, kind: input, shape index: {}]   ;;  %s17675_s6 = inlined_call_operand.vmem [shape: f32[8,1], index: 6, kind: input, shape index: {}]   ;;  %s17676_s9 = inlined_call_operand.vmem [shape: bf16[36,50,8], index: 9, kind: input, shape index: {}]   ;;  %s17677_s5 = inlined_call_operand.vmem [shape: bf16[9,8,16], index: 5, kind: input, shape index: {}]   ;;  %s17678_s7 = inlined_call_operand.vmem [shape: f32[8,1], index: 7, kind: input, shape index: {}]   ;;  %s17679_s11 = inlined_call_operand.vmem [shape: f32[2,1], index: 11, kind: input, shape index: {}]   ;;  %s17680_s14 = inlined_call_operand.vmem [shape: f32[4,8,1], index: 14, kind: input, shape index: {}]   ;;  %s17681_s17 = inlined_call_operand.vmem [shape: f32[16,1], index: 17, kind: input, shape index: {}]   ;;  %s17682_s8 = inlined_call_operand.vmem [shape: f32[8,1], index: 8, kind: input, shape index: {}]   ;;  %s17683_s12 = inlined_call_operand.vmem [shape: bf16[4,8,2], index: 12, kind: input, shape index: {}]   ;;  %s17684_s10 = inlined_call_operand.vmem [shape: bf16[4,2,8], index: 10, kind: input, shape index: {}]   ;;  %s17685_s13 = inlined_call_operand.vmem [shape: bf16[4,8,2], index: 13, kind: input, shape index: {}]   ;;  %s17686_s15 = inlined_call_operand.vmem [shape: bf16[4,2,8], index: 15, kind: input, shape index: {}]   ;;  %s17687_s16 = inlined_call_operand.vmem [shape: bf16[9,16,8], index: 16, kind: input, shape index: {}]   ;;  %s17688_s20 = inlined_call_operand.vmem [shape: bf16[9,8,50], index: 20, kind: input, shape index: {}]   ;;  %s17689_s18 = inlined_call_operand.vmem [shape: f32[16,1], index: 18, kind: input, shape index: {}]   ;;  %s17690_s19 = inlined_call_operand.vmem [shape: f32[16,1], index: 19, kind: input, shape index: {}]   ;;  %s17691_s22 = inlined_call_operand.vmem [shape: f32[8,1], index: 22, kind: input, shape index: {}]   ;;  %s17692_s25 = inlined_call_operand.vmem [shape: bf16[25,50,450], index: 25, kind: input, shape index: {}]   ;;  %s17693_s21 = inlined_call_operand.vmem [shape: bf16[25,8,16], index: 21, kind: input, shape index: {}]   ;;  %s17694_s27 = inlined_call_operand.<no memory space> [shape: f32[1,1], index: 27, kind: input, shape index: {}]   ;;  %s17695_s24 = inlined_call_operand.vmem [shape: f32[8,1], index: 24, kind: input, shape index: {}]   ;;  %s17696_s23 = inlined_call_operand.vmem [shape: f32[8,1], index: 23, kind: input, shape index: {}]   ;;  %s17697_s26 = inlined_call_operand.vmem [shape: bf16[4,8], index: 26, kind: input, shape index: {}]   ;;  %s17698_s28 = inlined_call_operand.vmem [shape: f32[4,450], index: 28, kind: output, shape index: {}]  }
   0x1   :  { %17707 = sst [smem:[#allocation3_spill]] %s17670_s0  ;;  %13050 = vmatprep.subr.bf16.mxu0 %v14795_v0  ;;  %13056 = vmatprep.subr.bf16.mxu1 %v14795_v0  ;;  %vm332_vm2 = vcmask 408576   ;;  %vm830_vm3 = vcmask 1040384   ;;  %vm3458_vm4 = vcmask 64512   ;;  %vm3490_vm5 = vcmask 1043456  }
   0x2   :  { %17708 = sst [smem:[#allocation4_spill]] %s17671_s1  ;;  %13052 = vmatprep.mubr.msk.bf16.mxu0 %vm14796_vm0, %v14795_v0  ;;  %13058 = vmatprep.mubr.msk.bf16.mxu1 %vm14796_vm0, %v14795_v0  ;;  %vm3881_vm6 = vcmask 15360   ;;  %vm11095_vm7 = vcmask 539648   ;;  %vm11290_vm8 = vcmask 539652  }
   0x3   :  { %17709 = sst [smem:[#allocation5_spill]] %s17672_s2  ;;  %s17721_s0 = sld [smem:[#allocation4_spill]]  ;;  %14057 = vset.pattern.permute.xlu0 %v14797_v4  ;;  %14058 = vset.pattern.permute.xlu1 %v14797_v4  ;;  %vm11291_vm9 = vmor %vm11290_vm8, %vm3490_vm5 }
   0x4   :  { %17710 = sst [smem:[#allocation6_spill]] %s17673_s3 }
   0x5   :  { %17711 = sst [smem:[#allocation7_spill]] %s17674_s4  ;;  %s17722_s4 = sld [smem:[#allocation5_spill]] }
   0x6   :  { %17712 = sst [smem:[#allocation8_spill]] %s17675_s6  ;;  %s17723_s3 = sld [smem:[#allocation6_spill]] }
   0x7   :  { %17713 = sst [smem:[#allocation9_spill]] %s17676_s9  ;;  %s17724_s29 = sld [smem:[#allocation7_spill]] }
   0x8   :  { %17714 = sst [smem:[#allocation10_spill]] %s17677_s5  ;;  %s17727_s9 = sld [smem:[#allocation9_spill]] }
   0x9   :  { %17715 = sst [smem:[#allocation11_spill]] %s17678_s7  ;;  %v14061_v3 = vld [vmem:[%s17721_s0] sm:$0xff]  }
   0xa   :  { %17716 = sst [smem:[#allocation12_spill]] %s17679_s11  ;;  %s17720_s11 = sld [smem:[#allocation3_spill]] }
   0xb   :  { %17717 = sst [smem:[#allocation13_spill]] %s17680_s14  ;;  %v94_v7 = vld [vmem:[%s17722_s4] sm:$0xff]  ;;  %v95_v8 = vld [vmem:[%s17722_s4 + $0x8] sm:$0xff]  ;;  %s17725_s4 = sld [smem:[#allocation8_spill]] }
   0xc   :  { %17718 = sst [smem:[#allocation14_spill]] %s17681_s17  ;;  %100 = vperm.xlu0 %14057, %v94_v7   ;;  %v328_v51 = vld [vmem:[%s17723_s3] sm:$0xff]  ;;  %v329_v52 = vld [vmem:[%s17723_s3 + $0x8] sm:$0xff]  ;;  %s17728_s7 = sld [smem:[#allocation11_spill]] }
   0xd   :  { %17719 = sst [smem:[#allocation15_spill]] %s17682_s8  ;;  %v330_v53 = vld [vmem:[%s17724_s29] sm:$0xff]  ;;  %s17729_s30 = sld [smem:[#allocation12_spill]] }
   0xe   :  { %s17730_s0 = sld [smem:[#allocation13_spill]] }
  0x10   :  { %v14059_v1 = vld [vmem:[%s17720_s11] sm:$0xff]   ;;  %v14060_v2 = vld [vmem:[%s17720_s11 + $0x8] sm:$0xff]   ;;  %v14062_v5 = vld [vmem:[%s17720_s11 + $0x10] sm:$0xff]   ;;  %105 = vperm.xlu0 %14057, %v95_v8  }
  0x11   :  { %13051 = vmatpush3.bf16.msra.mxu0 %v14059_v1  ;;  %13057 = vmatpush3.bf16.msra.mxu1 %v14060_v2  ;;  %v14063_v6 = vld [vmem:[%s17720_s11 + $0x18] sm:$0xff]   ;;  %v331_v1 = vld [vmem:[%s17724_s29 + $0x8] sm:$0xff]  ;;  %v3448_v2 = vld [vmem:[%s17725_s4] sm:$0xff]  ;;  %s17726_s11 = sld [smem:[#allocation10_spill]] }
  0x12   :  { %13062 = vmatprep.subr.bf16.mxu0 %v14795_v0  ;;  %13068 = vmatprep.subr.bf16.mxu1 %v14795_v0 }
  0x14   :  { %13053 = vmatmul.mubr.msk.bf16.vlgmr.msra.gmra.mrb[0].mxu0 %vm119_vm1, %v14061_v3  ;;  %13059 = vmatmul.mubr.msk.bf16.vlgmr.msra.gmra.mrb[0].mxu1 %vm119_vm1, %v14061_v3 }
  0x15   :  { %13063 = vmatpush3.bf16.msra.mxu0 %v14062_v5  ;;  %13069 = vmatpush3.bf16.msra.mxu1 %v14063_v6 }
  0x16   :  { %13064 = vmatprep.mubr.msk.bf16.mxu0 %vm14796_vm0, %v14795_v0  ;;  %13070 = vmatprep.mubr.msk.bf16.mxu1 %vm14796_vm0, %v14795_v0 }
  0x17   :  { %13074 = vmatprep.subr.bf16.mxu0 %v14795_v0  ;;  %13080 = vmatprep.subr.bf16.mxu1 %v14795_v0 }
  0x1c   :  { %13065 = vmatmul.mubr.msk.bf16.vlgmr.msra.gmra.mrb[4].mxu0 %vm119_vm1, %v14061_v3  ;;  %13071 = vmatmul.mubr.msk.bf16.vlgmr.msra.gmra.mrb[4].mxu1 %vm119_vm1, %v14061_v3 }
  0x1d   :  { %13076 = vmatprep.mubr.msk.bf16.mxu0 %vm14796_vm0, %v14795_v0  ;;  %13082 = vmatprep.mubr.msk.bf16.mxu1 %vm14796_vm0, %v14795_v0 }
  0x8b   :  { %v101_v9 = vpop.permute.xlu0 %100 }
  0x8f   :  { %v106_v11 = vpop.permute.xlu0 %105 }
  0xe7   :  { %v157_v10 = vpop.f32.mrb[0].mxu0  ;;  %v209_v13 = vpop.f32.mrb[0].mxu1 }
  0xe8   :  { %v158_v12 = vadd.f32 %v157_v10, %v101_v9  ;;  %v13054_v14 = vpop.f32.mrb[1].mxu0  ;;  %v210_v15 = vadd.f32 %v209_v13, %v101_v9  ;;  %v13060_v16 = vpop.f32.mrb[1].mxu1 }
  0xe9   :  { %v160_v17 = vpop.f32.mrb[2].mxu0  ;;  %v212_v20 = vpop.f32.mrb[2].mxu1 }
  0xea   :  { %v164_v18 = vmax.f32 %v158_v12, 0.0  ;;  %v161_v19 = vadd.f32 %v160_v17, %v106_v11  ;;  %v13055_v21 = vpop.f32.mrb[3].mxu0  ;;  %v216_v22 = vmax.f32 %v210_v15, 0.0  ;;  %v213_v23 = vadd.f32 %v212_v20, %v106_v11  ;;  %v13061_v24 = vpop.f32.mrb[3].mxu1 }
  0xeb   :  { %v11313_v24 = vld [vmem:[%s17726_s11 + $0x4] sm:$0xf] }
  0xec   :  { %v165_v25 = vmax.f32 %v161_v19, 0.0  ;;  %v322_v26 = vmax.f32 %v164_v18, %v216_v22  ;;  %v217_v27 = vmax.f32 %v213_v23, 0.0  ;;  %v384_v23 = vld [vmem:[%s17726_s11] sm:$0xf] }
  0xee   :  { %v323_v28 = vmax.f32 %v165_v25, %v217_v27  ;;  %v11315_v25 = vld [vmem:[%s17726_s11 + $0x8] sm:$0xf]  ;;  %v11319_v27 = vld [vmem:[%s17726_s11 + $0x10] sm:$0xf] }
  0xef   :  { %v261_v29 = vpop.f32.mrb[4].mxu0  ;;  %v313_v31 = vpop.f32.mrb[4].mxu1 }
  0xf0   :  { %v262_v30 = vadd.f32 %v261_v29, %v101_v9  ;;  %v13066_v32 = vpop.f32.mrb[5].mxu0  ;;  %v314_v33 = vadd.f32 %v313_v31, %v101_v9  ;;  %v13072_v34 = vpop.f32.mrb[5].mxu1  ;;  %v11323_v29 = vld [vmem:[%s17726_s11 + $0x18] sm:$0xf]  ;;  %v14064_v31 = vld [vmem:[%s17727_s9 + $0x1c] sm:$0xff]  }
  0xf1   :  { %v264_v35 = vpop.f32.mrb[6].mxu0  ;;  %v316_v38 = vpop.f32.mrb[6].mxu1  ;;  %v14066_v32 = vld [vmem:[%s17727_s9 + $0x24] sm:$0xff]   ;;  %v14065_v34 = vld [vmem:[%s17727_s9 + $0x118] sm:$0xff]  }
  0xf2   :  { %v268_v36 = vmax.f32 %v262_v30, 0.0  ;;  %v265_v37 = vadd.f32 %v264_v35, %v106_v11  ;;  %v13067_v39 = vpop.f32.mrb[7].mxu0  ;;  %v320_v40 = vmax.f32 %v314_v33, 0.0  ;;  %v317_v41 = vadd.f32 %v316_v38, %v106_v11  ;;  %v13073_v42 = vpop.f32.mrb[7].mxu1  ;;  %v11325_v30 = vld [vmem:[%s17726_s11 + $0x1c] sm:$0xf] }
  0xf3   :  { %v11327_v33 = vld [vmem:[%s17726_s11 + $0x20] sm:$0xf]  ;;  %v14068_v35 = vld [vmem:[%s17727_s9 + $0x2c] sm:$0xff]  }
  0xf4   :  { %v269_v43 = vmax.f32 %v265_v37, 0.0  ;;  %v324_v44 = vmax.f32 %v268_v36, %v320_v40  ;;  %v321_v45 = vmax.f32 %v317_v41, 0.0  ;;  %v14070_v36 = vld [vmem:[%s17727_s9 + $0x34] ss:$0 sps:$4 sm:$0x11]   ;;  %v14067_v37 = vld [vmem:[%s17727_s9 + $0x120] sm:$0xff]  }
  0xf5   :  { %v832_v38 = vsel %vm830_vm3, %v14070_v36, 0  ;;  %v14069_v39 = vld [vmem:[%s17727_s9 + $0x128] sm:$0xff]   ;;  %v14071_v40 = vld [vmem:[%s17727_s9 + $0x130] ss:$0 sps:$4 sm:$0x11]  }
  0xf6   :  { %v325_v46 = vmax.f32 %v269_v43, %v321_v45  ;;  %v326_v47 = vmax.f32 %v322_v26, %v324_v44  ;;  %v11317_v26 = vld [vmem:[%s17726_s11 + $0xc] sm:$0xf]  ;;  %v1518_v41 = vsel %vm830_vm3, %v14071_v40, 0  ;;  %v14072_v43 = vld [vmem:[%s17727_s9] sm:$0xff]   ;;  %v14089_v36 = vld [vmem:[%s17727_s9 + $0x150] sm:$0xff]  }
  0xf7   :  { %v14073_v44 = vld [vmem:[%s17727_s9 + $0xfc] sm:$0xff]  }
  0xf8   :  { %v333_v48 = vsel %vm332_vm2, %v326_v47, 0.0  ;;  %v327_v49 = vmax.f32 %v323_v28, %v325_v46  ;;  %v11321_v28 = vld [vmem:[%s17726_s11 + $0x14] sm:$0xf] }
  0xf9   :  { %334 = vadd.xlane.f32.xlu1 %v333_v48 }
  0xfa   :  { %v336_v50 = vsel %vm332_vm2, %v327_v49, 0.0 }
  0xfd   :  { %337 = vadd.xlane.f32.xlu1 %v336_v50 }
 0x10e   :  { %362 = vperm.xlu1 %14058, %v328_v51  }
 0x112   :  { %367 = vperm.xlu1 %14058, %v329_v52  }
 0x116   :  { %374 = vperm.xlu1 %14058, %v330_v53   ;;  %v14074_v53 = vld [vmem:[%s17727_s9 + $0x8] sm:$0xff]  }
 0x186   :  { %v335_v54 = vpop.xlane.xlu1 %334 }
 0x187   :  { %v340_v55 = vmul.f32 0.02, %v335_v54  ;;  %v14075_v54 = vld [vmem:[%s17727_s9 + $0x104] sm:$0xff]  }
 0x189   :  { %v342_v56 = vsub.f32 %v326_v47, %v340_v55  ;;  %v14076_v55 = vld [vmem:[%s17727_s9 + $0x10] sm:$0xff]  }
 0x18a   :  { %v338_v57 = vpop.xlane.xlu1 %337 }
 0x18b   :  { %v341_v58 = vmul.f32 0.02, %v338_v57  ;;  %v344_v59 = vmul.f32 %v342_v56, %v342_v56  ;;  %v14078_v57 = vld [vmem:[%s17727_s9 + $0x18] ss:$0 sps:$4 sm:$0x11]  }
 0x18d   :  { %v343_v60 = vsub.f32 %v327_v49, %v341_v58  ;;  %v346_v61 = vsel %vm332_vm2, %v344_v59, 0.0 }
 0x18e   :  { %347 = vadd.xlane.f32.xlu0 %v346_v61  ;;  %v363_v3 = vpop.permute.xlu1 %362 }
 0x18f   :  { %v345_v62 = vmul.f32 %v343_v60, %v343_v60 }
 0x191   :  { %v349_v63 = vsel %vm332_vm2, %v345_v62, 0.0 }
 0x192   :  { %350 = vadd.xlane.f32.xlu1 %v349_v63  ;;  %v368_v5 = vpop.permute.xlu1 %367 }
 0x196   :  { %v375_v6 = vpop.permute.xlu1 %374 }
 0x1a3   :  { %379 = vperm.xlu1 %14058, %v331_v1  }
 0x1a4   :  { %3451 = vperm.xlu0 %14057, %v3448_v2  }
 0x21b   :  { %v348_v7 = vpop.xlane.xlu0 %347 }
 0x21c   :  { %v352_v8 = vmul.f32 0.02, %v348_v7 }
 0x21e   :  { %v354_v9 = vadd.f32 1e-05, %v352_v8  ;;  %v14080_v8 = vld [vmem:[%s17727_s9 + $0x38] sm:$0xff]  }
 0x21f   :  { %v351_v10 = vpop.xlane.xlu1 %350 }
 0x220   :  { %14767 = vrsqrt.f32 %v354_v9  ;;  %v353_v11 = vmul.f32 0.02, %v351_v10  ;;  %v14081_v9 = vld [vmem:[%s17727_s9 + $0x134] sm:$0xff]  }
 0x222   :  { %v355_v12 = vadd.f32 1e-05, %v353_v11 }
 0x223   :  { %v380_v19 = vpop.permute.xlu1 %379 }
 0x224   :  { %14769 = vrsqrt.f32 %v355_v12 }
 0x22a   :  { %v14768_v13 = vpop.eup %14767 }
 0x22b   :  { %v358_v14 = vmul.f32 %v14768_v13, %v342_v56  ;;  %v14077_v56 = vld [vmem:[%s17727_s9 + $0x10c] sm:$0xff]  }
 0x22d   :  { %v370_v17 = vmul.f32 %v363_v3, %v358_v14 }
 0x22e   :  { %v14770_v15 = vpop.eup %14769 }
 0x22f   :  { %v359_v16 = vmul.f32 %v14770_v15, %v343_v60  ;;  %v382_v20 = vadd.f32 %v375_v6, %v370_v17  ;;  %v14079_v60 = vld [vmem:[%s17727_s9 + $0x114] ss:$0 sps:$4 sm:$0x11]  }
 0x230   :  { %v1582_v6 = vsel %vm830_vm3, %v14079_v60, 0 }
 0x231   :  { %v371_v18 = vmul.f32 %v368_v5, %v359_v16  ;;  %v899_v5 = vsel %vm830_vm3, %v14078_v57, 0  ;;  %v14102_v57 = vld [vmem:[%s17727_s9 + $0x88] ss:$0 sps:$4 sm:$0x11]  }
 0x233   :  { %v383_v21 = vadd.f32 %v380_v19, %v371_v18  ;;  %v14082_v18 = vld [vmem:[%s17727_s9 + $0x40] sm:$0xff]  }
 0x234   :  { %v14083_v19 = vld [vmem:[%s17727_s9 + $0x13c] sm:$0xff]  }
 0x235   :  { %v385_v22 = vpack.c.bf16 %v383_v21, %v382_v20  ;;  %v14084_v20 = vld [vmem:[%s17727_s9 + $0x48] sm:$0xff]  }
 0x236   :  { %v14085_v21 = vld [vmem:[%s17727_s9 + $0x144] sm:$0xff]  }
 0x237   :  { %13075 = vmatpush3.bf16.msra.mxu0 %v385_v22  ;;  %13081 = vmatpush3.bf16.msra.mxu1 %v385_v22 }
 0x238   :  { %13086 = vmatprep.subr.bf16.mxu0 %v14795_v0  ;;  %13092 = vmatprep.subr.bf16.mxu1 %v14795_v0 }
 0x23a   :  { %13077 = vmatmul.mubr.msk.bf16.vlgmr.msra.gmra.mrb[8].mxu0 %vm119_vm1, %v384_v23  ;;  %13083 = vmatmul.mubr.msk.bf16.vlgmr.msra.gmra.mrb[8].mxu1 %vm119_vm1, %v11313_v24 }
 0x23b   :  { %13087 = vmatpush3.bf16.msra.mxu0 %v385_v22  ;;  %13093 = vmatpush3.bf16.msra.mxu1 %v385_v22 }
 0x23c   :  { %13088 = vmatprep.mubr.msk.bf16.mxu0 %vm14796_vm0, %v14795_v0  ;;  %13094 = vmatprep.mubr.msk.bf16.mxu1 %vm14796_vm0, %v14795_v0 }
 0x23d   :  { %13098 = vmatprep.subr.bf16.mxu0 %v14795_v0  ;;  %13104 = vmatprep.subr.bf16.mxu1 %v14795_v0 }
 0x242   :  { %13089 = vmatmul.mubr.msk.bf16.vlgmr.msra.gmra.mrb[12].mxu0 %vm119_vm1, %v11315_v25  ;;  %13095 = vmatmul.mubr.msk.bf16.vlgmr.msra.gmra.mrb[12].mxu1 %vm119_vm1, %v11317_v26  ;;  %v14087_v25 = vld [vmem:[%s17727_s9 + $0x14c] ss:$0 sps:$4 sm:$0x11]  }
 0x243   :  { %13099 = vmatpush3.bf16.msra.mxu0 %v385_v22  ;;  %13105 = vmatpush3.bf16.msra.mxu1 %v385_v22 }
 0x244   :  { %13100 = vmatprep.mubr.msk.bf16.mxu0 %vm14796_vm0, %v14795_v0  ;;  %13106 = vmatprep.mubr.msk.bf16.mxu1 %vm14796_vm0, %v14795_v0 }
 0x245   :  { %13110 = vmatprep.subr.bf16.mxu0 %v14795_v0  ;;  %13116 = vmatprep.subr.bf16.mxu1 %v14795_v0 }
 0x24a   :  { %13101 = vmatmul.mubr.msk.bf16.vlgmr.msra.gmra.mrb[16].mxu0 %vm119_vm1, %v11319_v27  ;;  %13107 = vmatmul.mubr.msk.bf16.vlgmr.msra.gmra.mrb[16].mxu1 %vm119_vm1, %v11321_v28 }
 0x24b   :  { %13111 = vmatpush3.bf16.msra.mxu0 %v385_v22  ;;  %13117 = vmatpush3.bf16.msra.mxu1 %v385_v22 }
 0x24c   :  { %13112 = vmatprep.mubr.msk.bf16.mxu0 %vm14796_vm0, %v14795_v0  ;;  %13122 = vmatprep.subr.bf16.mxu0 %v14795_v0 }
 0x24d   :  { %13118 = vmatprep.mubr.msk.bf16.mxu1 %vm14796_vm0, %v14795_v0  ;;  %13128 = vmatprep.subr.bf16.mxu1 %v14795_v0 }
 0x252   :  { %13113 = vmatmul.mubr.msk.bf16.vlgmr.msra.gmra.mrb[20].mxu0 %vm119_vm1, %v11323_v29  ;;  %13119 = vmatmul.mubr.msk.bf16.vlgmr.msra.gmra.mrb[20].mxu1 %vm119_vm1, %v11325_v30 }
 0x253   :  { %13123 = vmatpush3.bf16.msra.mxu0 %v385_v22  ;;  %13124 = vmatprep.mubr.msk.bf16.mxu0 %vm14796_vm0, %v14795_v0  ;;  %v14086_v22 = vld [vmem:[%s17727_s9 + $0x50] ss:$0 sps:$4 sm:$0x11]  }
 0x254   :  { %13236 = vmatprep.subr.bf16.mxu0 %v14795_v0  ;;  %13129 = vmatpush3.bf16.msra.mxu1 %v14064_v31 }
 0x255   :  { %13130 = vmatprep.subr.bf16.mxu1 %v14795_v0  ;;  %13136 = vmatprep.mubr.msk.bf16.mxu1 %vm14796_vm0, %v14795_v0 }
 0x258   :  { %13131 = vmatpush3.bf16.msra.mxu1 %v14066_v32  ;;  %v975_v32 = vsel %vm830_vm3, %v14086_v22, 0 }
 0x259   :  { %13132 = vmatprep.subr.bf16.mxu1 %v14795_v0 }
 0x25a   :  { %13125 = vmatmul.mubr.msk.bf16.vlgmr.msra.gmra.mrb[24].mxu0 %vm119_vm1, %v11327_v33  ;;  %v1654_v33 = vsel %vm830_vm3, %v14087_v25, 0  ;;  %v14120_v25 = vld [vmem:[%s17727_s9 + $0xc4] sm:$0xff]  }
 0x25b   :  { %13237 = vmatpush3.bf16.msra.mxu0 %v14065_v34  ;;  %13244 = vmatprep.mubr.msk.bf16.mxu0 %vm14796_vm0, %v14795_v0 }
 0x25c   :  { %13238 = vmatprep.subr.bf16.mxu0 %v14795_v0  ;;  %13133 = vmatpush3.bf16.msra.mxu1 %v14068_v35  ;;  %v14088_v35 = vld [vmem:[%s17727_s9 + $0x54] sm:$0xff]  }
 0x25d   :  { %13134 = vmatprep.subr.bf16.mxu1 %v14795_v0 }
 0x25f   :  { %13239 = vmatpush3.bf16.msra.mxu0 %v14067_v37 }
 0x260   :  { %13240 = vmatprep.subr.bf16.mxu0 %v14795_v0  ;;  %13135 = vmatpush3.bf16.msra.mxu1 %v832_v38 }
 0x261   :  { %13140 = vmatprep.subr.bf16.mxu1 %v14795_v0 }
 0x263   :  { %13241 = vmatpush3.bf16.msra.mxu0 %v14069_v39 }
 0x264   :  { %13242 = vmatprep.subr.bf16.mxu0 %v14795_v0 }
 0x267   :  { %13243 = vmatpush3.bf16.msra.mxu0 %v1518_v41  ;;  %v14090_v41 = vld [vmem:[%s17727_s9 + $0x5c] sm:$0xff]  }
 0x268   :  { %13248 = vmatprep.subr.bf16.mxu0 %v14795_v0 }
 0x30d   :  { %v468_v42 = vpop.f32.mrb[8].mxu1  ;;  %v423_v45 = vpop.f32.mrb[8].mxu0 }
 0x30e   :  { %v15110_v46 = vpack.c.bf16 %v468_v42, %v468_v42  ;;  %v13084_v47 = vpop.f32.mrb[9].mxu1  ;;  %v13078_v48 = vpop.f32.mrb[9].mxu0  ;;  %v15150_v7 = vpack.c.bf16 %v423_v45, %v423_v45  ;;  %v14091_v42 = vld [vmem:[%s17727_s9 + $0x158] sm:$0xff]   ;;  %v14094_v45 = vld [vmem:[%s17727_s9 + $0x6c] ss:$0 sps:$4 sm:$0x11]  }
 0x30f   :  { %v471_v49 = vpop.f32.mrb[10].mxu1  ;;  %v426_v50 = vpop.f32.mrb[10].mxu0  ;;  %v14095_v47 = vld [vmem:[%s17727_s9 + $0x168] ss:$0 sps:$4 sm:$0x11]   ;;  %v1052_v48 = vsel %vm830_vm3, %v14094_v45, 0 }
 0x310   :  { %v13085_v51 = vpop.f32.mrb[11].mxu1  ;;  %13137 = vmatmul.mubr.msk.bf16.vlgmr.msra.gmra.mrb[24].mxu1 %vm332_vm2, %v15110_v46  ;;  %13245 = vmatmul.mubr.msk.bf16.vlgmr.msra.gmra.mrb[28].mxu0 %vm332_vm2, %v15110_v46  ;;  %v13079_v52 = vpop.f32.mrb[11].mxu0  ;;  %v1727_v49 = vsel %vm830_vm3, %v14095_v47, 0 }
 0x311   :  { %13141 = vmatpush3.bf16.msra.mxu1 %v14072_v43  ;;  %13249 = vmatpush3.bf16.msra.mxu0 %v14073_v44  ;;  %v14092_v43 = vld [vmem:[%s17727_s9 + $0x64] sm:$0xff]   ;;  %v14096_v51 = vld [vmem:[%s17727_s9 + $0x70] sm:$0xff]  }
 0x312   :  { %13142 = vmatprep.subr.bf16.mxu1 %v14795_v0  ;;  %13250 = vmatprep.subr.bf16.mxu0 %v14795_v0  ;;  %v14093_v44 = vld [vmem:[%s17727_s9 + $0x160] sm:$0xff]   ;;  %v14097_v52 = vld [vmem:[%s17727_s9 + $0x16c] sm:$0xff]  }
 0x313   :  { %13148 = vmatprep.mubr.msk.bf16.mxu1 %vm14796_vm0, %v14795_v0  ;;  %13256 = vmatprep.mubr.msk.bf16.mxu0 %vm14796_vm0, %v14795_v0 }
 0x315   :  { %13143 = vmatpush3.bf16.msra.mxu1 %v14074_v53  ;;  %13251 = vmatpush3.bf16.msra.mxu0 %v14075_v54  ;;  %v15137_v58 = vpop.f32.mrb[12].mxu0  ;;  %v15139_v59 = vpop.f32.mrb[12].mxu1  ;;  %v14098_v53 = vld [vmem:[%s17727_s9 + $0x78] sm:$0xff]  }
 0x316   :  { %13144 = vmatprep.subr.bf16.mxu1 %v14795_v0  ;;  %13252 = vmatprep.subr.bf16.mxu0 %v14795_v0  ;;  %v13090_v61 = vpop.f32.mrb[13].mxu0  ;;  %v13096_v62 = vpop.f32.mrb[13].mxu1  ;;  %v15204_v34 = vpack.c.bf16 %v15137_v58, %v15137_v58  ;;  %v15252_v50 = vpack.c.bf16 %v15139_v59, %v15139_v59  ;;  %v14099_v54 = vld [vmem:[%s17727_s9 + $0x174] sm:$0xff]   ;;  %v14103_v58 = vld [vmem:[%s17727_s9 + $0x184] ss:$0 sps:$4 sm:$0x11]  }
 0x317   :  { %v516_v63 = vpop.f32.mrb[14].mxu0  ;;  %v561_v1 = vpop.f32.mrb[14].mxu1  ;;  %v1129_v59 = vsel %vm830_vm3, %v14102_v57, 0  ;;  %v1800_v60 = vsel %vm830_vm3, %v14103_v58, 0  ;;  %v14104_v62 = vld [vmem:[%s17727_s9 + $0x8c] sm:$0xff]   ;;  %v14144_v58 = vld [vmem:[%s17727_s9 + $0x1f8] sm:$0xff]  }
 0x318   :  { %v13091_v2 = vpop.f32.mrb[15].mxu0  ;;  %v13097_v3 = vpop.f32.mrb[15].mxu1  ;;  %v14105_v63 = vld [vmem:[%s17727_s9 + $0x188] sm:$0xff]   ;;  %v14106_v1 = vld [vmem:[%s17727_s9 + $0x94] sm:$0xff]  }
 0x319   :  { %13145 = vmatpush3.bf16.msra.mxu1 %v14076_v55  ;;  %13253 = vmatpush3.bf16.msra.mxu0 %v14077_v56  ;;  %v14100_v55 = vld [vmem:[%s17727_s9 + $0x80] sm:$0xff]   ;;  %v14107_v2 = vld [vmem:[%s17727_s9 + $0x190] sm:$0xff]  }
 0x31a   :  { %13146 = vmatprep.subr.bf16.mxu1 %v14795_v0  ;;  %13254 = vmatprep.subr.bf16.mxu0 %v14795_v0  ;;  %v14101_v56 = vld [vmem:[%s17727_s9 + $0x17c] sm:$0xff]  }
 0x31b   :  { %v14108_v3 = vld [vmem:[%s17727_s9 + $0x9c] sm:$0xff]  }
 0x31d   :  { %13147 = vmatpush3.bf16.msra.mxu1 %v899_v5  ;;  %13255 = vmatpush3.bf16.msra.mxu0 %v1582_v6  ;;  %v15158_v10 = vpop.f32.mrb[16].mxu0  ;;  %v15160_v11 = vpop.f32.mrb[16].mxu1  ;;  %v14109_v5 = vld [vmem:[%s17727_s9 + $0x198] sm:$0xff]   ;;  %v14110_v6 = vld [vmem:[%s17727_s9 + $0xa4] ss:$0 sps:$4 sm:$0x11]  }
 0x31e   :  { %13152 = vmatprep.subr.bf16.mxu1 %v14795_v0  ;;  %13260 = vmatprep.subr.bf16.mxu0 %v14795_v0  ;;  %v13102_v12 = vpop.f32.mrb[17].mxu0  ;;  %v13108_v13 = vpop.f32.mrb[17].mxu1  ;;  %v15298_v61 = vpack.c.bf16 %v15158_v10, %v15158_v10 }
 0x31f   :  { %v606_v14 = vpop.f32.mrb[18].mxu0  ;;  %v651_v15 = vpop.f32.mrb[18].mxu1  ;;  %v15344_v12 = vpack.c.bf16 %v15160_v11, %v15160_v11  ;;  %v14112_v13 = vld [vmem:[%s17727_s9 + $0xa8] sm:$0xff]   ;;  %v14114_v11 = vld [vmem:[%s17727_s9 + $0xb0] sm:$0xff]  }
 0x320   :  { %13149 = vmatmul.mubr.msk.bf16.vlgmr.msra.gmra.mrb[24].mxu1 %vm332_vm2, %v15150_v7  ;;  %13257 = vmatmul.mubr.msk.bf16.vlgmr.msra.gmra.mrb[28].mxu0 %vm332_vm2, %v15150_v7  ;;  %v13103_v16 = vpop.f32.mrb[19].mxu0  ;;  %v13109_v17 = vpop.f32.mrb[19].mxu1  ;;  %v14113_v14 = vld [vmem:[%s17727_s9 + $0x1a4] sm:$0xff]   ;;  %v14115_v15 = vld [vmem:[%s17727_s9 + $0x1ac] sm:$0xff]  }
 0x321   :  { %13153 = vmatpush3.bf16.msra.mxu1 %v14080_v8  ;;  %13261 = vmatpush3.bf16.msra.mxu0 %v14081_v9  ;;  %v14111_v8 = vld [vmem:[%s17727_s9 + $0x1a0] ss:$0 sps:$4 sm:$0x11]   ;;  %v1206_v9 = vsel %vm830_vm3, %v14110_v6, 0  ;;  %v14116_v16 = vld [vmem:[%s17727_s9 + $0xb8] sm:$0xff]   ;;  %v14152_v6 = vld [vmem:[%s17727_s9 + $0x230] sm:$0xff]  }
 0x322   :  { %13154 = vmatprep.subr.bf16.mxu1 %v14795_v0  ;;  %13262 = vmatprep.subr.bf16.mxu0 %v14795_v0  ;;  %v1873_v10 = vsel %vm830_vm3, %v14111_v8, 0  ;;  %v14117_v17 = vld [vmem:[%s17727_s9 + $0x1b4] sm:$0xff]   ;;  %v14153_v8 = vld [vmem:[%s17727_s9 + $0x32c] sm:$0xff]  }
 0x323   :  { %13160 = vmatprep.mubr.msk.bf16.mxu1 %vm14796_vm0, %v14795_v0  ;;  %13268 = vmatprep.mubr.msk.bf16.mxu0 %vm14796_vm0, %v14795_v0 }
 0x325   :  { %13155 = vmatpush3.bf16.msra.mxu1 %v14082_v18  ;;  %13263 = vmatpush3.bf16.msra.mxu0 %v14083_v19  ;;  %v15189_v23 = vpop.f32.mrb[20].mxu0  ;;  %v15191_v24 = vpop.f32.mrb[20].mxu1  ;;  %v14118_v18 = vld [vmem:[%s17727_s9 + $0xc0] ss:$0 sps:$4 sm:$0x11]  }
 0x326   :  { %13156 = vmatprep.subr.bf16.mxu1 %v14795_v0  ;;  %13264 = vmatprep.subr.bf16.mxu0 %v14795_v0  ;;  %v13114_v26 = vpop.f32.mrb[21].mxu0  ;;  %v13120_v27 = vpop.f32.mrb[21].mxu1  ;;  %v14119_v19 = vld [vmem:[%s17727_s9 + $0x1bc] ss:$0 sps:$4 sm:$0x11]   ;;  %v15390_v22 = vpack.c.bf16 %v15189_v23, %v15189_v23  ;;  %v14122_v23 = vld [vmem:[%s17727_s9 + $0xcc] sm:$0xff]  }
 0x327   :  { %v696_v28 = vpop.f32.mrb[22].mxu0  ;;  %v741_v29 = vpop.f32.mrb[22].mxu1  ;;  %v14121_v26 = vld [vmem:[%s17727_s9 + $0x1c0] sm:$0xff]   ;;  %v14123_v27 = vld [vmem:[%s17727_s9 + $0x1c8] sm:$0xff]  }
 0x328   :  { %v13115_v30 = vpop.f32.mrb[23].mxu0  ;;  %v13121_v31 = vpop.f32.mrb[23].mxu1  ;;  %v14124_v28 = vld [vmem:[%s17727_s9 + $0xd4] sm:$0xff]  }
 0x329   :  { %13157 = vmatpush3.bf16.msra.mxu1 %v14084_v20  ;;  %13265 = vmatpush3.bf16.msra.mxu0 %v14085_v21  ;;  %v1283_v20 = vsel %vm830_vm3, %v14118_v18, 0  ;;  %v1946_v21 = vsel %vm830_vm3, %v14119_v19, 0  ;;  %v14125_v29 = vld [vmem:[%s17727_s9 + $0x1d0] sm:$0xff]   ;;  %v14126_v30 = vld [vmem:[%s17727_s9 + $0xdc] ss:$0 sps:$4 sm:$0x11]  }
 0x32a   :  { %13158 = vmatprep.subr.bf16.mxu1 %v14795_v0  ;;  %13266 = vmatprep.subr.bf16.mxu0 %v14795_v0  ;;  %v14127_v31 = vld [vmem:[%s17727_s9 + $0x1d8] ss:$0 sps:$4 sm:$0x11]   ;;  %v14161_v18 = vld [vmem:[%s17727_s9 + $0x348] sm:$0xff]  }
 0x32b   :  { %v14162_v19 = vld [vmem:[%s17727_s9 + $0x254] sm:$0xff]  }
 0x32d   :  { %13159 = vmatpush3.bf16.msra.mxu1 %v975_v32  ;;  %13267 = vmatpush3.bf16.msra.mxu0 %v1654_v33  ;;  %v15212_v37 = vpop.f32.mrb[24].mxu0  ;;  %v1360_v32 = vsel %vm830_vm3, %v14126_v30, 0  ;;  %v2019_v33 = vsel %vm830_vm3, %v14127_v31, 0  ;;  %v14170_v30 = vld [vmem:[%s17727_s9 + $0x270] sm:$0xff]  }
 0x32e   :  { %13164 = vmatprep.subr.bf16.mxu1 %v14795_v0  ;;  %13272 = vmatprep.subr.bf16.mxu0 %v14795_v0  ;;  %v13126_v38 = vpop.f32.mrb[25].mxu0  ;;  %v15482_v47 = vpack.c.bf16 %v15212_v37, %v15212_v37  ;;  %v14138_v37 = vld [vmem:[%s17727_s9 + $0x21c] sm:$0xff]   ;;  %v14171_v31 = vld [vmem:[%s17727_s9 + $0x36c] sm:$0xff]  }
 0x32f   :  { %v786_v39 = vpop.f32.mrb[26].mxu0  ;;  %v14129_v38 = vld [vmem:[%s17727_s9 + $0x1dc] sm:$0xff]  }
 0x330   :  { %13161 = vmatmul.mubr.msk.bf16.vlgmr.msra.gmra.mrb[24].mxu1 %vm332_vm2, %v15204_v34  ;;  %13269 = vmatmul.mubr.msk.bf16.vlgmr.msra.gmra.mrb[28].mxu0 %vm332_vm2, %v15204_v34  ;;  %v13127_v40 = vpop.f32.mrb[27].mxu0  ;;  %v14131_v39 = vld [vmem:[%s17727_s9 + $0x1e4] sm:$0xff]  }
 0x331   :  { %13165 = vmatpush3.bf16.msra.mxu1 %v14088_v35  ;;  %13273 = vmatpush3.bf16.msra.mxu0 %v14089_v36  ;;  %v15436_v35 = vpack.c.bf16 %v15191_v24, %v15191_v24  ;;  %v14128_v36 = vld [vmem:[%s17727_s9 + $0xe0] sm:$0xff]   ;;  %v14130_v24 = vld [vmem:[%s17727_s9 + $0xe8] sm:$0xff]   ;;  %v14132_v40 = vld [vmem:[%s17727_s9 + $0xf0] sm:$0xff]  }
 0x332   :  { %13166 = vmatprep.subr.bf16.mxu1 %v14795_v0  ;;  %13274 = vmatprep.subr.bf16.mxu0 %v14795_v0 }
 0x333   :  { %13172 = vmatprep.mubr.msk.bf16.mxu1 %vm14796_vm0, %v14795_v0  ;;  %13280 = vmatprep.mubr.msk.bf16.mxu0 %vm14796_vm0, %v14795_v0 }
 0x335   :  { %13167 = vmatpush3.bf16.msra.mxu1 %v14090_v41  ;;  %13275 = vmatpush3.bf16.msra.mxu0 %v14091_v42  ;;  %v14133_v41 = vld [vmem:[%s17727_s9 + $0x1ec] sm:$0xff]   ;;  %v14134_v42 = vld [vmem:[%s17727_s9 + $0xf8] ss:$0 sps:$4 sm:$0x11]  }
 0x336   :  { %13168 = vmatprep.subr.bf16.mxu1 %v14795_v0  ;;  %13276 = vmatprep.subr.bf16.mxu0 %v14795_v0 }
 0x339   :  { %13169 = vmatpush3.bf16.msra.mxu1 %v14092_v43  ;;  %13277 = vmatpush3.bf16.msra.mxu0 %v14093_v44  ;;  %v14135_v43 = vld [vmem:[%s17727_s9 + $0x1f4] ss:$0 sps:$4 sm:$0x11]   ;;  %v1437_v44 = vsel %vm830_vm3, %v14134_v42, 0  ;;  %v14179_v42 = vld [vmem:[%s17727_s9 + $0x388] sm:$0xff]  }
 0x33a   :  { %13170 = vmatprep.subr.bf16.mxu1 %v14795_v0  ;;  %13278 = vmatprep.subr.bf16.mxu0 %v14795_v0  ;;  %v2092_v45 = vsel %vm830_vm3, %v14135_v43, 0  ;;  %v14181_v43 = vld [vmem:[%s17727_s9 + $0x390] sm:$0xff]  }
 0x33d   :  { %13171 = vmatpush3.bf16.msra.mxu1 %v1052_v48  ;;  %13279 = vmatpush3.bf16.msra.mxu0 %v1727_v49  ;;  %v14136_v48 = vld [vmem:[%s17727_s9 + $0x214] sm:$0xff]  }
 0x33e   :  { %13176 = vmatprep.subr.bf16.mxu1 %v14795_v0  ;;  %13284 = vmatprep.subr.bf16.mxu0 %v14795_v0  ;;  %v14137_v49 = vld [vmem:[%s17727_s9 + $0x310] sm:$0xff]  }
 0x340   :  { %13173 = vmatmul.mubr.msk.bf16.vlgmr.msra.gmra.mrb[24].mxu1 %vm332_vm2, %v15252_v50  ;;  %13281 = vmatmul.mubr.msk.bf16.vlgmr.msra.gmra.mrb[28].mxu0 %vm332_vm2, %v15252_v50 }
 0x341   :  { %13177 = vmatpush3.bf16.msra.mxu1 %v14096_v51  ;;  %13285 = vmatpush3.bf16.msra.mxu0 %v14097_v52  ;;  %v14139_v51 = vld [vmem:[%s17727_s9 + $0x318] sm:$0xff]   ;;  %v14140_v52 = vld [vmem:[%s17727_s9 + $0x224] sm:$0xff]  }
 0x342   :  { %13178 = vmatprep.subr.bf16.mxu1 %v14795_v0  ;;  %13286 = vmatprep.subr.bf16.mxu0 %v14795_v0 }
 0x343   :  { %13184 = vmatprep.mubr.msk.bf16.mxu1 %vm14796_vm0, %v14795_v0  ;;  %13292 = vmatprep.mubr.msk.bf16.mxu0 %vm14796_vm0, %v14795_v0 }
 0x345   :  { %13179 = vmatpush3.bf16.msra.mxu1 %v14098_v53  ;;  %13287 = vmatpush3.bf16.msra.mxu0 %v14099_v54  ;;  %v14141_v53 = vld [vmem:[%s17727_s9 + $0x320] sm:$0xff]   ;;  %v14142_v54 = vld [vmem:[%s17727_s9 + $0x22c] ss:$0 sps:$4 sm:$0x11]  }
 0x346   :  { %13180 = vmatprep.subr.bf16.mxu1 %v14795_v0  ;;  %13288 = vmatprep.subr.bf16.mxu0 %v14795_v0 }
 0x349   :  { %13181 = vmatpush3.bf16.msra.mxu1 %v14100_v55  ;;  %13289 = vmatpush3.bf16.msra.mxu0 %v14101_v56  ;;  %v14143_v55 = vld [vmem:[%s17727_s9 + $0x328] ss:$0 sps:$4 sm:$0x11]   ;;  %v2174_v56 = vsel %vm830_vm3, %v14142_v54, 0  ;;  %v14189_v54 = vld [vmem:[%s17727_s9 + $0x3ac] sm:$0xff]  }
 0x34a   :  { %13182 = vmatprep.subr.bf16.mxu1 %v14795_v0  ;;  %13290 = vmatprep.subr.bf16.mxu0 %v14795_v0  ;;  %v2830_v57 = vsel %vm830_vm3, %v14143_v55, 0  ;;  %v14190_v55 = vld [vmem:[%s17727_s9 + $0x2b8] ss:$0 sps:$4 sm:$0x11]  }
 0x34d   :  { %13183 = vmatpush3.bf16.msra.mxu1 %v1129_v59  ;;  %13291 = vmatpush3.bf16.msra.mxu0 %v1800_v60  ;;  %v14145_v59 = vld [vmem:[%s17727_s9 + $0x2f4] sm:$0xff]   ;;  %v14146_v60 = vld [vmem:[%s17727_s9 + $0x200] sm:$0xff]  }
 0x34e   :  { %13188 = vmatprep.subr.bf16.mxu1 %v14795_v0  ;;  %13296 = vmatprep.subr.bf16.mxu0 %v14795_v0 }
 0x350   :  { %13185 = vmatmul.mubr.msk.bf16.vlgmr.msra.gmra.mrb[24].mxu1 %vm332_vm2, %v15298_v61  ;;  %13293 = vmatmul.mubr.msk.bf16.vlgmr.msra.gmra.mrb[28].mxu0 %vm332_vm2, %v15298_v61 }
 0x351   :  { %13189 = vmatpush3.bf16.msra.mxu1 %v14104_v62  ;;  %13297 = vmatpush3.bf16.msra.mxu0 %v14105_v63  ;;  %v14147_v62 = vld [vmem:[%s17727_s9 + $0x2fc] sm:$0xff]   ;;  %v14149_v63 = vld [vmem:[%s17727_s9 + $0x304] sm:$0xff]  }
 0x352   :  { %13190 = vmatprep.subr.bf16.mxu1 %v14795_v0  ;;  %13298 = vmatprep.subr.bf16.mxu0 %v14795_v0 }
 0x353   :  { %13196 = vmatprep.mubr.msk.bf16.mxu1 %vm14796_vm0, %v14795_v0  ;;  %13304 = vmatprep.mubr.msk.bf16.mxu0 %vm14796_vm0, %v14795_v0 }
 0x355   :  { %13191 = vmatpush3.bf16.msra.mxu1 %v14106_v1  ;;  %13299 = vmatpush3.bf16.msra.mxu0 %v14107_v2  ;;  %v14150_v1 = vld [vmem:[%s17727_s9 + $0x210] ss:$0 sps:$4 sm:$0x11]   ;;  %v14151_v2 = vld [vmem:[%s17727_s9 + $0x30c] ss:$0 sps:$4 sm:$0x11]  }
 0x356   :  { %13192 = vmatprep.subr.bf16.mxu1 %v14795_v0  ;;  %13300 = vmatprep.subr.bf16.mxu0 %v14795_v0 }
 0x359   :  { %13193 = vmatpush3.bf16.msra.mxu1 %v14108_v3  ;;  %13301 = vmatpush3.bf16.msra.mxu0 %v14109_v5  ;;  %v2238_v3 = vsel %vm830_vm3, %v14150_v1, 0  ;;  %v2894_v5 = vsel %vm830_vm3, %v14151_v2, 0  ;;  %v14198_v1 = vld [vmem:[%s17727_s9 + $0x2d4] ss:$0 sps:$4 sm:$0x11]  }
 0x35a   :  { %13194 = vmatprep.subr.bf16.mxu1 %v14795_v0  ;;  %13302 = vmatprep.subr.bf16.mxu0 %v14795_v0  ;;  %v14199_v2 = vld [vmem:[%s17727_s9 + $0x3d0] ss:$0 sps:$4 sm:$0x11]  }
 0x35d   :  { %13195 = vmatpush3.bf16.msra.mxu1 %v1206_v9  ;;  %13303 = vmatpush3.bf16.msra.mxu0 %v1873_v10  ;;  %v14154_v9 = vld [vmem:[%s17727_s9 + $0x238] sm:$0xff]  }
 0x35e   :  { %13200 = vmatprep.subr.bf16.mxu1 %v14795_v0  ;;  %13308 = vmatprep.subr.bf16.mxu0 %v14795_v0  ;;  %v14155_v10 = vld [vmem:[%s17727_s9 + $0x334] sm:$0xff]  }
 0x360   :  { %13197 = vmatmul.mubr.msk.bf16.vlgmr.msra.gmra.mrb[24].mxu1 %vm332_vm2, %v15344_v12  ;;  %13305 = vmatmul.mubr.msk.bf16.vlgmr.msra.gmra.mrb[28].mxu0 %vm332_vm2, %v15344_v12 }
 0x361   :  { %13201 = vmatpush3.bf16.msra.mxu1 %v14112_v13  ;;  %13309 = vmatpush3.bf16.msra.mxu0 %v14113_v14  ;;  %v14157_v13 = vld [vmem:[%s17727_s9 + $0x33c] sm:$0xff]   ;;  %v14158_v14 = vld [vmem:[%s17727_s9 + $0x248] ss:$0 sps:$4 sm:$0x11]  }
 0x362   :  { %13202 = vmatprep.subr.bf16.mxu1 %v14795_v0  ;;  %13310 = vmatprep.subr.bf16.mxu0 %v14795_v0 }
 0x363   :  { %13208 = vmatprep.mubr.msk.bf16.mxu1 %vm14796_vm0, %v14795_v0  ;;  %13316 = vmatprep.mubr.msk.bf16.mxu0 %vm14796_vm0, %v14795_v0 }
 0x365   :  { %13203 = vmatpush3.bf16.msra.mxu1 %v14114_v11  ;;  %13311 = vmatpush3.bf16.msra.mxu0 %v14115_v15  ;;  %v14159_v11 = vld [vmem:[%s17727_s9 + $0x344] ss:$0 sps:$4 sm:$0x11]   ;;  %v2310_v15 = vsel %vm830_vm3, %v14158_v14, 0 }
 0x366   :  { %13204 = vmatprep.subr.bf16.mxu1 %v14795_v0  ;;  %13312 = vmatprep.subr.bf16.mxu0 %v14795_v0  ;;  %v14207_v14 = vld [vmem:[%s17727_s9 + $0x3ec] ss:$0 sps:$4 sm:$0x11]  }
 0x369   :  { %13205 = vmatpush3.bf16.msra.mxu1 %v14116_v16  ;;  %13313 = vmatpush3.bf16.msra.mxu0 %v14117_v17  ;;  %v2966_v16 = vsel %vm830_vm3, %v14159_v11, 0  ;;  %v14160_v17 = vld [vmem:[%s17727_s9 + $0x24c] sm:$0xff]  }
 0x36a   :  { %13206 = vmatprep.subr.bf16.mxu1 %v14795_v0  ;;  %13314 = vmatprep.subr.bf16.mxu0 %v14795_v0 }
 0x36d   :  { %13207 = vmatpush3.bf16.msra.mxu1 %v1283_v20  ;;  %13315 = vmatpush3.bf16.msra.mxu0 %v1946_v21  ;;  %v14163_v20 = vld [vmem:[%s17727_s9 + $0x350] sm:$0xff]   ;;  %v14165_v21 = vld [vmem:[%s17727_s9 + $0x358] sm:$0xff]  }
 0x36e   :  { %13212 = vmatprep.subr.bf16.mxu1 %v14795_v0  ;;  %13320 = vmatprep.subr.bf16.mxu0 %v14795_v0 }
 0x370   :  { %13209 = vmatmul.mubr.msk.bf16.vlgmr.msra.gmra.mrb[24].mxu1 %vm332_vm2, %v15390_v22  ;;  %13317 = vmatmul.mubr.msk.bf16.vlgmr.msra.gmra.mrb[28].mxu0 %vm332_vm2, %v15390_v22 }
 0x371   :  { %13213 = vmatpush3.bf16.msra.mxu1 %v14120_v25  ;;  %13321 = vmatpush3.bf16.msra.mxu0 %v14121_v26  ;;  %v14166_v25 = vld [vmem:[%s17727_s9 + $0x264] ss:$0 sps:$4 sm:$0x11]   ;;  %v14167_v26 = vld [vmem:[%s17727_s9 + $0x360] ss:$0 sps:$4 sm:$0x11]  }
 0x372   :  { %13214 = vmatprep.subr.bf16.mxu1 %v14795_v0  ;;  %13322 = vmatprep.subr.bf16.mxu0 %v14795_v0 }
 0x373   :  { %13220 = vmatprep.mubr.msk.bf16.mxu1 %vm14796_vm0, %v14795_v0  ;;  %13328 = vmatprep.mubr.msk.bf16.mxu0 %vm14796_vm0, %v14795_v0 }
 0x375   :  { %13215 = vmatpush3.bf16.msra.mxu1 %v14122_v23  ;;  %13323 = vmatpush3.bf16.msra.mxu0 %v14123_v27  ;;  %v2383_v23 = vsel %vm830_vm3, %v14166_v25, 0  ;;  %v3039_v27 = vsel %vm830_vm3, %v14167_v26, 0 }
 0x376   :  { %13216 = vmatprep.subr.bf16.mxu1 %v14795_v0  ;;  %13324 = vmatprep.subr.bf16.mxu0 %v14795_v0 }
 0x379   :  { %13217 = vmatpush3.bf16.msra.mxu1 %v14124_v28  ;;  %13325 = vmatpush3.bf16.msra.mxu0 %v14125_v29  ;;  %v14168_v28 = vld [vmem:[%s17727_s9 + $0x268] sm:$0xff]  }
 0x37a   :  { %13218 = vmatprep.subr.bf16.mxu1 %v14795_v0  ;;  %13326 = vmatprep.subr.bf16.mxu0 %v14795_v0  ;;  %v14169_v29 = vld [vmem:[%s17727_s9 + $0x364] sm:$0xff]  }
 0x37d   :  { %13219 = vmatpush3.bf16.msra.mxu1 %v1360_v32  ;;  %13327 = vmatpush3.bf16.msra.mxu0 %v2019_v33  ;;  %v14173_v32 = vld [vmem:[%s17727_s9 + $0x374] sm:$0xff]   ;;  %v14174_v33 = vld [vmem:[%s17727_s9 + $0x280] ss:$0 sps:$4 sm:$0x11]  }
 0x37e   :  { %13224 = vmatprep.subr.bf16.mxu1 %v14795_v0  ;;  %13332 = vmatprep.subr.bf16.mxu0 %v14795_v0 }
 0x380   :  { %13221 = vmatmul.mubr.msk.bf16.vlgmr.msra.gmra.mrb[24].mxu1 %vm332_vm2, %v15436_v35  ;;  %13329 = vmatmul.mubr.msk.bf16.vlgmr.msra.gmra.mrb[28].mxu0 %vm332_vm2, %v15436_v35 }
 0x381   :  { %13225 = vmatpush3.bf16.msra.mxu1 %v14128_v36  ;;  %13333 = vmatpush3.bf16.msra.mxu0 %v14129_v38  ;;  %v14175_v36 = vld [vmem:[%s17727_s9 + $0x37c] ss:$0 sps:$4 sm:$0x11]   ;;  %v2456_v38 = vsel %vm830_vm3, %v14174_v33, 0 }
 0x382   :  { %13226 = vmatprep.subr.bf16.mxu1 %v14795_v0  ;;  %13334 = vmatprep.subr.bf16.mxu0 %v14795_v0 }
 0x383   :  { %13232 = vmatprep.mubr.msk.bf16.mxu1 %vm14796_vm0, %v14795_v0  ;;  %13340 = vmatprep.mubr.msk.bf16.mxu0 %vm14796_vm0, %v14795_v0 }
 0x385   :  { %13227 = vmatpush3.bf16.msra.mxu1 %v14130_v24  ;;  %13335 = vmatpush3.bf16.msra.mxu0 %v14131_v39  ;;  %v3112_v24 = vsel %vm830_vm3, %v14175_v36, 0  ;;  %v14176_v39 = vld [vmem:[%s17727_s9 + $0x284] sm:$0xff]   ;;  %v3452_v36 = vpop.permute.xlu0 %3451 }
 0x386   :  { %13228 = vmatprep.subr.bf16.mxu1 %v14795_v0  ;;  %13336 = vmatprep.subr.bf16.mxu0 %v14795_v0 }
 0x389   :  { %13229 = vmatpush3.bf16.msra.mxu1 %v14132_v40  ;;  %13337 = vmatpush3.bf16.msra.mxu0 %v14133_v41  ;;  %v14177_v40 = vld [vmem:[%s17727_s9 + $0x380] sm:$0xff]   ;;  %v14178_v41 = vld [vmem:[%s17727_s9 + $0x28c] sm:$0xff]  }
 0x38a   :  { %13230 = vmatprep.subr.bf16.mxu1 %v14795_v0  ;;  %13338 = vmatprep.subr.bf16.mxu0 %v14795_v0 }
 0x38d   :  { %13231 = vmatpush3.bf16.msra.mxu1 %v1437_v44  ;;  %13339 = vmatpush3.bf16.msra.mxu0 %v2092_v45  ;;  %v14182_v44 = vld [vmem:[%s17727_s9 + $0x29c] ss:$0 sps:$4 sm:$0x11]   ;;  %v14183_v45 = vld [vmem:[%s17727_s9 + $0x398] ss:$0 sps:$4 sm:$0x11]  }
 0x38e   :  { %13344 = vmatprep.subr.bf16.mxu1 %v14795_v0  ;;  %13452 = vmatprep.subr.bf16.mxu0 %v14795_v0 }
 0x390   :  { %13233 = vmatmul.mubr.msk.bf16.vlgmr.msra.gmra.mrb[24].mxu1 %vm332_vm2, %v15482_v47  ;;  %13341 = vmatmul.mubr.msk.bf16.vlgmr.msra.gmra.mrb[28].mxu0 %vm332_vm2, %v15482_v47 }
 0x391   :  { %13345 = vmatpush3.bf16.msra.mxu1 %v14136_v48  ;;  %13453 = vmatpush3.bf16.msra.mxu0 %v14137_v49  ;;  %v2529_v48 = vsel %vm830_vm3, %v14182_v44, 0  ;;  %v3185_v49 = vsel %vm830_vm3, %v14183_v45, 0  ;;  %v11781_v44 = vld [vmem:[%s17730_s0 + $0x18] sm:$0xff] }
 0x392   :  { %13346 = vmatprep.subr.bf16.mxu1 %v14795_v0  ;;  %13454 = vmatprep.subr.bf16.mxu0 %v14795_v0 }
 0x393   :  { %13352 = vmatprep.mubr.msk.bf16.mxu1 %vm14796_vm0, %v14795_v0  ;;  %13460 = vmatprep.mubr.msk.bf16.mxu0 %vm14796_vm0, %v14795_v0 }
 0x395   :  { %13347 = vmatpush3.bf16.msra.mxu1 %v14138_v37  ;;  %13455 = vmatpush3.bf16.msra.mxu0 %v14139_v51  ;;  %v14184_v37 = vld [vmem:[%s17727_s9 + $0x2a0] sm:$0xff]  }
 0x396   :  { %13348 = vmatprep.subr.bf16.mxu1 %v14795_v0  ;;  %13456 = vmatprep.subr.bf16.mxu0 %v14795_v0  ;;  %v14185_v51 = vld [vmem:[%s17727_s9 + $0x39c] sm:$0xff]  }
 0x399   :  { %13349 = vmatpush3.bf16.msra.mxu1 %v14140_v52  ;;  %13457 = vmatpush3.bf16.msra.mxu0 %v14141_v53  ;;  %v14186_v52 = vld [vmem:[%s17727_s9 + $0x2a8] sm:$0xff]  }
 0x39a   :  { %13350 = vmatprep.subr.bf16.mxu1 %v14795_v0  ;;  %13458 = vmatprep.subr.bf16.mxu0 %v14795_v0  ;;  %v14187_v53 = vld [vmem:[%s17727_s9 + $0x3a4] sm:$0xff]  }
 0x39d   :  { %13351 = vmatpush3.bf16.msra.mxu1 %v2174_v56  ;;  %13459 = vmatpush3.bf16.msra.mxu0 %v2830_v57  ;;  %v14191_v56 = vld [vmem:[%s17727_s9 + $0x3b4] ss:$0 sps:$4 sm:$0x11]   ;;  %v2602_v57 = vsel %vm830_vm3, %v14190_v55, 0 }
 0x39e   :  { %13356 = vmatprep.subr.bf16.mxu1 %v14795_v0  ;;  %13464 = vmatprep.subr.bf16.mxu0 %v14795_v0 }
 0x3a0   :  { %13353 = vmatmul.mubr.msk.bf16.vlgmr.msra.gmra.mrb[28].mxu1 %vm332_vm2, %v15110_v46  ;;  %13461 = vmatmul.mubr.msk.bf16.vlgmr.msra.gmra.mrb[32].mxu0 %vm332_vm2, %v15110_v46  ;;  %v14148_v46 = vld [vmem:[%s17727_s9 + $0x208] sm:$0xff]  }
 0x3a1   :  { %13357 = vmatpush3.bf16.msra.mxu1 %v14144_v58  ;;  %13465 = vmatpush3.bf16.msra.mxu0 %v14145_v59  ;;  %v3258_v58 = vsel %vm830_vm3, %v14191_v56, 0  ;;  %v14192_v59 = vld [vmem:[%s17727_s9 + $0x2bc] sm:$0xff]  }
 0x3a2   :  { %13358 = vmatprep.subr.bf16.mxu1 %v14795_v0  ;;  %13466 = vmatprep.subr.bf16.mxu0 %v14795_v0 }
 0x3a3   :  { %13364 = vmatprep.mubr.msk.bf16.mxu1 %vm14796_vm0, %v14795_v0  ;;  %13472 = vmatprep.mubr.msk.bf16.mxu0 %vm14796_vm0, %v14795_v0 }
 0x3a5   :  { %13359 = vmatpush3.bf16.msra.mxu1 %v14146_v60  ;;  %13467 = vmatpush3.bf16.msra.mxu0 %v14147_v62  ;;  %v14193_v60 = vld [vmem:[%s17727_s9 + $0x3b8] sm:$0xff]   ;;  %v14194_v62 = vld [vmem:[%s17727_s9 + $0x2c4] sm:$0xff]  }
 0x3a6   :  { %13360 = vmatprep.subr.bf16.mxu1 %v14795_v0  ;;  %13468 = vmatprep.subr.bf16.mxu0 %v14795_v0 }
 0x3a9   :  { %13361 = vmatpush3.bf16.msra.mxu1 %v14148_v46  ;;  %13469 = vmatpush3.bf16.msra.mxu0 %v14149_v63  ;;  %v14195_v46 = vld [vmem:[%s17727_s9 + $0x3c0] sm:$0xff]   ;;  %v14197_v63 = vld [vmem:[%s17727_s9 + $0x3c8] sm:$0xff]  }
 0x3aa   :  { %13362 = vmatprep.subr.bf16.mxu1 %v14795_v0  ;;  %13470 = vmatprep.subr.bf16.mxu0 %v14795_v0 }
 0x3ad   :  { %13363 = vmatpush3.bf16.msra.mxu1 %v2238_v3  ;;  %13471 = vmatpush3.bf16.msra.mxu0 %v2894_v5  ;;  %v2675_v3 = vsel %vm830_vm3, %v14198_v1, 0  ;;  %v3331_v5 = vsel %vm830_vm3, %v14199_v2, 0  ;;  %v3485_v2 = vld [vmem:[%s17684_s10] sm:$0x1] }
 0x3ae   :  { %13368 = vmatprep.subr.bf16.mxu1 %v14795_v0  ;;  %13476 = vmatprep.subr.bf16.mxu0 %v14795_v0 }
 0x3b0   :  { %13365 = vmatmul.mubr.msk.bf16.vlgmr.msra.gmra.mrb[28].mxu1 %vm332_vm2, %v15150_v7  ;;  %13473 = vmatmul.mubr.msk.bf16.vlgmr.msra.gmra.mrb[32].mxu0 %vm332_vm2, %v15150_v7  ;;  %v14156_v7 = vld [vmem:[%s17727_s9 + $0x240] sm:$0xff]  }
 0x3b1   :  { %13369 = vmatpush3.bf16.msra.mxu1 %v14152_v6  ;;  %13477 = vmatpush3.bf16.msra.mxu0 %v14153_v8  ;;  %v14200_v6 = vld [vmem:[%s17727_s9 + $0x2d8] sm:$0xff]  }
 0x3b2   :  { %13370 = vmatprep.subr.bf16.mxu1 %v14795_v0  ;;  %13478 = vmatprep.subr.bf16.mxu0 %v14795_v0  ;;  %v14201_v8 = vld [vmem:[%s17727_s9 + $0x3d4] sm:$0xff]  }
 0x3b3   :  { %13376 = vmatprep.mubr.msk.bf16.mxu1 %vm14796_vm0, %v14795_v0  ;;  %13484 = vmatprep.mubr.msk.bf16.mxu0 %vm14796_vm0, %v14795_v0 }
 0x3b5   :  { %13371 = vmatpush3.bf16.msra.mxu1 %v14154_v9  ;;  %13479 = vmatpush3.bf16.msra.mxu0 %v14155_v10  ;;  %v14202_v9 = vld [vmem:[%s17727_s9 + $0x2e0] sm:$0xff]  }
 0x3b6   :  { %13372 = vmatprep.subr.bf16.mxu1 %v14795_v0  ;;  %13480 = vmatprep.subr.bf16.mxu0 %v14795_v0  ;;  %v14203_v10 = vld [vmem:[%s17727_s9 + $0x3dc] sm:$0xff]  }
 0x3b9   :  { %13373 = vmatpush3.bf16.msra.mxu1 %v14156_v7  ;;  %13481 = vmatpush3.bf16.msra.mxu0 %v14157_v13  ;;  %v14205_v7 = vld [vmem:[%s17727_s9 + $0x3e4] sm:$0xff]   ;;  %v14206_v13 = vld [vmem:[%s17727_s9 + $0x2f0] ss:$0 sps:$4 sm:$0x11]  }
 0x3ba   :  { %13374 = vmatprep.subr.bf16.mxu1 %v14795_v0  ;;  %13482 = vmatprep.subr.bf16.mxu0 %v14795_v0  ;;  %v2748_v11 = vsel %vm830_vm3, %v14206_v13, 0 }
 0x3bd   :  { %13375 = vmatpush3.bf16.msra.mxu1 %v2310_v15  ;;  %13483 = vmatpush3.bf16.msra.mxu0 %v2966_v16  ;;  %v3404_v15 = vsel %vm830_vm3, %v14207_v14, 0 }
 0x3be   :  { %13380 = vmatprep.subr.bf16.mxu1 %v14795_v0  ;;  %13488 = vmatprep.subr.bf16.mxu0 %v14795_v0 }
 0x3c0   :  { %13377 = vmatmul.mubr.msk.bf16.vlgmr.msra.gmra.mrb[28].mxu1 %vm332_vm2, %v15204_v34  ;;  %13485 = vmatmul.mubr.msk.bf16.vlgmr.msra.gmra.mrb[32].mxu0 %vm332_vm2, %v15204_v34  ;;  %v14164_v34 = vld [vmem:[%s17727_s9 + $0x25c] sm:$0xff]  }
 0x3c1   :  { %13381 = vmatpush3.bf16.msra.mxu1 %v14160_v17  ;;  %13489 = vmatpush3.bf16.msra.mxu0 %v14161_v18 }
 0x3c2   :  { %13382 = vmatprep.subr.bf16.mxu1 %v14795_v0  ;;  %13490 = vmatprep.subr.bf16.mxu0 %v14795_v0 }
 0x3c3   :  { %13388 = vmatprep.mubr.msk.bf16.mxu1 %vm14796_vm0, %v14795_v0  ;;  %13496 = vmatprep.mubr.msk.bf16.mxu0 %vm14796_vm0, %v14795_v0 }
 0x3c5   :  { %13383 = vmatpush3.bf16.msra.mxu1 %v14162_v19  ;;  %13491 = vmatpush3.bf16.msra.mxu0 %v14163_v20 }
 0x3c6   :  { %13384 = vmatprep.subr.bf16.mxu1 %v14795_v0  ;;  %13492 = vmatprep.subr.bf16.mxu0 %v14795_v0 }
 0x3c9   :  { %13385 = vmatpush3.bf16.msra.mxu1 %v14164_v34  ;;  %13493 = vmatpush3.bf16.msra.mxu0 %v14165_v21 }
 0x3ca   :  { %13386 = vmatprep.subr.bf16.mxu1 %v14795_v0  ;;  %13494 = vmatprep.subr.bf16.mxu0 %v14795_v0 }
 0x3cd   :  { %13387 = vmatpush3.bf16.msra.mxu1 %v2383_v23  ;;  %13495 = vmatpush3.bf16.msra.mxu0 %v3039_v27 }
 0x3ce   :  { %13392 = vmatprep.subr.bf16.mxu1 %v14795_v0  ;;  %13500 = vmatprep.subr.bf16.mxu0 %v14795_v0 }
 0x3d0   :  { %13389 = vmatmul.mubr.msk.bf16.vlgmr.msra.gmra.mrb[28].mxu1 %vm332_vm2, %v15252_v50  ;;  %13497 = vmatmul.mubr.msk.bf16.vlgmr.msra.gmra.mrb[32].mxu0 %vm332_vm2, %v15252_v50  ;;  %v14172_v50 = vld [vmem:[%s17727_s9 + $0x278] sm:$0xff]  }
 0x3d1   :  { %13393 = vmatpush3.bf16.msra.mxu1 %v14168_v28  ;;  %13501 = vmatpush3.bf16.msra.mxu0 %v14169_v29 }
 0x3d2   :  { %13394 = vmatprep.subr.bf16.mxu1 %v14795_v0  ;;  %13502 = vmatprep.subr.bf16.mxu0 %v14795_v0 }
 0x3d3   :  { %13400 = vmatprep.mubr.msk.bf16.mxu1 %vm14796_vm0, %v14795_v0  ;;  %13508 = vmatprep.mubr.msk.bf16.mxu0 %vm14796_vm0, %v14795_v0 }
 0x3d5   :  { %13395 = vmatpush3.bf16.msra.mxu1 %v14170_v30  ;;  %13503 = vmatpush3.bf16.msra.mxu0 %v14171_v31 }
 0x3d6   :  { %13396 = vmatprep.subr.bf16.mxu1 %v14795_v0  ;;  %13504 = vmatprep.subr.bf16.mxu0 %v14795_v0 }
 0x3d9   :  { %13397 = vmatpush3.bf16.msra.mxu1 %v14172_v50  ;;  %13505 = vmatpush3.bf16.msra.mxu0 %v14173_v32 }
 0x3da   :  { %13398 = vmatprep.subr.bf16.mxu1 %v14795_v0  ;;  %13506 = vmatprep.subr.bf16.mxu0 %v14795_v0 }
 0x3dd   :  { %13399 = vmatpush3.bf16.msra.mxu1 %v2456_v38  ;;  %13507 = vmatpush3.bf16.msra.mxu0 %v3112_v24 }
 0x3de   :  { %13404 = vmatprep.subr.bf16.mxu1 %v14795_v0  ;;  %13512 = vmatprep.subr.bf16.mxu0 %v14795_v0 }
 0x3e0   :  { %13401 = vmatmul.mubr.msk.bf16.vlgmr.msra.gmra.mrb[28].mxu1 %vm332_vm2, %v15298_v61  ;;  %13509 = vmatmul.mubr.msk.bf16.vlgmr.msra.gmra.mrb[32].mxu0 %vm332_vm2, %v15298_v61  ;;  %v14180_v61 = vld [vmem:[%s17727_s9 + $0x294] sm:$0xff]  }
 0x3e1   :  { %13405 = vmatpush3.bf16.msra.mxu1 %v14176_v39  ;;  %13513 = vmatpush3.bf16.msra.mxu0 %v14177_v40  ;;  %v3456_v40 = vld [vmem:[%s17728_s7] sm:$0xff]  ;;  %s17731_s7 = sld [smem:[#allocation14_spill]] }
 0x3e2   :  { %13406 = vmatprep.subr.bf16.mxu1 %v14795_v0  ;;  %13514 = vmatprep.subr.bf16.mxu0 %v14795_v0 }
 0x3e3   :  { %13412 = vmatprep.mubr.msk.bf16.mxu1 %vm14796_vm0, %v14795_v0  ;;  %13520 = vmatprep.mubr.msk.bf16.mxu0 %vm14796_vm0, %v14795_v0 }
 0x3e5   :  { %13407 = vmatpush3.bf16.msra.mxu1 %v14178_v41  ;;  %13515 = vmatpush3.bf16.msra.mxu0 %v14179_v42  ;;  %v3866_v41 = vld [vmem:[%s17729_s30] sm:$0x3]  ;;  %v11770_v42 = vld [vmem:[%s17730_s0 + $0x8] sm:$0xff]  ;;  %s17732_s30 = sld [smem:[#allocation15_spill]] }
 0x3e6   :  { %13408 = vmatprep.subr.bf16.mxu1 %v14795_v0  ;;  %13516 = vmatprep.subr.bf16.mxu0 %v14795_v0 }
 0x3e7   :  { %v5217_v45 = vld [vmem:[%s17731_s7 + $0x8] sm:$0xff] }
 0x3e9   :  { %13409 = vmatpush3.bf16.msra.mxu1 %v14180_v61  ;;  %13517 = vmatpush3.bf16.msra.mxu0 %v14181_v43  ;;  %v3875_v61 = vld [vmem:[%s17730_s0] sm:$0xff]  ;;  %v11776_v43 = vld [vmem:[%s17730_s0 + $0x10] sm:$0xff] }
 0x3ea   :  { %13410 = vmatprep.subr.bf16.mxu1 %v14795_v0  ;;  %13518 = vmatprep.subr.bf16.mxu0 %v14795_v0 }
 0x3ed   :  { %13411 = vmatpush3.bf16.msra.mxu1 %v2529_v48  ;;  %13519 = vmatpush3.bf16.msra.mxu0 %v3185_v49 }
 0x3ee   :  { %13416 = vmatprep.subr.bf16.mxu1 %v14795_v0  ;;  %13524 = vmatprep.subr.bf16.mxu0 %v14795_v0 }
 0x3f0   :  { %13413 = vmatmul.mubr.msk.bf16.vlgmr.msra.gmra.mrb[28].mxu1 %vm332_vm2, %v15344_v12  ;;  %13521 = vmatmul.mubr.msk.bf16.vlgmr.msra.gmra.mrb[32].mxu0 %vm332_vm2, %v15344_v12  ;;  %v14188_v12 = vld [vmem:[%s17727_s9 + $0x2b0] sm:$0xff]  }
 0x3f1   :  { %13417 = vmatpush3.bf16.msra.mxu1 %v14184_v37  ;;  %13525 = vmatpush3.bf16.msra.mxu0 %v14185_v51 }
 0x3f2   :  { %13418 = vmatprep.subr.bf16.mxu1 %v14795_v0  ;;  %13526 = vmatprep.subr.bf16.mxu0 %v14795_v0 }
 0x3f3   :  { %13424 = vmatprep.mubr.msk.bf16.mxu1 %vm14796_vm0, %v14795_v0  ;;  %13532 = vmatprep.mubr.msk.bf16.mxu0 %vm14796_vm0, %v14795_v0 }
 0x3f5   :  { %13419 = vmatpush3.bf16.msra.mxu1 %v14186_v52  ;;  %13527 = vmatpush3.bf16.msra.mxu0 %v14187_v53  ;;  %v3457_v53 = vld [vmem:[%s17732_s30] sm:$0xff] }
 0x3f6   :  { %13420 = vmatprep.subr.bf16.mxu1 %v14795_v0  ;;  %13528 = vmatprep.subr.bf16.mxu0 %v14795_v0 }
 0x3f9   :  { %13421 = vmatpush3.bf16.msra.mxu1 %v14188_v12  ;;  %13529 = vmatpush3.bf16.msra.mxu0 %v14189_v54  ;;  %v5216_v12 = vld [vmem:[%s17731_s7] sm:$0xff] }
 0x3fa   :  { %13422 = vmatprep.subr.bf16.mxu1 %v14795_v0  ;;  %13530 = vmatprep.subr.bf16.mxu0 %v14795_v0 }
 0x3fd   :  { %13423 = vmatpush3.bf16.msra.mxu1 %v2602_v57  ;;  %13531 = vmatpush3.bf16.msra.mxu0 %v3258_v58 }
 0x3fe   :  { %13428 = vmatprep.subr.bf16.mxu1 %v14795_v0  ;;  %13536 = vmatprep.subr.bf16.mxu0 %v14795_v0 }
 0x400   :  { %13425 = vmatmul.mubr.msk.bf16.vlgmr.msra.gmra.mrb[28].mxu1 %vm332_vm2, %v15390_v22  ;;  %13533 = vmatmul.mubr.msk.bf16.vlgmr.msra.gmra.mrb[32].mxu0 %vm332_vm2, %v15390_v22  ;;  %v14196_v22 = vld [vmem:[%s17727_s9 + $0x2cc] sm:$0xff]  }
 0x401   :  { %13429 = vmatpush3.bf16.msra.mxu1 %v14192_v59  ;;  %13537 = vmatpush3.bf16.msra.mxu0 %v14193_v60 }
 0x402   :  { %13430 = vmatprep.subr.bf16.mxu1 %v14795_v0  ;;  %13538 = vmatprep.subr.bf16.mxu0 %v14795_v0 }
 0x403   :  { %13436 = vmatprep.mubr.msk.bf16.mxu1 %vm14796_vm0, %v14795_v0  ;;  %13544 = vmatprep.mubr.msk.bf16.mxu0 %vm14796_vm0, %v14795_v0 }
 0x405   :  { %13431 = vmatpush3.bf16.msra.mxu1 %v14194_v62  ;;  %13539 = vmatpush3.bf16.msra.mxu0 %v14195_v46 }
 0x406   :  { %13432 = vmatprep.subr.bf16.mxu1 %v14795_v0  ;;  %13540 = vmatprep.subr.bf16.mxu0 %v14795_v0 }
 0x409   :  { %13433 = vmatpush3.bf16.msra.mxu1 %v14196_v22  ;;  %13541 = vmatpush3.bf16.msra.mxu0 %v14197_v63  ;;  %v11757_v63 = vld [vmem:[%s17683_s12 + $0x4] sm:$0xf] }
 0x40a   :  { %13434 = vmatprep.subr.bf16.mxu1 %v14795_v0  ;;  %13542 = vmatprep.subr.bf16.mxu0 %v14795_v0 }
 0x40d   :  { %13435 = vmatpush3.bf16.msra.mxu1 %v2675_v3  ;;  %13543 = vmatpush3.bf16.msra.mxu0 %v3331_v5  ;;  %v11755_v3 = vld [vmem:[%s17684_s10 + $0x1] sm:$0x1]  ;;  %v3588_v5 = vsel %vm3490_vm5, %v11757_v63, 0 }
 0x40e   :  { %13440 = vmatprep.subr.bf16.mxu1 %v14795_v0  ;;  %13548 = vmatprep.subr.bf16.mxu0 %v14795_v0 }
 0x410   :  { %13437 = vmatmul.mubr.msk.bf16.vlgmr.msra.gmra.mrb[28].mxu1 %vm332_vm2, %v15436_v35  ;;  %13545 = vmatmul.mubr.msk.bf16.vlgmr.msra.gmra.mrb[32].mxu0 %vm332_vm2, %v15436_v35  ;;  %v14204_v35 = vld [vmem:[%s17727_s9 + $0x2e8] sm:$0xff]  }
 0x411   :  { %13441 = vmatpush3.bf16.msra.mxu1 %v14200_v6  ;;  %13549 = vmatpush3.bf16.msra.mxu0 %v14201_v8  ;;  %v3534_v6 = vld [vmem:[%s17683_s12] sm:$0xf] }
 0x412   :  { %13442 = vmatprep.subr.bf16.mxu1 %v14795_v0  ;;  %13550 = vmatprep.subr.bf16.mxu0 %v14795_v0  ;;  %v3634_v8 = vsel %vm3490_vm5, %v3534_v6, 0 }
 0x413   :  { %13448 = vmatprep.mubr.msk.bf16.mxu1 %vm14796_vm0, %v14795_v0  ;;  %13556 = vmatprep.mubr.msk.bf16.mxu0 %vm14796_vm0, %v14795_v0 }
 0x415   :  { %13443 = vmatpush3.bf16.msra.mxu1 %v14202_v9  ;;  %13551 = vmatpush3.bf16.msra.mxu0 %v14203_v10 }
 0x416   :  { %13444 = vmatprep.subr.bf16.mxu1 %v14795_v0  ;;  %13552 = vmatprep.subr.bf16.mxu0 %v14795_v0 }
 0x419   :  { %13445 = vmatpush3.bf16.msra.mxu1 %v14204_v35  ;;  %13553 = vmatpush3.bf16.msra.mxu0 %v14205_v7 }
 0x41a   :  { %13446 = vmatprep.subr.bf16.mxu1 %v14795_v0  ;;  %13554 = vmatprep.subr.bf16.mxu0 %v14795_v0 }
 0x41d   :  { %13447 = vmatpush3.bf16.msra.mxu1 %v2748_v11  ;;  %13555 = vmatpush3.bf16.msra.mxu0 %v3404_v15 }
 0x41e   :  { %13560 = vmatprep.subr.bf16.mxu1 %v14795_v0  ;;  %13566 = vmatprep.subr.bf16.mxu0 %v14795_v0 }
 0x420   :  { %13449 = vmatmul.mubr.msk.bf16.vlgmr.msra.gmra.mrb[28].mxu1 %vm332_vm2, %v15482_v47  ;;  %13557 = vmatmul.mubr.msk.bf16.vlgmr.msra.gmra.mrb[32].mxu0 %vm332_vm2, %v15482_v47 }
 0x421   :  { %13562 = vmatprep.mubr.msk.bf16.mxu1 %vm14796_vm0, %v14795_v0  ;;  %13568 = vmatprep.mubr.msk.bf16.mxu0 %vm14796_vm0, %v14795_v0 }
 0x463   :  { %v1473_v16 = vpop.f32.mrb[24].mxu1  ;;  %v2128_v17 = vpop.f32.mrb[28].mxu0 }
 0x464   :  { %v2135_v18 = vmax.f32 %v1473_v16, %v2128_v17  ;;  %v13234_v19 = vpop.f32.mrb[25].mxu1  ;;  %v13342_v20 = vpop.f32.mrb[29].mxu0 }
 0x465   :  { %v1476_v34 = vpop.f32.mrb[26].mxu1  ;;  %v2131_v21 = vpop.f32.mrb[30].mxu0  ;;  %v11764_v19 = vld [vmem:[%s17684_s10 + $0x3] sm:$0x1]  ;;  %v11762_v20 = vld [vmem:[%s17683_s12 + $0x8] sm:$0xf] }
 0x466   :  { %v13235_v25 = vpop.f32.mrb[27].mxu1  ;;  %v13343_v26 = vpop.f32.mrb[31].mxu0  ;;  %v3728_v34 = vsel %vm3490_vm5, %v11762_v20, 0  ;;  %v11778_v20 = vld [vmem:[%s17686_s15 + $0x2] sm:$0x1] }
 0x4f3   :  { %v2784_v23 = vpop.f32.mrb[28].mxu1  ;;  %v3440_v27 = vpop.f32.mrb[32].mxu0 }
 0x4f4   :  { %v2791_v28 = vmax.f32 %v2135_v18, %v2784_v23  ;;  %v13450_v29 = vpop.f32.mrb[29].mxu1  ;;  %v13558_v47 = vpop.f32.mrb[33].mxu0  ;;  %v11760_v18 = vld [vmem:[%s17684_s10 + $0x2] sm:$0x1] }
 0x4f5   :  { %v2787_v30 = vpop.f32.mrb[30].mxu1  ;;  %v3443_v31 = vpop.f32.mrb[34].mxu0 }
 0x4f6   :  { %v3447_v50 = vmax.f32 %v2791_v28, %v3440_v27  ;;  %v13451_v32 = vpop.f32.mrb[31].mxu1  ;;  %v13559_v33 = vpop.f32.mrb[35].mxu0  ;;  %v11766_v31 = vld [vmem:[%s17683_s12 + $0xc] sm:$0xf] }
 0x4f8   :  { %v3454_v38 = vadd.f32 %v3452_v36, %v3447_v50  ;;  %v3823_v36 = vsel %vm3490_vm5, %v11766_v31, 0 }
 0x4fa   :  { %v3455_v24 = vmax.f32 %v3454_v38, 0.0 }
 0x4fc   :  { %v3459_v39 = vsel %vm3458_vm4, %v3455_v24, 0.0 }
 0x4fd   :  { %3460 = vadd.xlane.f32.xlu1 %v3459_v39 }
 0x50e   :  { %3475 = vperm.xlu1 %14058, %v3456_v40  }
 0x512   :  { %3869 = vperm.xlu1 %14058, %v3866_v41  }
 0x516   :  { %3936 = vperm.xlu1 %14058, %v11770_v42  }
 0x51a   :  { %3878 = vperm.xlu1 %14058, %v3875_v61  }
 0x51e   :  { %4083 = vperm.xlu1 %14058, %v11776_v43  }
 0x522   :  { %4185 = vperm.xlu1 %14058, %v11781_v44  }
 0x526   :  { %5225 = vperm.xlu1 %14058, %v5217_v45  }
 0x58a   :  { %v3461_v48 = vpop.xlane.xlu1 %3460 }
 0x58b   :  { %v3463_v49 = vmul.f32 0.125, %v3461_v48 }
 0x58d   :  { %v3464_v37 = vsub.f32 %v3455_v24, %v3463_v49 }
 0x58e   :  { %v3476_v59 = vpop.permute.xlu1 %3475 }
 0x58f   :  { %v3465_v51 = vmul.f32 %v3464_v37, %v3464_v37 }
 0x591   :  { %v3466_v52 = vsel %vm3458_vm4, %v3465_v51, 0.0 }
 0x592   :  { %3467 = vadd.xlane.f32.xlu0 %v3466_v52 }
 0x5a8   :  { %3481 = vperm.xlu0 %14057, %v3457_v53   ;;  %v3870_v53 = vpop.permute.xlu1 %3869 }
 0x5ac   :  { %5220 = vperm.xlu0 %14057, %v5216_v12   ;;  %v3937_v63 = vpop.permute.xlu1 %3936 }
 0x61f   :  { %v3468_v54 = vpop.xlane.xlu0 %3467 }
 0x620   :  { %v3469_v55 = vmul.f32 0.125, %v3468_v54 }
 0x622   :  { %v3470_v56 = vadd.f32 1e-05, %v3469_v55 }
 0x624   :  { %14771 = vrsqrt.f32 %v3470_v56 }
 0x627   :  { %v3482_v62 = vpop.permute.xlu0 %3481 }
 0x62e   :  { %v14772_v57 = vpop.eup %14771 }
 0x62f   :  { %v3472_v58 = vmul.f32 %v14772_v57, %v3464_v37 }
 0x631   :  { %v3478_v60 = vmul.f32 %v3476_v59, %v3472_v58  ;;  %v3873_v58 = vld [vmem:[%s17685_s13] sm:$0xf]  ;;  %v11769_v59 = vld [vmem:[%s17685_s13 + $0x4] sm:$0xf] }
 0x633   :  { %v3484_v46 = vadd.f32 %v3482_v62, %v3478_v60  ;;  %v11775_v60 = vld [vmem:[%s17685_s13 + $0x8] sm:$0xf]  ;;  %v11780_v62 = vld [vmem:[%s17685_s13 + $0xc] sm:$0xf] }
 0x635   :  { %v3486_v22 = vpack.c.bf16 %v3484_v46, %v3484_v46  ;;  %v11772_v46 = vld [vmem:[%s17686_s15 + $0x1] sm:$0x1] }
 0x637   :  { %v3492_v1 = vsel %vm3490_vm5, %v3486_v22, 0  ;;  %v3989_v22 = vsel %vm830_vm3, %v11772_v46, 0  ;;  %v14213_v46 = vld [vmem:[%s17687_s16 + $0x28] sm:$0xff]  }
 0x638   :  { %13561 = vmatpush3.bf16.msra.mxu1 %v3492_v1  ;;  %13567 = vmatpush3.bf16.msra.mxu0 %v3492_v1 }
 0x639   :  { %13572 = vmatprep.subr.bf16.mxu1 %v14795_v0  ;;  %13578 = vmatprep.subr.bf16.mxu0 %v14795_v0 }
 0x63b   :  { %13563 = vmatmul.mubr.msk.bf16.vlgmr.msra.gmra.mrb[32].mxu1 %vm3458_vm4, %v3485_v2  ;;  %13569 = vmatmul.mubr.msk.bf16.vlgmr.msra.gmra.mrb[36].mxu0 %vm3458_vm4, %v11755_v3  ;;  %v3928_v3 = vld [vmem:[%s17686_s15] sm:$0x1] }
 0x63c   :  { %13573 = vmatpush3.bf16.msra.mxu1 %v3588_v5  ;;  %13574 = vmatprep.mubr.msk.bf16.mxu1 %vm14796_vm0, %v14795_v0 }
 0x63d   :  { %13580 = vmatprep.mubr.msk.bf16.mxu0 %vm14796_vm0, %v14795_v0  ;;  %13584 = vmatprep.subr.bf16.mxu1 %v14795_v0 }
 0x63e   :  { %13579 = vmatpush3.bf16.msra.mxu0 %v3634_v8 }
 0x63f   :  { %13590 = vmatprep.subr.bf16.mxu0 %v14795_v0 }
 0x70e   :  { %v3528_v9 = vpop.f32.mrb[32].mxu1  ;;  %v3575_v10 = vpop.f32.mrb[36].mxu0 }
 0x70f   :  { %v3535_v35 = vpack.c.bf16 %v3528_v9, %v3528_v9  ;;  %v3583_v7 = vpack.c.bf16 %v3575_v10, %v3575_v10  ;;  %v13570_v13 = vpop.f32.mrb[37].mxu0  ;;  %v13564_v14 = vpop.f32.mrb[33].mxu1 }
 0x710   :  { %v3578_v11 = vpop.f32.mrb[38].mxu0  ;;  %v3531_v15 = vpop.f32.mrb[34].mxu1  ;;  %v4035_v13 = vsel %vm830_vm3, %v3928_v3, 0 }
 0x711   :  { %v13571_v16 = vpop.f32.mrb[39].mxu0  ;;  %13575 = vmatmul.mubr.msk.bf16.vlgmr.msra.gmra.mrb[36].mxu1 %vm3458_vm4, %v3583_v7  ;;  %13581 = vmatmul.mubr.msk.bf16.vlgmr.msra.gmra.mrb[40].mxu0 %vm3458_vm4, %v3535_v35  ;;  %v13565_v17 = vpop.f32.mrb[35].mxu1 }
 0x712   :  { %13585 = vmatpush3.bf16.msra.mxu1 %v3492_v1  ;;  %13586 = vmatprep.mubr.msk.bf16.mxu1 %vm14796_vm0, %v14795_v0  ;;  %v3879_v16 = vpop.permute.xlu1 %3878 }
 0x713   :  { %13596 = vmatprep.subr.bf16.mxu1 %v14795_v0  ;;  %13592 = vmatprep.mubr.msk.bf16.mxu0 %vm14796_vm0, %v14795_v0 }
 0x714   :  { %13591 = vmatpush3.bf16.msra.mxu0 %v3728_v34 }
 0x715   :  { %13602 = vmatprep.subr.bf16.mxu0 %v14795_v0 }
 0x719   :  { %13587 = vmatmul.mubr.msk.bf16.vlgmr.msra.gmra.mrb[40].mxu1 %vm3458_vm4, %v11760_v18 }
 0x71a   :  { %13597 = vmatpush3.bf16.msra.mxu1 %v3492_v1  ;;  %13598 = vmatprep.mubr.msk.bf16.mxu1 %vm14796_vm0, %v14795_v0 }
 0x71b   :  { %13608 = vmatprep.subr.bf16.mxu1 %v14795_v0 }
 0x721   :  { %13599 = vmatmul.mubr.msk.bf16.vlgmr.msra.gmra.mrb[44].mxu1 %vm3458_vm4, %v11764_v19 }
 0x722   :  { %13610 = vmatprep.mubr.msk.bf16.mxu1 %vm14796_vm0, %v14795_v0 }
 0x7e4   :  { %v3624_v21 = vpop.f32.mrb[36].mxu1  ;;  %v3670_v25 = vpop.f32.mrb[40].mxu0 }
 0x7e5   :  { %v3671_v26 = vadd.f32 %v3670_v25, %v3624_v21  ;;  %v13576_v23 = vpop.f32.mrb[37].mxu1  ;;  %v13582_v27 = vpop.f32.mrb[41].mxu0  ;;  %v4136_v21 = vsel %vm830_vm3, %v11778_v20, 0 }
 0x7e6   :  { %v3627_v28 = vpop.f32.mrb[38].mxu1  ;;  %v3673_v29 = vpop.f32.mrb[42].mxu0 }
 0x7e7   :  { %v13577_v47 = vpop.f32.mrb[39].mxu1  ;;  %v13583_v30 = vpop.f32.mrb[43].mxu0 }
 0x7e8   :  { %v4084_v28 = vpop.permute.xlu1 %4083  ;;  %v11783_v47 = vld [vmem:[%s17686_s15 + $0x3] sm:$0x1] }
 0x7e9   :  { %v4238_v31 = vsel %vm830_vm3, %v11783_v47, 0 }
 0x7ec   :  { %v3715_v50 = vpop.f32.mrb[40].mxu1 }
 0x7ed   :  { %v3723_v32 = vpack.c.bf16 %v3715_v50, %v3715_v50  ;;  %v13588_v33 = vpop.f32.mrb[41].mxu1  ;;  %v4186_v50 = vpop.permute.xlu1 %4185 }
 0x7ee   :  { %v3718_v38 = vpop.f32.mrb[42].mxu1 }
 0x7ef   :  { %v13589_v24 = vpop.f32.mrb[43].mxu1  ;;  %13593 = vmatmul.mubr.msk.bf16.vlgmr.msra.gmra.mrb[44].mxu0 %vm3458_vm4, %v3723_v32 }
 0x7f0   :  { %13603 = vmatpush3.bf16.msra.mxu0 %v3823_v36  ;;  %13604 = vmatprep.mubr.msk.bf16.mxu0 %vm14796_vm0, %v14795_v0 }
 0x7f1   :  { %13614 = vmatprep.subr.bf16.mxu0 %v14795_v0 }
 0x7f4   :  { %v3810_v39 = vpop.f32.mrb[44].mxu1 }
 0x7f5   :  { %v3818_v40 = vpack.c.bf16 %v3810_v39, %v3810_v39  ;;  %v13600_v41 = vpop.f32.mrb[45].mxu1 }
 0x7f6   :  { %v3813_v42 = vpop.f32.mrb[46].mxu1 }
 0x7f7   :  { %v13601_v61 = vpop.f32.mrb[47].mxu1  ;;  %13605 = vmatmul.mubr.msk.bf16.vlgmr.msra.gmra.mrb[48].mxu0 %vm3458_vm4, %v3818_v40 }
 0x7f8   :  { %13616 = vmatprep.mubr.msk.bf16.mxu0 %vm14796_vm0, %v14795_v0  ;;  %v14208_v61 = vld [vmem:[%s17687_s16] sm:$0xff]  }
 0x8c2   :  { %v3764_v43 = vpop.f32.mrb[44].mxu0 }
 0x8c3   :  { %v3770_v44 = vadd.f32 %v3764_v43, %v3671_v26  ;;  %v13594_v45 = vpop.f32.mrb[45].mxu0  ;;  %v14209_v43 = vld [vmem:[%s17687_s16 + $0x8] sm:$0xff]  }
 0x8c4   :  { %v3767_v48 = vpop.f32.mrb[46].mxu0 }
 0x8c5   :  { %v13595_v49 = vpop.f32.mrb[47].mxu0  ;;  %v11791_v48 = vld [vmem:[%s17688_s20 + $0x4] sm:$0xf] }
 0x8c6   :  { %v4398_v49 = vsel %vm3490_vm5, %v11791_v48, 0 }
 0x8ca   :  { %v3859_v37 = vpop.f32.mrb[48].mxu0 }
 0x8cb   :  { %v3865_v51 = vadd.f32 %v3859_v37, %v3770_v44  ;;  %v13606_v52 = vpop.f32.mrb[49].mxu0  ;;  %v4337_v44 = vld [vmem:[%s17688_s20] sm:$0xf] }
 0x8cc   :  { %v3862_v12 = vpop.f32.mrb[50].mxu0  ;;  %v4445_v45 = vsel %vm3490_vm5, %v4337_v44, 0  ;;  %v11828_v44 = vld [vmem:[%s17688_s20 + $0x1c] sm:$0xf] }
 0x8cd   :  { %v3872_v54 = vadd.f32 %v3870_v53, %v3865_v51  ;;  %v13607_v55 = vpop.f32.mrb[51].mxu0 }
 0x8cf   :  { %v3874_v56 = vpack.c.bf16 %v3872_v54, %v3872_v54 }
 0x8d1   :  { %v3886_v57 = vsel %vm830_vm3, %v3874_v56, 0 }
 0x8d2   :  { %13609 = vmatpush3.bf16.msra.mxu1 %v3886_v57  ;;  %13615 = vmatpush3.bf16.msra.mxu0 %v3886_v57 }
 0x8d3   :  { %13632 = vmatprep.subr.bf16.mxu0 %v14795_v0  ;;  %13620 = vmatprep.subr.bf16.mxu1 %v14795_v0 }
 0x8d5   :  { %13611 = vmatmul.mubr.msk.bf16.vlgmr.msra.gmra.mrb[48].mxu1 %vm3881_vm6, %v3873_v58  ;;  %13617 = vmatmul.mubr.msk.bf16.vlgmr.msra.gmra.mrb[52].mxu0 %vm3881_vm6, %v11769_v59  ;;  %v14210_v59 = vld [vmem:[%s17687_s16 + $0x10] sm:$0xff]  }
 0x8d6   :  { %13633 = vmatpush3.bf16.msra.mxu0 %v3886_v57  ;;  %13634 = vmatprep.mubr.msk.bf16.mxu0 %vm14796_vm0, %v14795_v0 }
 0x8d7   :  { %13644 = vmatprep.subr.bf16.mxu0 %v14795_v0  ;;  %13622 = vmatprep.mubr.msk.bf16.mxu1 %vm14796_vm0, %v14795_v0 }
 0x8d8   :  { %13621 = vmatpush3.bf16.msra.mxu1 %v3989_v22  ;;  %v14214_v22 = vld [vmem:[%s17687_s16 + $0x30] sm:$0xff]  }
 0x8d9   :  { %13626 = vmatprep.subr.bf16.mxu1 %v14795_v0 }
 0x8dd   :  { %13635 = vmatmul.mubr.msk.bf16.vlgmr.msra.gmra.mrb[56].mxu0 %vm3881_vm6, %v11775_v60  ;;  %v14211_v60 = vld [vmem:[%s17687_s16 + $0x18] sm:$0xff]  }
 0x8de   :  { %13645 = vmatpush3.bf16.msra.mxu0 %v3886_v57  ;;  %13646 = vmatprep.mubr.msk.bf16.mxu0 %vm14796_vm0, %v14795_v0 }
 0x8df   :  { %13656 = vmatprep.subr.bf16.mxu0 %v14795_v0 }
 0x8e5   :  { %13647 = vmatmul.mubr.msk.bf16.vlgmr.msra.gmra.mrb[60].mxu0 %vm3881_vm6, %v11780_v62  ;;  %v14212_v62 = vld [vmem:[%s17687_s16 + $0x20] sm:$0xff]  }
 0x8e6   :  { %13658 = vmatprep.mubr.msk.bf16.mxu0 %vm14796_vm0, %v14795_v0 }
 0x9a8   :  { %v3922_v1 = vpop.f32.mrb[48].mxu1  ;;  %v3976_v2 = vpop.f32.mrb[52].mxu0 }
 0x9a9   :  { %v3977_v5 = vadd.f32 %v3976_v2, %v3937_v63  ;;  %v13618_v6 = vpop.f32.mrb[53].mxu0  ;;  %v13612_v8 = vpop.f32.mrb[49].mxu1  ;;  %v3923_v18 = vadd.f32 %v3922_v1, %v3879_v16  ;;  %v14215_v63 = vld [vmem:[%s17687_s16 + $0x38] sm:$0xff]   ;;  %v14216_v1 = vld [vmem:[%s17687_s16 + $0x40] sm:$0xff]   ;;  %v11798_v2 = vld [vmem:[%s17688_s20 + $0x8] sm:$0xf] }
 0x9aa   :  { %v3979_v9 = vpop.f32.mrb[54].mxu0  ;;  %v3925_v10 = vpop.f32.mrb[50].mxu1  ;;  %v4547_v3 = vsel %vm3490_vm5, %v11798_v2, 0  ;;  %v11804_v16 = vld [vmem:[%s17688_s20 + $0xc] sm:$0xf] }
 0x9ab   :  { %v3984_v35 = vpack.c.bf16 %v3977_v5, %v3977_v5  ;;  %v13619_v7 = vpop.f32.mrb[55].mxu0  ;;  %v13613_v14 = vpop.f32.mrb[51].mxu1  ;;  %v3929_v34 = vpack.c.bf16 %v3923_v18, %v3923_v18 }
 0x9ad   :  { %13623 = vmatmul.mubr.msk.bf16.vlgmr.msra.gmra.mrb[52].mxu1 %vm3881_vm6, %v3984_v35 }
 0x9ae   :  { %13627 = vmatpush3.bf16.msra.mxu1 %v4035_v13  ;;  %13628 = vmatprep.mubr.msk.bf16.mxu1 %vm14796_vm0, %v14795_v0 }
 0x9af   :  { %13638 = vmatprep.subr.bf16.mxu1 %v14795_v0 }
 0x9b0   :  { %v4123_v11 = vpop.f32.mrb[56].mxu0 }
 0x9b1   :  { %v13636_v15 = vpop.f32.mrb[57].mxu0  ;;  %v4124_v29 = vadd.f32 %v4123_v11, %v4084_v28 }
 0x9b2   :  { %v4126_v17 = vpop.f32.mrb[58].mxu0 }
 0x9b3   :  { %v13637_v19 = vpop.f32.mrb[59].mxu0  ;;  %v4131_v30 = vpack.c.bf16 %v4124_v29, %v4124_v29 }
 0x9b8   :  { %v4225_v25 = vpop.f32.mrb[60].mxu0 }
 0x9b9   :  { %13629 = vmatmul.mubr.msk.bf16.vlgmr.msra.gmra.mrb[52].mxu1 %vm3881_vm6, %v3929_v34  ;;  %v13648_v26 = vpop.f32.mrb[61].mxu0  ;;  %v4226_v32 = vadd.f32 %v4225_v25, %v4186_v50  ;;  %v4651_v34 = vsel %vm3490_vm5, %v11804_v16, 0  ;;  %v11810_v25 = vld [vmem:[%s17688_s20 + $0x10] sm:$0xf] }
 0x9ba   :  { %13639 = vmatpush3.bf16.msra.mxu1 %v4136_v21  ;;  %13640 = vmatprep.mubr.msk.bf16.mxu1 %vm14796_vm0, %v14795_v0  ;;  %v4228_v23 = vpop.f32.mrb[62].mxu0  ;;  %v4755_v29 = vsel %vm3490_vm5, %v11810_v25, 0 }
 0x9bb   :  { %13650 = vmatprep.subr.bf16.mxu1 %v14795_v0  ;;  %v13649_v27 = vpop.f32.mrb[63].mxu0  ;;  %v4233_v33 = vpack.c.bf16 %v4226_v32, %v4226_v32 }
 0x9c5   :  { %13641 = vmatmul.mubr.msk.bf16.vlgmr.msra.gmra.mrb[52].mxu1 %vm3881_vm6, %v4131_v30  ;;  %v11816_v30 = vld [vmem:[%s17688_s20 + $0x14] sm:$0xf] }
 0x9c6   :  { %13651 = vmatpush3.bf16.msra.mxu1 %v4238_v31  ;;  %13652 = vmatprep.mubr.msk.bf16.mxu1 %vm14796_vm0, %v14795_v0 }
 0x9c7   :  { %13668 = vmatprep.subr.bf16.mxu1 %v14795_v0 }
 0x9d1   :  { %13653 = vmatmul.mubr.msk.bf16.vlgmr.msra.gmra.mrb[52].mxu1 %vm3881_vm6, %v4233_v33 }
 0x9d2   :  { %13670 = vmatprep.mubr.msk.bf16.mxu1 %vm14796_vm0, %v14795_v0  ;;  %13669 = vmatpush3.bf16.msra.mxu1 %v4398_v49 }
 0x9d3   :  { %13680 = vmatprep.subr.bf16.mxu1 %v14795_v0 }
 0xaa4   :  { %v4274_v36 = vpop.f32.mrb[52].mxu1 }
 0xaa5   :  { %v4281_v38 = vmax.f32 %v4274_v36, 0.0  ;;  %v13654_v24 = vpop.f32.mrb[53].mxu1  ;;  %v4859_v36 = vsel %vm3490_vm5, %v11816_v30, 0 }
 0xaa6   :  { %v4277_v39 = vpop.f32.mrb[54].mxu1  ;;  %v11822_v24 = vld [vmem:[%s17688_s20 + $0x18] sm:$0xf] }
 0xaa7   :  { %v4284_v40 = vpack.c.bf16 %v4281_v38, %v4281_v38  ;;  %v13655_v41 = vpop.f32.mrb[55].mxu1 }
 0xaa9   :  { %v16024_v42 = vsel %vm3490_vm5, %v4284_v40, 0 }
 0xaaa   :  { %13657 = vmatpush3.bf16.msra.mxu0 %v16024_v42 }
 0xaab   :  { %13662 = vmatprep.subr.bf16.mxu0 %v14795_v0 }
 0xaad   :  { %13659 = vmatmul.mubr.msk.bf16.vlgmr.msra.gmra.mrb[64].mxu0 %vm3458_vm4, %v14208_v61  ;;  %v4963_v61 = vsel %vm3490_vm5, %v11822_v24, 0 }
 0xaae   :  { %13663 = vmatpush3.bf16.msra.mxu0 %v16024_v42  ;;  %13664 = vmatprep.mubr.msk.bf16.mxu0 %vm14796_vm0, %v14795_v0 }
 0xaaf   :  { %13674 = vmatprep.subr.bf16.mxu0 %v14795_v0 }
 0xab5   :  { %13665 = vmatmul.mubr.msk.bf16.vlgmr.msra.gmra.mrb[68].mxu0 %vm3458_vm4, %v14209_v43 }
 0xab6   :  { %13676 = vmatprep.mubr.msk.bf16.mxu0 %vm14796_vm0, %v14795_v0  ;;  %13675 = vmatpush3.bf16.msra.mxu0 %v4445_v45 }
 0xab7   :  { %13686 = vmatprep.subr.bf16.mxu0 %v14795_v0 }
 0xb80   :  { %v4330_v37 = vpop.f32.mrb[64].mxu0 }
 0xb81   :  { %v13660_v51 = vpop.f32.mrb[65].mxu0 }
 0xb82   :  { %v4333_v52 = vpop.f32.mrb[66].mxu0  ;;  %v5067_v51 = vsel %vm3490_vm5, %v11828_v44, 0  ;;  %v5226_v44 = vpop.permute.xlu1 %5225 }
 0xb83   :  { %v4338_v53 = vpack.c.bf16 %v4333_v52, %v4330_v37  ;;  %v13661_v12 = vpop.f32.mrb[67].mxu0 }
 0xb85   :  { %13677 = vmatmul.mubr.msk.bf16.vlgmr.msra.gmra.mrb[72].mxu0 %vm3458_vm4, %v4338_v53  ;;  %v11834_v53 = vld [vmem:[%s17688_s20 + $0x20] sm:$0xf] }
 0xb86   :  { %13688 = vmatprep.mubr.msk.bf16.mxu0 %vm14796_vm0, %v14795_v0  ;;  %13687 = vmatpush3.bf16.msra.mxu0 %v4547_v3 }
 0xb87   :  { %13698 = vmatprep.subr.bf16.mxu0 %v14795_v0 }
 0xb88   :  { %v4384_v54 = vpop.f32.mrb[68].mxu0 }
 0xb89   :  { %v13666_v55 = vpop.f32.mrb[69].mxu0 }
 0xb8a   :  { %v4387_v56 = vpop.f32.mrb[70].mxu0 }
 0xb8b   :  { %v4393_v57 = vpack.c.bf16 %v4387_v56, %v4384_v54  ;;  %v13667_v58 = vpop.f32.mrb[71].mxu0 }
 0xb8d   :  { %13671 = vmatmul.mubr.msk.bf16.vlgmr.msra.gmra.mrb[56].mxu1 %vm3458_vm4, %v4393_v57  ;;  %v5171_v57 = vsel %vm3490_vm5, %v11834_v53, 0  ;;  %v5234_v53 = vld [vmem:[%s17690_s19] sm:$0xff] }
 0xb8e   :  { %13681 = vmatpush3.bf16.msra.mxu1 %v16024_v42  ;;  %13682 = vmatprep.mubr.msk.bf16.mxu1 %vm14796_vm0, %v14795_v0 }
 0xb8f   :  { %13692 = vmatprep.subr.bf16.mxu1 %v14795_v0 }
 0xb95   :  { %13683 = vmatmul.mubr.msk.bf16.vlgmr.msra.gmra.mrb[60].mxu1 %vm3458_vm4, %v14210_v59 }
 0xb96   :  { %13693 = vmatpush3.bf16.msra.mxu1 %v16024_v42  ;;  %13694 = vmatprep.mubr.msk.bf16.mxu1 %vm14796_vm0, %v14795_v0 }
 0xb97   :  { %13704 = vmatprep.subr.bf16.mxu1 %v14795_v0 }
 0xb9d   :  { %13695 = vmatmul.mubr.msk.bf16.vlgmr.msra.gmra.mrb[64].mxu1 %vm3458_vm4, %v14211_v60 }
 0xb9e   :  { %13705 = vmatpush3.bf16.msra.mxu1 %v16024_v42  ;;  %13706 = vmatprep.mubr.msk.bf16.mxu1 %vm14796_vm0, %v14795_v0 }
 0xb9f   :  { %13716 = vmatprep.subr.bf16.mxu1 %v14795_v0 }
 0xba5   :  { %13707 = vmatmul.mubr.msk.bf16.vlgmr.msra.gmra.mrb[68].mxu1 %vm3458_vm4, %v14212_v62 }
 0xba6   :  { %13717 = vmatpush3.bf16.msra.mxu1 %v16024_v42  ;;  %13718 = vmatprep.mubr.msk.bf16.mxu1 %vm14796_vm0, %v14795_v0 }
 0xba7   :  { %13728 = vmatprep.subr.bf16.mxu1 %v14795_v0 }
 0xbad   :  { %13719 = vmatmul.mubr.msk.bf16.vlgmr.msra.gmra.mrb[72].mxu1 %vm3458_vm4, %v14213_v46 }
 0xbae   :  { %13729 = vmatpush3.bf16.msra.mxu1 %v16024_v42  ;;  %13730 = vmatprep.mubr.msk.bf16.mxu1 %vm14796_vm0, %v14795_v0 }
 0xbaf   :  { %13740 = vmatprep.subr.bf16.mxu1 %v14795_v0 }
 0xbb5   :  { %13731 = vmatmul.mubr.msk.bf16.vlgmr.msra.gmra.mrb[76].mxu1 %vm3458_vm4, %v14214_v22 }
 0xbb6   :  { %13741 = vmatpush3.bf16.msra.mxu1 %v16024_v42  ;;  %13742 = vmatprep.mubr.msk.bf16.mxu1 %vm14796_vm0, %v14795_v0 }
 0xbb7   :  { %13752 = vmatprep.subr.bf16.mxu1 %v14795_v0 }
 0xbbd   :  { %13743 = vmatmul.mubr.msk.bf16.vlgmr.msra.gmra.mrb[80].mxu1 %vm3458_vm4, %v14215_v63 }
 0xbbe   :  { %13753 = vmatpush3.bf16.msra.mxu1 %v16024_v42  ;;  %13754 = vmatprep.mubr.msk.bf16.mxu1 %vm14796_vm0, %v14795_v0 }
 0xbbf   :  { %13764 = vmatprep.subr.bf16.mxu1 %v14795_v0 }
 0xbc5   :  { %13755 = vmatmul.mubr.msk.bf16.vlgmr.msra.gmra.mrb[84].mxu1 %vm3458_vm4, %v14216_v1 }
 0xbc6   :  { %13766 = vmatprep.mubr.msk.bf16.mxu1 %vm14796_vm0, %v14795_v0 }
 0xc58   :  { %v4481_v5 = vpop.f32.mrb[72].mxu0 }
 0xc59   :  { %v13678_v6 = vpop.f32.mrb[73].mxu0 }
 0xc5a   :  { %v4484_v8 = vpop.f32.mrb[74].mxu0 }
 0xc5b   :  { %v13679_v9 = vpop.f32.mrb[75].mxu0 }
 0xc60   :  { %v4434_v10 = vpop.f32.mrb[56].mxu1 }
 0xc61   :  { %v16119_v35 = vadd.f32 %v4481_v5, %v4434_v10  ;;  %v13672_v7 = vpop.f32.mrb[57].mxu1 }
 0xc62   :  { %v4437_v13 = vpop.f32.mrb[58].mxu1 }
 0xc63   :  { %v16121_v14 = vadd.f32 %v4484_v8, %v4437_v13  ;;  %v13673_v11 = vpop.f32.mrb[59].mxu1 }
 0xc68   :  { %v4533_v15 = vpop.f32.mrb[60].mxu1 }
 0xc69   :  { %v13684_v17 = vpop.f32.mrb[61].mxu1 }
 0xc6a   :  { %v4536_v18 = vpop.f32.mrb[62].mxu1 }
 0xc6b   :  { %v4542_v19 = vpack.c.bf16 %v4536_v18, %v4533_v15  ;;  %v13685_v20 = vpop.f32.mrb[63].mxu1 }
 0xc6d   :  { %13689 = vmatmul.mubr.msk.bf16.vlgmr.msra.gmra.mrb[76].mxu0 %vm3458_vm4, %v4542_v19 }
 0xc6e   :  { %13699 = vmatpush3.bf16.msra.mxu0 %v4651_v34  ;;  %13700 = vmatprep.mubr.msk.bf16.mxu0 %vm14796_vm0, %v14795_v0 }
 0xc6f   :  { %13710 = vmatprep.subr.bf16.mxu0 %v14795_v0 }
 0xc70   :  { %v4637_v21 = vpop.f32.mrb[64].mxu1 }
 0xc71   :  { %v13696_v26 = vpop.f32.mrb[65].mxu1 }
 0xc72   :  { %v4640_v23 = vpop.f32.mrb[66].mxu1 }
 0xc73   :  { %v4646_v27 = vpack.c.bf16 %v4640_v23, %v4637_v21  ;;  %v13697_v28 = vpop.f32.mrb[67].mxu1 }
 0xc75   :  { %13701 = vmatmul.mubr.msk.bf16.vlgmr.msra.gmra.mrb[80].mxu0 %vm3458_vm4, %v4646_v27 }
 0xc76   :  { %13711 = vmatpush3.bf16.msra.mxu0 %v4755_v29  ;;  %13712 = vmatprep.mubr.msk.bf16.mxu0 %vm14796_vm0, %v14795_v0 }
 0xc77   :  { %13722 = vmatprep.subr.bf16.mxu0 %v14795_v0 }
 0xc78   :  { %v4741_v47 = vpop.f32.mrb[68].mxu1 }
 0xc79   :  { %v13708_v31 = vpop.f32.mrb[69].mxu1 }
 0xc7a   :  { %v4744_v50 = vpop.f32.mrb[70].mxu1 }
 0xc7b   :  { %v4750_v32 = vpack.c.bf16 %v4744_v50, %v4741_v47  ;;  %v13709_v33 = vpop.f32.mrb[71].mxu1 }
 0xc7d   :  { %13713 = vmatmul.mubr.msk.bf16.vlgmr.msra.gmra.mrb[84].mxu0 %vm3458_vm4, %v4750_v32 }
 0xc7e   :  { %13723 = vmatpush3.bf16.msra.mxu0 %v4859_v36  ;;  %13724 = vmatprep.mubr.msk.bf16.mxu0 %vm14796_vm0, %v14795_v0 }
 0xc7f   :  { %13734 = vmatprep.subr.bf16.mxu0 %v14795_v0 }
 0xc80   :  { %v4845_v38 = vpop.f32.mrb[72].mxu1 }
 0xc81   :  { %v13720_v39 = vpop.f32.mrb[73].mxu1 }
 0xc82   :  { %v4848_v40 = vpop.f32.mrb[74].mxu1 }
 0xc83   :  { %v4854_v41 = vpack.c.bf16 %v4848_v40, %v4845_v38  ;;  %v13721_v42 = vpop.f32.mrb[75].mxu1  ;;  %v5221_v40 = vpop.permute.xlu0 %5220 }
 0xc85   :  { %13725 = vmatmul.mubr.msk.bf16.vlgmr.msra.gmra.mrb[88].mxu0 %vm3458_vm4, %v4854_v41 }
 0xc86   :  { %13735 = vmatpush3.bf16.msra.mxu0 %v4963_v61  ;;  %13736 = vmatprep.mubr.msk.bf16.mxu0 %vm14796_vm0, %v14795_v0 }
 0xc87   :  { %13746 = vmatprep.subr.bf16.mxu0 %v14795_v0 }
 0xc88   :  { %v4949_v43 = vpop.f32.mrb[76].mxu1 }
 0xc89   :  { %v13732_v45 = vpop.f32.mrb[77].mxu1 }
 0xc8a   :  { %v4952_v48 = vpop.f32.mrb[78].mxu1 }
 0xc8b   :  { %v4958_v49 = vpack.c.bf16 %v4952_v48, %v4949_v43  ;;  %v13733_v37 = vpop.f32.mrb[79].mxu1 }
 0xc8d   :  { %13737 = vmatmul.mubr.msk.bf16.vlgmr.msra.gmra.mrb[92].mxu0 %vm3458_vm4, %v4958_v49 }
 0xc8e   :  { %13747 = vmatpush3.bf16.msra.mxu0 %v5067_v51  ;;  %13748 = vmatprep.mubr.msk.bf16.mxu0 %vm14796_vm0, %v14795_v0 }
 0xc8f   :  { %13758 = vmatprep.subr.bf16.mxu0 %v14795_v0 }
 0xc90   :  { %v5053_v52 = vpop.f32.mrb[80].mxu1 }
 0xc91   :  { %v13744_v12 = vpop.f32.mrb[81].mxu1 }
 0xc92   :  { %v5056_v54 = vpop.f32.mrb[82].mxu1  ;;  %v5235_v12 = vld [vmem:[%s17690_s19 + $0x8] sm:$0xff] }
 0xc93   :  { %v5062_v55 = vpack.c.bf16 %v5056_v54, %v5053_v52  ;;  %v13745_v56 = vpop.f32.mrb[83].mxu1  ;;  %v5232_v52 = vld [vmem:[%s17689_s18] sm:$0xff] }
 0xc95   :  { %13749 = vmatmul.mubr.msk.bf16.vlgmr.msra.gmra.mrb[96].mxu0 %vm3458_vm4, %v5062_v55 }
 0xc96   :  { %13759 = vmatpush3.bf16.msra.mxu0 %v5171_v57  ;;  %13760 = vmatprep.mubr.msk.bf16.mxu0 %vm14796_vm0, %v14795_v0 }
 0xc97   :  { %13770 = vmatprep.subr.bf16.mxu0 %v14795_v0 }
 0xc98   :  { %v5157_v58 = vpop.f32.mrb[84].mxu1 }
 0xc99   :  { %v13756_v59 = vpop.f32.mrb[85].mxu1 }
 0xc9a   :  { %v5160_v60 = vpop.f32.mrb[86].mxu1 }
 0xc9b   :  { %v5166_v62 = vpack.c.bf16 %v5160_v60, %v5157_v58  ;;  %v13757_v46 = vpop.f32.mrb[87].mxu1 }
 0xc9d   :  { %13761 = vmatmul.mubr.msk.bf16.vlgmr.msra.gmra.mrb[100].mxu0 %vm3458_vm4, %v5166_v62 }
 0xc9e   :  { %13772 = vmatprep.mubr.msk.bf16.mxu0 %vm14796_vm0, %v14795_v0 }
 0xd40   :  { %v4583_v22 = vpop.f32.mrb[76].mxu0 }
 0xd41   :  { %v4590_v63 = vadd.f32 %v4583_v22, %v16119_v35  ;;  %v13690_v1 = vpop.f32.mrb[77].mxu0 }
 0xd42   :  { %v4586_v2 = vpop.f32.mrb[78].mxu0  ;;  %v11077_v1 = vld [vmem:[%s17691_s22] sm:$0xff] }
 0xd43   :  { %v4591_v3 = vadd.f32 %v4586_v2, %v16121_v14  ;;  %v13691_v5 = vpop.f32.mrb[79].mxu0 }
 0xd48   :  { %v4687_v6 = vpop.f32.mrb[80].mxu0 }
 0xd49   :  { %v4694_v8 = vadd.f32 %v4687_v6, %v4590_v63  ;;  %v13702_v9 = vpop.f32.mrb[81].mxu0  ;;  %v5233_v63 = vld [vmem:[%s17689_s18 + $0x8] sm:$0xff] }
 0xd4a   :  { %v4690_v10 = vpop.f32.mrb[82].mxu0 }
 0xd4b   :  { %v4695_v7 = vadd.f32 %v4690_v10, %v4591_v3  ;;  %v13703_v13 = vpop.f32.mrb[83].mxu0 }
 0xd50   :  { %v4791_v11 = vpop.f32.mrb[84].mxu0 }
 0xd51   :  { %v4798_v15 = vadd.f32 %v4791_v11, %v4694_v8  ;;  %v13714_v16 = vpop.f32.mrb[85].mxu0 }
 0xd52   :  { %v4794_v17 = vpop.f32.mrb[86].mxu0 }
 0xd53   :  { %v4799_v18 = vadd.f32 %v4794_v17, %v4695_v7  ;;  %v13715_v19 = vpop.f32.mrb[87].mxu0 }
 0xd58   :  { %v4895_v20 = vpop.f32.mrb[88].mxu0 }
 0xd59   :  { %v4902_v34 = vadd.f32 %v4895_v20, %v4798_v15  ;;  %v13726_v35 = vpop.f32.mrb[89].mxu0 }
 0xd5a   :  { %v4898_v21 = vpop.f32.mrb[90].mxu0 }
 0xd5b   :  { %v4903_v25 = vadd.f32 %v4898_v21, %v4799_v18  ;;  %v13727_v26 = vpop.f32.mrb[91].mxu0  ;;  %v14219_v21 = vld [vmem:[%s17692_s25 + $0x74] ss:$16 sps:$4 sm:$0xff]  }
 0xd60   :  { %v4999_v14 = vpop.f32.mrb[92].mxu0 }
 0xd61   :  { %v5006_v23 = vadd.f32 %v4999_v14, %v4902_v34  ;;  %v13738_v27 = vpop.f32.mrb[93].mxu0  ;;  %v11837_v14 = vld [vmem:[%s17693_s21 + $0x4] sm:$0xf] }
 0xd62   :  { %v5002_v28 = vpop.f32.mrb[94].mxu0  ;;  %v14217_v27 = vld [vmem:[%s17692_s25 + $0x70] ss:$16 sps:$4 sm:$0xff]  }
 0xd63   :  { %v5007_v29 = vadd.f32 %v5002_v28, %v4903_v25  ;;  %v13739_v47 = vpop.f32.mrb[95].mxu0  ;;  %v14222_v25 = vld [vmem:[%s17692_s25 + $0x7c] ss:$16 sps:$4 sm:$0xff]   ;;  %v14220_v28 = vld [vmem:[%s17692_s25 + $0x78] ss:$16 sps:$4 sm:$0xff]  }
 0xd64   :  { %v14228_v47 = vld [vmem:[%s17692_s25 + $0x9c] ss:$16 sps:$4 sm:$0xff]  }
 0xd68   :  { %v5103_v30 = vpop.f32.mrb[96].mxu0 }
 0xd69   :  { %v5110_v31 = vadd.f32 %v5103_v30, %v5006_v23  ;;  %v13750_v50 = vpop.f32.mrb[97].mxu0  ;;  %v5286_v23 = vld [vmem:[%s17693_s21] sm:$0xf] }
 0xd6a   :  { %v5106_v32 = vpop.f32.mrb[98].mxu0  ;;  %v14223_v30 = vld [vmem:[%s17692_s25 + $0x90] ss:$16 sps:$4 sm:$0xff]   ;;  %v14231_v50 = vld [vmem:[%s17692_s25 + $0xb4] ss:$16 sps:$4 sm:$0xff]  }
 0xd6b   :  { %v5111_v33 = vadd.f32 %v5106_v32, %v5007_v29  ;;  %v13751_v36 = vpop.f32.mrb[99].mxu0  ;;  %v14225_v29 = vld [vmem:[%s17692_s25 + $0x94] ss:$16 sps:$4 sm:$0xff]   ;;  %v14234_v32 = vld [vmem:[%s17692_s25 + $0xbc] ss:$16 sps:$4 sm:$0xff]  }
 0xd6c   :  { %v11852_v36 = vld [vmem:[%s17692_s25 + $0xd8] sm:$0x11] }
 0xd70   :  { %v5207_v38 = vpop.f32.mrb[100].mxu0 }
 0xd71   :  { %v5214_v24 = vadd.f32 %v5207_v38, %v5110_v31  ;;  %v13762_v39 = vpop.f32.mrb[101].mxu0  ;;  %v14226_v31 = vld [vmem:[%s17692_s25 + $0x98] ss:$16 sps:$4 sm:$0xff]   ;;  %v14229_v38 = vld [vmem:[%s17692_s25 + $0xb0] ss:$16 sps:$4 sm:$0xff]  }
 0xd72   :  { %v5210_v41 = vpop.f32.mrb[102].mxu0 }
 0xd73   :  { %v5228_v42 = vadd.f32 %v5221_v40, %v5214_v24  ;;  %v5215_v61 = vadd.f32 %v5210_v41, %v5111_v33  ;;  %v13763_v43 = vpop.f32.mrb[103].mxu0  ;;  %v11851_v33 = vld [vmem:[%s17692_s25 + $0xd0] sm:$0x11]  ;;  %v14232_v24 = vld [vmem:[%s17692_s25 + $0xb8] ss:$16 sps:$4 sm:$0xff]   ;;  %v11868_v40 = vcombine.high %v11852_v36, %v11852_v36 }
 0xd74   :  { %v11866_v39 = vcombine.high %v11851_v33, %v11851_v33  ;;  %v11865_v41 = vcombine.low %v11851_v33, %v11851_v33  ;;  %v14285_v33 = vld [vmem:[%s17692_s25 + $0x154] ss:$16 sps:$4 sm:$0xff]  }
 0xd75   :  { %v5229_v45 = vadd.f32 %v5226_v44, %v5215_v61  ;;  %v5230_v48 = vmax.f32 %v5228_v42, 0.0  ;;  %v11867_v42 = vcombine.low %v11852_v36, %v11852_v36  ;;  %v14241_v44 = vld [vmem:[%s17692_s25 + $0x4] ss:$16 sps:$4 sm:$0xff]  }
 0xd76   :  { %v5481_v61 = vsel %vm830_vm3, %v11865_v41, 0 }
 0xd77   :  { %v5236_v49 = vsel %vm332_vm2, %v5230_v48, 0.0  ;;  %v5231_v37 = vmax.f32 %v5229_v45, 0.0  ;;  %v5487_v43 = vsel %vm830_vm3, %v11867_v42, 0  ;;  %v14244_v45 = vld [vmem:[%s17692_s25 + $0xc] ss:$16 sps:$4 sm:$0xff]  }
 0xd78   :  { %5237 = vadd.xlane.f32.xlu0 %v5236_v49  ;;  %v14239_v49 = vld [vmem:[%s17692_s25] ss:$16 sps:$4 sm:$0xff]  }
 0xd79   :  { %v5239_v51 = vsel %vm332_vm2, %v5231_v37, 0.0 }
 0xd7a   :  { %5240 = vadd.xlane.f32.xlu1 %v5239_v51 }
 0xd8b   :  { %5264 = vperm.xlu1 %14058, %v5232_v52  }
 0xd8f   :  { %5276 = vperm.xlu1 %14058, %v5234_v53  }
 0xd93   :  { %5281 = vperm.xlu1 %14058, %v5235_v12   ;;  %v14247_v12 = vld [vmem:[%s17692_s25 + $0x24] ss:$16 sps:$4 sm:$0xff]  }
 0xe05   :  { %v5238_v54 = vpop.xlane.xlu0 %5237 }
 0xe06   :  { %v5242_v55 = vmul.f32 0.02, %v5238_v54  ;;  %v14250_v54 = vld [vmem:[%s17692_s25 + $0x2c] ss:$16 sps:$4 sm:$0xff]  }
 0xe07   :  { %v5241_v56 = vpop.xlane.xlu1 %5240 }
 0xe08   :  { %v5244_v57 = vsub.f32 %v5230_v48, %v5242_v55  ;;  %v5243_v58 = vmul.f32 0.02, %v5241_v56 }
 0xe0a   :  { %v5245_v59 = vsub.f32 %v5231_v37, %v5243_v58  ;;  %v5246_v60 = vmul.f32 %v5244_v57, %v5244_v57  ;;  %v14242_v37 = vld [vmem:[%s17692_s25 + $0x8] ss:$16 sps:$4 sm:$0xff]  }
 0xe0b   :  { %v5265_v10 = vpop.permute.xlu1 %5264 }
 0xe0c   :  { %v5248_v62 = vsel %vm332_vm2, %v5246_v60, 0.0  ;;  %v5247_v46 = vmul.f32 %v5245_v59, %v5245_v59  ;;  %v14245_v60 = vld [vmem:[%s17692_s25 + $0x20] ss:$16 sps:$4 sm:$0xff]  }
 0xe0d   :  { %5249 = vadd.xlane.f32.xlu0 %v5248_v62  ;;  %v14248_v62 = vld [vmem:[%s17692_s25 + $0x28] ss:$16 sps:$4 sm:$0xff]  }
 0xe0e   :  { %v5251_v22 = vsel %vm332_vm2, %v5247_v46, 0.0  ;;  %v14253_v46 = vld [vmem:[%s17692_s25 + $0x44] ss:$16 sps:$4 sm:$0xff]  }
 0xe0f   :  { %v5277_v11 = vpop.permute.xlu1 %5276 }
 0xe11   :  { %5252 = vadd.xlane.f32.xlu0 %v5251_v22  ;;  %v14256_v22 = vld [vmem:[%s17692_s25 + $0x4c] ss:$16 sps:$4 sm:$0xff]  }
 0xe13   :  { %v5282_v20 = vpop.permute.xlu1 %5281 }
 0xe27   :  { %5269 = vperm.xlu0 %14057, %v5233_v63   ;;  %v5343_v63 = vld [vmem:[%s17692_s25 + $0x60] sm:$0x11] }
 0xe2b   :  { %11080 = vperm.xlu0 %14057, %v11077_v1   ;;  %v5344_v1 = vld [vmem:[%s17692_s25 + $0x68] sm:$0x11] }
 0xe9a   :  { %v5250_v2 = vpop.xlane.xlu0 %5249 }
 0xe9b   :  { %v5254_v3 = vmul.f32 0.02, %v5250_v2  ;;  %v14251_v2 = vld [vmem:[%s17692_s25 + $0x40] ss:$16 sps:$4 sm:$0xff]  }
 0xe9d   :  { %v5256_v5 = vadd.f32 1e-05, %v5254_v3  ;;  %v14254_v3 = vld [vmem:[%s17692_s25 + $0x48] ss:$16 sps:$4 sm:$0xff]  }
 0xe9e   :  { %v5253_v6 = vpop.xlane.xlu0 %5252 }
 0xe9f   :  { %14773 = vrsqrt.f32 %v5256_v5  ;;  %v5255_v8 = vmul.f32 0.02, %v5253_v6  ;;  %v11886_v5 = vcombine.high %v5343_v63, %v5343_v63  ;;  %v11888_v6 = vcombine.high %v5344_v1, %v5344_v1 }
 0xea1   :  { %v5257_v9 = vadd.f32 1e-05, %v5255_v8  ;;  %v11885_v8 = vcombine.low %v5343_v63, %v5343_v63  ;;  %v14289_v63 = vld [vmem:[%s17692_s25 + $0x170] ss:$16 sps:$4 sm:$0xff]  }
 0xea3   :  { %14775 = vrsqrt.f32 %v5257_v9  ;;  %v11887_v9 = vcombine.low %v5344_v1, %v5344_v1  ;;  %v11929_v1 = vld [vmem:[%s17693_s21 + $0xc] sm:$0xf] }
 0xea6   :  { %v5270_v18 = vpop.permute.xlu0 %5269 }
 0xea9   :  { %v14774_v7 = vpop.eup %14773 }
 0xeaa   :  { %v5260_v13 = vmul.f32 %v14774_v7, %v5244_v57  ;;  %v5654_v7 = vsel %vm830_vm3, %v11887_v9, 0  ;;  %v14300_v9 = vld [vmem:[%s17692_s25 + $0x19c] ss:$16 sps:$4 sm:$0xff]  }
 0xeac   :  { %v5272_v17 = vmul.f32 %v5265_v10, %v5260_v13  ;;  %v5648_v10 = vsel %vm830_vm3, %v11885_v8, 0  ;;  %v14295_v8 = vld [vmem:[%s17692_s25 + $0x190] ss:$16 sps:$4 sm:$0xff]  }
 0xead   :  { %v14776_v15 = vpop.eup %14775 }
 0xeae   :  { %v5261_v16 = vmul.f32 %v14776_v15, %v5245_v59  ;;  %v5284_v34 = vadd.f32 %v5277_v11, %v5272_v17  ;;  %v11893_v11 = vld [vmem:[%s17693_s21 + $0x8] sm:$0xf]  ;;  %v14261_v15 = vld [vmem:[%s17692_s25 + $0xe0] ss:$16 sps:$4 sm:$0xff]  }
 0xeaf   :  { %v14264_v17 = vld [vmem:[%s17692_s25 + $0xe8] ss:$16 sps:$4 sm:$0xff]  }
 0xeb0   :  { %v5273_v19 = vmul.f32 %v5270_v18, %v5261_v16  ;;  %v14263_v16 = vld [vmem:[%s17692_s25 + $0xe4] ss:$16 sps:$4 sm:$0xff]   ;;  %v14266_v18 = vld [vmem:[%s17692_s25 + $0xec] ss:$16 sps:$4 sm:$0xff]  }
 0xeb2   :  { %v5285_v35 = vadd.f32 %v5282_v20, %v5273_v19  ;;  %v14269_v19 = vld [vmem:[%s17692_s25 + $0x104] ss:$16 sps:$4 sm:$0xff]   ;;  %v14272_v20 = vld [vmem:[%s17692_s25 + $0x10c] ss:$16 sps:$4 sm:$0xff]  }
 0xeb4   :  { %v16201_v26 = vpack.c.bf16 %v5285_v35, %v5284_v34  ;;  %v14267_v34 = vld [vmem:[%s17692_s25 + $0x100] ss:$16 sps:$4 sm:$0xff]   ;;  %v14270_v35 = vld [vmem:[%s17692_s25 + $0x108] ss:$16 sps:$4 sm:$0xff]  }
 0xeb6   :  { %13765 = vmatpush3.bf16.msra.mxu1 %v16201_v26  ;;  %13771 = vmatpush3.bf16.msra.mxu0 %v16201_v26 }
 0xeb7   :  { %5492 = vmatprep.subr.bf16.mxu1 %v14219_v21  ;;  %5533 = vmatprep.subr.bf16.mxu0 %v14222_v25  ;;  %v14275_v21 = vld [vmem:[%s17692_s25 + $0x124] ss:$16 sps:$4 sm:$0xff]   ;;  %v14273_v25 = vld [vmem:[%s17692_s25 + $0x120] ss:$16 sps:$4 sm:$0xff]  }
 0xeb9   :  { %13773 = vmatmul.mubr.msk.bf16.vlgmr.msra.gmra.mrb[104].mxu0 %vm119_vm1, %v11837_v14  ;;  %13767 = vmatmul.mubr.msk.bf16.vlgmr.msra.gmra.mrb[88].mxu1 %vm119_vm1, %v5286_v23  ;;  %v14278_v14 = vld [vmem:[%s17692_s25 + $0x12c] ss:$16 sps:$4 sm:$0xff]   ;;  %v14276_v23 = vld [vmem:[%s17692_s25 + $0x128] ss:$16 sps:$4 sm:$0xff]  }
 0xeba   :  { %5493 = vmatpush1.bf16.msra.mxu1 %v14217_v27  ;;  %5534 = vmatpush1.bf16.msra.mxu0 %v14220_v28  ;;  %v11907_v27 = vld [vmem:[%s17692_s25 + $0x140] sm:$0x11]  ;;  %v11908_v28 = vld [vmem:[%s17692_s25 + $0x148] sm:$0x11] }
 0xebb   :  { %5494 = vmatprep.subr.bf16.mxu1 %v14225_v29  ;;  %5535 = vmatprep.subr.bf16.mxu0 %v14228_v47  ;;  %v11922_v29 = vcombine.high %v11907_v27, %v11907_v27  ;;  %v11921_v47 = vcombine.low %v11907_v27, %v11907_v27 }
 0xebc   :  { %5524 = vmatprep.mubr.bf16.mxu1 %v14797_v4  ;;  %5565 = vmatprep.mubr.bf16.mxu0 %v14797_v4 }
 0xebe   :  { %5495 = vmatpush1.bf16.msra.mxu1 %v14223_v30  ;;  %5536 = vmatpush1.bf16.msra.mxu0 %v14226_v31  ;;  %v11924_v30 = vcombine.high %v11908_v28, %v11908_v28  ;;  %v11923_v31 = vcombine.low %v11908_v28, %v11908_v28 }
 0xebf   :  { %5496 = vmatprep.subr.bf16.mxu1 %v14231_v50  ;;  %5537 = vmatprep.subr.bf16.mxu0 %v14234_v32  ;;  %v5876_v50 = vsel %vm830_vm3, %v11921_v47, 0 }
 0xec0   :  { %v5882_v32 = vsel %vm830_vm3, %v11923_v31, 0 }
 0xec2   :  { %5497 = vmatpush1.bf16.msra.mxu1 %v14229_v38  ;;  %5538 = vmatpush1.bf16.msra.mxu0 %v14232_v24 }
 0xec3   :  { %11869 = vmatprep.subr.msk.bf16.mxu1 %vm830_vm3, %v11866_v39  ;;  %11871 = vmatprep.subr.msk.bf16.mxu0 %vm830_vm3, %v11868_v40 }
 0xec6   :  { %5499 = vmatpush1.bf16.msra.mxu1 %v5481_v61  ;;  %5540 = vmatpush1.bf16.msra.mxu0 %v5487_v43 }
 0xec7   :  { %5659 = vmatprep.subr.bf16.mxu1 %v14241_v44  ;;  %5700 = vmatprep.subr.bf16.mxu0 %v14244_v45 }
 0xf8c   :  { %v5385_v48 = vpop.f32.mrb[104].mxu0  ;;  %v5325_v51 = vpop.f32.mrb[88].mxu1 }
 0xf8d   :  { %v5406_v52 = vpack.c.bf16 %v5385_v48, %v5385_v48  ;;  %v13774_v53 = vpop.f32.mrb[105].mxu0  ;;  %v13768_v55 = vpop.f32.mrb[89].mxu1  ;;  %v5345_v13 = vpack.c.bf16 %v5325_v51, %v5325_v51 }
 0xf8e   :  { %v5388_v56 = vpop.f32.mrb[106].mxu0  ;;  %v5328_v57 = vpop.f32.mrb[90].mxu1 }
 0xf8f   :  { %v13775_v58 = vpop.f32.mrb[107].mxu0  ;;  %11870 = vmatmul.mubr.msk.bf16.vlgmr.msra.gmra.mrb[92].mxu1 %vm332_vm2, %v5406_v52  ;;  %11872 = vmatmul.mubr.msk.bf16.vlgmr.msra.gmra.mrb[108].mxu0 %vm332_vm2, %v5406_v52  ;;  %v13769_v59 = vpop.f32.mrb[91].mxu1 }
 0xf90   :  { %5660 = vmatpush1.bf16.msra.mxu1 %v14239_v49  ;;  %5701 = vmatpush1.bf16.msra.mxu0 %v14242_v37  ;;  %v14283_v59 = vld [vmem:[%s17692_s25 + $0x150] ss:$16 sps:$4 sm:$0xff]  }
 0xf91   :  { %5661 = vmatprep.subr.bf16.mxu1 %v14247_v12  ;;  %5702 = vmatprep.subr.bf16.mxu0 %v14250_v54 }
 0xf92   :  { %5691 = vmatprep.mubr.bf16.mxu1 %v14797_v4  ;;  %5732 = vmatprep.mubr.bf16.mxu0 %v14797_v4 }
 0xf94   :  { %5662 = vmatpush1.bf16.msra.mxu1 %v14245_v60  ;;  %5703 = vmatpush1.bf16.msra.mxu0 %v14248_v62  ;;  %v14288_v60 = vld [vmem:[%s17692_s25 + $0x15c] ss:$16 sps:$4 sm:$0xff]  }
 0xf95   :  { %5663 = vmatprep.subr.bf16.mxu1 %v14253_v46  ;;  %5704 = vmatprep.subr.bf16.mxu0 %v14256_v22  ;;  %v14291_v46 = vld [vmem:[%s17692_s25 + $0x174] ss:$16 sps:$4 sm:$0xff]  }
 0xf98   :  { %5664 = vmatpush1.bf16.msra.mxu1 %v14251_v2  ;;  %5705 = vmatpush1.bf16.msra.mxu0 %v14254_v3  ;;  %v14286_v2 = vld [vmem:[%s17692_s25 + $0x158] ss:$16 sps:$4 sm:$0xff]   ;;  %v14294_v3 = vld [vmem:[%s17692_s25 + $0x17c] ss:$16 sps:$4 sm:$0xff]  }
 0xf99   :  { %11889 = vmatprep.subr.msk.bf16.mxu1 %vm830_vm3, %v11886_v5  ;;  %11891 = vmatprep.subr.msk.bf16.mxu0 %vm830_vm3, %v11888_v6  ;;  %v14292_v5 = vld [vmem:[%s17692_s25 + $0x178] ss:$16 sps:$4 sm:$0xff]   ;;  %v14297_v6 = vld [vmem:[%s17692_s25 + $0x194] ss:$16 sps:$4 sm:$0xff]  }
 0xf9c   :  { %5666 = vmatpush1.bf16.msra.mxu1 %v5648_v10  ;;  %5707 = vmatpush1.bf16.msra.mxu0 %v5654_v7  ;;  %v14298_v10 = vld [vmem:[%s17692_s25 + $0x198] ss:$16 sps:$4 sm:$0xff]   ;;  %v11943_v7 = vld [vmem:[%s17692_s25 + $0x1b0] sm:$0x11] }
 0xf9d   :  { %13776 = vmatprep.subr.bf16.mxu1 %v14795_v0  ;;  %5887 = vmatprep.subr.bf16.mxu0 %v14263_v16 }
 0xf9f   :  { %11890 = vmatmul.mubr.msk.bf16.vlgmr.msra.gmra.mrb[96].mxu1 %vm332_vm2, %v5345_v13  ;;  %11892 = vmatmul.mubr.msk.bf16.vlgmr.msra.gmra.mrb[112].mxu0 %vm332_vm2, %v5345_v13  ;;  %v11944_v13 = vld [vmem:[%s17692_s25 + $0x1b8] sm:$0x11] }
 0xfa0   :  { %13777 = vmatpush3.bf16.msra.mxu1 %v16201_v26  ;;  %13778 = vmatprep.mubr.msk.bf16.mxu1 %vm14796_vm0, %v14795_v0  ;;  %v11960_v16 = vcombine.high %v11944_v13, %v11944_v13 }
 0xfa1   :  { %5919 = vmatprep.mubr.bf16.mxu0 %v14797_v4  ;;  %5888 = vmatpush1.bf16.msra.mxu0 %v14261_v15  ;;  %v11957_v15 = vcombine.low %v11943_v7, %v11943_v7 }
 0xfa2   :  { %5928 = vmatprep.subr.bf16.mxu1 %v14266_v18  ;;  %5889 = vmatprep.subr.bf16.mxu0 %v14269_v19  ;;  %v11959_v18 = vcombine.low %v11944_v13, %v11944_v13  ;;  %v14327_v13 = vld [vmem:[%s17692_s25 + $0x230] ss:$16 sps:$4 sm:$0xff]  }
 0xfa4   :  { %v6114_v19 = vsel %vm830_vm3, %v11959_v18, 0  ;;  %v14333_v18 = vld [vmem:[%s17692_s25 + $0x250] ss:$16 sps:$4 sm:$0xff]  }
 0xfa5   :  { %5890 = vmatpush1.bf16.msra.mxu0 %v14267_v34 }
 0xfa6   :  { %5891 = vmatprep.subr.bf16.mxu0 %v14275_v21 }
 0xfa7   :  { %13779 = vmatmul.mubr.msk.bf16.vlgmr.msra.gmra.mrb[100].mxu1 %vm119_vm1, %v11893_v11  ;;  %v11958_v11 = vcombine.high %v11943_v7, %v11943_v7 }
 0xfa8   :  { %5960 = vmatprep.mubr.bf16.mxu1 %v14797_v4  ;;  %5929 = vmatpush1.bf16.msra.mxu1 %v14264_v17  ;;  %v6108_v17 = vsel %vm830_vm3, %v11957_v15, 0 }
 0xfa9   :  { %5930 = vmatprep.subr.bf16.mxu1 %v14272_v20  ;;  %5892 = vmatpush1.bf16.msra.mxu0 %v14273_v25  ;;  %v14307_v20 = vld [vmem:[%s17692_s25 + $0x1c4] ss:$16 sps:$4 sm:$0xff]  }
 0xfaa   :  { %11925 = vmatprep.subr.msk.bf16.mxu0 %vm830_vm3, %v11922_v29 }
 0xfac   :  { %5931 = vmatpush1.bf16.msra.mxu1 %v14270_v35 }
 0xfad   :  { %5932 = vmatprep.subr.bf16.mxu1 %v14278_v14  ;;  %5894 = vmatpush1.bf16.msra.mxu0 %v5876_v50 }
 0xfae   :  { %13782 = vmatprep.subr.bf16.mxu0 %v14795_v0 }
 0xfb0   :  { %5933 = vmatpush1.bf16.msra.mxu1 %v14276_v23 }
 0xfb1   :  { %11927 = vmatprep.subr.msk.bf16.mxu1 %vm830_vm3, %v11924_v30 }
 0xfb4   :  { %5935 = vmatpush1.bf16.msra.mxu1 %v5882_v32 }
 0xfb5   :  { %6119 = vmatprep.subr.bf16.mxu1 %v14285_v33 }
0x1062   :  { %v5526_v36 = vpop.f32.mrb[92].mxu1  ;;  %v5567_v38 = vpop.f32.mrb[108].mxu0 }
0x1063   :  { %v5528_v24 = vpop.f32.mrb[93].mxu1  ;;  %v5569_v39 = vpop.f32.mrb[109].mxu0 }
0x1064   :  { %v5530_v40 = vpop.f32.mrb[94].mxu1  ;;  %v5571_v41 = vpop.f32.mrb[110].mxu0 }
0x1065   :  { %v5531_v42 = vpop.f32.mrb[95].mxu1  ;;  %v5572_v61 = vpop.f32.mrb[111].mxu0  ;;  %v14311_v41 = vld [vmem:[%s17692_s25 + $0x1e0] ss:$16 sps:$4 sm:$0xff]  }
0x1066   :  { %v11965_v42 = vld [vmem:[%s17693_s21 + $0x10] sm:$0xf]  ;;  %v14308_v61 = vld [vmem:[%s17692_s25 + $0x1c8] ss:$16 sps:$4 sm:$0xff]  }
0x1072   :  { %v5693_v43 = vpop.f32.mrb[96].mxu1  ;;  %v5734_v44 = vpop.f32.mrb[112].mxu0 }
0x1073   :  { %v5694_v45 = vadd.f32 %v5693_v43, %v5526_v36  ;;  %v5735_v48 = vadd.f32 %v5734_v44, %v5567_v38  ;;  %v5695_v49 = vpop.f32.mrb[97].mxu1  ;;  %v5736_v37 = vpop.f32.mrb[113].mxu0  ;;  %v14305_v36 = vld [vmem:[%s17692_s25 + $0x1c0] ss:$16 sps:$4 sm:$0xff]   ;;  %v14310_v38 = vld [vmem:[%s17692_s25 + $0x1cc] ss:$16 sps:$4 sm:$0xff]  }
0x1074   :  { %v5696_v51 = vadd.f32 %v5695_v49, %v5528_v24  ;;  %v5737_v52 = vadd.f32 %v5736_v37, %v5569_v39  ;;  %v5697_v53 = vpop.f32.mrb[98].mxu1  ;;  %v5738_v12 = vpop.f32.mrb[114].mxu0  ;;  %v14313_v39 = vld [vmem:[%s17692_s25 + $0x1e4] ss:$16 sps:$4 sm:$0xff]   ;;  %v14316_v43 = vld [vmem:[%s17692_s25 + $0x1ec] ss:$16 sps:$4 sm:$0xff]  }
0x1075   :  { %v5698_v54 = vpop.f32.mrb[99].mxu1  ;;  %v5739_v55 = vpop.f32.mrb[115].mxu0  ;;  %v14314_v44 = vld [vmem:[%s17692_s25 + $0x1e8] ss:$16 sps:$4 sm:$0xff]   ;;  %v14322_v49 = vld [vmem:[%s17692_s25 + $0x20c] ss:$16 sps:$4 sm:$0xff]  }
0x1076   :  { %v14320_v37 = vld [vmem:[%s17692_s25 + $0x208] ss:$16 sps:$4 sm:$0xff]  }
0x107a   :  { %v5780_v56 = vpop.f32.mrb[100].mxu1 }
0x107b   :  { %v5801_v57 = vpack.c.bf16 %v5780_v56, %v5780_v56  ;;  %v13780_v58 = vpop.f32.mrb[101].mxu1 }
0x107c   :  { %v5783_v62 = vpop.f32.mrb[102].mxu1  ;;  %v14329_v58 = vld [vmem:[%s17692_s25 + $0x234] ss:$16 sps:$4 sm:$0xff]  }
0x107d   :  { %v13781_v22 = vpop.f32.mrb[103].mxu1  ;;  %11926 = vmatmul.mubr.msk.bf16.vlgmr.msra.gmra.mrb[116].mxu0 %vm332_vm2, %v5801_v57  ;;  %11928 = vmatmul.mubr.msk.bf16.vlgmr.msra.gmra.mrb[104].mxu1 %vm332_vm2, %v5801_v57 }
0x107e   :  { %13783 = vmatpush3.bf16.msra.mxu0 %v16201_v26  ;;  %13784 = vmatprep.mubr.msk.bf16.mxu0 %vm14796_vm0, %v14795_v0 }
0x107f   :  { %6120 = vmatpush1.bf16.msra.mxu1 %v14283_v59  ;;  %6160 = vmatprep.subr.bf16.mxu0 %v14288_v60 }
0x1080   :  { %6121 = vmatprep.subr.bf16.mxu1 %v14291_v46  ;;  %6151 = vmatprep.mubr.bf16.mxu1 %v14797_v4 }
0x1083   :  { %6122 = vmatpush1.bf16.msra.mxu1 %v14289_v63 }
0x1084   :  { %6123 = vmatprep.subr.bf16.mxu1 %v14297_v6 }
0x1085   :  { %13785 = vmatmul.mubr.msk.bf16.vlgmr.msra.gmra.mrb[120].mxu0 %vm119_vm1, %v11929_v1 }
0x1086   :  { %6161 = vmatpush1.bf16.msra.mxu0 %v14286_v2  ;;  %6192 = vmatprep.mubr.bf16.mxu0 %v14797_v4 }
0x1087   :  { %6162 = vmatprep.subr.bf16.mxu0 %v14294_v3  ;;  %6124 = vmatpush1.bf16.msra.mxu1 %v14295_v8 }
0x1088   :  { %11961 = vmatprep.subr.msk.bf16.mxu1 %vm830_vm3, %v11958_v11  ;;  %v14332_v11 = vld [vmem:[%s17692_s25 + $0x23c] ss:$16 sps:$4 sm:$0xff]  }
0x108a   :  { %6163 = vmatpush1.bf16.msra.mxu0 %v14292_v5 }
0x108b   :  { %6164 = vmatprep.subr.bf16.mxu0 %v14300_v9  ;;  %6126 = vmatpush1.bf16.msra.mxu1 %v6108_v17 }
0x108c   :  { %13788 = vmatprep.subr.bf16.mxu1 %v14795_v0 }
0x108e   :  { %6165 = vmatpush1.bf16.msra.mxu0 %v14298_v10 }
0x108f   :  { %11963 = vmatprep.subr.msk.bf16.mxu0 %vm830_vm3, %v11960_v16  ;;  %v14335_v16 = vld [vmem:[%s17692_s25 + $0x254] ss:$16 sps:$4 sm:$0xff]  }
0x1092   :  { %6167 = vmatpush1.bf16.msra.mxu0 %v6114_v19  ;;  %v12001_v19 = vld [vmem:[%s17693_s21 + $0x14] sm:$0xf] }
0x1093   :  { %6351 = vmatprep.subr.bf16.mxu0 %v14307_v20  ;;  %v14330_v20 = vld [vmem:[%s17692_s25 + $0x238] ss:$16 sps:$4 sm:$0xff]  }
0x1150   :  { %v5921_v34 = vpop.f32.mrb[116].mxu0  ;;  %v5962_v35 = vpop.f32.mrb[104].mxu1 }
0x1151   :  { %v5969_v21 = vadd.f32 %v5921_v34, %v5694_v45  ;;  %v5971_v25 = vadd.f32 %v5962_v35, %v5735_v48  ;;  %v5923_v14 = vpop.f32.mrb[117].mxu0  ;;  %v5964_v23 = vpop.f32.mrb[105].mxu1  ;;  %v14319_v45 = vld [vmem:[%s17692_s25 + $0x204] ss:$16 sps:$4 sm:$0xff]   ;;  %v14317_v48 = vld [vmem:[%s17692_s25 + $0x200] ss:$16 sps:$4 sm:$0xff]  }
0x1152   :  { %v5970_v27 = vadd.f32 %v5923_v14, %v5696_v51  ;;  %v5972_v28 = vadd.f32 %v5964_v23, %v5737_v52  ;;  %v5925_v29 = vpop.f32.mrb[118].mxu0  ;;  %v5966_v47 = vpop.f32.mrb[106].mxu1  ;;  %v11979_v51 = vld [vmem:[%s17692_s25 + $0x220] sm:$0x11]  ;;  %v11980_v52 = vld [vmem:[%s17692_s25 + $0x228] sm:$0x11] }
0x1153   :  { %v5926_v30 = vpop.f32.mrb[119].mxu0  ;;  %v5967_v31 = vpop.f32.mrb[107].mxu1  ;;  %v11994_v53 = vcombine.high %v11979_v51, %v11979_v51  ;;  %v11993_v12 = vcombine.low %v11979_v51, %v11979_v51  ;;  %v11996_v54 = vcombine.high %v11980_v52, %v11980_v52  ;;  %v11995_v56 = vcombine.low %v11980_v52, %v11980_v52  ;;  %v14338_v34 = vld [vmem:[%s17692_s25 + $0x25c] ss:$16 sps:$4 sm:$0xff]   ;;  %v14336_v35 = vld [vmem:[%s17692_s25 + $0x258] ss:$16 sps:$4 sm:$0xff]  }
0x1154   :  { %v14344_v14 = vld [vmem:[%s17692_s25 + $0x27c] ss:$16 sps:$4 sm:$0xff]   ;;  %v14342_v23 = vld [vmem:[%s17692_s25 + $0x278] ss:$16 sps:$4 sm:$0xff]   ;;  %v14349_v52 = vld [vmem:[%s17692_s25 + $0x2a0] ss:$16 sps:$4 sm:$0xff]  }
0x1155   :  { %v6340_v55 = vsel %vm830_vm3, %v11993_v12, 0  ;;  %v6346_v57 = vsel %vm830_vm3, %v11995_v56, 0  ;;  %v14355_v56 = vld [vmem:[%s17692_s25 + $0x2c0] ss:$16 sps:$4 sm:$0xff]  }
0x1158   :  { %v6012_v50 = vpop.f32.mrb[120].mxu0 }
0x1159   :  { %v6033_v32 = vpack.c.bf16 %v6012_v50, %v6012_v50  ;;  %v13786_v33 = vpop.f32.mrb[121].mxu0 }
0x115a   :  { %v6015_v24 = vpop.f32.mrb[122].mxu0  ;;  %v14351_v33 = vld [vmem:[%s17692_s25 + $0x2a4] ss:$16 sps:$4 sm:$0xff]  }
0x115b   :  { %v13787_v40 = vpop.f32.mrb[123].mxu0  ;;  %11962 = vmatmul.mubr.msk.bf16.vlgmr.msra.gmra.mrb[108].mxu1 %vm332_vm2, %v6033_v32  ;;  %11964 = vmatmul.mubr.msk.bf16.vlgmr.msra.gmra.mrb[124].mxu0 %vm332_vm2, %v6033_v32 }
0x115c   :  { %13789 = vmatpush3.bf16.msra.mxu1 %v16201_v26  ;;  %13790 = vmatprep.mubr.msk.bf16.mxu1 %vm14796_vm0, %v14795_v0 }
0x115d   :  { %6352 = vmatpush1.bf16.msra.mxu0 %v14305_v36  ;;  %6392 = vmatprep.subr.bf16.mxu1 %v14310_v38 }
0x115e   :  { %6353 = vmatprep.subr.bf16.mxu0 %v14313_v39  ;;  %6383 = vmatprep.mubr.bf16.mxu0 %v14797_v4 }
0x1161   :  { %6354 = vmatpush1.bf16.msra.mxu0 %v14311_v41 }
0x1162   :  { %6355 = vmatprep.subr.bf16.mxu0 %v14319_v45 }
0x1163   :  { %13791 = vmatmul.mubr.msk.bf16.vlgmr.msra.gmra.mrb[112].mxu1 %vm119_vm1, %v11965_v42 }
0x1164   :  { %6393 = vmatpush1.bf16.msra.mxu1 %v14308_v61  ;;  %6424 = vmatprep.mubr.bf16.mxu1 %v14797_v4 }
0x1165   :  { %6394 = vmatprep.subr.bf16.mxu1 %v14316_v43  ;;  %6356 = vmatpush1.bf16.msra.mxu0 %v14317_v48 }
0x1166   :  { %11997 = vmatprep.subr.msk.bf16.mxu0 %vm830_vm3, %v11994_v53  ;;  %v14354_v53 = vld [vmem:[%s17692_s25 + $0x2ac] ss:$16 sps:$4 sm:$0xff]  }
0x1168   :  { %6395 = vmatpush1.bf16.msra.mxu1 %v14314_v44 }
0x1169   :  { %6396 = vmatprep.subr.bf16.mxu1 %v14322_v49  ;;  %6358 = vmatpush1.bf16.msra.mxu0 %v6340_v55 }
0x116a   :  { %13794 = vmatprep.subr.bf16.mxu0 %v14795_v0 }
0x116c   :  { %6397 = vmatpush1.bf16.msra.mxu1 %v14320_v37 }
0x116d   :  { %11999 = vmatprep.subr.msk.bf16.mxu1 %vm830_vm3, %v11996_v54  ;;  %v14357_v54 = vld [vmem:[%s17692_s25 + $0x2c4] ss:$16 sps:$4 sm:$0xff]  }
0x1170   :  { %6399 = vmatpush1.bf16.msra.mxu1 %v6346_v57  ;;  %v12037_v57 = vld [vmem:[%s17693_s21 + $0x18] sm:$0xf] }
0x1171   :  { %6583 = vmatprep.subr.bf16.mxu1 %v14329_v58  ;;  %v14352_v58 = vld [vmem:[%s17692_s25 + $0x2a8] ss:$16 sps:$4 sm:$0xff]  }
0x122e   :  { %v6153_v59 = vpop.f32.mrb[108].mxu1  ;;  %v6194_v60 = vpop.f32.mrb[124].mxu0 }
0x122f   :  { %v6201_v62 = vadd.f32 %v6153_v59, %v5969_v21  ;;  %v6203_v46 = vadd.f32 %v6194_v60, %v5971_v25  ;;  %v6155_v22 = vpop.f32.mrb[109].mxu1  ;;  %v6196_v63 = vpop.f32.mrb[125].mxu0  ;;  %v14341_v21 = vld [vmem:[%s17692_s25 + $0x274] ss:$16 sps:$4 sm:$0xff]   ;;  %v14339_v25 = vld [vmem:[%s17692_s25 + $0x270] ss:$16 sps:$4 sm:$0xff]  }
0x1230   :  { %v6202_v1 = vadd.f32 %v6155_v22, %v5970_v27  ;;  %v6204_v2 = vadd.f32 %v6196_v63, %v5972_v28  ;;  %v6157_v3 = vpop.f32.mrb[110].mxu1  ;;  %v6198_v5 = vpop.f32.mrb[126].mxu0  ;;  %v12015_v27 = vld [vmem:[%s17692_s25 + $0x290] sm:$0x11]  ;;  %v12016_v28 = vld [vmem:[%s17692_s25 + $0x298] sm:$0x11] }
0x1231   :  { %v6158_v6 = vpop.f32.mrb[111].mxu1  ;;  %v6199_v8 = vpop.f32.mrb[127].mxu0  ;;  %v12030_v29 = vcombine.high %v12015_v27, %v12015_v27  ;;  %v12029_v47 = vcombine.low %v12015_v27, %v12015_v27  ;;  %v12032_v30 = vcombine.high %v12016_v28, %v12016_v28  ;;  %v12031_v50 = vcombine.low %v12016_v28, %v12016_v28  ;;  %v14360_v59 = vld [vmem:[%s17692_s25 + $0x2cc] ss:$16 sps:$4 sm:$0xff]   ;;  %v14358_v60 = vld [vmem:[%s17692_s25 + $0x2c8] ss:$16 sps:$4 sm:$0xff]  }
0x1232   :  { %v14366_v22 = vld [vmem:[%s17692_s25 + $0x2ec] ss:$16 sps:$4 sm:$0xff]   ;;  %v14364_v63 = vld [vmem:[%s17692_s25 + $0x2e8] ss:$16 sps:$4 sm:$0xff]   ;;  %v14371_v28 = vld [vmem:[%s17692_s25 + $0x310] ss:$16 sps:$4 sm:$0xff]  }
0x1233   :  { %v6572_v31 = vsel %vm830_vm3, %v12029_v47, 0  ;;  %v6578_v32 = vsel %vm830_vm3, %v12031_v50, 0  ;;  %v14377_v50 = vld [vmem:[%s17692_s25 + $0x330] ss:$16 sps:$4 sm:$0xff]  }
0x1236   :  { %v6244_v9 = vpop.f32.mrb[112].mxu1 }
0x1237   :  { %v6265_v10 = vpack.c.bf16 %v6244_v9, %v6244_v9  ;;  %v13792_v7 = vpop.f32.mrb[113].mxu1 }
0x1238   :  { %v6247_v15 = vpop.f32.mrb[114].mxu1  ;;  %v14373_v7 = vld [vmem:[%s17692_s25 + $0x314] ss:$16 sps:$4 sm:$0xff]  }
0x1239   :  { %v13793_v17 = vpop.f32.mrb[115].mxu1  ;;  %11998 = vmatmul.mubr.msk.bf16.vlgmr.msra.gmra.mrb[128].mxu0 %vm332_vm2, %v6265_v10  ;;  %12000 = vmatmul.mubr.msk.bf16.vlgmr.msra.gmra.mrb[116].mxu1 %vm332_vm2, %v6265_v10 }
0x123a   :  { %13795 = vmatpush3.bf16.msra.mxu0 %v16201_v26  ;;  %13796 = vmatprep.mubr.msk.bf16.mxu0 %vm14796_vm0, %v14795_v0 }
0x123b   :  { %6584 = vmatpush1.bf16.msra.mxu1 %v14327_v13  ;;  %6624 = vmatprep.subr.bf16.mxu0 %v14332_v11 }
0x123c   :  { %6585 = vmatprep.subr.bf16.mxu1 %v14335_v16  ;;  %6615 = vmatprep.mubr.bf16.mxu1 %v14797_v4 }
0x123f   :  { %6586 = vmatpush1.bf16.msra.mxu1 %v14333_v18 }
0x1240   :  { %6587 = vmatprep.subr.bf16.mxu1 %v14341_v21 }
0x1241   :  { %13797 = vmatmul.mubr.msk.bf16.vlgmr.msra.gmra.mrb[132].mxu0 %vm119_vm1, %v12001_v19 }
0x1242   :  { %6625 = vmatpush1.bf16.msra.mxu0 %v14330_v20  ;;  %6656 = vmatprep.mubr.bf16.mxu0 %v14797_v4 }
0x1243   :  { %6626 = vmatprep.subr.bf16.mxu0 %v14338_v34  ;;  %6588 = vmatpush1.bf16.msra.mxu1 %v14339_v25 }
0x1244   :  { %12033 = vmatprep.subr.msk.bf16.mxu1 %vm830_vm3, %v12030_v29  ;;  %v14376_v29 = vld [vmem:[%s17692_s25 + $0x31c] ss:$16 sps:$4 sm:$0xff]  }
0x1246   :  { %6627 = vmatpush1.bf16.msra.mxu0 %v14336_v35 }
0x1247   :  { %6628 = vmatprep.subr.bf16.mxu0 %v14344_v14  ;;  %6590 = vmatpush1.bf16.msra.mxu1 %v6572_v31 }
0x1248   :  { %13800 = vmatprep.subr.bf16.mxu1 %v14795_v0 }
0x124a   :  { %6629 = vmatpush1.bf16.msra.mxu0 %v14342_v23 }
0x124b   :  { %12035 = vmatprep.subr.msk.bf16.mxu0 %vm830_vm3, %v12032_v30  ;;  %v14379_v30 = vld [vmem:[%s17692_s25 + $0x334] ss:$16 sps:$4 sm:$0xff]  }
0x124e   :  { %6631 = vmatpush1.bf16.msra.mxu0 %v6578_v32  ;;  %v12073_v32 = vld [vmem:[%s17693_s21 + $0x1c] sm:$0xf] }
0x124f   :  { %6815 = vmatprep.subr.bf16.mxu0 %v14351_v33  ;;  %v14374_v33 = vld [vmem:[%s17692_s25 + $0x318] ss:$16 sps:$4 sm:$0xff]  }
0x130c   :  { %v6385_v36 = vpop.f32.mrb[128].mxu0  ;;  %v6426_v38 = vpop.f32.mrb[116].mxu1 }
0x130d   :  { %v6433_v24 = vadd.f32 %v6385_v36, %v6201_v62  ;;  %v6435_v39 = vadd.f32 %v6426_v38, %v6203_v46  ;;  %v6387_v40 = vpop.f32.mrb[129].mxu0  ;;  %v6428_v41 = vpop.f32.mrb[117].mxu1  ;;  %v14363_v62 = vld [vmem:[%s17692_s25 + $0x2e4] ss:$16 sps:$4 sm:$0xff]   ;;  %v14361_v46 = vld [vmem:[%s17692_s25 + $0x2e0] ss:$16 sps:$4 sm:$0xff]  }
0x130e   :  { %v6434_v42 = vadd.f32 %v6387_v40, %v6202_v1  ;;  %v6436_v61 = vadd.f32 %v6428_v41, %v6204_v2  ;;  %v6389_v43 = vpop.f32.mrb[130].mxu0  ;;  %v6430_v44 = vpop.f32.mrb[118].mxu1  ;;  %v12051_v1 = vld [vmem:[%s17692_s25 + $0x300] sm:$0x11]  ;;  %v12052_v2 = vld [vmem:[%s17692_s25 + $0x308] sm:$0x11] }
0x130f   :  { %v6390_v45 = vpop.f32.mrb[131].mxu0  ;;  %v6431_v48 = vpop.f32.mrb[119].mxu1  ;;  %v12066_v3 = vcombine.high %v12051_v1, %v12051_v1  ;;  %v12065_v5 = vcombine.low %v12051_v1, %v12051_v1  ;;  %v12068_v6 = vcombine.high %v12052_v2, %v12052_v2  ;;  %v12067_v9 = vcombine.low %v12052_v2, %v12052_v2  ;;  %v14382_v36 = vld [vmem:[%s17692_s25 + $0x33c] ss:$16 sps:$4 sm:$0xff]   ;;  %v14380_v38 = vld [vmem:[%s17692_s25 + $0x338] ss:$16 sps:$4 sm:$0xff]  }
0x1310   :  { %v14388_v40 = vld [vmem:[%s17692_s25 + $0x35c] ss:$16 sps:$4 sm:$0xff]   ;;  %v14386_v41 = vld [vmem:[%s17692_s25 + $0x358] ss:$16 sps:$4 sm:$0xff]   ;;  %v14393_v2 = vld [vmem:[%s17692_s25 + $0x380] ss:$16 sps:$4 sm:$0xff]  }
0x1311   :  { %v6804_v8 = vsel %vm830_vm3, %v12065_v5, 0  ;;  %v6810_v10 = vsel %vm830_vm3, %v12067_v9, 0  ;;  %v14399_v9 = vld [vmem:[%s17692_s25 + $0x3a0] ss:$16 sps:$4 sm:$0xff]  }
0x1314   :  { %v6476_v49 = vpop.f32.mrb[132].mxu0 }
0x1315   :  { %v6497_v37 = vpack.c.bf16 %v6476_v49, %v6476_v49  ;;  %v13798_v51 = vpop.f32.mrb[133].mxu0 }
0x1316   :  { %v6479_v12 = vpop.f32.mrb[134].mxu0  ;;  %v14395_v51 = vld [vmem:[%s17692_s25 + $0x384] ss:$16 sps:$4 sm:$0xff]  }
0x1317   :  { %v13799_v55 = vpop.f32.mrb[135].mxu0  ;;  %12034 = vmatmul.mubr.msk.bf16.vlgmr.msra.gmra.mrb[120].mxu1 %vm332_vm2, %v6497_v37  ;;  %12036 = vmatmul.mubr.msk.bf16.vlgmr.msra.gmra.mrb[136].mxu0 %vm332_vm2, %v6497_v37 }
0x1318   :  { %13801 = vmatpush3.bf16.msra.mxu1 %v16201_v26  ;;  %13802 = vmatprep.mubr.msk.bf16.mxu1 %vm14796_vm0, %v14795_v0 }
0x1319   :  { %6816 = vmatpush1.bf16.msra.mxu0 %v14349_v52  ;;  %6856 = vmatprep.subr.bf16.mxu1 %v14354_v53 }
0x131a   :  { %6817 = vmatprep.subr.bf16.mxu0 %v14357_v54  ;;  %6847 = vmatprep.mubr.bf16.mxu0 %v14797_v4 }
0x131d   :  { %6818 = vmatpush1.bf16.msra.mxu0 %v14355_v56 }
0x131e   :  { %6819 = vmatprep.subr.bf16.mxu0 %v14363_v62 }
0x131f   :  { %13803 = vmatmul.mubr.msk.bf16.vlgmr.msra.gmra.mrb[124].mxu1 %vm119_vm1, %v12037_v57 }
0x1320   :  { %6857 = vmatpush1.bf16.msra.mxu1 %v14352_v58  ;;  %6888 = vmatprep.mubr.bf16.mxu1 %v14797_v4 }
0x1321   :  { %6858 = vmatprep.subr.bf16.mxu1 %v14360_v59  ;;  %6820 = vmatpush1.bf16.msra.mxu0 %v14361_v46 }
0x1322   :  { %12069 = vmatprep.subr.msk.bf16.mxu0 %vm830_vm3, %v12066_v3  ;;  %v14398_v3 = vld [vmem:[%s17692_s25 + $0x38c] ss:$16 sps:$4 sm:$0xff]  }
0x1324   :  { %6859 = vmatpush1.bf16.msra.mxu1 %v14358_v60 }
0x1325   :  { %6860 = vmatprep.subr.bf16.mxu1 %v14366_v22  ;;  %6822 = vmatpush1.bf16.msra.mxu0 %v6804_v8 }
0x1326   :  { %13806 = vmatprep.subr.bf16.mxu0 %v14795_v0 }
0x1328   :  { %6861 = vmatpush1.bf16.msra.mxu1 %v14364_v63 }
0x1329   :  { %12071 = vmatprep.subr.msk.bf16.mxu1 %vm830_vm3, %v12068_v6  ;;  %v14401_v6 = vld [vmem:[%s17692_s25 + $0x3a4] ss:$16 sps:$4 sm:$0xff]  }
0x132c   :  { %6863 = vmatpush1.bf16.msra.mxu1 %v6810_v10  ;;  %v12109_v10 = vld [vmem:[%s17693_s21 + $0x20] sm:$0xf] }
0x132d   :  { %7047 = vmatprep.subr.bf16.mxu1 %v14373_v7  ;;  %v14396_v7 = vld [vmem:[%s17692_s25 + $0x388] ss:$16 sps:$4 sm:$0xff]  }
0x13ea   :  { %v6617_v13 = vpop.f32.mrb[120].mxu1  ;;  %v6658_v11 = vpop.f32.mrb[136].mxu0 }
0x13eb   :  { %v6665_v15 = vadd.f32 %v6617_v13, %v6433_v24  ;;  %v6667_v16 = vadd.f32 %v6658_v11, %v6435_v39  ;;  %v6619_v17 = vpop.f32.mrb[121].mxu1  ;;  %v6660_v18 = vpop.f32.mrb[137].mxu0  ;;  %v14385_v24 = vld [vmem:[%s17692_s25 + $0x354] ss:$16 sps:$4 sm:$0xff]   ;;  %v14383_v39 = vld [vmem:[%s17692_s25 + $0x350] ss:$16 sps:$4 sm:$0xff]  }
0x13ec   :  { %v6666_v19 = vadd.f32 %v6619_v17, %v6434_v42  ;;  %v6668_v20 = vadd.f32 %v6660_v18, %v6436_v61  ;;  %v6621_v34 = vpop.f32.mrb[122].mxu1  ;;  %v6662_v35 = vpop.f32.mrb[138].mxu0  ;;  %v12087_v42 = vld [vmem:[%s17692_s25 + $0x370] sm:$0x11]  ;;  %v12088_v61 = vld [vmem:[%s17692_s25 + $0x378] sm:$0x11] }
0x13ed   :  { %v6622_v21 = vpop.f32.mrb[123].mxu1  ;;  %v6663_v25 = vpop.f32.mrb[139].mxu0  ;;  %v12102_v43 = vcombine.high %v12087_v42, %v12087_v42  ;;  %v12101_v44 = vcombine.low %v12087_v42, %v12087_v42  ;;  %v12104_v45 = vcombine.high %v12088_v61, %v12088_v61  ;;  %v12103_v49 = vcombine.low %v12088_v61, %v12088_v61  ;;  %v14404_v13 = vld [vmem:[%s17692_s25 + $0x3ac] ss:$16 sps:$4 sm:$0xff]   ;;  %v14402_v11 = vld [vmem:[%s17692_s25 + $0x3a8] ss:$16 sps:$4 sm:$0xff]  }
0x13ee   :  { %v14410_v17 = vld [vmem:[%s17692_s25 + $0x3cc] ss:$16 sps:$4 sm:$0xff]   ;;  %v14408_v18 = vld [vmem:[%s17692_s25 + $0x3c8] ss:$16 sps:$4 sm:$0xff]   ;;  %v14415_v61 = vld [vmem:[%s17692_s25 + $0x3f0] ss:$16 sps:$4 sm:$0xff]  }
0x13ef   :  { %v7036_v48 = vsel %vm830_vm3, %v12101_v44, 0  ;;  %v7042_v37 = vsel %vm830_vm3, %v12103_v49, 0  ;;  %v14421_v49 = vld [vmem:[%s17692_s25 + $0x410] ss:$16 sps:$4 sm:$0xff]  }
0x13f2   :  { %v6708_v14 = vpop.f32.mrb[124].mxu1 }
0x13f3   :  { %v6729_v23 = vpack.c.bf16 %v6708_v14, %v6708_v14  ;;  %v13804_v27 = vpop.f32.mrb[125].mxu1 }
0x13f4   :  { %v6711_v47 = vpop.f32.mrb[126].mxu1  ;;  %v14417_v27 = vld [vmem:[%s17692_s25 + $0x3f4] ss:$16 sps:$4 sm:$0xff]  }
0x13f5   :  { %v13805_v31 = vpop.f32.mrb[127].mxu1  ;;  %12070 = vmatmul.mubr.msk.bf16.vlgmr.msra.gmra.mrb[140].mxu0 %vm332_vm2, %v6729_v23  ;;  %12072 = vmatmul.mubr.msk.bf16.vlgmr.msra.gmra.mrb[128].mxu1 %vm332_vm2, %v6729_v23 }
0x13f6   :  { %13807 = vmatpush3.bf16.msra.mxu0 %v16201_v26  ;;  %13808 = vmatprep.mubr.msk.bf16.mxu0 %vm14796_vm0, %v14795_v0 }
0x13f7   :  { %7048 = vmatpush1.bf16.msra.mxu1 %v14371_v28  ;;  %7088 = vmatprep.subr.bf16.mxu0 %v14376_v29 }
0x13f8   :  { %7049 = vmatprep.subr.bf16.mxu1 %v14379_v30  ;;  %7079 = vmatprep.mubr.bf16.mxu1 %v14797_v4 }
0x13fb   :  { %7050 = vmatpush1.bf16.msra.mxu1 %v14377_v50 }
0x13fc   :  { %7051 = vmatprep.subr.bf16.mxu1 %v14385_v24 }
0x13fd   :  { %13809 = vmatmul.mubr.msk.bf16.vlgmr.msra.gmra.mrb[144].mxu0 %vm119_vm1, %v12073_v32 }
0x13fe   :  { %7089 = vmatpush1.bf16.msra.mxu0 %v14374_v33  ;;  %7120 = vmatprep.mubr.bf16.mxu0 %v14797_v4 }
0x13ff   :  { %7090 = vmatprep.subr.bf16.mxu0 %v14382_v36  ;;  %7052 = vmatpush1.bf16.msra.mxu1 %v14383_v39 }
0x1400   :  { %12105 = vmatprep.subr.msk.bf16.mxu1 %vm830_vm3, %v12102_v43  ;;  %v14420_v43 = vld [vmem:[%s17692_s25 + $0x3fc] ss:$16 sps:$4 sm:$0xff]  }
0x1402   :  { %7091 = vmatpush1.bf16.msra.mxu0 %v14380_v38 }
0x1403   :  { %7092 = vmatprep.subr.bf16.mxu0 %v14388_v40  ;;  %7054 = vmatpush1.bf16.msra.mxu1 %v7036_v48 }
0x1404   :  { %13812 = vmatprep.subr.bf16.mxu1 %v14795_v0 }
0x1406   :  { %7093 = vmatpush1.bf16.msra.mxu0 %v14386_v41 }
0x1407   :  { %12107 = vmatprep.subr.msk.bf16.mxu0 %vm830_vm3, %v12104_v45  ;;  %v14423_v45 = vld [vmem:[%s17692_s25 + $0x414] ss:$16 sps:$4 sm:$0xff]  }
0x140a   :  { %7095 = vmatpush1.bf16.msra.mxu0 %v7042_v37  ;;  %v12145_v37 = vld [vmem:[%s17693_s21 + $0x24] sm:$0xf] }
0x140b   :  { %7279 = vmatprep.subr.bf16.mxu0 %v14395_v51  ;;  %v14418_v51 = vld [vmem:[%s17692_s25 + $0x3f8] ss:$16 sps:$4 sm:$0xff]  }
0x14c8   :  { %v6849_v52 = vpop.f32.mrb[140].mxu0  ;;  %v6890_v53 = vpop.f32.mrb[128].mxu1 }
0x14c9   :  { %v6897_v12 = vadd.f32 %v6849_v52, %v6665_v15  ;;  %v6899_v54 = vadd.f32 %v6890_v53, %v6667_v16  ;;  %v6851_v55 = vpop.f32.mrb[141].mxu0  ;;  %v6892_v56 = vpop.f32.mrb[129].mxu1  ;;  %v14407_v15 = vld [vmem:[%s17692_s25 + $0x3c4] ss:$16 sps:$4 sm:$0xff]   ;;  %v14405_v16 = vld [vmem:[%s17692_s25 + $0x3c0] ss:$16 sps:$4 sm:$0xff]  }
0x14ca   :  { %v6898_v57 = vadd.f32 %v6851_v55, %v6666_v19  ;;  %v6900_v58 = vadd.f32 %v6892_v56, %v6668_v20  ;;  %v6853_v59 = vpop.f32.mrb[142].mxu0  ;;  %v6894_v60 = vpop.f32.mrb[130].mxu1  ;;  %v12123_v19 = vld [vmem:[%s17692_s25 + $0x3e0] sm:$0x11]  ;;  %v12124_v20 = vld [vmem:[%s17692_s25 + $0x3e8] sm:$0x11] }
0x14cb   :  { %v6854_v62 = vpop.f32.mrb[143].mxu0  ;;  %v6895_v46 = vpop.f32.mrb[131].mxu1  ;;  %v12138_v34 = vcombine.high %v12123_v19, %v12123_v19  ;;  %v12137_v35 = vcombine.low %v12123_v19, %v12123_v19  ;;  %v12140_v21 = vcombine.high %v12124_v20, %v12124_v20  ;;  %v12139_v14 = vcombine.low %v12124_v20, %v12124_v20  ;;  %v14426_v52 = vld [vmem:[%s17692_s25 + $0x41c] ss:$16 sps:$4 sm:$0xff]   ;;  %v14424_v53 = vld [vmem:[%s17692_s25 + $0x418] ss:$16 sps:$4 sm:$0xff]  }
0x14cc   :  { %v14432_v55 = vld [vmem:[%s17692_s25 + $0x43c] ss:$16 sps:$4 sm:$0xff]   ;;  %v14430_v56 = vld [vmem:[%s17692_s25 + $0x438] ss:$16 sps:$4 sm:$0xff]   ;;  %v14437_v20 = vld [vmem:[%s17692_s25 + $0x460] ss:$16 sps:$4 sm:$0xff]  }
0x14cd   :  { %v7268_v25 = vsel %vm830_vm3, %v12137_v35, 0  ;;  %v7274_v23 = vsel %vm830_vm3, %v12139_v14, 0  ;;  %v14443_v14 = vld [vmem:[%s17692_s25 + $0x480] ss:$16 sps:$4 sm:$0xff]  }
0x14d0   :  { %v6940_v22 = vpop.f32.mrb[144].mxu0 }
0x14d1   :  { %v6961_v63 = vpack.c.bf16 %v6940_v22, %v6940_v22  ;;  %v13810_v1 = vpop.f32.mrb[145].mxu0 }
0x14d2   :  { %v6943_v5 = vpop.f32.mrb[146].mxu0  ;;  %v14439_v1 = vld [vmem:[%s17692_s25 + $0x464] ss:$16 sps:$4 sm:$0xff]  }
0x14d3   :  { %v13811_v8 = vpop.f32.mrb[147].mxu0  ;;  %12106 = vmatmul.mubr.msk.bf16.vlgmr.msra.gmra.mrb[132].mxu1 %vm332_vm2, %v6961_v63  ;;  %12108 = vmatmul.mubr.msk.bf16.vlgmr.msra.gmra.mrb[148].mxu0 %vm332_vm2, %v6961_v63 }
0x14d4   :  { %13813 = vmatpush3.bf16.msra.mxu1 %v16201_v26  ;;  %13814 = vmatprep.mubr.msk.bf16.mxu1 %vm14796_vm0, %v14795_v0 }
0x14d5   :  { %7280 = vmatpush1.bf16.msra.mxu0 %v14393_v2  ;;  %7320 = vmatprep.subr.bf16.mxu1 %v14398_v3 }
0x14d6   :  { %7281 = vmatprep.subr.bf16.mxu0 %v14401_v6  ;;  %7311 = vmatprep.mubr.bf16.mxu0 %v14797_v4 }
0x14d9   :  { %7282 = vmatpush1.bf16.msra.mxu0 %v14399_v9 }
0x14da   :  { %7283 = vmatprep.subr.bf16.mxu0 %v14407_v15 }
0x14db   :  { %13815 = vmatmul.mubr.msk.bf16.vlgmr.msra.gmra.mrb[136].mxu1 %vm119_vm1, %v12109_v10 }
0x14dc   :  { %7321 = vmatpush1.bf16.msra.mxu1 %v14396_v7  ;;  %7352 = vmatprep.mubr.bf16.mxu1 %v14797_v4 }
0x14dd   :  { %7322 = vmatprep.subr.bf16.mxu1 %v14404_v13  ;;  %7284 = vmatpush1.bf16.msra.mxu0 %v14405_v16 }
0x14de   :  { %12141 = vmatprep.subr.msk.bf16.mxu0 %vm830_vm3, %v12138_v34  ;;  %v14442_v34 = vld [vmem:[%s17692_s25 + $0x46c] ss:$16 sps:$4 sm:$0xff]  }
0x14e0   :  { %7323 = vmatpush1.bf16.msra.mxu1 %v14402_v11 }
0x14e1   :  { %7324 = vmatprep.subr.bf16.mxu1 %v14410_v17  ;;  %7286 = vmatpush1.bf16.msra.mxu0 %v7268_v25 }
0x14e2   :  { %13818 = vmatprep.subr.bf16.mxu0 %v14795_v0 }
0x14e4   :  { %7325 = vmatpush1.bf16.msra.mxu1 %v14408_v18 }
0x14e5   :  { %12143 = vmatprep.subr.msk.bf16.mxu1 %vm830_vm3, %v12140_v21  ;;  %v14445_v21 = vld [vmem:[%s17692_s25 + $0x484] ss:$16 sps:$4 sm:$0xff]  }
0x14e8   :  { %7327 = vmatpush1.bf16.msra.mxu1 %v7274_v23  ;;  %v12181_v23 = vld [vmem:[%s17693_s21 + $0x28] sm:$0xf] }
0x14e9   :  { %7511 = vmatprep.subr.bf16.mxu1 %v14417_v27  ;;  %v14440_v27 = vld [vmem:[%s17692_s25 + $0x468] ss:$16 sps:$4 sm:$0xff]  }
0x15a6   :  { %v7081_v28 = vpop.f32.mrb[132].mxu1  ;;  %v7122_v29 = vpop.f32.mrb[148].mxu0 }
0x15a7   :  { %v7129_v47 = vadd.f32 %v7081_v28, %v6897_v12  ;;  %v7131_v30 = vadd.f32 %v7122_v29, %v6899_v54  ;;  %v7083_v31 = vpop.f32.mrb[133].mxu1  ;;  %v7124_v50 = vpop.f32.mrb[149].mxu0  ;;  %v14429_v12 = vld [vmem:[%s17692_s25 + $0x434] ss:$16 sps:$4 sm:$0xff]   ;;  %v14427_v54 = vld [vmem:[%s17692_s25 + $0x430] ss:$16 sps:$4 sm:$0xff]  }
0x15a8   :  { %v7130_v32 = vadd.f32 %v7083_v31, %v6898_v57  ;;  %v7132_v33 = vadd.f32 %v7124_v50, %v6900_v58  ;;  %v7085_v36 = vpop.f32.mrb[134].mxu1  ;;  %v7126_v38 = vpop.f32.mrb[150].mxu0  ;;  %v12159_v57 = vld [vmem:[%s17692_s25 + $0x450] sm:$0x11]  ;;  %v12160_v58 = vld [vmem:[%s17692_s25 + $0x458] sm:$0x11] }
0x15a9   :  { %v7086_v24 = vpop.f32.mrb[135].mxu1  ;;  %v7127_v39 = vpop.f32.mrb[151].mxu0  ;;  %v12174_v59 = vcombine.high %v12159_v57, %v12159_v57  ;;  %v12173_v60 = vcombine.low %v12159_v57, %v12159_v57  ;;  %v12176_v62 = vcombine.high %v12160_v58, %v12160_v58  ;;  %v12175_v22 = vcombine.low %v12160_v58, %v12160_v58  ;;  %v14448_v28 = vld [vmem:[%s17692_s25 + $0x48c] ss:$16 sps:$4 sm:$0xff]   ;;  %v14446_v29 = vld [vmem:[%s17692_s25 + $0x488] ss:$16 sps:$4 sm:$0xff]  }
0x15aa   :  { %v14454_v31 = vld [vmem:[%s17692_s25 + $0x4ac] ss:$16 sps:$4 sm:$0xff]   ;;  %v14452_v50 = vld [vmem:[%s17692_s25 + $0x4a8] ss:$16 sps:$4 sm:$0xff]   ;;  %v14459_v58 = vld [vmem:[%s17692_s25 + $0x4d0] ss:$16 sps:$4 sm:$0xff]  }
0x15ab   :  { %v7500_v46 = vsel %vm830_vm3, %v12173_v60, 0  ;;  %v7506_v63 = vsel %vm830_vm3, %v12175_v22, 0  ;;  %v14465_v22 = vld [vmem:[%s17692_s25 + $0x4f0] ss:$16 sps:$4 sm:$0xff]  }
0x15ae   :  { %v7172_v40 = vpop.f32.mrb[136].mxu1 }
0x15af   :  { %v7193_v41 = vpack.c.bf16 %v7172_v40, %v7172_v40  ;;  %v13816_v42 = vpop.f32.mrb[137].mxu1 }
0x15b0   :  { %v7175_v44 = vpop.f32.mrb[138].mxu1  ;;  %v14461_v42 = vld [vmem:[%s17692_s25 + $0x4d4] ss:$16 sps:$4 sm:$0xff]  }
0x15b1   :  { %v13817_v48 = vpop.f32.mrb[139].mxu1  ;;  %12142 = vmatmul.mubr.msk.bf16.vlgmr.msra.gmra.mrb[152].mxu0 %vm332_vm2, %v7193_v41  ;;  %12144 = vmatmul.mubr.msk.bf16.vlgmr.msra.gmra.mrb[140].mxu1 %vm332_vm2, %v7193_v41 }
0x15b2   :  { %13819 = vmatpush3.bf16.msra.mxu0 %v16201_v26  ;;  %13820 = vmatprep.mubr.msk.bf16.mxu0 %vm14796_vm0, %v14795_v0 }
0x15b3   :  { %7512 = vmatpush1.bf16.msra.mxu1 %v14415_v61  ;;  %7552 = vmatprep.subr.bf16.mxu0 %v14420_v43 }
0x15b4   :  { %7513 = vmatprep.subr.bf16.mxu1 %v14423_v45  ;;  %7543 = vmatprep.mubr.bf16.mxu1 %v14797_v4 }
0x15b7   :  { %7514 = vmatpush1.bf16.msra.mxu1 %v14421_v49 }
0x15b8   :  { %7515 = vmatprep.subr.bf16.mxu1 %v14429_v12 }
0x15b9   :  { %13821 = vmatmul.mubr.msk.bf16.vlgmr.msra.gmra.mrb[156].mxu0 %vm119_vm1, %v12145_v37 }
0x15ba   :  { %7553 = vmatpush1.bf16.msra.mxu0 %v14418_v51  ;;  %7584 = vmatprep.mubr.bf16.mxu0 %v14797_v4 }
0x15bb   :  { %7554 = vmatprep.subr.bf16.mxu0 %v14426_v52  ;;  %7516 = vmatpush1.bf16.msra.mxu1 %v14427_v54 }
0x15bc   :  { %12177 = vmatprep.subr.msk.bf16.mxu1 %vm830_vm3, %v12174_v59  ;;  %v14464_v59 = vld [vmem:[%s17692_s25 + $0x4dc] ss:$16 sps:$4 sm:$0xff]  }
0x15be   :  { %7555 = vmatpush1.bf16.msra.mxu0 %v14424_v53 }
0x15bf   :  { %7556 = vmatprep.subr.bf16.mxu0 %v14432_v55  ;;  %7518 = vmatpush1.bf16.msra.mxu1 %v7500_v46 }
0x15c0   :  { %13824 = vmatprep.subr.bf16.mxu1 %v14795_v0 }
0x15c2   :  { %7557 = vmatpush1.bf16.msra.mxu0 %v14430_v56 }
0x15c3   :  { %12179 = vmatprep.subr.msk.bf16.mxu0 %vm830_vm3, %v12176_v62  ;;  %v14467_v62 = vld [vmem:[%s17692_s25 + $0x4f4] ss:$16 sps:$4 sm:$0xff]  }
0x15c6   :  { %7559 = vmatpush1.bf16.msra.mxu0 %v7506_v63  ;;  %v12217_v63 = vld [vmem:[%s17693_s21 + $0x2c] sm:$0xf] }
0x15c7   :  { %7743 = vmatprep.subr.bf16.mxu0 %v14439_v1  ;;  %v14462_v1 = vld [vmem:[%s17692_s25 + $0x4d8] ss:$16 sps:$4 sm:$0xff]  }
0x1684   :  { %v7313_v2 = vpop.f32.mrb[152].mxu0  ;;  %v7354_v3 = vpop.f32.mrb[140].mxu1 }
0x1685   :  { %v7361_v5 = vadd.f32 %v7313_v2, %v7129_v47  ;;  %v7363_v6 = vadd.f32 %v7354_v3, %v7131_v30  ;;  %v7315_v8 = vpop.f32.mrb[153].mxu0  ;;  %v7356_v9 = vpop.f32.mrb[141].mxu1  ;;  %v14451_v47 = vld [vmem:[%s17692_s25 + $0x4a4] ss:$16 sps:$4 sm:$0xff]   ;;  %v14449_v30 = vld [vmem:[%s17692_s25 + $0x4a0] ss:$16 sps:$4 sm:$0xff]  }
0x1686   :  { %v7362_v10 = vadd.f32 %v7315_v8, %v7130_v32  ;;  %v7364_v7 = vadd.f32 %v7356_v9, %v7132_v33  ;;  %v7317_v13 = vpop.f32.mrb[154].mxu0  ;;  %v7358_v11 = vpop.f32.mrb[142].mxu1  ;;  %v12195_v32 = vld [vmem:[%s17692_s25 + $0x4c0] sm:$0x11]  ;;  %v12196_v33 = vld [vmem:[%s17692_s25 + $0x4c8] sm:$0x11] }
0x1687   :  { %v7318_v15 = vpop.f32.mrb[155].mxu0  ;;  %v7359_v16 = vpop.f32.mrb[143].mxu1  ;;  %v12210_v36 = vcombine.high %v12195_v32, %v12195_v32  ;;  %v12209_v38 = vcombine.low %v12195_v32, %v12195_v32  ;;  %v12212_v24 = vcombine.high %v12196_v33, %v12196_v33  ;;  %v12211_v40 = vcombine.low %v12196_v33, %v12196_v33  ;;  %v14470_v2 = vld [vmem:[%s17692_s25 + $0x4fc] ss:$16 sps:$4 sm:$0xff]   ;;  %v14468_v3 = vld [vmem:[%s17692_s25 + $0x4f8] ss:$16 sps:$4 sm:$0xff]  }
0x1688   :  { %v14476_v8 = vld [vmem:[%s17692_s25 + $0x51c] ss:$16 sps:$4 sm:$0xff]   ;;  %v14474_v9 = vld [vmem:[%s17692_s25 + $0x518] ss:$16 sps:$4 sm:$0xff]   ;;  %v14481_v33 = vld [vmem:[%s17692_s25 + $0x540] ss:$16 sps:$4 sm:$0xff]  }
0x1689   :  { %v7732_v39 = vsel %vm830_vm3, %v12209_v38, 0  ;;  %v7738_v41 = vsel %vm830_vm3, %v12211_v40, 0  ;;  %v14487_v40 = vld [vmem:[%s17692_s25 + $0x560] ss:$16 sps:$4 sm:$0xff]  }
0x168c   :  { %v7404_v17 = vpop.f32.mrb[156].mxu0 }
0x168d   :  { %v7425_v18 = vpack.c.bf16 %v7404_v17, %v7404_v17  ;;  %v13822_v19 = vpop.f32.mrb[157].mxu0 }
0x168e   :  { %v7407_v35 = vpop.f32.mrb[158].mxu0  ;;  %v14483_v19 = vld [vmem:[%s17692_s25 + $0x544] ss:$16 sps:$4 sm:$0xff]  }
0x168f   :  { %v13823_v25 = vpop.f32.mrb[159].mxu0  ;;  %12178 = vmatmul.mubr.msk.bf16.vlgmr.msra.gmra.mrb[144].mxu1 %vm332_vm2, %v7425_v18  ;;  %12180 = vmatmul.mubr.msk.bf16.vlgmr.msra.gmra.mrb[160].mxu0 %vm332_vm2, %v7425_v18 }
0x1690   :  { %13825 = vmatpush3.bf16.msra.mxu1 %v16201_v26  ;;  %13826 = vmatprep.mubr.msk.bf16.mxu1 %vm14796_vm0, %v14795_v0 }
0x1691   :  { %7744 = vmatpush1.bf16.msra.mxu0 %v14437_v20  ;;  %7784 = vmatprep.subr.bf16.mxu1 %v14442_v34 }
0x1692   :  { %7745 = vmatprep.subr.bf16.mxu0 %v14445_v21  ;;  %7775 = vmatprep.mubr.bf16.mxu0 %v14797_v4 }
0x1695   :  { %7746 = vmatpush1.bf16.msra.mxu0 %v14443_v14 }
0x1696   :  { %7747 = vmatprep.subr.bf16.mxu0 %v14451_v47 }
0x1697   :  { %13827 = vmatmul.mubr.msk.bf16.vlgmr.msra.gmra.mrb[148].mxu1 %vm119_vm1, %v12181_v23 }
0x1698   :  { %7785 = vmatpush1.bf16.msra.mxu1 %v14440_v27  ;;  %7816 = vmatprep.mubr.bf16.mxu1 %v14797_v4 }
0x1699   :  { %7786 = vmatprep.subr.bf16.mxu1 %v14448_v28  ;;  %7748 = vmatpush1.bf16.msra.mxu0 %v14449_v30 }
0x169a   :  { %12213 = vmatprep.subr.msk.bf16.mxu0 %vm830_vm3, %v12210_v36  ;;  %v14486_v36 = vld [vmem:[%s17692_s25 + $0x54c] ss:$16 sps:$4 sm:$0xff]  }
0x169c   :  { %7787 = vmatpush1.bf16.msra.mxu1 %v14446_v29 }
0x169d   :  { %7788 = vmatprep.subr.bf16.mxu1 %v14454_v31  ;;  %7750 = vmatpush1.bf16.msra.mxu0 %v7732_v39 }
0x169e   :  { %13830 = vmatprep.subr.bf16.mxu0 %v14795_v0 }
0x16a0   :  { %7789 = vmatpush1.bf16.msra.mxu1 %v14452_v50 }
0x16a1   :  { %12215 = vmatprep.subr.msk.bf16.mxu1 %vm830_vm3, %v12212_v24  ;;  %v14489_v24 = vld [vmem:[%s17692_s25 + $0x564] ss:$16 sps:$4 sm:$0xff]  }
0x16a4   :  { %7791 = vmatpush1.bf16.msra.mxu1 %v7738_v41  ;;  %v12253_v41 = vld [vmem:[%s17693_s21 + $0x30] sm:$0xf] }
0x16a5   :  { %7975 = vmatprep.subr.bf16.mxu1 %v14461_v42  ;;  %v14484_v42 = vld [vmem:[%s17692_s25 + $0x548] ss:$16 sps:$4 sm:$0xff]  }
0x1762   :  { %v7545_v61 = vpop.f32.mrb[144].mxu1  ;;  %v7586_v43 = vpop.f32.mrb[160].mxu0 }
0x1763   :  { %v7593_v44 = vadd.f32 %v7545_v61, %v7361_v5  ;;  %v7595_v45 = vadd.f32 %v7586_v43, %v7363_v6  ;;  %v7547_v48 = vpop.f32.mrb[145].mxu1  ;;  %v7588_v49 = vpop.f32.mrb[161].mxu0  ;;  %v14473_v5 = vld [vmem:[%s17692_s25 + $0x514] ss:$16 sps:$4 sm:$0xff]   ;;  %v14471_v6 = vld [vmem:[%s17692_s25 + $0x510] ss:$16 sps:$4 sm:$0xff]  }
0x1764   :  { %v7594_v37 = vadd.f32 %v7547_v48, %v7362_v10  ;;  %v7596_v51 = vadd.f32 %v7588_v49, %v7364_v7  ;;  %v7549_v52 = vpop.f32.mrb[146].mxu1  ;;  %v7590_v53 = vpop.f32.mrb[162].mxu0  ;;  %v12231_v10 = vld [vmem:[%s17692_s25 + $0x530] sm:$0x11]  ;;  %v12232_v7 = vld [vmem:[%s17692_s25 + $0x538] sm:$0x11] }
0x1765   :  { %v7550_v12 = vpop.f32.mrb[147].mxu1  ;;  %v7591_v54 = vpop.f32.mrb[163].mxu0  ;;  %v12246_v13 = vcombine.high %v12231_v10, %v12231_v10  ;;  %v12245_v11 = vcombine.low %v12231_v10, %v12231_v10  ;;  %v12248_v15 = vcombine.high %v12232_v7, %v12232_v7  ;;  %v12247_v17 = vcombine.low %v12232_v7, %v12232_v7  ;;  %v14492_v61 = vld [vmem:[%s17692_s25 + $0x56c] ss:$16 sps:$4 sm:$0xff]   ;;  %v14490_v43 = vld [vmem:[%s17692_s25 + $0x568] ss:$16 sps:$4 sm:$0xff]  }
0x1766   :  { %v14498_v48 = vld [vmem:[%s17692_s25 + $0x58c] ss:$16 sps:$4 sm:$0xff]   ;;  %v14496_v49 = vld [vmem:[%s17692_s25 + $0x588] ss:$16 sps:$4 sm:$0xff]   ;;  %v14503_v7 = vld [vmem:[%s17692_s25 + $0x5b0] ss:$16 sps:$4 sm:$0xff]  }
0x1767   :  { %v7964_v16 = vsel %vm830_vm3, %v12245_v11, 0  ;;  %v7970_v18 = vsel %vm830_vm3, %v12247_v17, 0  ;;  %v14509_v17 = vld [vmem:[%s17692_s25 + $0x5d0] ss:$16 sps:$4 sm:$0xff]  }
0x176a   :  { %v7636_v55 = vpop.f32.mrb[148].mxu1 }
0x176b   :  { %v7657_v56 = vpack.c.bf16 %v7636_v55, %v7636_v55  ;;  %v13828_v57 = vpop.f32.mrb[149].mxu1 }
0x176c   :  { %v7639_v60 = vpop.f32.mrb[150].mxu1  ;;  %v14505_v57 = vld [vmem:[%s17692_s25 + $0x5b4] ss:$16 sps:$4 sm:$0xff]  }
0x176d   :  { %v13829_v46 = vpop.f32.mrb[151].mxu1  ;;  %12214 = vmatmul.mubr.msk.bf16.vlgmr.msra.gmra.mrb[164].mxu0 %vm332_vm2, %v7657_v56  ;;  %12216 = vmatmul.mubr.msk.bf16.vlgmr.msra.gmra.mrb[152].mxu1 %vm332_vm2, %v7657_v56 }
0x176e   :  { %13831 = vmatpush3.bf16.msra.mxu0 %v16201_v26  ;;  %13832 = vmatprep.mubr.msk.bf16.mxu0 %vm14796_vm0, %v14795_v0 }
0x176f   :  { %7976 = vmatpush1.bf16.msra.mxu1 %v14459_v58  ;;  %8016 = vmatprep.subr.bf16.mxu0 %v14464_v59 }
0x1770   :  { %7977 = vmatprep.subr.bf16.mxu1 %v14467_v62  ;;  %8007 = vmatprep.mubr.bf16.mxu1 %v14797_v4 }
0x1773   :  { %7978 = vmatpush1.bf16.msra.mxu1 %v14465_v22 }
0x1774   :  { %7979 = vmatprep.subr.bf16.mxu1 %v14473_v5 }
0x1775   :  { %13833 = vmatmul.mubr.msk.bf16.vlgmr.msra.gmra.mrb[168].mxu0 %vm119_vm1, %v12217_v63 }
0x1776   :  { %8017 = vmatpush1.bf16.msra.mxu0 %v14462_v1  ;;  %8048 = vmatprep.mubr.bf16.mxu0 %v14797_v4 }
0x1777   :  { %8018 = vmatprep.subr.bf16.mxu0 %v14470_v2  ;;  %7980 = vmatpush1.bf16.msra.mxu1 %v14471_v6 }
0x1778   :  { %12249 = vmatprep.subr.msk.bf16.mxu1 %vm830_vm3, %v12246_v13  ;;  %v14508_v13 = vld [vmem:[%s17692_s25 + $0x5bc] ss:$16 sps:$4 sm:$0xff]  }
0x177a   :  { %8019 = vmatpush1.bf16.msra.mxu0 %v14468_v3 }
0x177b   :  { %8020 = vmatprep.subr.bf16.mxu0 %v14476_v8  ;;  %7982 = vmatpush1.bf16.msra.mxu1 %v7964_v16 }
0x177c   :  { %13836 = vmatprep.subr.bf16.mxu1 %v14795_v0 }
0x177e   :  { %8021 = vmatpush1.bf16.msra.mxu0 %v14474_v9 }
0x177f   :  { %12251 = vmatprep.subr.msk.bf16.mxu0 %vm830_vm3, %v12248_v15  ;;  %v14511_v15 = vld [vmem:[%s17692_s25 + $0x5d4] ss:$16 sps:$4 sm:$0xff]  }
0x1782   :  { %8023 = vmatpush1.bf16.msra.mxu0 %v7970_v18  ;;  %v12289_v18 = vld [vmem:[%s17693_s21 + $0x34] sm:$0xf] }
0x1783   :  { %8207 = vmatprep.subr.bf16.mxu0 %v14483_v19  ;;  %v14506_v19 = vld [vmem:[%s17692_s25 + $0x5b8] ss:$16 sps:$4 sm:$0xff]  }
0x1840   :  { %v7777_v20 = vpop.f32.mrb[164].mxu0  ;;  %v7818_v34 = vpop.f32.mrb[152].mxu1 }
0x1841   :  { %v7825_v35 = vadd.f32 %v7777_v20, %v7593_v44  ;;  %v7827_v21 = vadd.f32 %v7818_v34, %v7595_v45  ;;  %v7779_v25 = vpop.f32.mrb[165].mxu0  ;;  %v7820_v14 = vpop.f32.mrb[153].mxu1  ;;  %v14495_v44 = vld [vmem:[%s17692_s25 + $0x584] ss:$16 sps:$4 sm:$0xff]   ;;  %v14493_v45 = vld [vmem:[%s17692_s25 + $0x580] ss:$16 sps:$4 sm:$0xff]  }
0x1842   :  { %v7826_v23 = vadd.f32 %v7779_v25, %v7594_v37  ;;  %v7828_v27 = vadd.f32 %v7820_v14, %v7596_v51  ;;  %v7781_v28 = vpop.f32.mrb[166].mxu0  ;;  %v7822_v29 = vpop.f32.mrb[154].mxu1  ;;  %v12267_v37 = vld [vmem:[%s17692_s25 + $0x5a0] sm:$0x11]  ;;  %v12268_v51 = vld [vmem:[%s17692_s25 + $0x5a8] sm:$0x11] }
0x1843   :  { %v7782_v47 = vpop.f32.mrb[167].mxu0  ;;  %v7823_v30 = vpop.f32.mrb[155].mxu1  ;;  %v12282_v52 = vcombine.high %v12267_v37, %v12267_v37  ;;  %v12281_v53 = vcombine.low %v12267_v37, %v12267_v37  ;;  %v12284_v12 = vcombine.high %v12268_v51, %v12268_v51  ;;  %v12283_v55 = vcombine.low %v12268_v51, %v12268_v51  ;;  %v14514_v20 = vld [vmem:[%s17692_s25 + $0x5dc] ss:$16 sps:$4 sm:$0xff]   ;;  %v14512_v34 = vld [vmem:[%s17692_s25 + $0x5d8] ss:$16 sps:$4 sm:$0xff]  }
0x1844   :  { %v14520_v25 = vld [vmem:[%s17692_s25 + $0x5fc] ss:$16 sps:$4 sm:$0xff]   ;;  %v14518_v14 = vld [vmem:[%s17692_s25 + $0x5f8] ss:$16 sps:$4 sm:$0xff]   ;;  %v14525_v51 = vld [vmem:[%s17692_s25 + $0x620] ss:$16 sps:$4 sm:$0xff]  }
0x1845   :  { %v8196_v54 = vsel %vm830_vm3, %v12281_v53, 0  ;;  %v8202_v56 = vsel %vm830_vm3, %v12283_v55, 0  ;;  %v14531_v55 = vld [vmem:[%s17692_s25 + $0x640] ss:$16 sps:$4 sm:$0xff]  }
0x1848   :  { %v7868_v31 = vpop.f32.mrb[168].mxu0 }
0x1849   :  { %v7889_v50 = vpack.c.bf16 %v7868_v31, %v7868_v31  ;;  %v13834_v32 = vpop.f32.mrb[169].mxu0 }
0x184a   :  { %v7871_v38 = vpop.f32.mrb[170].mxu0  ;;  %v14527_v32 = vld [vmem:[%s17692_s25 + $0x624] ss:$16 sps:$4 sm:$0xff]  }
0x184b   :  { %v13835_v39 = vpop.f32.mrb[171].mxu0  ;;  %12250 = vmatmul.mubr.msk.bf16.vlgmr.msra.gmra.mrb[156].mxu1 %vm332_vm2, %v7889_v50  ;;  %12252 = vmatmul.mubr.msk.bf16.vlgmr.msra.gmra.mrb[172].mxu0 %vm332_vm2, %v7889_v50 }
0x184c   :  { %13837 = vmatpush3.bf16.msra.mxu1 %v16201_v26  ;;  %13838 = vmatprep.mubr.msk.bf16.mxu1 %vm14796_vm0, %v14795_v0 }
0x184d   :  { %8208 = vmatpush1.bf16.msra.mxu0 %v14481_v33  ;;  %8248 = vmatprep.subr.bf16.mxu1 %v14486_v36 }
0x184e   :  { %8209 = vmatprep.subr.bf16.mxu0 %v14489_v24  ;;  %8239 = vmatprep.mubr.bf16.mxu0 %v14797_v4 }
0x1851   :  { %8210 = vmatpush1.bf16.msra.mxu0 %v14487_v40 }
0x1852   :  { %8211 = vmatprep.subr.bf16.mxu0 %v14495_v44 }
0x1853   :  { %13839 = vmatmul.mubr.msk.bf16.vlgmr.msra.gmra.mrb[160].mxu1 %vm119_vm1, %v12253_v41 }
0x1854   :  { %8249 = vmatpush1.bf16.msra.mxu1 %v14484_v42  ;;  %8280 = vmatprep.mubr.bf16.mxu1 %v14797_v4 }
0x1855   :  { %8250 = vmatprep.subr.bf16.mxu1 %v14492_v61  ;;  %8212 = vmatpush1.bf16.msra.mxu0 %v14493_v45 }
0x1856   :  { %12285 = vmatprep.subr.msk.bf16.mxu0 %vm830_vm3, %v12282_v52  ;;  %v14530_v52 = vld [vmem:[%s17692_s25 + $0x62c] ss:$16 sps:$4 sm:$0xff]  }
0x1858   :  { %8251 = vmatpush1.bf16.msra.mxu1 %v14490_v43 }
0x1859   :  { %8252 = vmatprep.subr.bf16.mxu1 %v14498_v48  ;;  %8214 = vmatpush1.bf16.msra.mxu0 %v8196_v54 }
0x185a   :  { %13842 = vmatprep.subr.bf16.mxu0 %v14795_v0 }
0x185c   :  { %8253 = vmatpush1.bf16.msra.mxu1 %v14496_v49 }
0x185d   :  { %12287 = vmatprep.subr.msk.bf16.mxu1 %vm830_vm3, %v12284_v12  ;;  %v14533_v12 = vld [vmem:[%s17692_s25 + $0x644] ss:$16 sps:$4 sm:$0xff]  }
0x1860   :  { %8255 = vmatpush1.bf16.msra.mxu1 %v8202_v56  ;;  %v12325_v56 = vld [vmem:[%s17693_s21 + $0x38] sm:$0xf] }
0x1861   :  { %8439 = vmatprep.subr.bf16.mxu1 %v14505_v57  ;;  %v14528_v57 = vld [vmem:[%s17692_s25 + $0x628] ss:$16 sps:$4 sm:$0xff]  }
0x191e   :  { %v8009_v58 = vpop.f32.mrb[156].mxu1  ;;  %v8050_v59 = vpop.f32.mrb[172].mxu0 }
0x191f   :  { %v8057_v60 = vadd.f32 %v8009_v58, %v7825_v35  ;;  %v8059_v62 = vadd.f32 %v8050_v59, %v7827_v21  ;;  %v8011_v46 = vpop.f32.mrb[157].mxu1  ;;  %v8052_v22 = vpop.f32.mrb[173].mxu0  ;;  %v14517_v35 = vld [vmem:[%s17692_s25 + $0x5f4] ss:$16 sps:$4 sm:$0xff]   ;;  %v14515_v21 = vld [vmem:[%s17692_s25 + $0x5f0] ss:$16 sps:$4 sm:$0xff]  }
0x1920   :  { %v8058_v63 = vadd.f32 %v8011_v46, %v7826_v23  ;;  %v8060_v1 = vadd.f32 %v8052_v22, %v7828_v27  ;;  %v8013_v2 = vpop.f32.mrb[158].mxu1  ;;  %v8054_v3 = vpop.f32.mrb[174].mxu0  ;;  %v12303_v23 = vld [vmem:[%s17692_s25 + $0x610] sm:$0x11]  ;;  %v12304_v27 = vld [vmem:[%s17692_s25 + $0x618] sm:$0x11] }
0x1921   :  { %v8014_v5 = vpop.f32.mrb[159].mxu1  ;;  %v8055_v6 = vpop.f32.mrb[175].mxu0  ;;  %v12318_v28 = vcombine.high %v12303_v23, %v12303_v23  ;;  %v12317_v29 = vcombine.low %v12303_v23, %v12303_v23  ;;  %v12320_v47 = vcombine.high %v12304_v27, %v12304_v27  ;;  %v12319_v31 = vcombine.low %v12304_v27, %v12304_v27  ;;  %v14536_v58 = vld [vmem:[%s17692_s25 + $0x64c] ss:$16 sps:$4 sm:$0xff]   ;;  %v14534_v59 = vld [vmem:[%s17692_s25 + $0x648] ss:$16 sps:$4 sm:$0xff]  }
0x1922   :  { %v14542_v46 = vld [vmem:[%s17692_s25 + $0x66c] ss:$16 sps:$4 sm:$0xff]   ;;  %v14540_v22 = vld [vmem:[%s17692_s25 + $0x668] ss:$16 sps:$4 sm:$0xff]   ;;  %v14547_v27 = vld [vmem:[%s17692_s25 + $0x690] ss:$16 sps:$4 sm:$0xff]  }
0x1923   :  { %v8428_v30 = vsel %vm830_vm3, %v12317_v29, 0  ;;  %v8434_v50 = vsel %vm830_vm3, %v12319_v31, 0  ;;  %v14553_v31 = vld [vmem:[%s17692_s25 + $0x6b0] ss:$16 sps:$4 sm:$0xff]  }
0x1926   :  { %v8100_v8 = vpop.f32.mrb[160].mxu1 }
0x1927   :  { %v8121_v9 = vpack.c.bf16 %v8100_v8, %v8100_v8  ;;  %v13840_v10 = vpop.f32.mrb[161].mxu1 }
0x1928   :  { %v8103_v11 = vpop.f32.mrb[162].mxu1  ;;  %v14549_v10 = vld [vmem:[%s17692_s25 + $0x694] ss:$16 sps:$4 sm:$0xff]  }
0x1929   :  { %v13841_v16 = vpop.f32.mrb[163].mxu1  ;;  %12286 = vmatmul.mubr.msk.bf16.vlgmr.msra.gmra.mrb[176].mxu0 %vm332_vm2, %v8121_v9  ;;  %12288 = vmatmul.mubr.msk.bf16.vlgmr.msra.gmra.mrb[164].mxu1 %vm332_vm2, %v8121_v9 }
0x192a   :  { %13843 = vmatpush3.bf16.msra.mxu0 %v16201_v26  ;;  %13844 = vmatprep.mubr.msk.bf16.mxu0 %vm14796_vm0, %v14795_v0 }
0x192b   :  { %8440 = vmatpush1.bf16.msra.mxu1 %v14503_v7  ;;  %8480 = vmatprep.subr.bf16.mxu0 %v14508_v13 }
0x192c   :  { %8441 = vmatprep.subr.bf16.mxu1 %v14511_v15  ;;  %8471 = vmatprep.mubr.bf16.mxu1 %v14797_v4 }
0x192f   :  { %8442 = vmatpush1.bf16.msra.mxu1 %v14509_v17 }
0x1930   :  { %8443 = vmatprep.subr.bf16.mxu1 %v14517_v35 }
0x1931   :  { %13845 = vmatmul.mubr.msk.bf16.vlgmr.msra.gmra.mrb[180].mxu0 %vm119_vm1, %v12289_v18 }
0x1932   :  { %8481 = vmatpush1.bf16.msra.mxu0 %v14506_v19  ;;  %8512 = vmatprep.mubr.bf16.mxu0 %v14797_v4 }
0x1933   :  { %8482 = vmatprep.subr.bf16.mxu0 %v14514_v20  ;;  %8444 = vmatpush1.bf16.msra.mxu1 %v14515_v21 }
0x1934   :  { %12321 = vmatprep.subr.msk.bf16.mxu1 %vm830_vm3, %v12318_v28  ;;  %v14552_v28 = vld [vmem:[%s17692_s25 + $0x69c] ss:$16 sps:$4 sm:$0xff]  }
0x1936   :  { %8483 = vmatpush1.bf16.msra.mxu0 %v14512_v34 }
0x1937   :  { %8484 = vmatprep.subr.bf16.mxu0 %v14520_v25  ;;  %8446 = vmatpush1.bf16.msra.mxu1 %v8428_v30 }
0x1938   :  { %13848 = vmatprep.subr.bf16.mxu1 %v14795_v0 }
0x193a   :  { %8485 = vmatpush1.bf16.msra.mxu0 %v14518_v14 }
0x193b   :  { %12323 = vmatprep.subr.msk.bf16.mxu0 %vm830_vm3, %v12320_v47  ;;  %v14555_v47 = vld [vmem:[%s17692_s25 + $0x6b4] ss:$16 sps:$4 sm:$0xff]  }
0x193e   :  { %8487 = vmatpush1.bf16.msra.mxu0 %v8434_v50  ;;  %v12361_v50 = vld [vmem:[%s17693_s21 + $0x3c] sm:$0xf] }
0x193f   :  { %8671 = vmatprep.subr.bf16.mxu0 %v14527_v32  ;;  %v14550_v32 = vld [vmem:[%s17692_s25 + $0x698] ss:$16 sps:$4 sm:$0xff]  }
0x19fc   :  { %v8241_v33 = vpop.f32.mrb[176].mxu0  ;;  %v8282_v36 = vpop.f32.mrb[164].mxu1 }
0x19fd   :  { %v8289_v38 = vadd.f32 %v8241_v33, %v8057_v60  ;;  %v8291_v24 = vadd.f32 %v8282_v36, %v8059_v62  ;;  %v8243_v39 = vpop.f32.mrb[177].mxu0  ;;  %v8284_v40 = vpop.f32.mrb[165].mxu1  ;;  %v14539_v60 = vld [vmem:[%s17692_s25 + $0x664] ss:$16 sps:$4 sm:$0xff]   ;;  %v14537_v62 = vld [vmem:[%s17692_s25 + $0x660] ss:$16 sps:$4 sm:$0xff]  }
0x19fe   :  { %v8290_v41 = vadd.f32 %v8243_v39, %v8058_v63  ;;  %v8292_v42 = vadd.f32 %v8284_v40, %v8060_v1  ;;  %v8245_v61 = vpop.f32.mrb[178].mxu0  ;;  %v8286_v43 = vpop.f32.mrb[166].mxu1  ;;  %v12339_v63 = vld [vmem:[%s17692_s25 + $0x680] sm:$0x11]  ;;  %v12340_v1 = vld [vmem:[%s17692_s25 + $0x688] sm:$0x11] }
0x19ff   :  { %v8246_v44 = vpop.f32.mrb[179].mxu0  ;;  %v8287_v45 = vpop.f32.mrb[167].mxu1  ;;  %v12354_v2 = vcombine.high %v12339_v63, %v12339_v63  ;;  %v12353_v3 = vcombine.low %v12339_v63, %v12339_v63  ;;  %v12356_v5 = vcombine.high %v12340_v1, %v12340_v1  ;;  %v12355_v8 = vcombine.low %v12340_v1, %v12340_v1  ;;  %v14558_v33 = vld [vmem:[%s17692_s25 + $0x6bc] ss:$16 sps:$4 sm:$0xff]   ;;  %v14556_v36 = vld [vmem:[%s17692_s25 + $0x6b8] ss:$16 sps:$4 sm:$0xff]  }
0x1a00   :  { %v14564_v39 = vld [vmem:[%s17692_s25 + $0x6dc] ss:$16 sps:$4 sm:$0xff]   ;;  %v14562_v40 = vld [vmem:[%s17692_s25 + $0x6d8] ss:$16 sps:$4 sm:$0xff]   ;;  %v14569_v1 = vld [vmem:[%s17692_s25 + $0x700] ss:$16 sps:$4 sm:$0xff]  }
0x1a01   :  { %v8660_v6 = vsel %vm830_vm3, %v12353_v3, 0  ;;  %v8666_v9 = vsel %vm830_vm3, %v12355_v8, 0  ;;  %v14575_v8 = vld [vmem:[%s17692_s25 + $0x720] ss:$16 sps:$4 sm:$0xff]  }
0x1a04   :  { %v8332_v48 = vpop.f32.mrb[180].mxu0 }
0x1a05   :  { %v8353_v49 = vpack.c.bf16 %v8332_v48, %v8332_v48  ;;  %v13846_v37 = vpop.f32.mrb[181].mxu0 }
0x1a06   :  { %v8335_v53 = vpop.f32.mrb[182].mxu0  ;;  %v14571_v37 = vld [vmem:[%s17692_s25 + $0x704] ss:$16 sps:$4 sm:$0xff]  }
0x1a07   :  { %v13847_v54 = vpop.f32.mrb[183].mxu0  ;;  %12322 = vmatmul.mubr.msk.bf16.vlgmr.msra.gmra.mrb[168].mxu1 %vm332_vm2, %v8353_v49  ;;  %12324 = vmatmul.mubr.msk.bf16.vlgmr.msra.gmra.mrb[184].mxu0 %vm332_vm2, %v8353_v49 }
0x1a08   :  { %13849 = vmatpush3.bf16.msra.mxu1 %v16201_v26  ;;  %13850 = vmatprep.mubr.msk.bf16.mxu1 %vm14796_vm0, %v14795_v0 }
0x1a09   :  { %8672 = vmatpush1.bf16.msra.mxu0 %v14525_v51  ;;  %8712 = vmatprep.subr.bf16.mxu1 %v14530_v52 }
0x1a0a   :  { %8673 = vmatprep.subr.bf16.mxu0 %v14533_v12  ;;  %8703 = vmatprep.mubr.bf16.mxu0 %v14797_v4 }
0x1a0d   :  { %8674 = vmatpush1.bf16.msra.mxu0 %v14531_v55 }
0x1a0e   :  { %8675 = vmatprep.subr.bf16.mxu0 %v14539_v60 }
0x1a0f   :  { %13851 = vmatmul.mubr.msk.bf16.vlgmr.msra.gmra.mrb[172].mxu1 %vm119_vm1, %v12325_v56 }
0x1a10   :  { %8713 = vmatpush1.bf16.msra.mxu1 %v14528_v57  ;;  %8744 = vmatprep.mubr.bf16.mxu1 %v14797_v4 }
0x1a11   :  { %8714 = vmatprep.subr.bf16.mxu1 %v14536_v58  ;;  %8676 = vmatpush1.bf16.msra.mxu0 %v14537_v62 }
0x1a12   :  { %12357 = vmatprep.subr.msk.bf16.mxu0 %vm830_vm3, %v12354_v2  ;;  %v14574_v2 = vld [vmem:[%s17692_s25 + $0x70c] ss:$16 sps:$4 sm:$0xff]  }
0x1a14   :  { %8715 = vmatpush1.bf16.msra.mxu1 %v14534_v59 }
0x1a15   :  { %8716 = vmatprep.subr.bf16.mxu1 %v14542_v46  ;;  %8678 = vmatpush1.bf16.msra.mxu0 %v8660_v6 }
0x1a16   :  { %13854 = vmatprep.subr.bf16.mxu0 %v14795_v0 }
0x1a18   :  { %8717 = vmatpush1.bf16.msra.mxu1 %v14540_v22 }
0x1a19   :  { %12359 = vmatprep.subr.msk.bf16.mxu1 %vm830_vm3, %v12356_v5  ;;  %v14577_v5 = vld [vmem:[%s17692_s25 + $0x724] ss:$16 sps:$4 sm:$0xff]  }
0x1a1c   :  { %8719 = vmatpush1.bf16.msra.mxu1 %v8666_v9  ;;  %v12397_v9 = vld [vmem:[%s17693_s21 + $0x40] sm:$0xf] }
0x1a1d   :  { %8903 = vmatprep.subr.bf16.mxu1 %v14549_v10  ;;  %v14572_v10 = vld [vmem:[%s17692_s25 + $0x708] ss:$16 sps:$4 sm:$0xff]  }
0x1ada   :  { %v8473_v7 = vpop.f32.mrb[168].mxu1  ;;  %v8514_v13 = vpop.f32.mrb[184].mxu0 }
0x1adb   :  { %v8521_v11 = vadd.f32 %v8473_v7, %v8289_v38  ;;  %v8523_v15 = vadd.f32 %v8514_v13, %v8291_v24  ;;  %v8475_v16 = vpop.f32.mrb[169].mxu1  ;;  %v8516_v17 = vpop.f32.mrb[185].mxu0  ;;  %v14561_v38 = vld [vmem:[%s17692_s25 + $0x6d4] ss:$16 sps:$4 sm:$0xff]   ;;  %v14559_v24 = vld [vmem:[%s17692_s25 + $0x6d0] ss:$16 sps:$4 sm:$0xff]  }
0x1adc   :  { %v8522_v18 = vadd.f32 %v8475_v16, %v8290_v41  ;;  %v8524_v19 = vadd.f32 %v8516_v17, %v8292_v42  ;;  %v8477_v20 = vpop.f32.mrb[170].mxu1  ;;  %v8518_v34 = vpop.f32.mrb[186].mxu0  ;;  %v12375_v41 = vld [vmem:[%s17692_s25 + $0x6f0] sm:$0x11]  ;;  %v12376_v42 = vld [vmem:[%s17692_s25 + $0x6f8] sm:$0x11] }
0x1add   :  { %v8478_v35 = vpop.f32.mrb[171].mxu1  ;;  %v8519_v21 = vpop.f32.mrb[187].mxu0  ;;  %v12390_v61 = vcombine.high %v12375_v41, %v12375_v41  ;;  %v12389_v43 = vcombine.low %v12375_v41, %v12375_v41  ;;  %v12392_v44 = vcombine.high %v12376_v42, %v12376_v42  ;;  %v12391_v48 = vcombine.low %v12376_v42, %v12376_v42  ;;  %v14580_v7 = vld [vmem:[%s17692_s25 + $0x72c] ss:$16 sps:$4 sm:$0xff]   ;;  %v14578_v13 = vld [vmem:[%s17692_s25 + $0x728] ss:$16 sps:$4 sm:$0xff]  }
0x1ade   :  { %v14586_v16 = vld [vmem:[%s17692_s25 + $0x74c] ss:$16 sps:$4 sm:$0xff]   ;;  %v14584_v17 = vld [vmem:[%s17692_s25 + $0x748] ss:$16 sps:$4 sm:$0xff]   ;;  %v14591_v42 = vld [vmem:[%s17692_s25 + $0x770] ss:$16 sps:$4 sm:$0xff]  }
0x1adf   :  { %v8892_v45 = vsel %vm830_vm3, %v12389_v43, 0  ;;  %v8898_v49 = vsel %vm830_vm3, %v12391_v48, 0  ;;  %v14597_v48 = vld [vmem:[%s17692_s25 + $0x790] ss:$16 sps:$4 sm:$0xff]  }
0x1ae2   :  { %v8564_v25 = vpop.f32.mrb[172].mxu1 }
0x1ae3   :  { %v8585_v14 = vpack.c.bf16 %v8564_v25, %v8564_v25  ;;  %v13852_v23 = vpop.f32.mrb[173].mxu1 }
0x1ae4   :  { %v8567_v29 = vpop.f32.mrb[174].mxu1  ;;  %v14593_v23 = vld [vmem:[%s17692_s25 + $0x774] ss:$16 sps:$4 sm:$0xff]  }
0x1ae5   :  { %v13853_v30 = vpop.f32.mrb[175].mxu1  ;;  %12358 = vmatmul.mubr.msk.bf16.vlgmr.msra.gmra.mrb[188].mxu0 %vm332_vm2, %v8585_v14  ;;  %12360 = vmatmul.mubr.msk.bf16.vlgmr.msra.gmra.mrb[176].mxu1 %vm332_vm2, %v8585_v14 }
0x1ae6   :  { %13855 = vmatpush3.bf16.msra.mxu0 %v16201_v26  ;;  %13856 = vmatprep.mubr.msk.bf16.mxu0 %vm14796_vm0, %v14795_v0 }
0x1ae7   :  { %8904 = vmatpush1.bf16.msra.mxu1 %v14547_v27  ;;  %8944 = vmatprep.subr.bf16.mxu0 %v14552_v28 }
0x1ae8   :  { %8905 = vmatprep.subr.bf16.mxu1 %v14555_v47  ;;  %8935 = vmatprep.mubr.bf16.mxu1 %v14797_v4 }
0x1aeb   :  { %8906 = vmatpush1.bf16.msra.mxu1 %v14553_v31 }
0x1aec   :  { %8907 = vmatprep.subr.bf16.mxu1 %v14561_v38 }
0x1aed   :  { %13857 = vmatmul.mubr.msk.bf16.vlgmr.msra.gmra.mrb[192].mxu0 %vm119_vm1, %v12361_v50 }
0x1aee   :  { %8945 = vmatpush1.bf16.msra.mxu0 %v14550_v32  ;;  %8976 = vmatprep.mubr.bf16.mxu0 %v14797_v4 }
0x1aef   :  { %8946 = vmatprep.subr.bf16.mxu0 %v14558_v33  ;;  %8908 = vmatpush1.bf16.msra.mxu1 %v14559_v24 }
0x1af0   :  { %12393 = vmatprep.subr.msk.bf16.mxu1 %vm830_vm3, %v12390_v61  ;;  %v14596_v61 = vld [vmem:[%s17692_s25 + $0x77c] ss:$16 sps:$4 sm:$0xff]  }
0x1af2   :  { %8947 = vmatpush1.bf16.msra.mxu0 %v14556_v36 }
0x1af3   :  { %8948 = vmatprep.subr.bf16.mxu0 %v14564_v39  ;;  %8910 = vmatpush1.bf16.msra.mxu1 %v8892_v45 }
0x1af4   :  { %13860 = vmatprep.subr.bf16.mxu1 %v14795_v0 }
0x1af6   :  { %8949 = vmatpush1.bf16.msra.mxu0 %v14562_v40 }
0x1af7   :  { %12395 = vmatprep.subr.msk.bf16.mxu0 %vm830_vm3, %v12392_v44  ;;  %v14599_v44 = vld [vmem:[%s17692_s25 + $0x794] ss:$16 sps:$4 sm:$0xff]  }
0x1afa   :  { %8951 = vmatpush1.bf16.msra.mxu0 %v8898_v49  ;;  %v12433_v49 = vld [vmem:[%s17693_s21 + $0x44] sm:$0xf] }
0x1afb   :  { %9135 = vmatprep.subr.bf16.mxu0 %v14571_v37  ;;  %v14594_v37 = vld [vmem:[%s17692_s25 + $0x778] ss:$16 sps:$4 sm:$0xff]  }
0x1bb8   :  { %v8705_v51 = vpop.f32.mrb[188].mxu0  ;;  %v8746_v52 = vpop.f32.mrb[176].mxu1 }
0x1bb9   :  { %v8753_v53 = vadd.f32 %v8705_v51, %v8521_v11  ;;  %v8755_v12 = vadd.f32 %v8746_v52, %v8523_v15  ;;  %v8707_v54 = vpop.f32.mrb[189].mxu0  ;;  %v8748_v55 = vpop.f32.mrb[177].mxu1  ;;  %v14583_v11 = vld [vmem:[%s17692_s25 + $0x744] ss:$16 sps:$4 sm:$0xff]   ;;  %v14581_v15 = vld [vmem:[%s17692_s25 + $0x740] ss:$16 sps:$4 sm:$0xff]  }
0x1bba   :  { %v8754_v56 = vadd.f32 %v8707_v54, %v8522_v18  ;;  %v8756_v57 = vadd.f32 %v8748_v55, %v8524_v19  ;;  %v8709_v58 = vpop.f32.mrb[190].mxu0  ;;  %v8750_v59 = vpop.f32.mrb[178].mxu1  ;;  %v12411_v18 = vld [vmem:[%s17692_s25 + $0x760] sm:$0x11]  ;;  %v12412_v19 = vld [vmem:[%s17692_s25 + $0x768] sm:$0x11] }
0x1bbb   :  { %v8710_v60 = vpop.f32.mrb[191].mxu0  ;;  %v8751_v62 = vpop.f32.mrb[179].mxu1  ;;  %v12426_v20 = vcombine.high %v12411_v18, %v12411_v18  ;;  %v12425_v34 = vcombine.low %v12411_v18, %v12411_v18  ;;  %v12428_v35 = vcombine.high %v12412_v19, %v12412_v19  ;;  %v12427_v25 = vcombine.low %v12412_v19, %v12412_v19  ;;  %v14602_v51 = vld [vmem:[%s17692_s25 + $0x79c] ss:$16 sps:$4 sm:$0xff]   ;;  %v14600_v52 = vld [vmem:[%s17692_s25 + $0x798] ss:$16 sps:$4 sm:$0xff]  }
0x1bbc   :  { %v14608_v54 = vld [vmem:[%s17692_s25 + $0x7bc] ss:$16 sps:$4 sm:$0xff]   ;;  %v14606_v55 = vld [vmem:[%s17692_s25 + $0x7b8] ss:$16 sps:$4 sm:$0xff]   ;;  %v14613_v19 = vld [vmem:[%s17692_s25 + $0x7e0] ss:$16 sps:$4 sm:$0xff]  }
0x1bbd   :  { %v9124_v21 = vsel %vm830_vm3, %v12425_v34, 0  ;;  %v9130_v14 = vsel %vm830_vm3, %v12427_v25, 0  ;;  %v14619_v25 = vld [vmem:[%s17692_s25 + $0x800] ss:$16 sps:$4 sm:$0xff]  }
0x1bc0   :  { %v8796_v46 = vpop.f32.mrb[192].mxu0 }
0x1bc1   :  { %v8817_v22 = vpack.c.bf16 %v8796_v46, %v8796_v46  ;;  %v13858_v63 = vpop.f32.mrb[193].mxu0 }
0x1bc2   :  { %v8799_v3 = vpop.f32.mrb[194].mxu0  ;;  %v14615_v63 = vld [vmem:[%s17692_s25 + $0x7e4] ss:$16 sps:$4 sm:$0xff]  }
0x1bc3   :  { %v13859_v6 = vpop.f32.mrb[195].mxu0  ;;  %12394 = vmatmul.mubr.msk.bf16.vlgmr.msra.gmra.mrb[180].mxu1 %vm332_vm2, %v8817_v22  ;;  %12396 = vmatmul.mubr.msk.bf16.vlgmr.msra.gmra.mrb[196].mxu0 %vm332_vm2, %v8817_v22 }
0x1bc4   :  { %13861 = vmatpush3.bf16.msra.mxu1 %v16201_v26  ;;  %13862 = vmatprep.mubr.msk.bf16.mxu1 %vm14796_vm0, %v14795_v0 }
0x1bc5   :  { %9136 = vmatpush1.bf16.msra.mxu0 %v14569_v1  ;;  %9176 = vmatprep.subr.bf16.mxu1 %v14574_v2 }
0x1bc6   :  { %9137 = vmatprep.subr.bf16.mxu0 %v14577_v5  ;;  %9167 = vmatprep.mubr.bf16.mxu0 %v14797_v4 }
0x1bc9   :  { %9138 = vmatpush1.bf16.msra.mxu0 %v14575_v8 }
0x1bca   :  { %9139 = vmatprep.subr.bf16.mxu0 %v14583_v11 }
0x1bcb   :  { %13863 = vmatmul.mubr.msk.bf16.vlgmr.msra.gmra.mrb[184].mxu1 %vm119_vm1, %v12397_v9 }
0x1bcc   :  { %9177 = vmatpush1.bf16.msra.mxu1 %v14572_v10  ;;  %9208 = vmatprep.mubr.bf16.mxu1 %v14797_v4 }
0x1bcd   :  { %9178 = vmatprep.subr.bf16.mxu1 %v14580_v7  ;;  %9140 = vmatpush1.bf16.msra.mxu0 %v14581_v15 }
0x1bce   :  { %12429 = vmatprep.subr.msk.bf16.mxu0 %vm830_vm3, %v12426_v20  ;;  %v14618_v20 = vld [vmem:[%s17692_s25 + $0x7ec] ss:$16 sps:$4 sm:$0xff]  }
0x1bd0   :  { %9179 = vmatpush1.bf16.msra.mxu1 %v14578_v13 }
0x1bd1   :  { %9180 = vmatprep.subr.bf16.mxu1 %v14586_v16  ;;  %9142 = vmatpush1.bf16.msra.mxu0 %v9124_v21 }
0x1bd2   :  { %13866 = vmatprep.subr.bf16.mxu0 %v14795_v0 }
0x1bd4   :  { %9181 = vmatpush1.bf16.msra.mxu1 %v14584_v17 }
0x1bd5   :  { %12431 = vmatprep.subr.msk.bf16.mxu1 %vm830_vm3, %v12428_v35  ;;  %v14621_v35 = vld [vmem:[%s17692_s25 + $0x804] ss:$16 sps:$4 sm:$0xff]  }
0x1bd8   :  { %9183 = vmatpush1.bf16.msra.mxu1 %v9130_v14  ;;  %v12469_v14 = vld [vmem:[%s17693_s21 + $0x48] sm:$0xf] }
0x1bd9   :  { %9367 = vmatprep.subr.bf16.mxu1 %v14593_v23  ;;  %v14616_v23 = vld [vmem:[%s17692_s25 + $0x7e8] ss:$16 sps:$4 sm:$0xff]  }
0x1c96   :  { %v8937_v27 = vpop.f32.mrb[180].mxu1  ;;  %v8978_v28 = vpop.f32.mrb[196].mxu0 }
0x1c97   :  { %v8985_v29 = vadd.f32 %v8937_v27, %v8753_v53  ;;  %v8987_v47 = vadd.f32 %v8978_v28, %v8755_v12  ;;  %v8939_v30 = vpop.f32.mrb[181].mxu1  ;;  %v8980_v31 = vpop.f32.mrb[197].mxu0  ;;  %v14605_v53 = vld [vmem:[%s17692_s25 + $0x7b4] ss:$16 sps:$4 sm:$0xff]   ;;  %v14603_v12 = vld [vmem:[%s17692_s25 + $0x7b0] ss:$16 sps:$4 sm:$0xff]  }
0x1c98   :  { %v8986_v50 = vadd.f32 %v8939_v30, %v8754_v56  ;;  %v8988_v32 = vadd.f32 %v8980_v31, %v8756_v57  ;;  %v8941_v33 = vpop.f32.mrb[182].mxu1  ;;  %v8982_v36 = vpop.f32.mrb[198].mxu0  ;;  %v12447_v56 = vld [vmem:[%s17692_s25 + $0x7d0] sm:$0x11]  ;;  %v12448_v57 = vld [vmem:[%s17692_s25 + $0x7d8] sm:$0x11] }
0x1c99   :  { %v8942_v38 = vpop.f32.mrb[183].mxu1  ;;  %v8983_v24 = vpop.f32.mrb[199].mxu0  ;;  %v12462_v58 = vcombine.high %v12447_v56, %v12447_v56  ;;  %v12461_v59 = vcombine.low %v12447_v56, %v12447_v56  ;;  %v12464_v60 = vcombine.high %v12448_v57, %v12448_v57  ;;  %v12463_v46 = vcombine.low %v12448_v57, %v12448_v57  ;;  %v14624_v27 = vld [vmem:[%s17692_s25 + $0x80c] ss:$16 sps:$4 sm:$0xff]   ;;  %v14622_v28 = vld [vmem:[%s17692_s25 + $0x808] ss:$16 sps:$4 sm:$0xff]  }
0x1c9a   :  { %v14630_v30 = vld [vmem:[%s17692_s25 + $0x82c] ss:$16 sps:$4 sm:$0xff]   ;;  %v14628_v31 = vld [vmem:[%s17692_s25 + $0x828] ss:$16 sps:$4 sm:$0xff]   ;;  %v14635_v57 = vld [vmem:[%s17692_s25 + $0x850] ss:$16 sps:$4 sm:$0xff]  }
0x1c9b   :  { %v9356_v62 = vsel %vm830_vm3, %v12461_v59, 0  ;;  %v9362_v22 = vsel %vm830_vm3, %v12463_v46, 0  ;;  %v14641_v46 = vld [vmem:[%s17692_s25 + $0x870] ss:$16 sps:$4 sm:$0xff]  }
0x1c9e   :  { %v9028_v39 = vpop.f32.mrb[184].mxu1 }
0x1c9f   :  { %v9049_v40 = vpack.c.bf16 %v9028_v39, %v9028_v39  ;;  %v13864_v41 = vpop.f32.mrb[185].mxu1 }
0x1ca0   :  { %v9031_v43 = vpop.f32.mrb[186].mxu1  ;;  %v14637_v41 = vld [vmem:[%s17692_s25 + $0x854] ss:$16 sps:$4 sm:$0xff]  }
0x1ca1   :  { %v13865_v45 = vpop.f32.mrb[187].mxu1  ;;  %12430 = vmatmul.mubr.msk.bf16.vlgmr.msra.gmra.mrb[200].mxu0 %vm332_vm2, %v9049_v40  ;;  %12432 = vmatmul.mubr.msk.bf16.vlgmr.msra.gmra.mrb[188].mxu1 %vm332_vm2, %v9049_v40 }
0x1ca2   :  { %13867 = vmatpush3.bf16.msra.mxu0 %v16201_v26  ;;  %13868 = vmatprep.mubr.msk.bf16.mxu0 %vm14796_vm0, %v14795_v0 }
0x1ca3   :  { %9368 = vmatpush1.bf16.msra.mxu1 %v14591_v42  ;;  %9408 = vmatprep.subr.bf16.mxu0 %v14596_v61 }
0x1ca4   :  { %9369 = vmatprep.subr.bf16.mxu1 %v14599_v44  ;;  %9399 = vmatprep.mubr.bf16.mxu1 %v14797_v4 }
0x1ca7   :  { %9370 = vmatpush1.bf16.msra.mxu1 %v14597_v48 }
0x1ca8   :  { %9371 = vmatprep.subr.bf16.mxu1 %v14605_v53 }
0x1ca9   :  { %13869 = vmatmul.mubr.msk.bf16.vlgmr.msra.gmra.mrb[204].mxu0 %vm119_vm1, %v12433_v49 }
0x1caa   :  { %9409 = vmatpush1.bf16.msra.mxu0 %v14594_v37  ;;  %9440 = vmatprep.mubr.bf16.mxu0 %v14797_v4 }
0x1cab   :  { %9410 = vmatprep.subr.bf16.mxu0 %v14602_v51  ;;  %9372 = vmatpush1.bf16.msra.mxu1 %v14603_v12 }
0x1cac   :  { %12465 = vmatprep.subr.msk.bf16.mxu1 %vm830_vm3, %v12462_v58  ;;  %v14640_v58 = vld [vmem:[%s17692_s25 + $0x85c] ss:$16 sps:$4 sm:$0xff]  }
0x1cae   :  { %9411 = vmatpush1.bf16.msra.mxu0 %v14600_v52 }
0x1caf   :  { %9412 = vmatprep.subr.bf16.mxu0 %v14608_v54  ;;  %9374 = vmatpush1.bf16.msra.mxu1 %v9356_v62 }
0x1cb0   :  { %13872 = vmatprep.subr.bf16.mxu1 %v14795_v0 }
0x1cb2   :  { %9413 = vmatpush1.bf16.msra.mxu0 %v14606_v55 }
0x1cb3   :  { %12467 = vmatprep.subr.msk.bf16.mxu0 %vm830_vm3, %v12464_v60  ;;  %v14643_v60 = vld [vmem:[%s17692_s25 + $0x874] ss:$16 sps:$4 sm:$0xff]  }
0x1cb6   :  { %9415 = vmatpush1.bf16.msra.mxu0 %v9362_v22  ;;  %v12505_v22 = vld [vmem:[%s17693_s21 + $0x4c] sm:$0xf] }
0x1cb7   :  { %9599 = vmatprep.subr.bf16.mxu0 %v14615_v63  ;;  %v14638_v63 = vld [vmem:[%s17692_s25 + $0x858] ss:$16 sps:$4 sm:$0xff]  }
0x1d74   :  { %v9169_v1 = vpop.f32.mrb[200].mxu0  ;;  %v9210_v2 = vpop.f32.mrb[188].mxu1 }
0x1d75   :  { %v9217_v3 = vadd.f32 %v9169_v1, %v8985_v29  ;;  %v9219_v5 = vadd.f32 %v9210_v2, %v8987_v47  ;;  %v9171_v6 = vpop.f32.mrb[201].mxu0  ;;  %v9212_v8 = vpop.f32.mrb[189].mxu1  ;;  %v14627_v29 = vld [vmem:[%s17692_s25 + $0x824] ss:$16 sps:$4 sm:$0xff]   ;;  %v14625_v47 = vld [vmem:[%s17692_s25 + $0x820] ss:$16 sps:$4 sm:$0xff]  }
0x1d76   :  { %v9218_v9 = vadd.f32 %v9171_v6, %v8986_v50  ;;  %v9220_v10 = vadd.f32 %v9212_v8, %v8988_v32  ;;  %v9173_v7 = vpop.f32.mrb[202].mxu0  ;;  %v9214_v13 = vpop.f32.mrb[190].mxu1  ;;  %v12483_v50 = vld [vmem:[%s17692_s25 + $0x840] sm:$0x11]  ;;  %v12484_v32 = vld [vmem:[%s17692_s25 + $0x848] sm:$0x11] }
0x1d77   :  { %v9174_v11 = vpop.f32.mrb[203].mxu0  ;;  %v9215_v15 = vpop.f32.mrb[191].mxu1  ;;  %v12498_v33 = vcombine.high %v12483_v50, %v12483_v50  ;;  %v12497_v36 = vcombine.low %v12483_v50, %v12483_v50  ;;  %v12500_v38 = vcombine.high %v12484_v32, %v12484_v32  ;;  %v12499_v39 = vcombine.low %v12484_v32, %v12484_v32  ;;  %v14646_v1 = vld [vmem:[%s17692_s25 + $0x87c] ss:$16 sps:$4 sm:$0xff]   ;;  %v14644_v2 = vld [vmem:[%s17692_s25 + $0x878] ss:$16 sps:$4 sm:$0xff]  }
0x1d78   :  { %v14652_v6 = vld [vmem:[%s17692_s25 + $0x89c] ss:$16 sps:$4 sm:$0xff]   ;;  %v14650_v8 = vld [vmem:[%s17692_s25 + $0x898] ss:$16 sps:$4 sm:$0xff]   ;;  %v14657_v32 = vld [vmem:[%s17692_s25 + $0x8c0] ss:$16 sps:$4 sm:$0xff]  }
0x1d79   :  { %v9588_v24 = vsel %vm830_vm3, %v12497_v36, 0  ;;  %v9594_v40 = vsel %vm830_vm3, %v12499_v39, 0  ;;  %v14663_v39 = vld [vmem:[%s17692_s25 + $0x8e0] ss:$16 sps:$4 sm:$0xff]  }
0x1d7c   :  { %v9260_v16 = vpop.f32.mrb[204].mxu0 }
0x1d7d   :  { %v9281_v17 = vpack.c.bf16 %v9260_v16, %v9260_v16  ;;  %v13870_v18 = vpop.f32.mrb[205].mxu0 }
0x1d7e   :  { %v9263_v34 = vpop.f32.mrb[206].mxu0  ;;  %v14659_v18 = vld [vmem:[%s17692_s25 + $0x8c4] ss:$16 sps:$4 sm:$0xff]  }
0x1d7f   :  { %v13871_v21 = vpop.f32.mrb[207].mxu0  ;;  %12466 = vmatmul.mubr.msk.bf16.vlgmr.msra.gmra.mrb[192].mxu1 %vm332_vm2, %v9281_v17  ;;  %12468 = vmatmul.mubr.msk.bf16.vlgmr.msra.gmra.mrb[208].mxu0 %vm332_vm2, %v9281_v17 }
0x1d80   :  { %13873 = vmatpush3.bf16.msra.mxu1 %v16201_v26  ;;  %13874 = vmatprep.mubr.msk.bf16.mxu1 %vm14796_vm0, %v14795_v0 }
0x1d81   :  { %9600 = vmatpush1.bf16.msra.mxu0 %v14613_v19  ;;  %9640 = vmatprep.subr.bf16.mxu1 %v14618_v20 }
0x1d82   :  { %9601 = vmatprep.subr.bf16.mxu0 %v14621_v35  ;;  %9631 = vmatprep.mubr.bf16.mxu0 %v14797_v4 }
0x1d85   :  { %9602 = vmatpush1.bf16.msra.mxu0 %v14619_v25 }
0x1d86   :  { %9603 = vmatprep.subr.bf16.mxu0 %v14627_v29 }
0x1d87   :  { %13875 = vmatmul.mubr.msk.bf16.vlgmr.msra.gmra.mrb[196].mxu1 %vm119_vm1, %v12469_v14 }
0x1d88   :  { %9641 = vmatpush1.bf16.msra.mxu1 %v14616_v23  ;;  %9672 = vmatprep.mubr.bf16.mxu1 %v14797_v4 }
0x1d89   :  { %9642 = vmatprep.subr.bf16.mxu1 %v14624_v27  ;;  %9604 = vmatpush1.bf16.msra.mxu0 %v14625_v47 }
0x1d8a   :  { %12501 = vmatprep.subr.msk.bf16.mxu0 %vm830_vm3, %v12498_v33  ;;  %v14662_v33 = vld [vmem:[%s17692_s25 + $0x8cc] ss:$16 sps:$4 sm:$0xff]  }
0x1d8c   :  { %9643 = vmatpush1.bf16.msra.mxu1 %v14622_v28 }
0x1d8d   :  { %9644 = vmatprep.subr.bf16.mxu1 %v14630_v30  ;;  %9606 = vmatpush1.bf16.msra.mxu0 %v9588_v24 }
0x1d8e   :  { %13878 = vmatprep.subr.bf16.mxu0 %v14795_v0 }
0x1d90   :  { %9645 = vmatpush1.bf16.msra.mxu1 %v14628_v31 }
0x1d91   :  { %12503 = vmatprep.subr.msk.bf16.mxu1 %vm830_vm3, %v12500_v38  ;;  %v14665_v38 = vld [vmem:[%s17692_s25 + $0x8e4] ss:$16 sps:$4 sm:$0xff]  }
0x1d94   :  { %9647 = vmatpush1.bf16.msra.mxu1 %v9594_v40  ;;  %v12541_v40 = vld [vmem:[%s17693_s21 + $0x50] sm:$0xf] }
0x1d95   :  { %9831 = vmatprep.subr.bf16.mxu1 %v14637_v41  ;;  %v14660_v41 = vld [vmem:[%s17692_s25 + $0x8c8] ss:$16 sps:$4 sm:$0xff]  }
0x1e52   :  { %v9401_v42 = vpop.f32.mrb[192].mxu1  ;;  %v9442_v61 = vpop.f32.mrb[208].mxu0 }
0x1e53   :  { %v9449_v43 = vadd.f32 %v9401_v42, %v9217_v3  ;;  %v9451_v44 = vadd.f32 %v9442_v61, %v9219_v5  ;;  %v9403_v45 = vpop.f32.mrb[193].mxu1  ;;  %v9444_v48 = vpop.f32.mrb[209].mxu0  ;;  %v14649_v3 = vld [vmem:[%s17692_s25 + $0x894] ss:$16 sps:$4 sm:$0xff]   ;;  %v14647_v5 = vld [vmem:[%s17692_s25 + $0x890] ss:$16 sps:$4 sm:$0xff]  }
0x1e54   :  { %v9450_v49 = vadd.f32 %v9403_v45, %v9218_v9  ;;  %v9452_v37 = vadd.f32 %v9444_v48, %v9220_v10  ;;  %v9405_v51 = vpop.f32.mrb[194].mxu1  ;;  %v9446_v52 = vpop.f32.mrb[210].mxu0  ;;  %v12519_v9 = vld [vmem:[%s17692_s25 + $0x8b0] sm:$0x11]  ;;  %v12520_v10 = vld [vmem:[%s17692_s25 + $0x8b8] sm:$0x11] }
0x1e55   :  { %v9406_v53 = vpop.f32.mrb[195].mxu1  ;;  %v9447_v12 = vpop.f32.mrb[211].mxu0  ;;  %v12534_v7 = vcombine.high %v12519_v9, %v12519_v9  ;;  %v12533_v13 = vcombine.low %v12519_v9, %v12519_v9  ;;  %v12536_v11 = vcombine.high %v12520_v10, %v12520_v10  ;;  %v12535_v16 = vcombine.low %v12520_v10, %v12520_v10  ;;  %v14668_v42 = vld [vmem:[%s17692_s25 + $0x8ec] ss:$16 sps:$4 sm:$0xff]   ;;  %v14666_v61 = vld [vmem:[%s17692_s25 + $0x8e8] ss:$16 sps:$4 sm:$0xff]  }
0x1e56   :  { %v14674_v45 = vld [vmem:[%s17692_s25 + $0x90c] ss:$16 sps:$4 sm:$0xff]   ;;  %v14672_v48 = vld [vmem:[%s17692_s25 + $0x908] ss:$16 sps:$4 sm:$0xff]   ;;  %v14679_v10 = vld [vmem:[%s17692_s25 + $0x930] ss:$16 sps:$4 sm:$0xff]  }
0x1e57   :  { %v9820_v15 = vsel %vm830_vm3, %v12533_v13, 0  ;;  %v9826_v17 = vsel %vm830_vm3, %v12535_v16, 0  ;;  %v14685_v16 = vld [vmem:[%s17692_s25 + $0x950] ss:$16 sps:$4 sm:$0xff]  }
0x1e5a   :  { %v9492_v54 = vpop.f32.mrb[196].mxu1 }
0x1e5b   :  { %v9513_v55 = vpack.c.bf16 %v9492_v54, %v9492_v54  ;;  %v13876_v56 = vpop.f32.mrb[197].mxu1 }
0x1e5c   :  { %v9495_v59 = vpop.f32.mrb[198].mxu1  ;;  %v14681_v56 = vld [vmem:[%s17692_s25 + $0x934] ss:$16 sps:$4 sm:$0xff]  }
0x1e5d   :  { %v13877_v62 = vpop.f32.mrb[199].mxu1  ;;  %12502 = vmatmul.mubr.msk.bf16.vlgmr.msra.gmra.mrb[212].mxu0 %vm332_vm2, %v9513_v55  ;;  %12504 = vmatmul.mubr.msk.bf16.vlgmr.msra.gmra.mrb[200].mxu1 %vm332_vm2, %v9513_v55 }
0x1e5e   :  { %13879 = vmatpush3.bf16.msra.mxu0 %v16201_v26  ;;  %13880 = vmatprep.mubr.msk.bf16.mxu0 %vm14796_vm0, %v14795_v0 }
0x1e5f   :  { %9832 = vmatpush1.bf16.msra.mxu1 %v14635_v57  ;;  %9872 = vmatprep.subr.bf16.mxu0 %v14640_v58 }
0x1e60   :  { %9833 = vmatprep.subr.bf16.mxu1 %v14643_v60  ;;  %9863 = vmatprep.mubr.bf16.mxu1 %v14797_v4 }
0x1e63   :  { %9834 = vmatpush1.bf16.msra.mxu1 %v14641_v46 }
0x1e64   :  { %9835 = vmatprep.subr.bf16.mxu1 %v14649_v3 }
0x1e65   :  { %13881 = vmatmul.mubr.msk.bf16.vlgmr.msra.gmra.mrb[216].mxu0 %vm119_vm1, %v12505_v22 }
0x1e66   :  { %9873 = vmatpush1.bf16.msra.mxu0 %v14638_v63  ;;  %9904 = vmatprep.mubr.bf16.mxu0 %v14797_v4 }
0x1e67   :  { %9874 = vmatprep.subr.bf16.mxu0 %v14646_v1  ;;  %9836 = vmatpush1.bf16.msra.mxu1 %v14647_v5 }
0x1e68   :  { %12537 = vmatprep.subr.msk.bf16.mxu1 %vm830_vm3, %v12534_v7  ;;  %v14684_v7 = vld [vmem:[%s17692_s25 + $0x93c] ss:$16 sps:$4 sm:$0xff]  }
0x1e6a   :  { %9875 = vmatpush1.bf16.msra.mxu0 %v14644_v2 }
0x1e6b   :  { %9876 = vmatprep.subr.bf16.mxu0 %v14652_v6  ;;  %9838 = vmatpush1.bf16.msra.mxu1 %v9820_v15 }
0x1e6c   :  { %13884 = vmatprep.subr.bf16.mxu1 %v14795_v0 }
0x1e6e   :  { %9877 = vmatpush1.bf16.msra.mxu0 %v14650_v8 }
0x1e6f   :  { %12539 = vmatprep.subr.msk.bf16.mxu0 %vm830_vm3, %v12536_v11  ;;  %v14687_v11 = vld [vmem:[%s17692_s25 + $0x954] ss:$16 sps:$4 sm:$0xff]  }
0x1e72   :  { %9879 = vmatpush1.bf16.msra.mxu0 %v9826_v17  ;;  %v12577_v17 = vld [vmem:[%s17693_s21 + $0x54] sm:$0xf] }
0x1e73   :  { %10063 = vmatprep.subr.bf16.mxu0 %v14659_v18  ;;  %v14682_v18 = vld [vmem:[%s17692_s25 + $0x938] ss:$16 sps:$4 sm:$0xff]  }
0x1f30   :  { %v9633_v19 = vpop.f32.mrb[212].mxu0  ;;  %v9674_v20 = vpop.f32.mrb[200].mxu1 }
0x1f31   :  { %v9681_v34 = vadd.f32 %v9633_v19, %v9449_v43  ;;  %v9683_v35 = vadd.f32 %v9674_v20, %v9451_v44  ;;  %v9635_v21 = vpop.f32.mrb[213].mxu0  ;;  %v9676_v25 = vpop.f32.mrb[201].mxu1  ;;  %v14671_v43 = vld [vmem:[%s17692_s25 + $0x904] ss:$16 sps:$4 sm:$0xff]   ;;  %v14669_v44 = vld [vmem:[%s17692_s25 + $0x900] ss:$16 sps:$4 sm:$0xff]  }
0x1f32   :  { %v9682_v14 = vadd.f32 %v9635_v21, %v9450_v49  ;;  %v9684_v23 = vadd.f32 %v9676_v25, %v9452_v37  ;;  %v9637_v27 = vpop.f32.mrb[214].mxu0  ;;  %v9678_v28 = vpop.f32.mrb[202].mxu1  ;;  %v12555_v49 = vld [vmem:[%s17692_s25 + $0x920] sm:$0x11]  ;;  %v12556_v37 = vld [vmem:[%s17692_s25 + $0x928] sm:$0x11] }
0x1f33   :  { %v9638_v29 = vpop.f32.mrb[215].mxu0  ;;  %v9679_v47 = vpop.f32.mrb[203].mxu1  ;;  %v12570_v51 = vcombine.high %v12555_v49, %v12555_v49  ;;  %v12569_v52 = vcombine.low %v12555_v49, %v12555_v49  ;;  %v12572_v53 = vcombine.high %v12556_v37, %v12556_v37  ;;  %v12571_v54 = vcombine.low %v12556_v37, %v12556_v37  ;;  %v14690_v19 = vld [vmem:[%s17692_s25 + $0x95c] ss:$16 sps:$4 sm:$0xff]   ;;  %v14688_v20 = vld [vmem:[%s17692_s25 + $0x958] ss:$16 sps:$4 sm:$0xff]  }
0x1f34   :  { %v14696_v21 = vld [vmem:[%s17692_s25 + $0x97c] ss:$16 sps:$4 sm:$0xff]   ;;  %v14694_v25 = vld [vmem:[%s17692_s25 + $0x978] ss:$16 sps:$4 sm:$0xff]   ;;  %v14701_v37 = vld [vmem:[%s17692_s25 + $0x9a0] ss:$16 sps:$4 sm:$0xff]  }
0x1f35   :  { %v10052_v12 = vsel %vm830_vm3, %v12569_v52, 0  ;;  %v10058_v55 = vsel %vm830_vm3, %v12571_v54, 0  ;;  %v14707_v54 = vld [vmem:[%s17692_s25 + $0x9c0] ss:$16 sps:$4 sm:$0xff]  }
0x1f38   :  { %v9724_v30 = vpop.f32.mrb[216].mxu0 }
0x1f39   :  { %v9745_v31 = vpack.c.bf16 %v9724_v30, %v9724_v30  ;;  %v13882_v50 = vpop.f32.mrb[217].mxu0 }
0x1f3a   :  { %v9727_v36 = vpop.f32.mrb[218].mxu0  ;;  %v14703_v50 = vld [vmem:[%s17692_s25 + $0x9a4] ss:$16 sps:$4 sm:$0xff]  }
0x1f3b   :  { %v13883_v24 = vpop.f32.mrb[219].mxu0  ;;  %12538 = vmatmul.mubr.msk.bf16.vlgmr.msra.gmra.mrb[204].mxu1 %vm332_vm2, %v9745_v31  ;;  %12540 = vmatmul.mubr.msk.bf16.vlgmr.msra.gmra.mrb[220].mxu0 %vm332_vm2, %v9745_v31 }
0x1f3c   :  { %13885 = vmatpush3.bf16.msra.mxu1 %v16201_v26  ;;  %13886 = vmatprep.mubr.msk.bf16.mxu1 %vm14796_vm0, %v14795_v0 }
0x1f3d   :  { %10064 = vmatpush1.bf16.msra.mxu0 %v14657_v32  ;;  %10104 = vmatprep.subr.bf16.mxu1 %v14662_v33 }
0x1f3e   :  { %10065 = vmatprep.subr.bf16.mxu0 %v14665_v38  ;;  %10095 = vmatprep.mubr.bf16.mxu0 %v14797_v4 }
0x1f41   :  { %10066 = vmatpush1.bf16.msra.mxu0 %v14663_v39 }
0x1f42   :  { %10067 = vmatprep.subr.bf16.mxu0 %v14671_v43 }
0x1f43   :  { %13887 = vmatmul.mubr.msk.bf16.vlgmr.msra.gmra.mrb[208].mxu1 %vm119_vm1, %v12541_v40 }
0x1f44   :  { %10105 = vmatpush1.bf16.msra.mxu1 %v14660_v41  ;;  %10136 = vmatprep.mubr.bf16.mxu1 %v14797_v4 }
0x1f45   :  { %10106 = vmatprep.subr.bf16.mxu1 %v14668_v42  ;;  %10068 = vmatpush1.bf16.msra.mxu0 %v14669_v44 }
0x1f46   :  { %12573 = vmatprep.subr.msk.bf16.mxu0 %vm830_vm3, %v12570_v51  ;;  %v14706_v51 = vld [vmem:[%s17692_s25 + $0x9ac] ss:$16 sps:$4 sm:$0xff]  }
0x1f48   :  { %10107 = vmatpush1.bf16.msra.mxu1 %v14666_v61 }
0x1f49   :  { %10108 = vmatprep.subr.bf16.mxu1 %v14674_v45  ;;  %10070 = vmatpush1.bf16.msra.mxu0 %v10052_v12 }
0x1f4a   :  { %13890 = vmatprep.subr.bf16.mxu0 %v14795_v0 }
0x1f4c   :  { %10109 = vmatpush1.bf16.msra.mxu1 %v14672_v48 }
0x1f4d   :  { %12575 = vmatprep.subr.msk.bf16.mxu1 %vm830_vm3, %v12572_v53  ;;  %v14709_v53 = vld [vmem:[%s17692_s25 + $0x9c4] ss:$16 sps:$4 sm:$0xff]  }
0x1f50   :  { %10111 = vmatpush1.bf16.msra.mxu1 %v10058_v55  ;;  %v12613_v55 = vld [vmem:[%s17693_s21 + $0x58] sm:$0xf] }
0x1f51   :  { %10295 = vmatprep.subr.bf16.mxu1 %v14681_v56  ;;  %v14704_v56 = vld [vmem:[%s17692_s25 + $0x9a8] ss:$16 sps:$4 sm:$0xff]  }
0x200e   :  { %v9865_v57 = vpop.f32.mrb[204].mxu1  ;;  %v9906_v58 = vpop.f32.mrb[220].mxu0 }
0x200f   :  { %v9913_v59 = vadd.f32 %v9865_v57, %v9681_v34  ;;  %v9915_v60 = vadd.f32 %v9906_v58, %v9683_v35  ;;  %v9867_v62 = vpop.f32.mrb[205].mxu1  ;;  %v9908_v46 = vpop.f32.mrb[221].mxu0  ;;  %v14693_v34 = vld [vmem:[%s17692_s25 + $0x974] ss:$16 sps:$4 sm:$0xff]   ;;  %v14691_v35 = vld [vmem:[%s17692_s25 + $0x970] ss:$16 sps:$4 sm:$0xff]  }
0x2010   :  { %v9914_v22 = vadd.f32 %v9867_v62, %v9682_v14  ;;  %v9916_v63 = vadd.f32 %v9908_v46, %v9684_v23  ;;  %v9869_v1 = vpop.f32.mrb[206].mxu1  ;;  %v9910_v2 = vpop.f32.mrb[222].mxu0  ;;  %v12591_v14 = vld [vmem:[%s17692_s25 + $0x990] sm:$0x11]  ;;  %v12592_v23 = vld [vmem:[%s17692_s25 + $0x998] sm:$0x11] }
0x2011   :  { %v9870_v3 = vpop.f32.mrb[207].mxu1  ;;  %v9911_v5 = vpop.f32.mrb[223].mxu0  ;;  %v12606_v27 = vcombine.high %v12591_v14, %v12591_v14  ;;  %v12605_v28 = vcombine.low %v12591_v14, %v12591_v14  ;;  %v12608_v29 = vcombine.high %v12592_v23, %v12592_v23  ;;  %v12607_v30 = vcombine.low %v12592_v23, %v12592_v23  ;;  %v14712_v57 = vld [vmem:[%s17692_s25 + $0x9cc] ss:$16 sps:$4 sm:$0xff]   ;;  %v14710_v58 = vld [vmem:[%s17692_s25 + $0x9c8] ss:$16 sps:$4 sm:$0xff]  }
0x2012   :  { %v14718_v62 = vld [vmem:[%s17692_s25 + $0x9ec] ss:$16 sps:$4 sm:$0xff]   ;;  %v14716_v46 = vld [vmem:[%s17692_s25 + $0x9e8] ss:$16 sps:$4 sm:$0xff]   ;;  %v14723_v23 = vld [vmem:[%s17692_s25 + $0xa10] ss:$16 sps:$4 sm:$0xff]  }
0x2013   :  { %v10284_v47 = vsel %vm830_vm3, %v12605_v28, 0  ;;  %v10290_v31 = vsel %vm830_vm3, %v12607_v30, 0  ;;  %v14729_v30 = vld [vmem:[%s17692_s25 + $0xa30] ss:$16 sps:$4 sm:$0xff]  }
0x2016   :  { %v9956_v6 = vpop.f32.mrb[208].mxu1 }
0x2017   :  { %v9977_v8 = vpack.c.bf16 %v9956_v6, %v9956_v6  ;;  %v13888_v9 = vpop.f32.mrb[209].mxu1 }
0x2018   :  { %v9959_v13 = vpop.f32.mrb[210].mxu1  ;;  %v14725_v9 = vld [vmem:[%s17692_s25 + $0xa14] ss:$16 sps:$4 sm:$0xff]  }
0x2019   :  { %v13889_v15 = vpop.f32.mrb[211].mxu1  ;;  %12574 = vmatmul.mubr.msk.bf16.vlgmr.msra.gmra.mrb[224].mxu0 %vm332_vm2, %v9977_v8  ;;  %12576 = vmatmul.mubr.msk.bf16.vlgmr.msra.gmra.mrb[212].mxu1 %vm332_vm2, %v9977_v8 }
0x201a   :  { %13891 = vmatpush3.bf16.msra.mxu0 %v16201_v26  ;;  %13892 = vmatprep.mubr.msk.bf16.mxu0 %vm14796_vm0, %v14795_v0 }
0x201b   :  { %10296 = vmatpush1.bf16.msra.mxu1 %v14679_v10  ;;  %10336 = vmatprep.subr.bf16.mxu0 %v14684_v7 }
0x201c   :  { %10297 = vmatprep.subr.bf16.mxu1 %v14687_v11  ;;  %10327 = vmatprep.mubr.bf16.mxu1 %v14797_v4 }
0x201f   :  { %10298 = vmatpush1.bf16.msra.mxu1 %v14685_v16 }
0x2020   :  { %10299 = vmatprep.subr.bf16.mxu1 %v14693_v34 }
0x2021   :  { %13893 = vmatmul.mubr.msk.bf16.vlgmr.msra.gmra.mrb[228].mxu0 %vm119_vm1, %v12577_v17 }
0x2022   :  { %10337 = vmatpush1.bf16.msra.mxu0 %v14682_v18  ;;  %10368 = vmatprep.mubr.bf16.mxu0 %v14797_v4 }
0x2023   :  { %10338 = vmatprep.subr.bf16.mxu0 %v14690_v19  ;;  %10300 = vmatpush1.bf16.msra.mxu1 %v14691_v35 }
0x2024   :  { %12609 = vmatprep.subr.msk.bf16.mxu1 %vm830_vm3, %v12606_v27  ;;  %v14728_v27 = vld [vmem:[%s17692_s25 + $0xa1c] ss:$16 sps:$4 sm:$0xff]  }
0x2026   :  { %10339 = vmatpush1.bf16.msra.mxu0 %v14688_v20 }
0x2027   :  { %10340 = vmatprep.subr.bf16.mxu0 %v14696_v21  ;;  %10302 = vmatpush1.bf16.msra.mxu1 %v10284_v47 }
0x2028   :  { %13896 = vmatprep.subr.bf16.mxu1 %v14795_v0 }
0x202a   :  { %10341 = vmatpush1.bf16.msra.mxu0 %v14694_v25 }
0x202b   :  { %12611 = vmatprep.subr.msk.bf16.mxu0 %vm830_vm3, %v12608_v29  ;;  %v14731_v29 = vld [vmem:[%s17692_s25 + $0xa34] ss:$16 sps:$4 sm:$0xff]  }
0x202e   :  { %10343 = vmatpush1.bf16.msra.mxu0 %v10290_v31  ;;  %v12649_v31 = vld [vmem:[%s17693_s21 + $0x5c] sm:$0xf] }
0x202f   :  { %10527 = vmatprep.subr.bf16.mxu0 %v14703_v50  ;;  %v14726_v50 = vld [vmem:[%s17692_s25 + $0xa18] ss:$16 sps:$4 sm:$0xff]  }
0x20ec   :  { %v10097_v32 = vpop.f32.mrb[224].mxu0  ;;  %v10138_v33 = vpop.f32.mrb[212].mxu1 }
0x20ed   :  { %v10145_v36 = vadd.f32 %v10097_v32, %v9913_v59  ;;  %v10147_v38 = vadd.f32 %v10138_v33, %v9915_v60  ;;  %v10099_v24 = vpop.f32.mrb[225].mxu0  ;;  %v10140_v39 = vpop.f32.mrb[213].mxu1  ;;  %v14715_v59 = vld [vmem:[%s17692_s25 + $0x9e4] ss:$16 sps:$4 sm:$0xff]   ;;  %v14713_v60 = vld [vmem:[%s17692_s25 + $0x9e0] ss:$16 sps:$4 sm:$0xff]  }
0x20ee   :  { %v10146_v40 = vadd.f32 %v10099_v24, %v9914_v22  ;;  %v10148_v41 = vadd.f32 %v10140_v39, %v9916_v63  ;;  %v10101_v42 = vpop.f32.mrb[226].mxu0  ;;  %v10142_v61 = vpop.f32.mrb[214].mxu1  ;;  %v12627_v22 = vld [vmem:[%s17692_s25 + $0xa00] sm:$0x11]  ;;  %v12628_v63 = vld [vmem:[%s17692_s25 + $0xa08] sm:$0x11] }
0x20ef   :  { %v10102_v43 = vpop.f32.mrb[227].mxu0  ;;  %v10143_v44 = vpop.f32.mrb[215].mxu1  ;;  %v12642_v1 = vcombine.high %v12627_v22, %v12627_v22  ;;  %v12641_v2 = vcombine.low %v12627_v22, %v12627_v22  ;;  %v12644_v3 = vcombine.high %v12628_v63, %v12628_v63  ;;  %v12643_v6 = vcombine.low %v12628_v63, %v12628_v63  ;;  %v14734_v32 = vld [vmem:[%s17692_s25 + $0xa3c] ss:$16 sps:$4 sm:$0xff]   ;;  %v14732_v33 = vld [vmem:[%s17692_s25 + $0xa38] ss:$16 sps:$4 sm:$0xff]  }
0x20f0   :  { %v14740_v24 = vld [vmem:[%s17692_s25 + $0xa5c] ss:$16 sps:$4 sm:$0xff]   ;;  %v14738_v39 = vld [vmem:[%s17692_s25 + $0xa58] ss:$16 sps:$4 sm:$0xff]   ;;  %v14745_v63 = vld [vmem:[%s17692_s25 + $0xa80] ss:$16 sps:$4 sm:$0xff]  }
0x20f1   :  { %v10516_v5 = vsel %vm830_vm3, %v12641_v2, 0  ;;  %v10522_v8 = vsel %vm830_vm3, %v12643_v6, 0  ;;  %v14751_v6 = vld [vmem:[%s17692_s25 + $0xaa0] ss:$16 sps:$4 sm:$0xff]  }
0x20f4   :  { %v10188_v45 = vpop.f32.mrb[228].mxu0 }
0x20f5   :  { %v10209_v48 = vpack.c.bf16 %v10188_v45, %v10188_v45  ;;  %v13894_v49 = vpop.f32.mrb[229].mxu0 }
0x20f6   :  { %v10191_v52 = vpop.f32.mrb[230].mxu0  ;;  %v14747_v49 = vld [vmem:[%s17692_s25 + $0xa84] ss:$16 sps:$4 sm:$0xff]  }
0x20f7   :  { %v13895_v12 = vpop.f32.mrb[231].mxu0  ;;  %12610 = vmatmul.mubr.msk.bf16.vlgmr.msra.gmra.mrb[216].mxu1 %vm332_vm2, %v10209_v48  ;;  %12612 = vmatmul.mubr.msk.bf16.vlgmr.msra.gmra.mrb[232].mxu0 %vm332_vm2, %v10209_v48 }
0x20f8   :  { %13897 = vmatpush3.bf16.msra.mxu1 %v16201_v26  ;;  %13898 = vmatprep.mubr.msk.bf16.mxu1 %vm14796_vm0, %v14795_v0 }
0x20f9   :  { %10528 = vmatpush1.bf16.msra.mxu0 %v14701_v37  ;;  %10568 = vmatprep.subr.bf16.mxu1 %v14706_v51 }
0x20fa   :  { %10529 = vmatprep.subr.bf16.mxu0 %v14709_v53  ;;  %10559 = vmatprep.mubr.bf16.mxu0 %v14797_v4 }
0x20fd   :  { %10530 = vmatpush1.bf16.msra.mxu0 %v14707_v54 }
0x20fe   :  { %10531 = vmatprep.subr.bf16.mxu0 %v14715_v59 }
0x20ff   :  { %13899 = vmatmul.mubr.msk.bf16.vlgmr.msra.gmra.mrb[220].mxu1 %vm119_vm1, %v12613_v55 }
0x2100   :  { %10569 = vmatpush1.bf16.msra.mxu1 %v14704_v56  ;;  %10600 = vmatprep.mubr.bf16.mxu1 %v14797_v4 }
0x2101   :  { %10570 = vmatprep.subr.bf16.mxu1 %v14712_v57  ;;  %10532 = vmatpush1.bf16.msra.mxu0 %v14713_v60 }
0x2102   :  { %12645 = vmatprep.subr.msk.bf16.mxu0 %vm830_vm3, %v12642_v1  ;;  %v14750_v1 = vld [vmem:[%s17692_s25 + $0xa8c] ss:$16 sps:$4 sm:$0xff]  }
0x2104   :  { %10571 = vmatpush1.bf16.msra.mxu1 %v14710_v58 }
0x2105   :  { %10572 = vmatprep.subr.bf16.mxu1 %v14718_v62  ;;  %10534 = vmatpush1.bf16.msra.mxu0 %v10516_v5 }
0x2106   :  { %13902 = vmatprep.subr.bf16.mxu0 %v14795_v0 }
0x2108   :  { %10573 = vmatpush1.bf16.msra.mxu1 %v14716_v46 }
0x2109   :  { %12647 = vmatprep.subr.msk.bf16.mxu1 %vm830_vm3, %v12644_v3  ;;  %v14753_v3 = vld [vmem:[%s17692_s25 + $0xaa4] ss:$16 sps:$4 sm:$0xff]  }
0x210c   :  { %10575 = vmatpush1.bf16.msra.mxu1 %v10522_v8  ;;  %v12685_v8 = vld [vmem:[%s17693_s21 + $0x60] sm:$0xf] }
0x210d   :  { %10759 = vmatprep.subr.bf16.mxu1 %v14725_v9  ;;  %v14754_v9 = vld [vmem:[%s17692_s25 + $0xaa8] ss:$16 sps:$4 sm:$0xff]  }
0x21ca   :  { %v10329_v10 = vpop.f32.mrb[216].mxu1  ;;  %v10370_v7 = vpop.f32.mrb[232].mxu0 }
0x21cb   :  { %v10377_v13 = vadd.f32 %v10329_v10, %v10145_v36  ;;  %v10379_v11 = vadd.f32 %v10370_v7, %v10147_v38  ;;  %v10331_v15 = vpop.f32.mrb[217].mxu1  ;;  %v10372_v16 = vpop.f32.mrb[233].mxu0  ;;  %v14737_v36 = vld [vmem:[%s17692_s25 + $0xa54] ss:$16 sps:$4 sm:$0xff]   ;;  %v14735_v38 = vld [vmem:[%s17692_s25 + $0xa50] ss:$16 sps:$4 sm:$0xff]  }
0x21cc   :  { %v10378_v17 = vadd.f32 %v10331_v15, %v10146_v40  ;;  %v10380_v18 = vadd.f32 %v10372_v16, %v10148_v41  ;;  %v10333_v19 = vpop.f32.mrb[218].mxu1  ;;  %v10374_v20 = vpop.f32.mrb[234].mxu0  ;;  %v12663_v40 = vld [vmem:[%s17692_s25 + $0xa70] sm:$0x11]  ;;  %v12664_v41 = vld [vmem:[%s17692_s25 + $0xa78] sm:$0x11] }
0x21cd   :  { %v10334_v34 = vpop.f32.mrb[219].mxu1  ;;  %v10375_v35 = vpop.f32.mrb[235].mxu0  ;;  %v12678_v42 = vcombine.high %v12663_v40, %v12663_v40  ;;  %v12677_v61 = vcombine.low %v12663_v40, %v12663_v40  ;;  %v12680_v43 = vcombine.high %v12664_v41, %v12664_v41  ;;  %v12679_v45 = vcombine.low %v12664_v41, %v12664_v41  ;;  %v14759_v10 = vld [vmem:[%s17692_s25 + $0xac4] ss:$16 sps:$4 sm:$0xff]   ;;  %v14762_v7 = vld [vmem:[%s17692_s25 + $0xacc] ss:$16 sps:$4 sm:$0xff]  }
0x21ce   :  { %v12699_v15 = vld [vmem:[%s17692_s25 + $0xae0] sm:$0x11]  ;;  %v33_v40 = vstv %s17694_s27  ;;  %v11081_v41 = vpop.permute.xlu0 %11080 }
0x21cf   :  { %v10748_v44 = vsel %vm830_vm3, %v12677_v61, 0  ;;  %v10754_v48 = vsel %vm830_vm3, %v12679_v45, 0  ;;  %v12714_v16 = vcombine.high %v12699_v15, %v12699_v15  ;;  %v12713_v19 = vcombine.low %v12699_v15, %v12699_v15  ;;  %34 = vst [vmem:[#allocation2] sm:$0x1] %v33_v40 }
0x21d1   :  { %v10980_v34 = vsel %vm830_vm3, %v12713_v19, 0 }
0x21d2   :  { %v10420_v21 = vpop.f32.mrb[220].mxu1 }
0x21d3   :  { %v10441_v25 = vpack.c.bf16 %v10420_v21, %v10420_v21  ;;  %v13900_v14 = vpop.f32.mrb[221].mxu1 }
0x21d4   :  { %v10423_v28 = vpop.f32.mrb[222].mxu1 }
0x21d5   :  { %v13901_v47 = vpop.f32.mrb[223].mxu1  ;;  %12646 = vmatmul.mubr.msk.bf16.vlgmr.msra.gmra.mrb[236].mxu0 %vm332_vm2, %v10441_v25  ;;  %12648 = vmatmul.mubr.msk.bf16.vlgmr.msra.gmra.mrb[224].mxu1 %vm332_vm2, %v10441_v25 }
0x21d6   :  { %13903 = vmatpush3.bf16.msra.mxu0 %v16201_v26  ;;  %13904 = vmatprep.mubr.msk.bf16.mxu0 %vm14796_vm0, %v14795_v0 }
0x21d7   :  { %10760 = vmatpush1.bf16.msra.mxu1 %v14723_v23  ;;  %10800 = vmatprep.subr.bf16.mxu0 %v14728_v27 }
0x21d8   :  { %10761 = vmatprep.subr.bf16.mxu1 %v14731_v29  ;;  %10791 = vmatprep.mubr.bf16.mxu1 %v14797_v4 }
0x21db   :  { %10762 = vmatpush1.bf16.msra.mxu1 %v14729_v30 }
0x21dc   :  { %10763 = vmatprep.subr.bf16.mxu1 %v14737_v36 }
0x21dd   :  { %13905 = vmatmul.mubr.msk.bf16.vlgmr.msra.gmra.mrb[240].mxu0 %vm119_vm1, %v12649_v31 }
0x21de   :  { %10801 = vmatpush1.bf16.msra.mxu0 %v14726_v50  ;;  %10832 = vmatprep.mubr.bf16.mxu0 %v14797_v4 }
0x21df   :  { %10802 = vmatprep.subr.bf16.mxu0 %v14734_v32  ;;  %10764 = vmatpush1.bf16.msra.mxu1 %v14735_v38 }
0x21e0   :  { %12681 = vmatprep.subr.msk.bf16.mxu1 %vm830_vm3, %v12678_v42 }
0x21e2   :  { %10803 = vmatpush1.bf16.msra.mxu0 %v14732_v33 }
0x21e3   :  { %10804 = vmatprep.subr.bf16.mxu0 %v14740_v24  ;;  %10766 = vmatpush1.bf16.msra.mxu1 %v10748_v44 }
0x21e4   :  { %13908 = vmatprep.subr.bf16.mxu1 %v14795_v0 }
0x21e6   :  { %10805 = vmatpush1.bf16.msra.mxu0 %v14738_v39 }
0x21e7   :  { %12683 = vmatprep.subr.msk.bf16.mxu0 %vm830_vm3, %v12680_v43 }
0x21ea   :  { %10807 = vmatpush1.bf16.msra.mxu0 %v10754_v48 }
0x21eb   :  { %10991 = vmatprep.subr.bf16.mxu0 %v14747_v49 }
0x22a8   :  { %v10561_v37 = vpop.f32.mrb[236].mxu0  ;;  %v10602_v51 = vpop.f32.mrb[224].mxu1 }
0x22a9   :  { %v10609_v52 = vadd.f32 %v10561_v37, %v10377_v13  ;;  %v10611_v53 = vadd.f32 %v10602_v51, %v10379_v11  ;;  %v10563_v12 = vpop.f32.mrb[237].mxu0  ;;  %v10604_v54 = vpop.f32.mrb[225].mxu1  ;;  %v14757_v13 = vld [vmem:[%s17692_s25 + $0xac0] ss:$16 sps:$4 sm:$0xff]   ;;  %v14760_v11 = vld [vmem:[%s17692_s25 + $0xac8] ss:$16 sps:$4 sm:$0xff]  }
0x22aa   :  { %v10610_v55 = vadd.f32 %v10563_v12, %v10378_v17  ;;  %v10612_v56 = vadd.f32 %v10604_v54, %v10380_v18  ;;  %v10565_v57 = vpop.f32.mrb[238].mxu0  ;;  %v10606_v58 = vpop.f32.mrb[226].mxu1  ;;  %v12700_v17 = vld [vmem:[%s17692_s25 + $0xae8] sm:$0x11] }
0x22ab   :  { %v10566_v59 = vpop.f32.mrb[239].mxu0  ;;  %v10607_v60 = vpop.f32.mrb[227].mxu1  ;;  %v12716_v18 = vcombine.high %v12700_v17, %v12700_v17  ;;  %v12715_v20 = vcombine.low %v12700_v17, %v12700_v17 }
0x22ad   :  { %v10986_v35 = vsel %vm830_vm3, %v12715_v20, 0 }
0x22b0   :  { %v10652_v62 = vpop.f32.mrb[240].mxu0 }
0x22b1   :  { %v10673_v46 = vpack.c.bf16 %v10652_v62, %v10652_v62  ;;  %v13906_v22 = vpop.f32.mrb[241].mxu0 }
0x22b2   :  { %v10655_v2 = vpop.f32.mrb[242].mxu0 }
0x22b3   :  { %v13907_v5 = vpop.f32.mrb[243].mxu0  ;;  %12682 = vmatmul.mubr.msk.bf16.vlgmr.msra.gmra.mrb[228].mxu1 %vm332_vm2, %v10673_v46  ;;  %12684 = vmatmul.mubr.msk.bf16.vlgmr.msra.gmra.mrb[244].mxu0 %vm332_vm2, %v10673_v46  ;;  %v12721_v2 = vld [vmem:[#allocation2] ss:$0 sm:$0xff] }
0x22b4   :  { %13909 = vmatpush3.bf16.msra.mxu1 %v16201_v26  ;;  %13910 = vmatprep.mubr.msk.bf16.mxu1 %vm14796_vm0, %v14795_v0  ;;  %v14748_v26 = vld [vmem:[%s17692_s25 + $0xa88] ss:$16 sps:$4 sm:$0xff]   ;;  %v14756_v0 = vld [vmem:[%s17692_s25 + $0xaac] ss:$16 sps:$4 sm:$0xff]  }
0x22b5   :  { %11032 = vmatprep.subr.bf16.mxu1 %v14750_v1  ;;  %10992 = vmatpush1.bf16.msra.mxu0 %v14745_v63  ;;  %v11092_v1 = vld [vmem:[%s17695_s24] sm:$0xff] }
0x22b6   :  { %10993 = vmatprep.subr.bf16.mxu0 %v14753_v3  ;;  %11023 = vmatprep.mubr.bf16.mxu0 %v14797_v4 }
0x22b9   :  { %10994 = vmatpush1.bf16.msra.mxu0 %v14751_v6 }
0x22ba   :  { %10995 = vmatprep.subr.bf16.mxu0 %v14759_v10 }
0x22bb   :  { %13911 = vmatmul.mubr.msk.bf16.vlgmr.msra.gmra.mrb[232].mxu1 %vm119_vm1, %v12685_v8 }
0x22bc   :  { %11033 = vmatpush1.bf16.msra.mxu1 %v14748_v26  ;;  %11064 = vmatprep.mubr.bf16.mxu1 %v14797_v4 }
0x22bd   :  { %11034 = vmatprep.subr.bf16.mxu1 %v14756_v0  ;;  %10996 = vmatpush1.bf16.msra.mxu0 %v14757_v13 }
0x22be   :  { %12717 = vmatprep.subr.msk.bf16.mxu0 %vm830_vm3, %v12714_v16 }
0x22c0   :  { %11035 = vmatpush1.bf16.msra.mxu1 %v14754_v9 }
0x22c1   :  { %11036 = vmatprep.subr.bf16.mxu1 %v14762_v7  ;;  %10998 = vmatpush1.bf16.msra.mxu0 %v10980_v34 }
0x22c4   :  { %11037 = vmatpush1.bf16.msra.mxu1 %v14760_v11 }
0x22c5   :  { %12719 = vmatprep.subr.msk.bf16.mxu1 %vm830_vm3, %v12716_v18  ;;  %v11091_v18 = vld [vmem:[%s17696_s23] sm:$0xff] }
0x22c8   :  { %11039 = vmatpush1.bf16.msra.mxu1 %v10986_v35 }
0x2386   :  { %v10793_v21 = vpop.f32.mrb[228].mxu1  ;;  %v10834_v25 = vpop.f32.mrb[244].mxu0 }
0x2387   :  { %v10841_v14 = vadd.f32 %v10793_v21, %v10609_v52  ;;  %v10843_v23 = vadd.f32 %v10834_v25, %v10611_v53  ;;  %v10795_v27 = vpop.f32.mrb[229].mxu1  ;;  %v10836_v28 = vpop.f32.mrb[245].mxu0 }
0x2388   :  { %v10842_v29 = vadd.f32 %v10795_v27, %v10610_v55  ;;  %v10844_v47 = vadd.f32 %v10836_v28, %v10612_v56  ;;  %v10797_v30 = vpop.f32.mrb[230].mxu1  ;;  %v10838_v31 = vpop.f32.mrb[246].mxu0 }
0x2389   :  { %v10798_v50 = vpop.f32.mrb[231].mxu1  ;;  %v10839_v32 = vpop.f32.mrb[247].mxu0 }
0x238e   :  { %v10884_v33 = vpop.f32.mrb[232].mxu1 }
0x238f   :  { %v10905_v36 = vpack.c.bf16 %v10884_v33, %v10884_v33  ;;  %v13912_v38 = vpop.f32.mrb[233].mxu1 }
0x2390   :  { %v10887_v24 = vpop.f32.mrb[234].mxu1 }
0x2391   :  { %v13913_v39 = vpop.f32.mrb[235].mxu1  ;;  %12718 = vmatmul.mubr.msk.bf16.vlgmr.msra.gmra.mrb[248].mxu0 %vm332_vm2, %v10905_v36  ;;  %12720 = vmatmul.mubr.msk.bf16.vlgmr.msra.gmra.mrb[236].mxu1 %vm332_vm2, %v10905_v36 }
0x2392   :  { %11203 = vmatprep.mubr.bf16.mxu0 %v14797_v4  ;;  %11244 = vmatprep.mubr.bf16.mxu1 %v14797_v4 }
0x2464   :  { %v11025_v42 = vpop.f32.mrb[248].mxu0  ;;  %v11066_v61 = vpop.f32.mrb[236].mxu1 }
0x2465   :  { %v11073_v43 = vadd.f32 %v11025_v42, %v10841_v14  ;;  %v11075_v44 = vadd.f32 %v11066_v61, %v10843_v23  ;;  %v11027_v45 = vpop.f32.mrb[249].mxu0  ;;  %v11068_v48 = vpop.f32.mrb[237].mxu1  ;;  %v11141_v61 = vld [vmem:[%s17697_s26] sm:$0x3] }
0x2466   :  { %v11074_v49 = vadd.f32 %v11027_v45, %v10842_v29  ;;  %v11076_v37 = vadd.f32 %v11068_v48, %v10844_v47  ;;  %v11029_v51 = vpop.f32.mrb[250].mxu0  ;;  %v11070_v52 = vpop.f32.mrb[238].mxu1 }
0x2467   :  { %v11083_v53 = vadd.f32 %v11081_v41, %v11073_v43  ;;  %v11030_v12 = vpop.f32.mrb[251].mxu0  ;;  %v11071_v54 = vpop.f32.mrb[239].mxu1  ;;  %v11085_v4 = vadd.f32 %v11081_v41, %v11075_v44 }
0x2468   :  { %v11084_v55 = vadd.f32 %v11081_v41, %v11074_v49  ;;  %v11086_v56 = vadd.f32 %v11081_v41, %v11076_v37 }
0x2469   :  { %v11087_v57 = vmax.f32 %v11083_v53, 0.0  ;;  %v11089_v60 = vmax.f32 %v11085_v4, 0.0 }
0x246a   :  { %v11088_v58 = vmax.f32 %v11084_v55, 0.0  ;;  %v11090_v59 = vmax.f32 %v11086_v56, 0.0 }
0x246c   :  { %v11093_v62 = vadd.f32 %v11088_v58, %v11087_v57  ;;  %v11096_v22 = vsel %vm11095_vm7, %v11090_v59, 0.0 }
0x246e   :  { %v11094_v46 = vadd.f32 %v11093_v62, %v11089_v60 }
0x2470   :  { %v11097_v63 = vadd.f32 %v11096_v22, %v11094_v46 }
0x2472   :  { %11098 = vadd.xlane.f32.xlu1 %v11097_v63 }
0x2483   :  { %11134 = vperm.xlu1 %14058, %v11092_v1  }
0x2487   :  { %11153 = vperm.xlu1 %14058, %v12721_v2  }
0x24ff   :  { %v11099_v3 = vpop.xlane.xlu1 %11098 }
0x2500   :  { %v11101_v5 = vmul.f32 0.0022222223, %v11099_v3 }
0x2502   :  { %v11102_v6 = vsub.f32 %v11087_v57, %v11101_v5  ;;  %v11103_v8 = vsub.f32 %v11088_v58, %v11101_v5  ;;  %v11104_v26 = vsub.f32 %v11089_v60, %v11101_v5  ;;  %v11105_v0 = vsub.f32 %v11090_v59, %v11101_v5 }
0x2503   :  { %v11135_v31 = vpop.permute.xlu1 %11134 }
0x2504   :  { %v11106_v9 = vmul.f32 %v11102_v6, %v11102_v6  ;;  %v11107_v10 = vmul.f32 %v11103_v8, %v11103_v8  ;;  %v11109_v7 = vmul.f32 %v11105_v0, %v11105_v0  ;;  %v11108_v13 = vmul.f32 %v11104_v26, %v11104_v26 }
0x2506   :  { %v11110_v11 = vadd.f32 %v11107_v10, %v11106_v9  ;;  %v11112_v16 = vsel %vm11095_vm7, %v11109_v7, 0.0 }
0x2507   :  { %v11154_v43 = vpop.permute.xlu1 %11153 }
0x2508   :  { %v11111_v15 = vadd.f32 %v11110_v11, %v11108_v13 }
0x250a   :  { %v11113_v17 = vadd.f32 %v11112_v16, %v11111_v15 }
0x250c   :  { %11114 = vadd.xlane.f32.xlu0 %v11113_v17 }
0x2522   :  { %11125 = vperm.xlu0 %14057, %v11091_v18  }
0x2599   :  { %v11115_v19 = vpop.xlane.xlu0 %11114 }
0x259a   :  { %v11116_v20 = vmul.f32 0.0022222223, %v11115_v19 }
0x259c   :  { %v11117_v34 = vadd.f32 1e-05, %v11116_v20 }
0x259e   :  { %14777 = vrsqrt.f32 %v11117_v34 }
0x25a1   :  { %v11126_v27 = vpop.permute.xlu0 %11125 }
0x25a8   :  { %v14778_v35 = vpop.eup %14777 }
0x25a9   :  { %v11119_v21 = vmul.f32 %v14778_v35, %v11102_v6  ;;  %v11120_v25 = vmul.f32 %v14778_v35, %v11103_v8  ;;  %v11121_v14 = vmul.f32 %v14778_v35, %v11104_v26  ;;  %v11122_v23 = vmul.f32 %v14778_v35, %v11105_v0 }
0x25ab   :  { %v11128_v28 = vmul.f32 %v11126_v27, %v11119_v21  ;;  %v11129_v29 = vmul.f32 %v11126_v27, %v11120_v25  ;;  %v11130_v47 = vmul.f32 %v11126_v27, %v11121_v14  ;;  %v11131_v30 = vmul.f32 %v11126_v27, %v11122_v23 }
0x25ad   :  { %v11137_v50 = vadd.f32 %v11135_v31, %v11128_v28  ;;  %v11138_v32 = vadd.f32 %v11135_v31, %v11129_v29  ;;  %v11139_v33 = vadd.f32 %v11135_v31, %v11130_v47  ;;  %v11140_v36 = vadd.f32 %v11135_v31, %v11131_v30 }
0x25af   :  { %v11143_v38 = vpack.c.bf16 %v11138_v32, %v11138_v32  ;;  %v11145_v24 = vpack.c.bf16 %v11140_v36, %v11140_v36  ;;  %v11142_v39 = vpack.c.bf16 %v11137_v50, %v11137_v50  ;;  %v11144_v40 = vpack.c.bf16 %v11139_v33, %v11139_v33 }
0x25b1   :  { %12722 = vmatprep.subr.msk.bf16.mxu0 %vm3490_vm5, %v11143_v38  ;;  %12724 = vmatprep.subr.msk.bf16.mxu1 %vm3490_vm5, %v11145_v24  ;;  %v11160_v41 = vsel %vm3490_vm5, %v11142_v39, 0  ;;  %v11166_v42 = vsel %vm3490_vm5, %v11144_v40, 0 }
0x25b2   :  { %11172 = vmatpush1.bf16.msra.mxu0 %v11160_v41  ;;  %11213 = vmatpush1.bf16.msra.mxu1 %v11166_v42 }
0x25b5   :  { %12723 = vmatmul.mubr.msk.bf16.vlgmr.msra.gmra.mrb[252].mxu0 %vm3458_vm4, %v11141_v61  ;;  %12725 = vmatmul.mubr.msk.bf16.vlgmr.msra.gmra.mrb[240].mxu1 %vm3458_vm4, %v11141_v61 }
0x2688   :  { %v11205_v44 = vpop.f32.mrb[252].mxu0  ;;  %v11246_v45 = vpop.f32.mrb[240].mxu1 }
0x2689   :  { %v11206_v48 = vadd.f32 %v11205_v44, %v11154_v43  ;;  %v11247_v49 = vadd.f32 %v11246_v45, %v11154_v43  ;;  %v11207_v37 = vpop.f32.mrb[253].mxu0  ;;  %v11248_v51 = vpop.f32.mrb[241].mxu1 }
0x268a   :  { %v11208_v52 = vadd.f32 %v11207_v37, %v11154_v43  ;;  %v11249_v53 = vadd.f32 %v11248_v51, %v11154_v43  ;;  %v11209_v12 = vpop.f32.mrb[254].mxu0  ;;  %v11250_v54 = vpop.f32.mrb[242].mxu1 }
0x268b   :  { %v11253_v4 = vsub.f32 0.0, %v11206_v48  ;;  %v11255_v55 = vsub.f32 0.0, %v11247_v49  ;;  %v11210_v56 = vpop.f32.mrb[255].mxu0  ;;  %v11251_v57 = vpop.f32.mrb[243].mxu1 }
0x268c   :  { %v11254_v58 = vsub.f32 0.0, %v11208_v52  ;;  %v11256_v59 = vsub.f32 0.0, %v11249_v53 }
0x268d   :  { %v11257_v60 = vmul.f32 1.442695, %v11253_v4  ;;  %v11261_v62 = vmul.f32 1.442695, %v11255_v55 }
0x268e   :  { %v11259_v46 = vmul.f32 1.442695, %v11254_v58  ;;  %v11263_v22 = vmul.f32 1.442695, %v11256_v59 }
0x268f   :  { %14779 = vpow2.f32 %v11257_v60 }
0x2690   :  { %14781 = vpow2.f32 %v11261_v62 }
0x2691   :  { %14783 = vpow2.f32 %v11259_v46 }
0x2692   :  { %14785 = vpow2.f32 %v11263_v22 }
0x2699   :  { %v14780_v63 = vpop.eup %14779 }
0x269a   :  { %v14782_v1 = vpop.eup %14781  ;;  %v11265_v2 = vadd.f32 1.0, %v14780_v63 }
0x269b   :  { %v14784_v3 = vpop.eup %14783  ;;  %v11267_v5 = vadd.f32 1.0, %v14782_v1 }
0x269c   :  { %v14786_v6 = vpop.eup %14785  ;;  %14787 = vrcp.f32 %v11265_v2  ;;  %v11266_v8 = vadd.f32 1.0, %v14784_v3 }
0x269d   :  { %14789 = vrcp.f32 %v11267_v5  ;;  %v11268_v26 = vadd.f32 1.0, %v14786_v6 }
0x269e   :  { %14791 = vrcp.f32 %v11266_v8 }
0x269f   :  { %14793 = vrcp.f32 %v11268_v26 }
0x26a6   :  { %v14788_v0 = vpop.eup %14787 }
0x26a7   :  { %v14790_v9 = vpop.eup %14789  ;;  %v11273_v10 = vmax.f32 %v14788_v0, 0.0 }
0x26a8   :  { %v14792_v7 = vpop.eup %14791  ;;  %v11275_v13 = vmax.f32 %v14790_v9, 0.0 }
0x26a9   :  { %v14794_v11 = vpop.eup %14793  ;;  %v11277_v15 = vmin.f32 %v11273_v10, 1.0  ;;  %v11274_v16 = vmax.f32 %v14792_v7, 0.0 }
0x26aa   :  { %v11279_v17 = vmin.f32 %v11275_v13, 1.0  ;;  %v11276_v18 = vmax.f32 %v14794_v11, 0.0 }
0x26ab   :  { %v11278_v19 = vmin.f32 %v11274_v16, 1.0 }
0x26ac   :  { %v11280_v20 = vmin.f32 %v11276_v18, 1.0 }
0x26ad   :  { %v11285_v34 = vcombine.low %v11277_v15, %v11278_v19 }
0x26ae   :  { %v11286_v35 = vcombine.low %v11279_v17, %v11280_v20 }
0x26af   :  { %11289 = vst [vmem:[%s17698_s28] sm:$0xff] %v11285_v34 }
0x26b0   :  { %11292 = vst.msk [vmem:[%s17698_s28 + $0x8] sm:$0xff] %vm11291_vm9, %v11286_v35 }

</bundles_post_ra>
